<compile_context>
chip_gen: v5e
topology: v5e:2x2
jax: 0.10.0
libtpu: 0.0.40
codegen_flags: <defaults>
</compile_context>

<pallas_src>
import numpy as np

import jax
import jax.numpy as jnp
from jax.experimental import pallas as pl
from jax.experimental.pallas import tpu as pltpu

_BN_EPS = 1e-5


# ---------------------------------------------------------------------------
# Fused whole-layer kernel
# ---------------------------------------------------------------------------
def _bn_train(acc, gamma, beta):
    """Training-mode BatchNorm folded to one scale/shift pass.

    acc:   (M, C) f32 pre-BN conv output (M = N*OH*OW is the statistics axis)
    gamma: (1, C) f32,  beta: (1, C) f32
    """
    inv_m = 1.0 / acc.shape[0]
    s1 = jnp.sum(acc, axis=0, keepdims=True)
    s2 = jnp.sum(acc * acc, axis=0, keepdims=True)
    mean = s1 * inv_m
    var = jnp.maximum(s2 * inv_m - mean * mean, 0.0)   # biased var (PyTorch fwd)
    scale = gamma * jax.lax.rsqrt(var + _BN_EPS)
    shift = beta - mean * scale
    return acc * scale + shift


def _resnet2_kernel(p0_ref, w0_ref, g0_ref, b0_ref,
                    s_ref, w_ref, g_ref, b_ref, o_ref):
    f32 = jnp.float32
    bf16 = jnp.bfloat16
    cout = w_ref.shape[-1]            # 128
    n_rest = w_ref.shape[0]           # 7 remaining 3x3 stride-1 convs
    m = o_ref.shape[0]                # N*OH*OW rows (statistics / matmul M)

    # --- SpecialBlock: conv1 (3x3, stride 2) and the 1x1 stride-2 identity
    #     conv fused into a single (M, 9*Cin) @ (9*Cin, 2*Cout) MXU pass.
    acc0 = jnp.dot(p0_ref[...], w0_ref[...], preferred_element_type=f32)
    a0 = _bn_train(acc0, g0_ref[...], b0_ref[...])      # per-channel stats
    x = jnp.maximum(a0[:, :cout], 0.0)                  # relu(bn1(conv1(x)))
    identity = a0[:, cout:]                             # change_channel branch

    def conv3x3_bn(act, idx):
        """3x3 stride-1 pad-1 conv (+ train-mode BN) in two MXU matmuls."""
        xb = act.astype(bf16)
        # (1) all 9 zero-padded tap shifts at once: S_all is a 0/1 selection
        #     matrix, so the f32 result and its bf16 round-trip are exact.
        sh = jnp.dot(s_ref[...], xb,
                     preferred_element_type=f32).astype(bf16)       # (9M, C)
        # (2) lane-dense im2col patches (aligned 32-row slices, 128-lane
        #     blocks -> pure tile placement) then one deep-K conv matmul.
        patches = jnp.concatenate(
            [sh[t * m:(t + 1) * m] for t in range(9)], axis=-1)     # (M, 9C)
        acc = jnp.dot(patches, w_ref[idx], preferred_element_type=f32)
        return _bn_train(acc, g_ref[idx:idx + 1, :], b_ref[idx:idx + 1, :])

    # --- SpecialBlock conv2 + residual (identity) + relu
    x = jnp.maximum(conv3x3_bn(x, 0) + identity, 0.0)

    # --- 3 x CommonBlock (all activations stay on-chip)
    for blk in range((n_rest - 1) // 2):
        t1 = jnp.maximum(conv3x3_bn(x, 1 + 2 * blk), 0.0)
        x = jnp.maximum(conv3x3_bn(t1, 2 + 2 * blk) + x, 0.0)

    o_ref[...] = x.astype(o_ref.dtype)


def _full_spec(arr):
    nd = arr.ndim
    return pl.BlockSpec(arr.shape, lambda i, _nd=nd: (0,) * _nd)


# ---------------------------------------------------------------------------
# Host-side parameter packing / constants
# ---------------------------------------------------------------------------
def _shift_matrices(n, h, w):
    """S_all[t*M + r, r'] applies tap (kh, kw) = (t//3, t%3) of a 3x3 s=1 p=1
    conv to a row-major-(n, h, w) flattened (M, C) activation, with zero fill
    at the image borders.  Returned stacked as a single (9*M, M) bf16 matrix
    so all 9 shifted copies come out of one MXU matmul."""
    m = n * h * w
    s = np.zeros((9, m, m), np.float32)
    for kh in range(3):
        for kw in range(3):
            t = kh * 3 + kw
            dh, dw = kh - 1, kw - 1
            for b in range(n):
                for i in range(h):
                    for j in range(w):
                        ii, jj = i + dh, j + dw
                        if 0 <= ii < h and 0 <= jj < w:
                            s[t, (b * h + i) * w + j, (b * h + ii) * w + jj] = 1.0
    return jnp.asarray(s.reshape(9 * m, m), jnp.bfloat16)


def _he(key, shape, fan_in):
    return jax.random.normal(key, shape, jnp.float32) * (2.0 / fan_in) ** 0.5


def init_params(key):
    """Synthetic weights matching the PyTorch module's structure.

    3x3 weights are stored per-tap as (9, Cin, Cout) with tap = kh*3 + kw;
    the 1x1 identity weight as (Cin, Cout).  BN gamma=1 / beta=0 (default
    nn.BatchNorm2d init)."""
    keys = jax.random.split(key, 16)
    ki = iter(keys)

    def bn(c):
        return jnp.ones((c,), jnp.float32), jnp.zeros((c,), jnp.float32)

    params = []
    g_id, b_id = bn(128)
    g1, b1 = bn(128)
    g2, b2 = bn(128)
    params.append(dict(
        w_id=_he(next(ki), (64, 128), 64), g_id=g_id, b_id=b_id,
        w1=_he(next(ki), (9, 64, 128), 9 * 64), g1=g1, b1=b1,
        w2=_he(next(ki), (9, 128, 128), 9 * 128), g2=g2, b2=b2,
    ))
    for _ in range(3):
        g1, b1 = bn(128)
        g2, b2 = bn(128)
        params.append(dict(
            w1=_he(next(ki), (9, 128, 128), 9 * 128), g1=g1, b1=b1,
            w2=_he(next(ki), (9, 128, 128), 9 * 128), g2=g2, b2=b2,
        ))
    return params


def pack_params(params, n, h, w):
    sp = params[0]
    cin = sp["w1"].shape[1]       # 64
    cout = sp["w1"].shape[2]      # 128

    # Combined weight [SpecialBlock.conv1 | change_channel 1x1 conv]: the 1x1
    # stride-2 conv reads exactly the centre tap (kh=kw=1) of the 3x3 stride-2
    # pad-1 patches, so its weight occupies rows [4*cin:5*cin] of the identity
    # half (columns [cout:2*cout]).
    w0 = jnp.zeros((9 * cin, 2 * cout), jnp.float32)
    w0 = w0.at[:, :cout].set(sp["w1"].reshape(9 * cin, cout))
    w0 = w0.at[4 * cin:5 * cin, cout:].set(sp["w_id"])

    g0 = jnp.concatenate([sp["g1"], sp["g_id"]]).reshape(1, 2 * cout)
    b0 = jnp.concatenate([sp["b1"], sp["b_id"]]).reshape(1, 2 * cout)

    w_list, g_list, b_list = [sp["w2"]], [sp["g2"]], [sp["b2"]]
    for p in params[1:]:
        w_list += [p["w1"], p["w2"]]
        g_list += [p["g1"], p["g2"]]
        b_list += [p["b1"], p["b2"]]

    # (9, Cin, Cout) -> (9*Cin, Cout), tap-major / cin-minor, matching the
    # in-kernel patches layout so each conv is a single deep-K matmul.
    w_rest = jnp.stack([wt.reshape(9 * cout, cout) for wt in w_list])

    oh, ow = (h - 1) // 2 + 1, (w - 1) // 2 + 1
    return dict(
        w0=w0.astype(jnp.bfloat16),                      # (576, 256) bf16
        g0=g0, b0=b0,                                    # (1, 256) f32
        S=_shift_matrices(n, oh, ow),                    # (9*M, M) bf16
        w_rest=w_rest.astype(jnp.bfloat16),              # (7, 1152, 128) bf16
        g_rest=jnp.stack(g_list),                        # (7, 128) f32
        b_rest=jnp.stack(b_list),                        # (7, 128) f32
    )


# ---------------------------------------------------------------------------
# ResNet2 forward
# ---------------------------------------------------------------------------
@jax.jit
def resnet2_forward(x_nchw, packed):
    x = jnp.transpose(x_nchw, (0, 2, 3, 1)).astype(jnp.float32)   # NCHW -> NHWC
    n, h, w, cin = x.shape
    oh, ow = (h - 1) // 2 + 1, (w - 1) // 2 + 1                   # 3x3, s=2, p=1
    m = n * oh * ow
    cout = packed["w_rest"].shape[-1]

    # One-time im2col for the single stride-2 conv at the layer input
    # (tap-major columns, Cin minor).  The centre tap doubles as the 1x1
    # identity conv's input, so no separate identity patch matrix is needed.
    xp = jnp.pad(x, ((0, 0), (1, 1), (1, 1), (0, 0)))
    taps = [xp[:, kh:kh + 2 * oh:2, kw:kw + 2 * ow:2, :]
            for kh in range(3) for kw in range(3)]
    patches0 = jnp.concatenate(taps, axis=-1).reshape(m, 9 * cin)
    patches0 = patches0.astype(jnp.bfloat16)

    args = (patches0, packed["w0"], packed["g0"], packed["b0"],
            packed["S"], packed["w_rest"], packed["g_rest"], packed["b_rest"])

    out_flat = pl.pallas_call(
        _resnet2_kernel,
        grid=(1,),
        in_specs=[_full_spec(a) for a in args],
        out_specs=pl.BlockSpec((m, cout), lambda i: (0, 0)),
        out_shape=jax.ShapeDtypeStruct((m, cout), jnp.float32),
        compiler_params=pltpu.CompilerParams(
            dimension_semantics=("arbitrary",)),
    )(*args)

    out = out_flat.reshape(n, oh, ow, cout)
    return jnp.transpose(out, (0, 3, 1, 2))                       # NHWC -> NCHW


if __name__ == "__main__":
    key = jax.random.PRNGKey(0)
    k_x, k_p = jax.random.split(key)

    # layer2 of ResNet-18 is fixed to 64 -> 128 channels; stride 2 halves H/W.
    x = jax.random.normal(k_x, (2, 64, 8, 8), jnp.float32)        # NCHW
    params = init_params(k_p)
    packed = pack_params(params, n=2, h=8, w=8)

    out = resnet2_forward(x, packed)
    out = jax.block_until_ready(out)

    assert out.shape == (2, 128, 4, 4), out.shape
    assert bool(jnp.all(jnp.isfinite(out)))
    print("KERNEL_OK")
</pallas_src>

<mosaic_0001>
module attributes {stable_mosaic.version = 11 : i64} {
  func.func @_resnet2_kernel(%arg0: i32, %arg1: memref<32x576xbf16, #tpu.memory_space<vmem>>, %arg2: memref<576x256xbf16, #tpu.memory_space<vmem>>, %arg3: memref<1x256xf32, #tpu.memory_space<vmem>>, %arg4: memref<1x256xf32, #tpu.memory_space<vmem>>, %arg5: memref<288x32xbf16, #tpu.memory_space<vmem>>, %arg6: memref<7x1152x128xbf16, #tpu.memory_space<vmem>>, %arg7: memref<7x128xf32, #tpu.memory_space<vmem>>, %arg8: memref<7x128xf32, #tpu.memory_space<vmem>>, %arg9: memref<32x128xf32, #tpu.memory_space<vmem>>) attributes {dimension_semantics = [#tpu.dimension_semantics<arbitrary>], iteration_bounds = array<i64: 1>, scalar_prefetch = 0 : i64, scratch_operands = 0 : i64, tpu.core_type = #tpu.core_type<tc>, window_params = [{pipeline_mode = #tpu.pipeline_mode<synchronous>, transform_indices = @transform_0, window_bounds = array<i64: 32, 576>}, {pipeline_mode = #tpu.pipeline_mode<synchronous>, transform_indices = @transform_1, window_bounds = array<i64: 576, 256>}, {pipeline_mode = #tpu.pipeline_mode<synchronous>, transform_indices = @transform_2, window_bounds = array<i64: 1, 256>}, {pipeline_mode = #tpu.pipeline_mode<synchronous>, transform_indices = @transform_3, window_bounds = array<i64: 1, 256>}, {pipeline_mode = #tpu.pipeline_mode<synchronous>, transform_indices = @transform_4, window_bounds = array<i64: 288, 32>}, {pipeline_mode = #tpu.pipeline_mode<synchronous>, transform_indices = @transform_5, window_bounds = array<i64: 7, 1152, 128>}, {pipeline_mode = #tpu.pipeline_mode<synchronous>, transform_indices = @transform_6, window_bounds = array<i64: 7, 128>}, {pipeline_mode = #tpu.pipeline_mode<synchronous>, transform_indices = @transform_7, window_bounds = array<i64: 7, 128>}, {pipeline_mode = #tpu.pipeline_mode<synchronous>, transform_indices = @transform_8, window_bounds = array<i64: 32, 128>}]} {
    %c0 = arith.constant 0 : index
    %c0_0 = arith.constant 0 : index
    %0 = vector.load %arg1[%c0, %c0_0] : memref<32x576xbf16, #tpu.memory_space<vmem>>, vector<32x576xbf16>
    %c0_1 = arith.constant 0 : index
    %c0_2 = arith.constant 0 : index
    %1 = vector.load %arg2[%c0_1, %c0_2] : memref<576x256xbf16, #tpu.memory_space<vmem>>, vector<576x256xbf16>
    %cst = arith.constant dense<0.000000e+00> : vector<32x256xf32>
    %2 = tpu.matmul %0, %1, %cst {dimension_numbers = #tpu.dot_dimension_numbers<[1], [0], [0], [1], [0, 0, 1, 1], [], []>} : vector<32x576xbf16>, vector<576x256xbf16>, vector<32x256xf32> -> vector<32x256xf32>
    %c0_3 = arith.constant 0 : index
    %c0_4 = arith.constant 0 : index
    %3 = vector.load %arg3[%c0_3, %c0_4] : memref<1x256xf32, #tpu.memory_space<vmem>>, vector<1x256xf32>
    %c0_5 = arith.constant 0 : index
    %c0_6 = arith.constant 0 : index
    %4 = vector.load %arg4[%c0_5, %c0_6] : memref<1x256xf32, #tpu.memory_space<vmem>>, vector<1x256xf32>
    %cst_7 = arith.constant dense<0.000000e+00> : vector<256xf32>
    %5 = vector.multi_reduction <add>, %2, %cst_7 [0] : vector<32x256xf32> to vector<256xf32>
    %6 = vector.shape_cast %5 : vector<256xf32> to vector<1x256xf32>
    %7 = arith.mulf %2, %2 : vector<32x256xf32>
    %cst_8 = arith.constant dense<0.000000e+00> : vector<256xf32>
    %8 = vector.multi_reduction <add>, %7, %cst_8 [0] : vector<32x256xf32> to vector<256xf32>
    %9 = vector.shape_cast %8 : vector<256xf32> to vector<1x256xf32>
    %cst_9 = arith.constant 3.125000e-02 : f32
    %10 = vector.broadcast %cst_9 : f32 to vector<1x256xf32>
    %11 = arith.mulf %6, %10 : vector<1x256xf32>
    %cst_10 = arith.constant 3.125000e-02 : f32
    %12 = vector.broadcast %cst_10 : f32 to vector<1x256xf32>
    %13 = arith.mulf %9, %12 : vector<1x256xf32>
    %14 = arith.mulf %11, %11 : vector<1x256xf32>
    %15 = arith.subf %13, %14 : vector<1x256xf32>
    %cst_11 = arith.constant 0.000000e+00 : f32
    %16 = vector.broadcast %cst_11 : f32 to vector<1x256xf32>
    %17 = arith.maximumf %15, %16 : vector<1x256xf32>
    %cst_12 = arith.constant 9.99999974E-6 : f32
    %18 = vector.broadcast %cst_12 : f32 to vector<1x256xf32>
    %19 = arith.addf %17, %18 : vector<1x256xf32>
    %20 = math.rsqrt %19 : vector<1x256xf32>
    %21 = arith.mulf %3, %20 : vector<1x256xf32>
    %22 = arith.mulf %11, %21 : vector<1x256xf32>
    %23 = arith.subf %4, %22 : vector<1x256xf32>
    %24 = vector.broadcast %21 : vector<1x256xf32> to vector<32x256xf32>
    %25 = arith.mulf %2, %24 : vector<32x256xf32>
    %26 = vector.broadcast %23 : vector<1x256xf32> to vector<32x256xf32>
    %27 = arith.addf %25, %26 : vector<32x256xf32>
    %28 = vector.extract_strided_slice %27 {offsets = [0, 0], sizes = [32, 128], strides = [1, 1]} : vector<32x256xf32> to vector<32x128xf32>
    %cst_13 = arith.constant 0.000000e+00 : f32
    %29 = vector.broadcast %cst_13 : f32 to vector<32x128xf32>
    %30 = arith.maximumf %28, %29 : vector<32x128xf32>
    %31 = vector.extract_strided_slice %27 {offsets = [0, 128], sizes = [32, 128], strides = [1, 1]} : vector<32x256xf32> to vector<32x128xf32>
    %32 = arith.truncf %30 : vector<32x128xf32> to vector<32x128xbf16>
    %c0_14 = arith.constant 0 : index
    %c0_15 = arith.constant 0 : index
    %33 = vector.load %arg5[%c0_14, %c0_15] : memref<288x32xbf16, #tpu.memory_space<vmem>>, vector<288x32xbf16>
    %cst_16 = arith.constant dense<0.000000e+00> : vector<288x128xf32>
    %34 = tpu.matmul %33, %32, %cst_16 {dimension_numbers = #tpu.dot_dimension_numbers<[1], [0], [0], [1], [0, 0, 1, 1], [], []>} : vector<288x32xbf16>, vector<32x128xbf16>, vector<288x128xf32> -> vector<288x128xf32>
    %35 = arith.truncf %34 : vector<288x128xf32> to vector<288x128xbf16>
    %36 = vector.extract_strided_slice %35 {offsets = [0, 0], sizes = [32, 128], strides = [1, 1]} : vector<288x128xbf16> to vector<32x128xbf16>
    %37 = vector.extract_strided_slice %35 {offsets = [32, 0], sizes = [32, 128], strides = [1, 1]} : vector<288x128xbf16> to vector<32x128xbf16>
    %38 = vector.extract_strided_slice %35 {offsets = [64, 0], sizes = [32, 128], strides = [1, 1]} : vector<288x128xbf16> to vector<32x128xbf16>
    %39 = vector.extract_strided_slice %35 {offsets = [96, 0], sizes = [32, 128], strides = [1, 1]} : vector<288x128xbf16> to vector<32x128xbf16>
    %40 = vector.extract_strided_slice %35 {offsets = [128, 0], sizes = [32, 128], strides = [1, 1]} : vector<288x128xbf16> to vector<32x128xbf16>
    %41 = vector.extract_strided_slice %35 {offsets = [160, 0], sizes = [32, 128], strides = [1, 1]} : vector<288x128xbf16> to vector<32x128xbf16>
    %42 = vector.extract_strided_slice %35 {offsets = [192, 0], sizes = [32, 128], strides = [1, 1]} : vector<288x128xbf16> to vector<32x128xbf16>
    %43 = vector.extract_strided_slice %35 {offsets = [224, 0], sizes = [32, 128], strides = [1, 1]} : vector<288x128xbf16> to vector<32x128xbf16>
    %44 = vector.extract_strided_slice %35 {offsets = [256, 0], sizes = [32, 128], strides = [1, 1]} : vector<288x128xbf16> to vector<32x128xbf16>
    %45 = tpu.concatenate %36, %37, %38, %39, %40, %41, %42, %43, %44 in 1 : vector<32x128xbf16>, vector<32x128xbf16>, vector<32x128xbf16>, vector<32x128xbf16>, vector<32x128xbf16>, vector<32x128xbf16>, vector<32x128xbf16>, vector<32x128xbf16>, vector<32x128xbf16> -> vector<32x1152xbf16>
    %c0_17 = arith.constant 0 : index
    %c0_18 = arith.constant 0 : index
    %c0_19 = arith.constant 0 : index
    %46 = vector.load %arg6[%c0_17, %c0_18, %c0_19] : memref<7x1152x128xbf16, #tpu.memory_space<vmem>>, vector<1x1152x128xbf16>
    %47 = vector.shape_cast %46 : vector<1x1152x128xbf16> to vector<1152x128xbf16>
    %cst_20 = arith.constant dense<0.000000e+00> : vector<32x128xf32>
    %48 = tpu.matmul %45, %47, %cst_20 {dimension_numbers = #tpu.dot_dimension_numbers<[1], [0], [0], [1], [0, 0, 1, 1], [], []>} : vector<32x1152xbf16>, vector<1152x128xbf16>, vector<32x128xf32> -> vector<32x128xf32>
    %c0_21 = arith.constant 0 : index
    %c0_22 = arith.constant 0 : index
    %49 = vector.load %arg7[%c0_21, %c0_22] : memref<7x128xf32, #tpu.memory_space<vmem>>, vector<1x128xf32>
    %c0_23 = arith.constant 0 : index
    %c0_24 = arith.constant 0 : index
    %50 = vector.load %arg8[%c0_23, %c0_24] : memref<7x128xf32, #tpu.memory_space<vmem>>, vector<1x128xf32>
    %cst_25 = arith.constant dense<0.000000e+00> : vector<128xf32>
    %51 = vector.multi_reduction <add>, %48, %cst_25 [0] : vector<32x128xf32> to vector<128xf32>
    %52 = vector.shape_cast %51 : vector<128xf32> to vector<1x128xf32>
    %53 = arith.mulf %48, %48 : vector<32x128xf32>
    %cst_26 = arith.constant dense<0.000000e+00> : vector<128xf32>
    %54 = vector.multi_reduction <add>, %53, %cst_26 [0] : vector<32x128xf32> to vector<128xf32>
    %55 = vector.shape_cast %54 : vector<128xf32> to vector<1x128xf32>
    %cst_27 = arith.constant 3.125000e-02 : f32
    %56 = vector.broadcast %cst_27 : f32 to vector<1x128xf32>
    %57 = arith.mulf %52, %56 : vector<1x128xf32>
    %cst_28 = arith.constant 3.125000e-02 : f32
    %58 = vector.broadcast %cst_28 : f32 to vector<1x128xf32>
    %59 = arith.mulf %55, %58 : vector<1x128xf32>
    %60 = arith.mulf %57, %57 : vector<1x128xf32>
    %61 = arith.subf %59, %60 : vector<1x128xf32>
    %cst_29 = arith.constant 0.000000e+00 : f32
    %62 = vector.broadcast %cst_29 : f32 to vector<1x128xf32>
    %63 = arith.maximumf %61, %62 : vector<1x128xf32>
    %cst_30 = arith.constant 9.99999974E-6 : f32
    %64 = vector.broadcast %cst_30 : f32 to vector<1x128xf32>
    %65 = arith.addf %63, %64 : vector<1x128xf32>
    %66 = math.rsqrt %65 : vector<1x128xf32>
    %67 = arith.mulf %49, %66 : vector<1x128xf32>
    %68 = arith.mulf %57, %67 : vector<1x128xf32>
    %69 = arith.subf %50, %68 : vector<1x128xf32>
    %70 = vector.broadcast %67 : vector<1x128xf32> to vector<32x128xf32>
    %71 = arith.mulf %48, %70 : vector<32x128xf32>
    %72 = vector.broadcast %69 : vector<1x128xf32> to vector<32x128xf32>
    %73 = arith.addf %71, %72 : vector<32x128xf32>
    %74 = arith.addf %73, %31 : vector<32x128xf32>
    %cst_31 = arith.constant 0.000000e+00 : f32
    %75 = vector.broadcast %cst_31 : f32 to vector<32x128xf32>
    %76 = arith.maximumf %74, %75 : vector<32x128xf32>
    %77 = arith.truncf %76 : vector<32x128xf32> to vector<32x128xbf16>
    %c0_32 = arith.constant 0 : index
    %c0_33 = arith.constant 0 : index
    %78 = vector.load %arg5[%c0_32, %c0_33] : memref<288x32xbf16, #tpu.memory_space<vmem>>, vector<288x32xbf16>
    %cst_34 = arith.constant dense<0.000000e+00> : vector<288x128xf32>
    %79 = tpu.matmul %78, %77, %cst_34 {dimension_numbers = #tpu.dot_dimension_numbers<[1], [0], [0], [1], [0, 0, 1, 1], [], []>} : vector<288x32xbf16>, vector<32x128xbf16>, vector<288x128xf32> -> vector<288x128xf32>
    %80 = arith.truncf %79 : vector<288x128xf32> to vector<288x128xbf16>
    %81 = vector.extract_strided_slice %80 {offsets = [0, 0], sizes = [32, 128], strides = [1, 1]} : vector<288x128xbf16> to vector<32x128xbf16>
    %82 = vector.extract_strided_slice %80 {offsets = [32, 0], sizes = [32, 128], strides = [1, 1]} : vector<288x128xbf16> to vector<32x128xbf16>
    %83 = vector.extract_strided_slice %80 {offsets = [64, 0], sizes = [32, 128], strides = [1, 1]} : vector<288x128xbf16> to vector<32x128xbf16>
    %84 = vector.extract_strided_slice %80 {offsets = [96, 0], sizes = [32, 128], strides = [1, 1]} : vector<288x128xbf16> to vector<32x128xbf16>
    %85 = vector.extract_strided_slice %80 {offsets = [128, 0], sizes = [32, 128], strides = [1, 1]} : vector<288x128xbf16> to vector<32x128xbf16>
    %86 = vector.extract_strided_slice %80 {offsets = [160, 0], sizes = [32, 128], strides = [1, 1]} : vector<288x128xbf16> to vector<32x128xbf16>
    %87 = vector.extract_strided_slice %80 {offsets = [192, 0], sizes = [32, 128], strides = [1, 1]} : vector<288x128xbf16> to vector<32x128xbf16>
    %88 = vector.extract_strided_slice %80 {offsets = [224, 0], sizes = [32, 128], strides = [1, 1]} : vector<288x128xbf16> to vector<32x128xbf16>
    %89 = vector.extract_strided_slice %80 {offsets = [256, 0], sizes = [32, 128], strides = [1, 1]} : vector<288x128xbf16> to vector<32x128xbf16>
    %90 = tpu.concatenate %81, %82, %83, %84, %85, %86, %87, %88, %89 in 1 : vector<32x128xbf16>, vector<32x128xbf16>, vector<32x128xbf16>, vector<32x128xbf16>, vector<32x128xbf16>, vector<32x128xbf16>, vector<32x128xbf16>, vector<32x128xbf16>, vector<32x128xbf16> -> vector<32x1152xbf16>
    %c1 = arith.constant 1 : index
    %c0_35 = arith.constant 0 : index
    %c0_36 = arith.constant 0 : index
    %91 = vector.load %arg6[%c1, %c0_35, %c0_36] : memref<7x1152x128xbf16, #tpu.memory_space<vmem>>, vector<1x1152x128xbf16>
    %92 = vector.shape_cast %91 : vector<1x1152x128xbf16> to vector<1152x128xbf16>
    %cst_37 = arith.constant dense<0.000000e+00> : vector<32x128xf32>
    %93 = tpu.matmul %90, %92, %cst_37 {dimension_numbers = #tpu.dot_dimension_numbers<[1], [0], [0], [1], [0, 0, 1, 1], [], []>} : vector<32x1152xbf16>, vector<1152x128xbf16>, vector<32x128xf32> -> vector<32x128xf32>
    %c1_38 = arith.constant 1 : index
    %c0_39 = arith.constant 0 : index
    %94 = vector.load %arg7[%c1_38, %c0_39] : memref<7x128xf32, #tpu.memory_space<vmem>>, vector<1x128xf32>
    %c1_40 = arith.constant 1 : index
    %c0_41 = arith.constant 0 : index
    %95 = vector.load %arg8[%c1_40, %c0_41] : memref<7x128xf32, #tpu.memory_space<vmem>>, vector<1x128xf32>
    %cst_42 = arith.constant dense<0.000000e+00> : vector<128xf32>
    %96 = vector.multi_reduction <add>, %93, %cst_42 [0] : vector<32x128xf32> to vector<128xf32>
    %97 = vector.shape_cast %96 : vector<128xf32> to vector<1x128xf32>
    %98 = arith.mulf %93, %93 : vector<32x128xf32>
    %cst_43 = arith.constant dense<0.000000e+00> : vector<128xf32>
    %99 = vector.multi_reduction <add>, %98, %cst_43 [0] : vector<32x128xf32> to vector<128xf32>
    %100 = vector.shape_cast %99 : vector<128xf32> to vector<1x128xf32>
    %cst_44 = arith.constant 3.125000e-02 : f32
    %101 = vector.broadcast %cst_44 : f32 to vector<1x128xf32>
    %102 = arith.mulf %97, %101 : vector<1x128xf32>
    %cst_45 = arith.constant 3.125000e-02 : f32
    %103 = vector.broadcast %cst_45 : f32 to vector<1x128xf32>
    %104 = arith.mulf %100, %103 : vector<1x128xf32>
    %105 = arith.mulf %102, %102 : vector<1x128xf32>
    %106 = arith.subf %104, %105 : vector<1x128xf32>
    %cst_46 = arith.constant 0.000000e+00 : f32
    %107 = vector.broadcast %cst_46 : f32 to vector<1x128xf32>
    %108 = arith.maximumf %106, %107 : vector<1x128xf32>
    %cst_47 = arith.constant 9.99999974E-6 : f32
    %109 = vector.broadcast %cst_47 : f32 to vector<1x128xf32>
    %110 = arith.addf %108, %109 : vector<1x128xf32>
    %111 = math.rsqrt %110 : vector<1x128xf32>
    %112 = arith.mulf %94, %111 : vector<1x128xf32>
    %113 = arith.mulf %102, %112 : vector<1x128xf32>
    %114 = arith.subf %95, %113 : vector<1x128xf32>
    %115 = vector.broadcast %112 : vector<1x128xf32> to vector<32x128xf32>
    %116 = arith.mulf %93, %115 : vector<32x128xf32>
    %117 = vector.broadcast %114 : vector<1x128xf32> to vector<32x128xf32>
    %118 = arith.addf %116, %117 : vector<32x128xf32>
    %cst_48 = arith.constant 0.000000e+00 : f32
    %119 = vector.broadcast %cst_48 : f32 to vector<32x128xf32>
    %120 = arith.maximumf %118, %119 : vector<32x128xf32>
    %121 = arith.truncf %120 : vector<32x128xf32> to vector<32x128xbf16>
    %c0_49 = arith.constant 0 : index
    %c0_50 = arith.constant 0 : index
    %122 = vector.load %arg5[%c0_49, %c0_50] : memref<288x32xbf16, #tpu.memory_space<vmem>>, vector<288x32xbf16>
    %cst_51 = arith.constant dense<0.000000e+00> : vector<288x128xf32>
    %123 = tpu.matmul %122, %121, %cst_51 {dimension_numbers = #tpu.dot_dimension_numbers<[1], [0], [0], [1], [0, 0, 1, 1], [], []>} : vector<288x32xbf16>, vector<32x128xbf16>, vector<288x128xf32> -> vector<288x128xf32>
    %124 = arith.truncf %123 : vector<288x128xf32> to vector<288x128xbf16>
    %125 = vector.extract_strided_slice %124 {offsets = [0, 0], sizes = [32, 128], strides = [1, 1]} : vector<288x128xbf16> to vector<32x128xbf16>
    %126 = vector.extract_strided_slice %124 {offsets = [32, 0], sizes = [32, 128], strides = [1, 1]} : vector<288x128xbf16> to vector<32x128xbf16>
    %127 = vector.extract_strided_slice %124 {offsets = [64, 0], sizes = [32, 128], strides = [1, 1]} : vector<288x128xbf16> to vector<32x128xbf16>
    %128 = vector.extract_strided_slice %124 {offsets = [96, 0], sizes = [32, 128], strides = [1, 1]} : vector<288x128xbf16> to vector<32x128xbf16>
    %129 = vector.extract_strided_slice %124 {offsets = [128, 0], sizes = [32, 128], strides = [1, 1]} : vector<288x128xbf16> to vector<32x128xbf16>
    %130 = vector.extract_strided_slice %124 {offsets = [160, 0], sizes = [32, 128], strides = [1, 1]} : vector<288x128xbf16> to vector<32x128xbf16>
    %131 = vector.extract_strided_slice %124 {offsets = [192, 0], sizes = [32, 128], strides = [1, 1]} : vector<288x128xbf16> to vector<32x128xbf16>
    %132 = vector.extract_strided_slice %124 {offsets = [224, 0], sizes = [32, 128], strides = [1, 1]} : vector<288x128xbf16> to vector<32x128xbf16>
    %133 = vector.extract_strided_slice %124 {offsets = [256, 0], sizes = [32, 128], strides = [1, 1]} : vector<288x128xbf16> to vector<32x128xbf16>
    %134 = tpu.concatenate %125, %126, %127, %128, %129, %130, %131, %132, %133 in 1 : vector<32x128xbf16>, vector<32x128xbf16>, vector<32x128xbf16>, vector<32x128xbf16>, vector<32x128xbf16>, vector<32x128xbf16>, vector<32x128xbf16>, vector<32x128xbf16>, vector<32x128xbf16> -> vector<32x1152xbf16>
    %c2 = arith.constant 2 : index
    %c0_52 = arith.constant 0 : index
    %c0_53 = arith.constant 0 : index
    %135 = vector.load %arg6[%c2, %c0_52, %c0_53] : memref<7x1152x128xbf16, #tpu.memory_space<vmem>>, vector<1x1152x128xbf16>
    %136 = vector.shape_cast %135 : vector<1x1152x128xbf16> to vector<1152x128xbf16>
    %cst_54 = arith.constant dense<0.000000e+00> : vector<32x128xf32>
    %137 = tpu.matmul %134, %136, %cst_54 {dimension_numbers = #tpu.dot_dimension_numbers<[1], [0], [0], [1], [0, 0, 1, 1], [], []>} : vector<32x1152xbf16>, vector<1152x128xbf16>, vector<32x128xf32> -> vector<32x128xf32>
    %c2_55 = arith.constant 2 : index
    %c0_56 = arith.constant 0 : index
    %138 = vector.load %arg7[%c2_55, %c0_56] : memref<7x128xf32, #tpu.memory_space<vmem>>, vector<1x128xf32>
    %c2_57 = arith.constant 2 : index
    %c0_58 = arith.constant 0 : index
    %139 = vector.load %arg8[%c2_57, %c0_58] : memref<7x128xf32, #tpu.memory_space<vmem>>, vector<1x128xf32>
    %cst_59 = arith.constant dense<0.000000e+00> : vector<128xf32>
    %140 = vector.multi_reduction <add>, %137, %cst_59 [0] : vector<32x128xf32> to vector<128xf32>
    %141 = vector.shape_cast %140 : vector<128xf32> to vector<1x128xf32>
    %142 = arith.mulf %137, %137 : vector<32x128xf32>
    %cst_60 = arith.constant dense<0.000000e+00> : vector<128xf32>
    %143 = vector.multi_reduction <add>, %142, %cst_60 [0] : vector<32x128xf32> to vector<128xf32>
    %144 = vector.shape_cast %143 : vector<128xf32> to vector<1x128xf32>
    %cst_61 = arith.constant 3.125000e-02 : f32
    %145 = vector.broadcast %cst_61 : f32 to vector<1x128xf32>
    %146 = arith.mulf %141, %145 : vector<1x128xf32>
    %cst_62 = arith.constant 3.125000e-02 : f32
    %147 = vector.broadcast %cst_62 : f32 to vector<1x128xf32>
    %148 = arith.mulf %144, %147 : vector<1x128xf32>
    %149 = arith.mulf %146, %146 : vector<1x128xf32>
    %150 = arith.subf %148, %149 : vector<1x128xf32>
    %cst_63 = arith.constant 0.000000e+00 : f32
    %151 = vector.broadcast %cst_63 : f32 to vector<1x128xf32>
    %152 = arith.maximumf %150, %151 : vector<1x128xf32>
    %cst_64 = arith.constant 9.99999974E-6 : f32
    %153 = vector.broadcast %cst_64 : f32 to vector<1x128xf32>
    %154 = arith.addf %152, %153 : vector<1x128xf32>
    %155 = math.rsqrt %154 : vector<1x128xf32>
    %156 = arith.mulf %138, %155 : vector<1x128xf32>
    %157 = arith.mulf %146, %156 : vector<1x128xf32>
    %158 = arith.subf %139, %157 : vector<1x128xf32>
    %159 = vector.broadcast %156 : vector<1x128xf32> to vector<32x128xf32>
    %160 = arith.mulf %137, %159 : vector<32x128xf32>
    %161 = vector.broadcast %158 : vector<1x128xf32> to vector<32x128xf32>
    %162 = arith.addf %160, %161 : vector<32x128xf32>
    %163 = arith.addf %162, %76 : vector<32x128xf32>
    %cst_65 = arith.constant 0.000000e+00 : f32
    %164 = vector.broadcast %cst_65 : f32 to vector<32x128xf32>
    %165 = arith.maximumf %163, %164 : vector<32x128xf32>
    %166 = arith.truncf %165 : vector<32x128xf32> to vector<32x128xbf16>
    %c0_66 = arith.constant 0 : index
    %c0_67 = arith.constant 0 : index
    %167 = vector.load %arg5[%c0_66, %c0_67] : memref<288x32xbf16, #tpu.memory_space<vmem>>, vector<288x32xbf16>
    %cst_68 = arith.constant dense<0.000000e+00> : vector<288x128xf32>
    %168 = tpu.matmul %167, %166, %cst_68 {dimension_numbers = #tpu.dot_dimension_numbers<[1], [0], [0], [1], [0, 0, 1, 1], [], []>} : vector<288x32xbf16>, vector<32x128xbf16>, vector<288x128xf32> -> vector<288x128xf32>
    %169 = arith.truncf %168 : vector<288x128xf32> to vector<288x128xbf16>
    %170 = vector.extract_strided_slice %169 {offsets = [0, 0], sizes = [32, 128], strides = [1, 1]} : vector<288x128xbf16> to vector<32x128xbf16>
    %171 = vector.extract_strided_slice %169 {offsets = [32, 0], sizes = [32, 128], strides = [1, 1]} : vector<288x128xbf16> to vector<32x128xbf16>
    %172 = vector.extract_strided_slice %169 {offsets = [64, 0], sizes = [32, 128], strides = [1, 1]} : vector<288x128xbf16> to vector<32x128xbf16>
    %173 = vector.extract_strided_slice %169 {offsets = [96, 0], sizes = [32, 128], strides = [1, 1]} : vector<288x128xbf16> to vector<32x128xbf16>
    %174 = vector.extract_strided_slice %169 {offsets = [128, 0], sizes = [32, 128], strides = [1, 1]} : vector<288x128xbf16> to vector<32x128xbf16>
    %175 = vector.extract_strided_slice %169 {offsets = [160, 0], sizes = [32, 128], strides = [1, 1]} : vector<288x128xbf16> to vector<32x128xbf16>
    %176 = vector.extract_strided_slice %169 {offsets = [192, 0], sizes = [32, 128], strides = [1, 1]} : vector<288x128xbf16> to vector<32x128xbf16>
    %177 = vector.extract_strided_slice %169 {offsets = [224, 0], sizes = [32, 128], strides = [1, 1]} : vector<288x128xbf16> to vector<32x128xbf16>
    %178 = vector.extract_strided_slice %169 {offsets = [256, 0], sizes = [32, 128], strides = [1, 1]} : vector<288x128xbf16> to vector<32x128xbf16>
    %179 = tpu.concatenate %170, %171, %172, %173, %174, %175, %176, %177, %178 in 1 : vector<32x128xbf16>, vector<32x128xbf16>, vector<32x128xbf16>, vector<32x128xbf16>, vector<32x128xbf16>, vector<32x128xbf16>, vector<32x128xbf16>, vector<32x128xbf16>, vector<32x128xbf16> -> vector<32x1152xbf16>
    %c3 = arith.constant 3 : index
    %c0_69 = arith.constant 0 : index
    %c0_70 = arith.constant 0 : index
    %180 = vector.load %arg6[%c3, %c0_69, %c0_70] : memref<7x1152x128xbf16, #tpu.memory_space<vmem>>, vector<1x1152x128xbf16>
    %181 = vector.shape_cast %180 : vector<1x1152x128xbf16> to vector<1152x128xbf16>
    %cst_71 = arith.constant dense<0.000000e+00> : vector<32x128xf32>
    %182 = tpu.matmul %179, %181, %cst_71 {dimension_numbers = #tpu.dot_dimension_numbers<[1], [0], [0], [1], [0, 0, 1, 1], [], []>} : vector<32x1152xbf16>, vector<1152x128xbf16>, vector<32x128xf32> -> vector<32x128xf32>
    %c3_72 = arith.constant 3 : index
    %c0_73 = arith.constant 0 : index
    %183 = vector.load %arg7[%c3_72, %c0_73] : memref<7x128xf32, #tpu.memory_space<vmem>>, vector<1x128xf32>
    %c3_74 = arith.constant 3 : index
    %c0_75 = arith.constant 0 : index
    %184 = vector.load %arg8[%c3_74, %c0_75] : memref<7x128xf32, #tpu.memory_space<vmem>>, vector<1x128xf32>
    %cst_76 = arith.constant dense<0.000000e+00> : vector<128xf32>
    %185 = vector.multi_reduction <add>, %182, %cst_76 [0] : vector<32x128xf32> to vector<128xf32>
    %186 = vector.shape_cast %185 : vector<128xf32> to vector<1x128xf32>
    %187 = arith.mulf %182, %182 : vector<32x128xf32>
    %cst_77 = arith.constant dense<0.000000e+00> : vector<128xf32>
    %188 = vector.multi_reduction <add>, %187, %cst_77 [0] : vector<32x128xf32> to vector<128xf32>
    %189 = vector.shape_cast %188 : vector<128xf32> to vector<1x128xf32>
    %cst_78 = arith.constant 3.125000e-02 : f32
    %190 = vector.broadcast %cst_78 : f32 to vector<1x128xf32>
    %191 = arith.mulf %186, %190 : vector<1x128xf32>
    %cst_79 = arith.constant 3.125000e-02 : f32
    %192 = vector.broadcast %cst_79 : f32 to vector<1x128xf32>
    %193 = arith.mulf %189, %192 : vector<1x128xf32>
    %194 = arith.mulf %191, %191 : vector<1x128xf32>
    %195 = arith.subf %193, %194 : vector<1x128xf32>
    %cst_80 = arith.constant 0.000000e+00 : f32
    %196 = vector.broadcast %cst_80 : f32 to vector<1x128xf32>
    %197 = arith.maximumf %195, %196 : vector<1x128xf32>
    %cst_81 = arith.constant 9.99999974E-6 : f32
    %198 = vector.broadcast %cst_81 : f32 to vector<1x128xf32>
    %199 = arith.addf %197, %198 : vector<1x128xf32>
    %200 = math.rsqrt %199 : vector<1x128xf32>
    %201 = arith.mulf %183, %200 : vector<1x128xf32>
    %202 = arith.mulf %191, %201 : vector<1x128xf32>
    %203 = arith.subf %184, %202 : vector<1x128xf32>
    %204 = vector.broadcast %201 : vector<1x128xf32> to vector<32x128xf32>
    %205 = arith.mulf %182, %204 : vector<32x128xf32>
    %206 = vector.broadcast %203 : vector<1x128xf32> to vector<32x128xf32>
    %207 = arith.addf %205, %206 : vector<32x128xf32>
    %cst_82 = arith.constant 0.000000e+00 : f32
    %208 = vector.broadcast %cst_82 : f32 to vector<32x128xf32>
    %209 = arith.maximumf %207, %208 : vector<32x128xf32>
    %210 = arith.truncf %209 : vector<32x128xf32> to vector<32x128xbf16>
    %c0_83 = arith.constant 0 : index
    %c0_84 = arith.constant 0 : index
    %211 = vector.load %arg5[%c0_83, %c0_84] : memref<288x32xbf16, #tpu.memory_space<vmem>>, vector<288x32xbf16>
    %cst_85 = arith.constant dense<0.000000e+00> : vector<288x128xf32>
    %212 = tpu.matmul %211, %210, %cst_85 {dimension_numbers = #tpu.dot_dimension_numbers<[1], [0], [0], [1], [0, 0, 1, 1], [], []>} : vector<288x32xbf16>, vector<32x128xbf16>, vector<288x128xf32> -> vector<288x128xf32>
    %213 = arith.truncf %212 : vector<288x128xf32> to vector<288x128xbf16>
    %214 = vector.extract_strided_slice %213 {offsets = [0, 0], sizes = [32, 128], strides = [1, 1]} : vector<288x128xbf16> to vector<32x128xbf16>
    %215 = vector.extract_strided_slice %213 {offsets = [32, 0], sizes = [32, 128], strides = [1, 1]} : vector<288x128xbf16> to vector<32x128xbf16>
    %216 = vector.extract_strided_slice %213 {offsets = [64, 0], sizes = [32, 128], strides = [1, 1]} : vector<288x128xbf16> to vector<32x128xbf16>
    %217 = vector.extract_strided_slice %213 {offsets = [96, 0], sizes = [32, 128], strides = [1, 1]} : vector<288x128xbf16> to vector<32x128xbf16>
    %218 = vector.extract_strided_slice %213 {offsets = [128, 0], sizes = [32, 128], strides = [1, 1]} : vector<288x128xbf16> to vector<32x128xbf16>
    %219 = vector.extract_strided_slice %213 {offsets = [160, 0], sizes = [32, 128], strides = [1, 1]} : vector<288x128xbf16> to vector<32x128xbf16>
    %220 = vector.extract_strided_slice %213 {offsets = [192, 0], sizes = [32, 128], strides = [1, 1]} : vector<288x128xbf16> to vector<32x128xbf16>
    %221 = vector.extract_strided_slice %213 {offsets = [224, 0], sizes = [32, 128], strides = [1, 1]} : vector<288x128xbf16> to vector<32x128xbf16>
    %222 = vector.extract_strided_slice %213 {offsets = [256, 0], sizes = [32, 128], strides = [1, 1]} : vector<288x128xbf16> to vector<32x128xbf16>
    %223 = tpu.concatenate %214, %215, %216, %217, %218, %219, %220, %221, %222 in 1 : vector<32x128xbf16>, vector<32x128xbf16>, vector<32x128xbf16>, vector<32x128xbf16>, vector<32x128xbf16>, vector<32x128xbf16>, vector<32x128xbf16>, vector<32x128xbf16>, vector<32x128xbf16> -> vector<32x1152xbf16>
    %c4 = arith.constant 4 : index
    %c0_86 = arith.constant 0 : index
    %c0_87 = arith.constant 0 : index
    %224 = vector.load %arg6[%c4, %c0_86, %c0_87] : memref<7x1152x128xbf16, #tpu.memory_space<vmem>>, vector<1x1152x128xbf16>
    %225 = vector.shape_cast %224 : vector<1x1152x128xbf16> to vector<1152x128xbf16>
    %cst_88 = arith.constant dense<0.000000e+00> : vector<32x128xf32>
    %226 = tpu.matmul %223, %225, %cst_88 {dimension_numbers = #tpu.dot_dimension_numbers<[1], [0], [0], [1], [0, 0, 1, 1], [], []>} : vector<32x1152xbf16>, vector<1152x128xbf16>, vector<32x128xf32> -> vector<32x128xf32>
    %c4_89 = arith.constant 4 : index
    %c0_90 = arith.constant 0 : index
    %227 = vector.load %arg7[%c4_89, %c0_90] : memref<7x128xf32, #tpu.memory_space<vmem>>, vector<1x128xf32>
    %c4_91 = arith.constant 4 : index
    %c0_92 = arith.constant 0 : index
    %228 = vector.load %arg8[%c4_91, %c0_92] : memref<7x128xf32, #tpu.memory_space<vmem>>, vector<1x128xf32>
    %cst_93 = arith.constant dense<0.000000e+00> : vector<128xf32>
    %229 = vector.multi_reduction <add>, %226, %cst_93 [0] : vector<32x128xf32> to vector<128xf32>
    %230 = vector.shape_cast %229 : vector<128xf32> to vector<1x128xf32>
    %231 = arith.mulf %226, %226 : vector<32x128xf32>
    %cst_94 = arith.constant dense<0.000000e+00> : vector<128xf32>
    %232 = vector.multi_reduction <add>, %231, %cst_94 [0] : vector<32x128xf32> to vector<128xf32>
    %233 = vector.shape_cast %232 : vector<128xf32> to vector<1x128xf32>
    %cst_95 = arith.constant 3.125000e-02 : f32
    %234 = vector.broadcast %cst_95 : f32 to vector<1x128xf32>
    %235 = arith.mulf %230, %234 : vector<1x128xf32>
    %cst_96 = arith.constant 3.125000e-02 : f32
    %236 = vector.broadcast %cst_96 : f32 to vector<1x128xf32>
    %237 = arith.mulf %233, %236 : vector<1x128xf32>
    %238 = arith.mulf %235, %235 : vector<1x128xf32>
    %239 = arith.subf %237, %238 : vector<1x128xf32>
    %cst_97 = arith.constant 0.000000e+00 : f32
    %240 = vector.broadcast %cst_97 : f32 to vector<1x128xf32>
    %241 = arith.maximumf %239, %240 : vector<1x128xf32>
    %cst_98 = arith.constant 9.99999974E-6 : f32
    %242 = vector.broadcast %cst_98 : f32 to vector<1x128xf32>
    %243 = arith.addf %241, %242 : vector<1x128xf32>
    %244 = math.rsqrt %243 : vector<1x128xf32>
    %245 = arith.mulf %227, %244 : vector<1x128xf32>
    %246 = arith.mulf %235, %245 : vector<1x128xf32>
    %247 = arith.subf %228, %246 : vector<1x128xf32>
    %248 = vector.broadcast %245 : vector<1x128xf32> to vector<32x128xf32>
    %249 = arith.mulf %226, %248 : vector<32x128xf32>
    %250 = vector.broadcast %247 : vector<1x128xf32> to vector<32x128xf32>
    %251 = arith.addf %249, %250 : vector<32x128xf32>
    %252 = arith.addf %251, %165 : vector<32x128xf32>
    %cst_99 = arith.constant 0.000000e+00 : f32
    %253 = vector.broadcast %cst_99 : f32 to vector<32x128xf32>
    %254 = arith.maximumf %252, %253 : vector<32x128xf32>
    %255 = arith.truncf %254 : vector<32x128xf32> to vector<32x128xbf16>
    %c0_100 = arith.constant 0 : index
    %c0_101 = arith.constant 0 : index
    %256 = vector.load %arg5[%c0_100, %c0_101] : memref<288x32xbf16, #tpu.memory_space<vmem>>, vector<288x32xbf16>
    %cst_102 = arith.constant dense<0.000000e+00> : vector<288x128xf32>
    %257 = tpu.matmul %256, %255, %cst_102 {dimension_numbers = #tpu.dot_dimension_numbers<[1], [0], [0], [1], [0, 0, 1, 1], [], []>} : vector<288x32xbf16>, vector<32x128xbf16>, vector<288x128xf32> -> vector<288x128xf32>
    %258 = arith.truncf %257 : vector<288x128xf32> to vector<288x128xbf16>
    %259 = vector.extract_strided_slice %258 {offsets = [0, 0], sizes = [32, 128], strides = [1, 1]} : vector<288x128xbf16> to vector<32x128xbf16>
    %260 = vector.extract_strided_slice %258 {offsets = [32, 0], sizes = [32, 128], strides = [1, 1]} : vector<288x128xbf16> to vector<32x128xbf16>
    %261 = vector.extract_strided_slice %258 {offsets = [64, 0], sizes = [32, 128], strides = [1, 1]} : vector<288x128xbf16> to vector<32x128xbf16>
    %262 = vector.extract_strided_slice %258 {offsets = [96, 0], sizes = [32, 128], strides = [1, 1]} : vector<288x128xbf16> to vector<32x128xbf16>
    %263 = vector.extract_strided_slice %258 {offsets = [128, 0], sizes = [32, 128], strides = [1, 1]} : vector<288x128xbf16> to vector<32x128xbf16>
    %264 = vector.extract_strided_slice %258 {offsets = [160, 0], sizes = [32, 128], strides = [1, 1]} : vector<288x128xbf16> to vector<32x128xbf16>
    %265 = vector.extract_strided_slice %258 {offsets = [192, 0], sizes = [32, 128], strides = [1, 1]} : vector<288x128xbf16> to vector<32x128xbf16>
    %266 = vector.extract_strided_slice %258 {offsets = [224, 0], sizes = [32, 128], strides = [1, 1]} : vector<288x128xbf16> to vector<32x128xbf16>
    %267 = vector.extract_strided_slice %258 {offsets = [256, 0], sizes = [32, 128], strides = [1, 1]} : vector<288x128xbf16> to vector<32x128xbf16>
    %268 = tpu.concatenate %259, %260, %261, %262, %263, %264, %265, %266, %267 in 1 : vector<32x128xbf16>, vector<32x128xbf16>, vector<32x128xbf16>, vector<32x128xbf16>, vector<32x128xbf16>, vector<32x128xbf16>, vector<32x128xbf16>, vector<32x128xbf16>, vector<32x128xbf16> -> vector<32x1152xbf16>
    %c5 = arith.constant 5 : index
    %c0_103 = arith.constant 0 : index
    %c0_104 = arith.constant 0 : index
    %269 = vector.load %arg6[%c5, %c0_103, %c0_104] : memref<7x1152x128xbf16, #tpu.memory_space<vmem>>, vector<1x1152x128xbf16>
    %270 = vector.shape_cast %269 : vector<1x1152x128xbf16> to vector<1152x128xbf16>
    %cst_105 = arith.constant dense<0.000000e+00> : vector<32x128xf32>
    %271 = tpu.matmul %268, %270, %cst_105 {dimension_numbers = #tpu.dot_dimension_numbers<[1], [0], [0], [1], [0, 0, 1, 1], [], []>} : vector<32x1152xbf16>, vector<1152x128xbf16>, vector<32x128xf32> -> vector<32x128xf32>
    %c5_106 = arith.constant 5 : index
    %c0_107 = arith.constant 0 : index
    %272 = vector.load %arg7[%c5_106, %c0_107] : memref<7x128xf32, #tpu.memory_space<vmem>>, vector<1x128xf32>
    %c5_108 = arith.constant 5 : index
    %c0_109 = arith.constant 0 : index
    %273 = vector.load %arg8[%c5_108, %c0_109] : memref<7x128xf32, #tpu.memory_space<vmem>>, vector<1x128xf32>
    %cst_110 = arith.constant dense<0.000000e+00> : vector<128xf32>
    %274 = vector.multi_reduction <add>, %271, %cst_110 [0] : vector<32x128xf32> to vector<128xf32>
    %275 = vector.shape_cast %274 : vector<128xf32> to vector<1x128xf32>
    %276 = arith.mulf %271, %271 : vector<32x128xf32>
    %cst_111 = arith.constant dense<0.000000e+00> : vector<128xf32>
    %277 = vector.multi_reduction <add>, %276, %cst_111 [0] : vector<32x128xf32> to vector<128xf32>
    %278 = vector.shape_cast %277 : vector<128xf32> to vector<1x128xf32>
    %cst_112 = arith.constant 3.125000e-02 : f32
    %279 = vector.broadcast %cst_112 : f32 to vector<1x128xf32>
    %280 = arith.mulf %275, %279 : vector<1x128xf32>
    %cst_113 = arith.constant 3.125000e-02 : f32
    %281 = vector.broadcast %cst_113 : f32 to vector<1x128xf32>
    %282 = arith.mulf %278, %281 : vector<1x128xf32>
    %283 = arith.mulf %280, %280 : vector<1x128xf32>
    %284 = arith.subf %282, %283 : vector<1x128xf32>
    %cst_114 = arith.constant 0.000000e+00 : f32
    %285 = vector.broadcast %cst_114 : f32 to vector<1x128xf32>
    %286 = arith.maximumf %284, %285 : vector<1x128xf32>
    %cst_115 = arith.constant 9.99999974E-6 : f32
    %287 = vector.broadcast %cst_115 : f32 to vector<1x128xf32>
    %288 = arith.addf %286, %287 : vector<1x128xf32>
    %289 = math.rsqrt %288 : vector<1x128xf32>
    %290 = arith.mulf %272, %289 : vector<1x128xf32>
    %291 = arith.mulf %280, %290 : vector<1x128xf32>
    %292 = arith.subf %273, %291 : vector<1x128xf32>
    %293 = vector.broadcast %290 : vector<1x128xf32> to vector<32x128xf32>
    %294 = arith.mulf %271, %293 : vector<32x128xf32>
    %295 = vector.broadcast %292 : vector<1x128xf32> to vector<32x128xf32>
    %296 = arith.addf %294, %295 : vector<32x128xf32>
    %cst_116 = arith.constant 0.000000e+00 : f32
    %297 = vector.broadcast %cst_116 : f32 to vector<32x128xf32>
    %298 = arith.maximumf %296, %297 : vector<32x128xf32>
    %299 = arith.truncf %298 : vector<32x128xf32> to vector<32x128xbf16>
    %c0_117 = arith.constant 0 : index
    %c0_118 = arith.constant 0 : index
    %300 = vector.load %arg5[%c0_117, %c0_118] : memref<288x32xbf16, #tpu.memory_space<vmem>>, vector<288x32xbf16>
    %cst_119 = arith.constant dense<0.000000e+00> : vector<288x128xf32>
    %301 = tpu.matmul %300, %299, %cst_119 {dimension_numbers = #tpu.dot_dimension_numbers<[1], [0], [0], [1], [0, 0, 1, 1], [], []>} : vector<288x32xbf16>, vector<32x128xbf16>, vector<288x128xf32> -> vector<288x128xf32>
    %302 = arith.truncf %301 : vector<288x128xf32> to vector<288x128xbf16>
    %303 = vector.extract_strided_slice %302 {offsets = [0, 0], sizes = [32, 128], strides = [1, 1]} : vector<288x128xbf16> to vector<32x128xbf16>
    %304 = vector.extract_strided_slice %302 {offsets = [32, 0], sizes = [32, 128], strides = [1, 1]} : vector<288x128xbf16> to vector<32x128xbf16>
    %305 = vector.extract_strided_slice %302 {offsets = [64, 0], sizes = [32, 128], strides = [1, 1]} : vector<288x128xbf16> to vector<32x128xbf16>
    %306 = vector.extract_strided_slice %302 {offsets = [96, 0], sizes = [32, 128], strides = [1, 1]} : vector<288x128xbf16> to vector<32x128xbf16>
    %307 = vector.extract_strided_slice %302 {offsets = [128, 0], sizes = [32, 128], strides = [1, 1]} : vector<288x128xbf16> to vector<32x128xbf16>
    %308 = vector.extract_strided_slice %302 {offsets = [160, 0], sizes = [32, 128], strides = [1, 1]} : vector<288x128xbf16> to vector<32x128xbf16>
    %309 = vector.extract_strided_slice %302 {offsets = [192, 0], sizes = [32, 128], strides = [1, 1]} : vector<288x128xbf16> to vector<32x128xbf16>
    %310 = vector.extract_strided_slice %302 {offsets = [224, 0], sizes = [32, 128], strides = [1, 1]} : vector<288x128xbf16> to vector<32x128xbf16>
    %311 = vector.extract_strided_slice %302 {offsets = [256, 0], sizes = [32, 128], strides = [1, 1]} : vector<288x128xbf16> to vector<32x128xbf16>
    %312 = tpu.concatenate %303, %304, %305, %306, %307, %308, %309, %310, %311 in 1 : vector<32x128xbf16>, vector<32x128xbf16>, vector<32x128xbf16>, vector<32x128xbf16>, vector<32x128xbf16>, vector<32x128xbf16>, vector<32x128xbf16>, vector<32x128xbf16>, vector<32x128xbf16> -> vector<32x1152xbf16>
    %c6 = arith.constant 6 : index
    %c0_120 = arith.constant 0 : index
    %c0_121 = arith.constant 0 : index
    %313 = vector.load %arg6[%c6, %c0_120, %c0_121] : memref<7x1152x128xbf16, #tpu.memory_space<vmem>>, vector<1x1152x128xbf16>
    %314 = vector.shape_cast %313 : vector<1x1152x128xbf16> to vector<1152x128xbf16>
    %cst_122 = arith.constant dense<0.000000e+00> : vector<32x128xf32>
    %315 = tpu.matmul %312, %314, %cst_122 {dimension_numbers = #tpu.dot_dimension_numbers<[1], [0], [0], [1], [0, 0, 1, 1], [], []>} : vector<32x1152xbf16>, vector<1152x128xbf16>, vector<32x128xf32> -> vector<32x128xf32>
    %c6_123 = arith.constant 6 : index
    %c0_124 = arith.constant 0 : index
    %316 = vector.load %arg7[%c6_123, %c0_124] : memref<7x128xf32, #tpu.memory_space<vmem>>, vector<1x128xf32>
    %c6_125 = arith.constant 6 : index
    %c0_126 = arith.constant 0 : index
    %317 = vector.load %arg8[%c6_125, %c0_126] : memref<7x128xf32, #tpu.memory_space<vmem>>, vector<1x128xf32>
    %cst_127 = arith.constant dense<0.000000e+00> : vector<128xf32>
    %318 = vector.multi_reduction <add>, %315, %cst_127 [0] : vector<32x128xf32> to vector<128xf32>
    %319 = vector.shape_cast %318 : vector<128xf32> to vector<1x128xf32>
    %320 = arith.mulf %315, %315 : vector<32x128xf32>
    %cst_128 = arith.constant dense<0.000000e+00> : vector<128xf32>
    %321 = vector.multi_reduction <add>, %320, %cst_128 [0] : vector<32x128xf32> to vector<128xf32>
    %322 = vector.shape_cast %321 : vector<128xf32> to vector<1x128xf32>
    %cst_129 = arith.constant 3.125000e-02 : f32
    %323 = vector.broadcast %cst_129 : f32 to vector<1x128xf32>
    %324 = arith.mulf %319, %323 : vector<1x128xf32>
    %cst_130 = arith.constant 3.125000e-02 : f32
    %325 = vector.broadcast %cst_130 : f32 to vector<1x128xf32>
    %326 = arith.mulf %322, %325 : vector<1x128xf32>
    %327 = arith.mulf %324, %324 : vector<1x128xf32>
    %328 = arith.subf %326, %327 : vector<1x128xf32>
    %cst_131 = arith.constant 0.000000e+00 : f32
    %329 = vector.broadcast %cst_131 : f32 to vector<1x128xf32>
    %330 = arith.maximumf %328, %329 : vector<1x128xf32>
    %cst_132 = arith.constant 9.99999974E-6 : f32
    %331 = vector.broadcast %cst_132 : f32 to vector<1x128xf32>
    %332 = arith.addf %330, %331 : vector<1x128xf32>
    %333 = math.rsqrt %332 : vector<1x128xf32>
    %334 = arith.mulf %316, %333 : vector<1x128xf32>
    %335 = arith.mulf %324, %334 : vector<1x128xf32>
    %336 = arith.subf %317, %335 : vector<1x128xf32>
    %337 = vector.broadcast %334 : vector<1x128xf32> to vector<32x128xf32>
    %338 = arith.mulf %315, %337 : vector<32x128xf32>
    %339 = vector.broadcast %336 : vector<1x128xf32> to vector<32x128xf32>
    %340 = arith.addf %338, %339 : vector<32x128xf32>
    %341 = arith.addf %340, %254 : vector<32x128xf32>
    %cst_133 = arith.constant 0.000000e+00 : f32
    %342 = vector.broadcast %cst_133 : f32 to vector<32x128xf32>
    %343 = arith.maximumf %341, %342 : vector<32x128xf32>
    %c0_134 = arith.constant 0 : index
    %c0_135 = arith.constant 0 : index
    %344 = vector.load %arg9[%c0_134, %c0_135] : memref<32x128xf32, #tpu.memory_space<vmem>>, vector<32x128xf32>
    tpu.vector_store %arg9[%c0_134, %c0_135], %343 {strides = array<i32>} : memref<32x128xf32, #tpu.memory_space<vmem>>, vector<32x128xf32>,
    return
  }
  func.func @transform_0(%arg0: i32) -> (i32, i32) {
    %c0_i32 = arith.constant 0 : i32
    %c0_i32_0 = arith.constant 0 : i32
    %c0_i32_1 = arith.constant 0 : i32
    return %c0_i32, %c0_i32_0 : i32, i32
  }
  func.func @transform_1(%arg0: i32) -> (i32, i32) {
    %c0_i32 = arith.constant 0 : i32
    %c0_i32_0 = arith.constant 0 : i32
    %c0_i32_1 = arith.constant 0 : i32
    return %c0_i32, %c0_i32_0 : i32, i32
  }
  func.func @transform_2(%arg0: i32) -> (i32, i32) {
    %c0_i32 = arith.constant 0 : i32
    %c0_i32_0 = arith.constant 0 : i32
    %c0_i32_1 = arith.constant 0 : i32
    return %c0_i32, %c0_i32_0 : i32, i32
  }
  func.func @transform_3(%arg0: i32) -> (i32, i32) {
    %c0_i32 = arith.constant 0 : i32
    %c0_i32_0 = arith.constant 0 : i32
    %c0_i32_1 = arith.constant 0 : i32
    return %c0_i32, %c0_i32_0 : i32, i32
  }
  func.func @transform_4(%arg0: i32) -> (i32, i32) {
    %c0_i32 = arith.constant 0 : i32
    %c0_i32_0 = arith.constant 0 : i32
    %c0_i32_1 = arith.constant 0 : i32
    return %c0_i32, %c0_i32_0 : i32, i32
  }
  func.func @transform_5(%arg0: i32) -> (i32, i32, i32) {
    %c0_i32 = arith.constant 0 : i32
    %c0_i32_0 = arith.constant 0 : i32
    %c0_i32_1 = arith.constant 0 : i32
    %c0_i32_2 = arith.constant 0 : i32
    return %c0_i32, %c0_i32_0, %c0_i32_1 : i32, i32, i32
  }
  func.func @transform_6(%arg0: i32) -> (i32, i32) {
    %c0_i32 = arith.constant 0 : i32
    %c0_i32_0 = arith.constant 0 : i32
    %c0_i32_1 = arith.constant 0 : i32
    return %c0_i32, %c0_i32_0 : i32, i32
  }
  func.func @transform_7(%arg0: i32) -> (i32, i32) {
    %c0_i32 = arith.constant 0 : i32
    %c0_i32_0 = arith.constant 0 : i32
    %c0_i32_1 = arith.constant 0 : i32
    return %c0_i32, %c0_i32_0 : i32, i32
  }
  func.func @transform_8(%arg0: i32) -> (i32, i32) {
    %c0_i32 = arith.constant 0 : i32
    %c0_i32_0 = arith.constant 0 : i32
    %c0_i32_1 = arith.constant 0 : i32
    return %c0_i32, %c0_i32_0 : i32, i32
  }
}

</mosaic_0001>

<bundles_post_ra>
// kernel: resnet2_forward.1
= control target key start
LH: loop header
LB: loop body
LE: loop exit
PB: predicated region body
PF: predicated region fallthrough
CT: control target
= control target key end

     0   :  { %13 = vsyncpa [#allocation3], 0  ;;  %s12917_s0 = inlined_call_operand.vmem [shape: bf16[32,576], index: 0, kind: input, shape index: {}]   ;;  %s12918_s1 = inlined_call_operand.hbm [shape: bf16[576,256], index: 1, kind: input, shape index: {}]   ;;  %s12919_s2 = inlined_call_operand.hbm [shape: f32[1,256], index: 2, kind: input, shape index: {}]   ;;  %s12920_s3 = inlined_call_operand.hbm [shape: f32[1,256], index: 3, kind: input, shape index: {}]   ;;  %s12921_s4 = inlined_call_operand.vmem [shape: bf16[288,32], index: 4, kind: input, shape index: {}]   ;;  %s12922_s5 = inlined_call_operand.hbm [shape: bf16[7,1152,128], index: 5, kind: input, shape index: {}]   ;;  %s12923_s6 = inlined_call_operand.hbm [shape: f32[7,128], index: 6, kind: input, shape index: {}]   ;;  %s12924_s7 = inlined_call_operand.hbm [shape: f32[7,128], index: 7, kind: input, shape index: {}]   ;;  %s12925_s8 = inlined_call_operand.hbm [shape: f32[32,128], index: 8, kind: output, shape index: {}]  }
   0x1   :  { %14 = vsyncpa [#allocation6], 0 }
   0x2   :  { %15 = vsyncpa [#allocation9], 0 }
   0x3   :  { %16 = vsyncpa [#allocation12], 0  ;;  %s38_s29 = sshll.u32 %s12919_s2, 4  ;;  %s39_s29 = int_to_ptr.hbm [resolvable:$true] %s38_s29 }
   0x4   :  { %17 = vsyncpa [#allocation4], 0  ;;  %s11914_s30 = smov [#allocation5]   ;;  %s61_s12 = sshll.u32 %s12922_s5, 4  ;;  %s62_s12 = int_to_ptr.hbm [resolvable:$true] %s61_s12 }
   0x5   :  { %s40_s9 = sshll.u32 %s11914_s30, 4  ;;  %s11915_s13 = smov [#allocation8]   ;;  %s41_s9 = int_to_ptr.vmem [resolvable:$true] %s40_s9 }
   0x6   :  { %43 = dma.hbm_to_vmem [thread:$0]  %s39_s29, 32, %s41_s9, [#allocation6]  }
   0x7   :  { %s63_s14 = sshll.u32 %s11915_s13, 4  ;;  %s11916_s15 = smov 64   ;;  %s64_s14 = int_to_ptr.vmem [resolvable:$true] %s63_s14 }
   0x8   :  { %s11917_s16 = smov 4   ;;  %s24_s2 = sshll.u32 %s12918_s1, 4  ;;  %s25_s2 = int_to_ptr.hbm [resolvable:$true] %s24_s2 }
   0x9   :  { %69 = dma.hbm_to_vmem [thread:$0]  %s62_s12, 64512, %s64_s14, [#allocation9], %s11916_s15, %s11916_s15, %s11917_s16  }
   0xa   :  { %s11918_s19 = smov [#allocation2]   ;;  %s49_s5 = sshll.u32 %s12920_s3, 4  ;;  %s50_s5 = int_to_ptr.hbm [resolvable:$true] %s49_s5 }
   0xb   :  { %s26_s20 = sshll.u32 %s11918_s19, 4  ;;  %s11919_s23 = smov 128   ;;  %s27_s20 = int_to_ptr.vmem [resolvable:$true] %s26_s20 }
   0xc   :  { %s11920_s24 = smov 8   ;;  %s11921_s25 = smov [#allocation7]  }
   0xd   :  { %32 = dma.hbm_to_vmem [thread:$0]  %s25_s2, 9216, %s27_s20, [#allocation3], %s11919_s23, %s11919_s23, %s11920_s24  }
   0xe   :  { %s51_s26 = sshll.u32 %s11921_s25, 4  ;;  %s75_s1 = sshll.u32 %s12923_s6, 4  ;;  %s52_s26 = int_to_ptr.vmem [resolvable:$true] %s51_s26  ;;  %s76_s1 = int_to_ptr.hbm [resolvable:$true] %s75_s1 }
   0xf   :  { %54 = dma.hbm_to_vmem [thread:$0]  %s50_s5, 32, %s52_s26, [#allocation6]  }
  0x10   :  { %s86_s3 = sshll.u32 %s12924_s7, 4  ;;  %s11922_s9 = smov [#allocation10]   ;;  %s87_s3 = int_to_ptr.hbm [resolvable:$true] %s86_s3 }
  0x11   :  { %s77_s10 = sshll.u32 %s11922_s9, 4  ;;  %s11923_s11 = smov [#allocation11]   ;;  %s78_s10 = int_to_ptr.vmem [resolvable:$true] %s77_s10 }
  0x12   :  { %80 = dma.hbm_to_vmem [thread:$0]  %s76_s1, 128, %s78_s10, [#allocation9]  }
  0x13   :  { %s88_s12 = sshll.u32 %s11923_s11, 4  ;;  %s89_s12 = int_to_ptr.vmem [resolvable:$true] %s88_s12 }
  0x14   :  { %91 = dma.hbm_to_vmem [thread:$0]  %s87_s3, 128, %s89_s12, [#allocation12]  }
  0x15   :  { %11904 = dma.done.wait [#allocation3], 9216  }
  0x16   :  { %11905 = vsyncadd [#allocation3], 4294958080 }
  0x17   :  { %11906 = dma.done.wait [#allocation6], 64  }
  0x18   :  { %11907 = vsyncadd [#allocation6], 4294967232 }
  0x19   :  { %11908 = dma.done.wait [#allocation9], 64640  }
  0x1a   :  { %11909 = vsyncadd [#allocation9], 4294902656 }
  0x1b   :  { %11910 = dma.done.wait [#allocation12], 128  }
  0x1c   :  { %11911 = vsyncadd [#allocation12], 4294967168  ;;  %v8601_v0 = vld [vmem:[#allocation2 + $0x70] sm:$0xf]  ;;  %v11074_v1 = vld [vmem:[#allocation2 + $0x74] sm:$0xf0] }
  0x1d   :  { %v8665_v2 = vld [vmem:[#allocation2 + $0xf0] sm:$0xf]  ;;  %v8602_v3 = vor.u32 %v11074_v1, %v8601_v0  ;;  %v11090_v4 = vld [vmem:[#allocation2 + $0xf4] sm:$0xf0]  ;;  %v8593_v5 = vld [vmem:[#allocation2 + $0x60] sm:$0xf] }
  0x1e   :  { %v11072_v6 = vld [vmem:[#allocation2 + $0x64] sm:$0xf0]  ;;  %v8666_v7 = vor.u32 %v11090_v4, %v8665_v2  ;;  %v8657_v8 = vld [vmem:[#allocation2 + $0xe0] sm:$0xf]  ;;  %v8585_v12 = vld [vmem:[#allocation2 + $0x50] sm:$0xf] }
  0x1f   :  { %v11088_v9 = vld [vmem:[#allocation2 + $0xe4] sm:$0xf0]  ;;  %618 = vmatpush.bf16.msra.mxu0 %v8602_v3  ;;  %v8594_v10 = vor.u32 %v11072_v6, %v8593_v5  ;;  %v11070_v13 = vld [vmem:[#allocation2 + $0x54] sm:$0xf0]  ;;  %v8649_v14 = vld [vmem:[#allocation2 + $0xd0] sm:$0xf] }
  0x20   :  { %637 = vmatpush.bf16.msra.mxu1 %v8666_v7  ;;  %v8658_v11 = vor.u32 %v11088_v9, %v8657_v8  ;;  %v11086_v15 = vld [vmem:[#allocation2 + $0xd4] sm:$0xf0]  ;;  %v8586_v16 = vor.u32 %v11070_v13, %v8585_v12  ;;  %v8577_v18 = vld [vmem:[#allocation2 + $0x40] sm:$0xf]  ;;  %v11068_v19 = vld [vmem:[#allocation2 + $0x44] sm:$0xf0] }
  0x21   :  { %v8650_v17 = vor.u32 %v11086_v15, %v8649_v14  ;;  %v8641_v20 = vld [vmem:[#allocation2 + $0xc0] sm:$0xf]  ;;  %v11084_v21 = vld [vmem:[#allocation2 + $0xc4] sm:$0xf0]  ;;  %v8793_v22 = vld [vmem:[#allocation2 + $0x1f0] sm:$0xf]  ;;  %v8578_v23 = vor.u32 %v11068_v19, %v8577_v18 }
  0x22   :  { %v11122_v24 = vld [vmem:[#allocation2 + $0x1f4] sm:$0xf0]  ;;  %v8642_v25 = vor.u32 %v11084_v21, %v8641_v20  ;;  %v8569_v26 = vld [vmem:[#allocation2 + $0x30] sm:$0xf]  ;;  %v8785_v31 = vld [vmem:[#allocation2 + $0x1e0] sm:$0xf] }
  0x23   :  { %619 = vmatpush.bf16.msra.mxu0 %v8594_v10  ;;  %v11066_v27 = vld [vmem:[#allocation2 + $0x34] sm:$0xf0]  ;;  %v8633_v28 = vld [vmem:[#allocation2 + $0xb0] sm:$0xf]  ;;  %v8794_v29 = vor.u32 %v11122_v24, %v8793_v22  ;;  %v11120_v32 = vld [vmem:[#allocation2 + $0x1e4] sm:$0xf0] }
  0x24   :  { %638 = vmatpush.bf16.msra.mxu1 %v8658_v11  ;;  %v11082_v30 = vld [vmem:[#allocation2 + $0xb4] sm:$0xf0]  ;;  %v8786_v33 = vor.u32 %v11120_v32, %v8785_v31  ;;  %v8570_v34 = vor.u32 %v11066_v27, %v8569_v26  ;;  %v8777_v35 = vld [vmem:[#allocation2 + $0x1d0] sm:$0xf]  ;;  %v8561_v38 = vld [vmem:[#allocation2 + $0x20] sm:$0xf] }
  0x25   :  { %675 = vmatpush.bf16.msra.mxu3 %v8794_v29  ;;  %v11118_v36 = vld [vmem:[#allocation2 + $0x1d4] sm:$0xf0]  ;;  %v8634_v37 = vor.u32 %v11082_v30, %v8633_v28  ;;  %v11064_v39 = vld [vmem:[#allocation2 + $0x24] sm:$0xf0]  ;;  %v8625_v40 = vld [vmem:[#allocation2 + $0xa0] sm:$0xf] }
  0x26   :  { %v11080_v41 = vld [vmem:[#allocation2 + $0xa4] sm:$0xf0]  ;;  %v8778_v42 = vor.u32 %v11118_v36, %v8777_v35  ;;  %v8562_v43 = vor.u32 %v11064_v39, %v8561_v38  ;;  %v8769_v44 = vld [vmem:[#allocation2 + $0x1c0] sm:$0xf]  ;;  %v8553_v47 = vld [vmem:[#allocation2 + $0x10] sm:$0xf] }
  0x27   :  { %620 = vmatpush.bf16.msra.mxu0 %v8586_v16  ;;  %v11116_v45 = vld [vmem:[#allocation2 + $0x1c4] sm:$0xf0]  ;;  %v8626_v46 = vor.u32 %v11080_v41, %v8625_v40  ;;  %v11062_v48 = vld [vmem:[#allocation2 + $0x14] sm:$0xf0]  ;;  %v8617_v49 = vld [vmem:[#allocation2 + $0x90] sm:$0xf] }
  0x28   :  { %639 = vmatpush.bf16.msra.mxu1 %v8650_v17  ;;  %v11078_v50 = vld [vmem:[#allocation2 + $0x94] sm:$0xf0]  ;;  %v8770_v51 = vor.u32 %v11116_v45, %v8769_v44  ;;  %v8554_v52 = vor.u32 %v11062_v48, %v8553_v47  ;;  %v8761_v53 = vld [vmem:[#allocation2 + $0x1b0] sm:$0xf]  ;;  %v8545_v56 = vld [vmem:[#allocation2] sm:$0xf] }
  0x29   :  { %676 = vmatpush.bf16.msra.mxu3 %v8786_v33  ;;  %v11114_v54 = vld [vmem:[#allocation2 + $0x1b4] sm:$0xf0]  ;;  %v8618_v55 = vor.u32 %v11078_v50, %v8617_v49  ;;  %v11060_v57 = vld [vmem:[#allocation2 + $0x4] sm:$0xf0]  ;;  %v8609_v58 = vld [vmem:[#allocation2 + $0x80] sm:$0xf] }
  0x2a   :  { %v11076_v59 = vld [vmem:[#allocation2 + $0x84] sm:$0xf0]  ;;  %v8729_v60 = vld [vmem:[#allocation2 + $0x170] sm:$0xf]  ;;  %v11106_v61 = vld [vmem:[#allocation2 + $0x174] sm:$0xf0]  ;;  %v8762_v1 = vor.u32 %v11114_v54, %v8761_v53  ;;  %v8546_v2 = vor.u32 %v11060_v57, %v8545_v56 }
  0x2b   :  { %621 = vmatpush.bf16.msra.mxu0 %v8578_v23  ;;  %v8505_v62 = vld [vmem:[%s12917_s0] sm:$0xf]  ;;  %v11073_v63 = vld [vmem:[#allocation2 + $0x74] sm:$0xf]  ;;  %v8603_v0 = vld [vmem:[#allocation2 + $0x78] sm:$0xf0]  ;;  %v8610_v6 = vor.u32 %v11076_v59, %v8609_v58  ;;  %v8730_v9 = vor.u32 %v11106_v61, %v8729_v60 }
  0x2c   :  { %640 = vmatpush.bf16.msra.mxu1 %v8642_v25  ;;  %v11051_v3 = vld [vmem:[%s12917_s0 + $0x10] sm:$0xf0]  ;;  %v8753_v4 = vld [vmem:[#allocation2 + $0x1a0] sm:$0xf]  ;;  %v11112_v5 = vld [vmem:[#allocation2 + $0x1a4] sm:$0xf0]  ;;  %v8606_v10 = vor.u32 %v11073_v63, %v8603_v0 }
  0x2d   :  { %677 = vmatpush.bf16.msra.mxu3 %v8778_v42  ;;  %v11049_v7 = vld [vmem:[%s12917_s0 + $0x4] sm:$0xf]  ;;  %v8507_v8 = vld [vmem:[%s12917_s0 + $0x14] sm:$0xf0]  ;;  %v8721_v11 = vld [vmem:[#allocation2 + $0x160] sm:$0xf]  ;;  %v12003_v13 = vor.u32 %v11051_v3, %v8505_v62  ;;  %v8754_v16 = vor.u32 %v11112_v5, %v8753_v4 }
  0x2e   :  { %v11104_v12 = vld [vmem:[#allocation2 + $0x164] sm:$0xf0]  ;;  %v11071_v14 = vld [vmem:[#allocation2 + $0x64] sm:$0xf]  ;;  %v8595_v15 = vld [vmem:[#allocation2 + $0x68] sm:$0xf0]  ;;  %v12005_v17 = vor.u32 %v11049_v7, %v8507_v8 }
  0x2f   :  { %622 = vmatpush.bf16.msra.mxu0 %v8570_v34  ;;  %v8745_v18 = vld [vmem:[#allocation2 + $0x190] sm:$0xf]  ;;  %v11110_v19 = vld [vmem:[#allocation2 + $0x194] sm:$0xf0]  ;;  %v8722_v20 = vor.u32 %v11104_v12, %v8721_v11  ;;  %v8598_v21 = vor.u32 %v11071_v14, %v8595_v15  ;;  %v11069_v24 = vld [vmem:[#allocation2 + $0x54] sm:$0xf] }
  0x30   :  { %641 = vmatpush.bf16.msra.mxu1 %v8634_v37  ;;  %v8713_v22 = vld [vmem:[#allocation2 + $0x150] sm:$0xf]  ;;  %v11102_v23 = vld [vmem:[#allocation2 + $0x154] sm:$0xf0]  ;;  %v8587_v25 = vld [vmem:[#allocation2 + $0x58] sm:$0xf0]  ;;  %v8746_v26 = vor.u32 %v11110_v19, %v8745_v18 }
  0x31   :  { %678 = vmatpush.bf16.msra.mxu3 %v8770_v51  ;;  %v8737_v27 = vld [vmem:[#allocation2 + $0x180] sm:$0xf]  ;;  %v11108_v28 = vld [vmem:[#allocation2 + $0x184] sm:$0xf0]  ;;  %v8714_v29 = vor.u32 %v11102_v23, %v8713_v22  ;;  %v11105_v30 = vld [vmem:[#allocation2 + $0x174] sm:$0xf]  ;;  %v8590_v32 = vor.u32 %v11069_v24, %v8587_v25 }
  0x32   :  { %v8731_v31 = vld [vmem:[#allocation2 + $0x178] sm:$0xf0]  ;;  %v8705_v33 = vld [vmem:[#allocation2 + $0x140] sm:$0xf]  ;;  %v11100_v34 = vld [vmem:[#allocation2 + $0x144] sm:$0xf0]  ;;  %v8738_v37 = vor.u32 %v11108_v28, %v8737_v27 }
  0x33   :  { %623 = vmatpush.bf16.msra.mxu0 %v8562_v43  ;;  %v11067_v35 = vld [vmem:[#allocation2 + $0x44] sm:$0xf]  ;;  %v8579_v36 = vld [vmem:[#allocation2 + $0x48] sm:$0xf0]  ;;  %v8515_v39 = vld [vmem:[%s12917_s0 + $0x1c] sm:$0xf0]  ;;  %v8734_v40 = vor.u32 %v11105_v30, %v8731_v31  ;;  %v8706_v41 = vor.u32 %v11100_v34, %v8705_v33 }
  0x34   :  { %642 = vmatpush.bf16.msra.mxu1 %v8626_v46  ;;  %v11050_v38 = vld [vmem:[%s12917_s0 + $0xc] sm:$0xf]  ;;  %v11103_v42 = vld [vmem:[#allocation2 + $0x164] sm:$0xf]  ;;  %v8582_v44 = vor.u32 %v11067_v35, %v8579_v36  ;;  %v8697_v45 = vld [vmem:[#allocation2 + $0x130] sm:$0xf] }
  0x35   :  { %679 = vmatpush.bf16.msra.mxu3 %v8762_v1  ;;  %v8723_v43 = vld [vmem:[#allocation2 + $0x168] sm:$0xf0]  ;;  %v11098_v46 = vld [vmem:[#allocation2 + $0x134] sm:$0xf0]  ;;  %v12015_v47 = vor.u32 %v11050_v38, %v8515_v39  ;;  %v11065_v48 = vld [vmem:[#allocation2 + $0x34] sm:$0xf] }
  0x36   :  { %v8571_v49 = vld [vmem:[#allocation2 + $0x38] sm:$0xf0]  ;;  %v8525_v50 = vld [vmem:[%s12917_s0 + $0x28] sm:$0xf]  ;;  %v8726_v53 = vor.u32 %v11103_v42, %v8723_v43  ;;  %v8527_v54 = vld [vmem:[%s12917_s0 + $0x3c] sm:$0xf0] }
  0x37   :  { %624 = vmatpush.bf16.msra.mxu0 %v8554_v52  ;;  %v11056_v51 = vld [vmem:[%s12917_s0 + $0x38] sm:$0xf0]  ;;  %v11054_v52 = vld [vmem:[%s12917_s0 + $0x2c] sm:$0xf]  ;;  %v11101_v56 = vld [vmem:[#allocation2 + $0x154] sm:$0xf]  ;;  %v8574_v58 = vor.u32 %v11065_v48, %v8571_v49 }
  0x38   :  { %643 = vmatpush.bf16.msra.mxu1 %v8618_v55  ;;  %v8698_v55 = vor.u32 %v11098_v46, %v8697_v45  ;;  %v8715_v57 = vld [vmem:[#allocation2 + $0x158] sm:$0xf0]  ;;  %v8689_v59 = vld [vmem:[#allocation2 + $0x120] sm:$0xf]  ;;  %v11096_v60 = vld [vmem:[#allocation2 + $0x124] sm:$0xf0]  ;;  %v12030_v61 = vor.u32 %v11056_v51, %v8525_v50  ;;  %v12032_v0 = vor.u32 %v11054_v52, %v8527_v54 }
  0x39   :  { %680 = vmatpush.bf16.msra.mxu3 %v8754_v16  ;;  %v11063_v62 = vld [vmem:[#allocation2 + $0x24] sm:$0xf]  ;;  %v8563_v63 = vld [vmem:[#allocation2 + $0x28] sm:$0xf0]  ;;  %v8718_v1 = vor.u32 %v11101_v56, %v8715_v57  ;;  %v11094_v7 = vld [vmem:[#allocation2 + $0x114] sm:$0xf0] }
  0x3a   :  { %v11099_v3 = vld [vmem:[#allocation2 + $0x144] sm:$0xf]  ;;  %v8707_v4 = vld [vmem:[#allocation2 + $0x148] sm:$0xf0]  ;;  %v8566_v5 = vor.u32 %v11063_v62, %v8563_v63  ;;  %v11061_v8 = vld [vmem:[#allocation2 + $0x14] sm:$0xf] }
  0x3b   :  { %625 = vmatpush.bf16.msra.mxu0 %v8546_v2  ;;  %v8690_v2 = vor.u32 %v11096_v60, %v8689_v59  ;;  %v8673_v12 = vld [vmem:[#allocation2 + $0x100] sm:$0xf]  ;;  %v11097_v14 = vld [vmem:[#allocation2 + $0x134] sm:$0xf]  ;;  %v8699_v15 = vld [vmem:[#allocation2 + $0x138] sm:$0xf0] }
  0x3c   :  { %644 = vmatpush.bf16.msra.mxu1 %v8610_v6  ;;  %v8681_v6 = vld [vmem:[#allocation2 + $0x110] sm:$0xf]  ;;  %v11092_v18 = vld [vmem:[#allocation2 + $0x104] sm:$0xf0]  ;;  %v11059_v19 = vld [vmem:[#allocation2 + $0x4] sm:$0xf]  ;;  %v8702_v25 = vor.u32 %v11097_v14, %v8699_v15 }
  0x3d   :  { %681 = vmatpush.bf16.msra.mxu3 %v8746_v26  ;;  %v8682_v11 = vor.u32 %v11094_v7, %v8681_v6  ;;  %v11055_v22 = vld [vmem:[%s12917_s0 + $0x34] sm:$0xf]  ;;  %v8535_v23 = vld [vmem:[%s12917_s0 + $0x44] sm:$0xf0]  ;;  %v8667_v24 = vld [vmem:[#allocation2 + $0xf8] sm:$0xf0]  ;;  %v8674_v28 = vor.u32 %v11092_v18, %v8673_v12 }
  0x3e   :  { %626 = vmatmul.bf16.vlgmr.msra.gmra.mxu0 %v12003_v13  ;;  %v8825_v26 = vld [vmem:[#allocation2 + $0x230] sm:$0xf]  ;;  %v11130_v27 = vld [vmem:[#allocation2 + $0x234] sm:$0xf0]  ;;  %v8691_v30 = vld [vmem:[#allocation2 + $0x128] sm:$0xf0] }
  0x3f   :  { %656 = vmatpush.bf16.msrb.mxu0 %v8730_v9  ;;  %645 = vmatmul.bf16.vlgmr.msra.gmra.mxu1 %v12005_v17  ;;  %v8555_v9 = vld [vmem:[#allocation2 + $0x18] sm:$0xf0]  ;;  %v8513_v33 = vld [vmem:[%s12917_s0 + $0x8] sm:$0xf]  ;;  %v8826_v35 = vor.u32 %v11130_v27, %v8825_v26  ;;  %v8659_v38 = vld [vmem:[#allocation2 + $0xe8] sm:$0xf0] }
  0x40   :  { %713 = vmatpush.bf16.msrb.mxu1 %v8606_v10  ;;  %v8710_v10 = vor.u32 %v11099_v3, %v8707_v4  ;;  %v8558_v16 = vor.u32 %v11061_v8, %v8555_v9  ;;  %v11052_v36 = vld [vmem:[%s12917_s0 + $0x18] sm:$0xf0]  ;;  %v11093_v42 = vld [vmem:[#allocation2 + $0x114] sm:$0xf]  ;;  %v8809_v51 = vld [vmem:[#allocation2 + $0x210] sm:$0xf] }
  0x41   :  { %682 = vmatpush.bf16.msra.mxu3 %v8738_v37  ;;  %v11087_v37 = vld [vmem:[#allocation2 + $0xe4] sm:$0xf]  ;;  %v8683_v43 = vld [vmem:[#allocation2 + $0x118] sm:$0xf0]  ;;  %v11085_v46 = vld [vmem:[#allocation2 + $0xd4] sm:$0xf] }
  0x42   :  { %v8662_v45 = vor.u32 %v11087_v37, %v8659_v38  ;;  %v8651_v48 = vld [vmem:[#allocation2 + $0xd8] sm:$0xf0]  ;;  %v8686_v50 = vor.u32 %v11093_v42, %v8683_v43  ;;  %v11126_v52 = vld [vmem:[#allocation2 + $0x214] sm:$0xf0]  ;;  %v8675_v54 = vld [vmem:[#allocation2 + $0x108] sm:$0xf0] }
  0x43   :  { %657 = vmatpush.bf16.msrb.mxu0 %v8722_v20  ;;  %v8547_v20 = vld [vmem:[#allocation2 + $0x8] sm:$0xf0]  ;;  %v11083_v56 = vld [vmem:[#allocation2 + $0xc4] sm:$0xf]  ;;  %v8801_v60 = vld [vmem:[#allocation2 + $0x200] sm:$0xf] }
  0x44   :  { %714 = vmatpush.bf16.msrb.mxu1 %v8598_v21  ;;  %683 = vmatmul.bf16.vlgmr.msra.gmra.mxu3 %v12015_v47  ;;  %v11089_v21 = vld [vmem:[#allocation2 + $0xf4] sm:$0xf]  ;;  %v8550_v31 = vor.u32 %v11059_v19, %v8547_v20  ;;  %v8643_v57 = vld [vmem:[#allocation2 + $0xc8] sm:$0xf0]  ;;  %v11124_v62 = vld [vmem:[#allocation2 + $0x204] sm:$0xf0] }
  0x45   :  { %751 = vmatpush.bf16.msrb.mxu3 %v8734_v40  ;;  %v8670_v34 = vor.u32 %v11089_v21, %v8667_v24  ;;  %v8817_v40 = vld [vmem:[#allocation2 + $0x220] sm:$0xf]  ;;  %v11121_v63 = vld [vmem:[#allocation2 + $0x1f4] sm:$0xf]  ;;  %v8635_v4 = vld [vmem:[#allocation2 + $0xb8] sm:$0xf0] }
  0x46   :  { %v11081_v3 = vld [vmem:[#allocation2 + $0xb4] sm:$0xf]  ;;  %v11119_v7 = vld [vmem:[#allocation2 + $0x1e4] sm:$0xf]  ;;  %v8533_v8 = vld [vmem:[%s12917_s0 + $0x30] sm:$0xf] }
  0x47   :  { %658 = vmatpush.bf16.msrb.mxu0 %v8714_v29  ;;  %v11095_v29 = vld [vmem:[#allocation2 + $0x124] sm:$0xf]  ;;  %v8638_v9 = vor.u32 %v11081_v3, %v8635_v4  ;;  %v8627_v12 = vld [vmem:[#allocation2 + $0xa8] sm:$0xf0]  ;;  %v11117_v15 = vld [vmem:[#allocation2 + $0x1d4] sm:$0xf] }
  0x48   :  { %715 = vmatpush.bf16.msrb.mxu1 %v8590_v32  ;;  %v12042_v32 = vor.u32 %v11055_v22, %v8535_v23  ;;  %v8694_v39 = vor.u32 %v11095_v29, %v8691_v30  ;;  %v11077_v20 = vld [vmem:[#allocation2 + $0x94] sm:$0xf]  ;;  %v8619_v21 = vld [vmem:[#allocation2 + $0x98] sm:$0xf0]  ;;  %v11115_v23 = vld [vmem:[#allocation2 + $0x1c4] sm:$0xf] }
  0x49   :  { %752 = vmatpush.bf16.msrb.mxu3 %v8726_v53  ;;  %v11091_v53 = vld [vmem:[#allocation2 + $0x104] sm:$0xf]  ;;  %v8771_v24 = vld [vmem:[#allocation2 + $0x1c8] sm:$0xf0]  ;;  %v11129_v29 = vld [vmem:[#allocation2 + $0x234] sm:$0xf] }
  0x4a   :  { %v8678_v59 = vor.u32 %v11091_v53, %v8675_v54  ;;  %v11075_v26 = vld [vmem:[#allocation2 + $0x84] sm:$0xf]  ;;  %v8611_v27 = vld [vmem:[#allocation2 + $0x88] sm:$0xf0]  ;;  %v8827_v30 = vld [vmem:[#allocation2 + $0x238] sm:$0xf0] }
  0x4b   :  { %659 = vmatpush.bf16.msrb.mxu0 %v8706_v41  ;;  %v11128_v41 = vld [vmem:[#allocation2 + $0x224] sm:$0xf0]  ;;  %v11127_v37 = vld [vmem:[#allocation2 + $0x224] sm:$0xf]  ;;  %v8819_v38 = vld [vmem:[#allocation2 + $0x228] sm:$0xf0] }
  0x4c   :  { %716 = vmatpush.bf16.msrb.mxu1 %v8582_v44  ;;  %v8514_v44 = vor.u32 %v11052_v36, %v8513_v33  ;;  %v8818_v49 = vor.u32 %v11128_v41, %v8817_v40  ;;  %v8763_v33 = vld [vmem:[#allocation2 + $0x1b8] sm:$0xf0]  ;;  %v8755_v40 = vld [vmem:[#allocation2 + $0x1a8] sm:$0xf0]  ;;  %v11053_v41 = vld [vmem:[%s12917_s0 + $0x20] sm:$0xf0]  ;;  %v8822_v42 = vor.u32 %v11127_v37, %v8819_v38 }
  0x4d   :  { %753 = vmatpush.bf16.msrb.mxu3 %v8718_v1  ;;  %v8795_v1 = vld [vmem:[#allocation2 + $0x1f8] sm:$0xf0]  ;;  %vm611_vm0 = vcmask 523264   ;;  %v8739_v53 = vld [vmem:[#allocation2 + $0x188] sm:$0xf0]  ;;  %vm889_vm6 = vcmask 1040384  }
  0x4e   :  { %631 = vmatmul.bf16.gmra.mxu0 %v12030_v61  ;;  %v8798_v6 = vor.u32 %v11121_v63, %v8795_v1  ;;  %v11123_v54 = vld [vmem:[#allocation2 + $0x204] sm:$0xf]  ;;  %vm1059_vm8 = vcmask 261120   ;;  %s8487_s12 = sshll.u32 %s12925_s8, 4  ;;  %s8488_s12 = int_to_ptr.hbm [resolvable:$true] %s8487_s12 }
  0x4f   :  { %660 = vmatpush.bf16.msrb.mxu0 %v8698_v55  ;;  %650 = vmatmul.bf16.gmra.mxu1 %v12032_v0  ;;  %v8654_v55 = vor.u32 %v11085_v46, %v8651_v48  ;;  %v11125_v46 = vld [vmem:[#allocation2 + $0x214] sm:$0xf]  ;;  %v8811_v48 = vld [vmem:[#allocation2 + $0x218] sm:$0xf0] }
  0x50   :  { %717 = vmatpush.bf16.msrb.mxu1 %v8574_v58  ;;  %v8810_v58 = vor.u32 %v11126_v52, %v8809_v51  ;;  %v8814_v51 = vor.u32 %v11125_v46, %v8811_v48  ;;  %v11107_v52 = vld [vmem:[#allocation2 + $0x184] sm:$0xf] }
  0x51   :  { %754 = vmatpush.bf16.msrb.mxu3 %v8710_v10  ;;  %v11057_v10 = vld [vmem:[%s12917_s0 + $0x40] sm:$0xf0] }
  0x52   :  { %v8534_v18 = vor.u32 %v11057_v10, %v8533_v8 }
  0x53   :  { %661 = vmatpush.bf16.msrb.mxu0 %v8690_v2  ;;  %v8646_v2 = vor.u32 %v11083_v56, %v8643_v57  ;;  %v8742_v56 = vor.u32 %v11107_v52, %v8739_v53 }
  0x54   :  { %718 = vmatpush.bf16.msrb.mxu1 %v8566_v5  ;;  %688 = vmatmul.bf16.gmra.mxu3 %v12042_v32  ;;  %v8802_v5 = vor.u32 %v11124_v62, %v8801_v60 }
  0x55   :  { %755 = vmatpush.bf16.msrb.mxu3 %v8702_v25  ;;  %v8622_v25 = vor.u32 %v11077_v20, %v8619_v21 }
  0x57   :  { %662 = vmatpush.bf16.msrb.mxu0 %v8682_v11  ;;  %v11079_v11 = vld [vmem:[#allocation2 + $0xa4] sm:$0xf] }
  0x58   :  { %719 = vmatpush.bf16.msrb.mxu1 %v8558_v16  ;;  %v8779_v16 = vld [vmem:[#allocation2 + $0x1d8] sm:$0xf0]  ;;  %v8630_v19 = vor.u32 %v11079_v11, %v8627_v12 }
  0x59   :  { %756 = vmatpush.bf16.msrb.mxu3 %v8694_v39  ;;  %v8782_v22 = vor.u32 %v11117_v15, %v8779_v16  ;;  %v11111_v39 = vld [vmem:[#allocation2 + $0x1a4] sm:$0xf] }
  0x5a   :  { %v8758_v43 = vor.u32 %v11111_v39, %v8755_v40 }
  0x5b   :  { %663 = vmatpush.bf16.msrb.mxu0 %v8674_v28  ;;  %v8774_v28 = vor.u32 %v11115_v23, %v8771_v24 }
  0x5c   :  { %720 = vmatpush.bf16.msrb.mxu1 %v8550_v31  ;;  %v11113_v31 = vld [vmem:[#allocation2 + $0x1b4] sm:$0xf] }
  0x5d   :  { %757 = vmatpush.bf16.msrb.mxu3 %v8686_v50  ;;  %v8766_v36 = vor.u32 %v11113_v31, %v8763_v33 }
  0x5e   :  { %664 = vmatmul.bf16.vlgmr.msrb.gmra.mxu0 %v8514_v44 }
  0x5f   :  { %698 = vmatpush.bf16.msra.mxu0 %v8826_v35  ;;  %721 = vmatmul.bf16.vlgmr.msrb.gmra.mxu1 %v12003_v13  ;;  %v8787_v13 = vld [vmem:[#allocation2 + $0x1e8] sm:$0xf0]  ;;  %v8830_v35 = vor.u32 %v11129_v29, %v8827_v30 }
  0x60   :  { %732 = vmatpush.bf16.msra.mxu1 %v8670_v34  ;;  %v8790_v14 = vor.u32 %v11119_v7, %v8787_v13  ;;  %v8614_v34 = vor.u32 %v11075_v26, %v8611_v27 }
  0x61   :  { %758 = vmatpush.bf16.msrb.mxu3 %v8678_v59  ;;  %v11058_v59 = vld [vmem:[%s12917_s0 + $0x48] sm:$0xf0] }
  0x63   :  { %699 = vmatpush.bf16.msra.mxu0 %v8818_v49 }
  0x64   :  { %733 = vmatpush.bf16.msra.mxu1 %v8662_v45  ;;  %759 = vmatmul.bf16.vlgmr.msrb.gmra.mxu3 %v8514_v44  ;;  %v11109_v44 = vld [vmem:[#allocation2 + $0x194] sm:$0xf]  ;;  %v8747_v45 = vld [vmem:[#allocation2 + $0x198] sm:$0xf0] }
  0x65   :  { %v8750_v50 = vor.u32 %v11109_v44, %v8747_v45 }
  0x67   :  { %700 = vmatpush.bf16.msra.mxu0 %v8810_v58  ;;  %v8541_v58 = vld [vmem:[%s12917_s0 + $0x38] sm:$0xf] }
  0x68   :  { %734 = vmatpush.bf16.msra.mxu1 %v8654_v55  ;;  %v8803_v55 = vld [vmem:[#allocation2 + $0x208] sm:$0xf0]  ;;  %v8542_v60 = vor.u32 %v11058_v59, %v8541_v58 }
  0x69   :  { %v8806_v57 = vor.u32 %v11123_v54, %v8803_v55 }
  0x6b   :  { %701 = vmatpush.bf16.msra.mxu0 %v8802_v5 }
  0x6c   :  { %735 = vmatpush.bf16.msra.mxu1 %v8646_v2 }
  0x6e   :  { %669 = vmatmul.bf16.gmra.mxu0 %v8534_v18 }
  0x6f   :  { %770 = vmatpush.bf16.msrb.mxu0 %v8798_v6  ;;  %726 = vmatmul.bf16.gmra.mxu1 %v12030_v61  ;;  %v8521_v61 = vld [vmem:[%s12917_s0 + $0x10] sm:$0xf] }
  0x70   :  { %736 = vmatpush.bf16.msra.mxu1 %v8638_v9  ;;  %v8522_v49 = vor.u32 %v11053_v41, %v8521_v61 }
  0x73   :  { %771 = vmatpush.bf16.msrb.mxu0 %v8790_v14 }
  0x74   :  { %737 = vmatpush.bf16.msra.mxu1 %v8630_v19  ;;  %764 = vmatmul.bf16.gmra.mxu3 %v8534_v18 }
  0x77   :  { %772 = vmatpush.bf16.msrb.mxu0 %v8782_v22 }
  0x78   :  { %738 = vmatpush.bf16.msra.mxu1 %v8622_v25 }
  0x7b   :  { %773 = vmatpush.bf16.msrb.mxu0 %v8774_v28 }
  0x7c   :  { %739 = vmatpush.bf16.msra.mxu1 %v8614_v34 }
  0x7e   :  { %8831 = vmatmul.msk.bf16.vlgmr.msra.gmra.mxu0 %vm611_vm0, %v8522_v49 }
  0x7f   :  { %774 = vmatpush.bf16.msrb.mxu0 %v8766_v36  ;;  %740 = vmatmul.bf16.vlgmr.msra.gmra.mxu1 %v12005_v17 }
  0x80   :  { %793 = vmatpush.bf16.msrb.mxu1 %v8830_v35 }
  0x83   :  { %775 = vmatpush.bf16.msrb.mxu0 %v8758_v43 }
  0x84   :  { %794 = vmatpush.bf16.msrb.mxu1 %v8822_v42 }
  0x87   :  { %776 = vmatpush.bf16.msrb.mxu0 %v8750_v50 }
  0x88   :  { %795 = vmatpush.bf16.msrb.mxu1 %v8814_v51 }
  0x8b   :  { %777 = vmatpush.bf16.msrb.mxu0 %v8742_v56 }
  0x8c   :  { %796 = vmatpush.bf16.msrb.mxu1 %v8806_v57 }
  0x8e   :  { %8832 = vmatmul.msk.bf16.gmra.mxu0 %vm611_vm0, %v8542_v60 }
  0x8f   :  { %745 = vmatmul.bf16.gmra.mxu1 %v12032_v0 }
  0x9e   :  { %778 = vmatmul.bf16.vlgmr.msrb.gmra.mxu0 %v12015_v47 }
  0x9f   :  { %8833 = vmatmul.msk.bf16.vlgmr.msrb.gmra.mxu1 %vm611_vm0, %v8522_v49 }
  0xae   :  { %783 = vmatmul.bf16.gmra.mxu0 %v12042_v32 }
  0xaf   :  { %8834 = vmatmul.msk.bf16.gmra.mxu1 %vm611_vm0, %v8542_v60 }
  0xbb   :  { %v627_v17 = vpop.f32.mrf.mxu0 }
  0xbc   :  { %v646_v62 = vpop.f32.mrf.mxu1 }
  0xbd   :  { %v647_v63 = vadd.f32 %v646_v62, %v627_v17 }
  0xc3   :  { %v629_v1 = vpop.f32.mrf.mxu0 }
  0xc4   :  { %v648_v2 = vpop.f32.mrf.mxu1 }
  0xc5   :  { %v649_v21 = vadd.f32 %v648_v2, %v629_v1 }
  0xc7   :  { %v684_v10 = vpop.f32.mrf.mxu3 }
  0xcb   :  { %v632_v3 = vpop.f32.mrf.mxu0 }
  0xcc   :  { %v651_v4 = vpop.f32.mrf.mxu1 }
  0xcd   :  { %v652_v5 = vadd.f32 %v651_v4, %v632_v3 }
  0xcf   :  { %v686_v14 = vpop.f32.mrf.mxu3 }
  0xd3   :  { %v634_v6 = vpop.f32.mrf.mxu0 }
  0xd4   :  { %v653_v7 = vpop.f32.mrf.mxu1 }
  0xd5   :  { %v654_v34 = vadd.f32 %v653_v7, %v634_v6 }
  0xd7   :  { %v689_v20 = vpop.f32.mrf.mxu3 }
  0xdb   :  { %v665_v13 = vpop.f32.mrf.mxu0 }
  0xdc   :  { %v666_v0 = vadd.f32 %v665_v13, %v647_v63  ;;  %v12079_v8 = vpop.f32.mrf.mxu1 }
  0xde   :  { %v685_v26 = vadd.f32 %v684_v10, %v666_v0 }
  0xdf   :  { %v691_v28 = vpop.f32.mrf.mxu3 }
  0xe3   :  { %v667_v47 = vpop.f32.mrf.mxu0 }
  0xe4   :  { %v724_v9 = vpop.f32.mrf.mxu1  ;;  %v668_v22 = vadd.f32 %v667_v47, %v649_v21 }
  0xe6   :  { %v687_v24 = vadd.f32 %v686_v14, %v668_v22 }
  0xe7   :  { %v760_v43 = vpop.f32.mrf.mxu3 }
  0xeb   :  { %v670_v32 = vpop.f32.mrf.mxu0 }
  0xec   :  { %v671_v11 = vadd.f32 %v670_v32, %v652_v5  ;;  %v727_v12 = vpop.f32.mrf.mxu1 }
  0xee   :  { %v690_v30 = vadd.f32 %v689_v20, %v671_v11 }
  0xef   :  { %v762_v55 = vpop.f32.mrf.mxu3 }
  0xf3   :  { %v672_v15 = vpop.f32.mrf.mxu0 }
  0xf4   :  { %v12081_v16 = vpop.f32.mrf.mxu1  ;;  %v673_v39 = vadd.f32 %v672_v15, %v654_v34 }
  0xf6   :  { %v692_v44 = vadd.f32 %v691_v28, %v673_v39 }
  0xf7   :  { %v765_v13 = vpop.f32.mrf.mxu3 }
  0xfb   :  { %v703_v18 = vpop.f32.mrf.mxu0 }
  0xfc   :  { %v741_v19 = vpop.f32.mrf.mxu1  ;;  %v12085_v29 = vadd.f32 %v703_v18, %v685_v26 }
  0xfd   :  { %v742_v0 = vadd.f32 %v741_v19, %v12079_v8 }
  0xfe   :  { %v828_v35 = vmul.f32 %v12085_v29, %v12085_v29 }
  0xff   :  { %v761_v15 = vadd.f32 %v760_v43, %v742_v0  ;;  %v767_v26 = vpop.f32.mrf.mxu3 }
 0x103   :  { %v705_v23 = vpop.f32.mrf.mxu0 }
 0x104   :  { %v743_v25 = vpop.f32.mrf.mxu1  ;;  %v12083_v27 = vadd.f32 %v705_v23, %v687_v24 }
 0x105   :  { %v744_v4 = vadd.f32 %v743_v25, %v724_v9 }
 0x106   :  { %v830_v31 = vmul.f32 %v12083_v27, %v12083_v27  ;;  %v810_v36 = vadd.f32 %v12083_v27, %v12085_v29 }
 0x107   :  { %v763_v11 = vadd.f32 %v762_v55, %v744_v4 }
 0x108   :  { %v836_v40 = vadd.f32 %v830_v31, %v828_v35 }
 0x10b   :  { %v708_v33 = vpop.f32.mrf.mxu0 }
 0x10c   :  { %v12093_v37 = vadd.f32 %v708_v33, %v690_v30  ;;  %v746_v38 = vpop.f32.mrf.mxu1 }
 0x10d   :  { %v747_v47 = vadd.f32 %v746_v38, %v727_v12 }
 0x10e   :  { %v811_v61 = vadd.f32 %v810_v36, %v12093_v37  ;;  %v832_v41 = vmul.f32 %v12093_v37, %v12093_v37 }
 0x10f   :  { %v766_v18 = vadd.f32 %v765_v13, %v747_v47 }
 0x110   :  { %v837_v42 = vadd.f32 %v836_v40, %v832_v41 }
 0x113   :  { %v710_v45 = vpop.f32.mrf.mxu0 }
 0x114   :  { %v12098_v46 = vadd.f32 %v710_v45, %v692_v44  ;;  %v748_v48 = vpop.f32.mrf.mxu1 }
 0x115   :  { %v749_v24 = vadd.f32 %v748_v48, %v12081_v16 }
 0x116   :  { %v812_v49 = vadd.f32 %v811_v61, %v12098_v46  ;;  %v834_v50 = vmul.f32 %v12098_v46, %v12098_v46 }
 0x117   :  { %v768_v19 = vadd.f32 %v767_v26, %v749_v24 }
 0x118   :  { %v813_v51 = vrot.slane %v812_v49, 4  ;;  %v838_v52 = vadd.f32 %v837_v42, %v834_v50 }
 0x11a   :  { %v814_v53 = vadd.f32 %v813_v51, %v812_v49  ;;  %v839_v54 = vrot.slane %v838_v52, 4 }
 0x11b   :  { %v779_v56 = vpop.f32.mrf.mxu0 }
 0x11c   :  { %v815_v57 = vrot.slane %v814_v53, 2  ;;  %v840_v58 = vadd.f32 %v839_v54, %v838_v52  ;;  %v798_v59 = vpop.f32.mrf.mxu1  ;;  %v780_v22 = vadd.f32 %v779_v56, %v761_v15 }
 0x11e   :  { %v816_v60 = vadd.f32 %v815_v57, %v814_v53  ;;  %v841_v17 = vrot.slane %v840_v58, 2  ;;  %v12111_v8 = vadd.f32 %v798_v59, %v780_v22 }
 0x120   :  { %v817_v62 = vrot.slane %v816_v60, 1  ;;  %v842_v63 = vadd.f32 %v841_v17, %v840_v58  ;;  %v829_v31 = vmul.f32 %v12111_v8, %v12111_v8 }
 0x122   :  { %v818_v1 = vadd.f32 %v817_v62, %v816_v60  ;;  %v843_v2 = vrot.slane %v842_v63, 1 }
 0x123   :  { %v781_v3 = vpop.f32.mrf.mxu0 }
 0x124   :  { %v844_v5 = vadd.f32 %v843_v2, %v842_v63  ;;  %v12103_v6 = vmul.f32 0.03125, %v818_v1  ;;  %v800_v7 = vpop.f32.mrf.mxu1  ;;  %v782_v20 = vadd.f32 %v781_v3, %v763_v11 }
 0x126   :  { %v856_v10 = vmul.f32 0.03125, %v844_v5  ;;  %v858_v32 = vmul.f32 %v12103_v6, %v12103_v6  ;;  %v12109_v25 = vadd.f32 %v800_v7, %v782_v20 }
 0x128   :  { %v860_v14 = vsub.f32 %v856_v10, %v858_v32  ;;  %v831_v28 = vmul.f32 %v12109_v25, %v12109_v25  ;;  %v819_v33 = vadd.f32 %v12109_v25, %v12111_v8 }
 0x12a   :  { %v845_v36 = vadd.f32 %v831_v28, %v829_v31  ;;  %v862_v48 = vmax.f32 %v860_v14, 0.0 }
 0x12b   :  { %v784_v21 = vpop.f32.mrf.mxu0 }
 0x12c   :  { %v785_v9 = vadd.f32 %v784_v21, %v766_v18  ;;  %v803_v23 = vpop.f32.mrf.mxu1  ;;  %v864_v53 = vadd.f32 1e-05, %v862_v48  ;;  %v808_v18 = vld [vmem:[#allocation5] sm:$0x3] }
 0x12e   :  { %v12113_v12 = vadd.f32 %v803_v23, %v785_v9  ;;  %11664 = vrsqrt.f32 %v864_v53  ;;  %vm872_vm5 = vweird.f32 %v864_v53 }
 0x130   :  { %v833_v16 = vmul.f32 %v12113_v12, %v12113_v12  ;;  %v820_v38 = vadd.f32 %v819_v33, %v12113_v12 }
 0x132   :  { %v846_v40 = vadd.f32 %v845_v36, %v833_v16  ;;  %v809_v16 = vld [vmem:[#allocation7] sm:$0x3] }
 0x133   :  { %v786_v30 = vpop.f32.mrf.mxu0 }
 0x134   :  { %v787_v34 = vadd.f32 %v786_v30, %v768_v19  ;;  %v805_v35 = vpop.f32.mrf.mxu1  ;;  %v11665_v63 = vpop.eup %11664 }
 0x135   :  { %v867_v3 = vmul.f32 %v11665_v63, %v864_v53  ;;  %vm873_vm2 = vweird.f32 %v11665_v63  ;;  %v12159_v53 = vld [vmem:[%s12921_s4 + $0x10] sm:$0xff] }
 0x136   :  { %v806_v39 = vadd.f32 %v805_v35, %v787_v34  ;;  %vm874_vm7 = vmor %vm872_vm5, %vm873_vm2 }
 0x137   :  { %v868_v4 = vmul.f32 %v11665_v63, %v867_v3  ;;  %v11149_v3 = vld [vmem:[#allocation8] sm:$0xff] }
 0x138   :  { %v821_v61 = vadd.f32 %v820_v38, %v806_v39  ;;  %v835_v41 = vmul.f32 %v806_v39, %v806_v39 }
 0x139   :  { %v869_v7 = vmul.f32 0.5, %v868_v4  ;;  %v11164_v4 = vld [vmem:[#allocation8 + $0x78] sm:$0xff] }
 0x13a   :  { %v822_v42 = vrot.slane %v821_v61, 4  ;;  %v847_v43 = vadd.f32 %v846_v40, %v835_v41  ;;  %1952 = vmatpush.bf16.msra.mxu0 %v11164_v4 }
 0x13b   :  { %v870_v47 = vsub.f32 1.5, %v869_v7  ;;  %v11162_v7 = vld [vmem:[#allocation8 + $0x68] sm:$0xff] }
 0x13c   :  { %v823_v44 = vadd.f32 %v822_v42, %v821_v61  ;;  %v848_v45 = vrot.slane %v847_v43, 4 }
 0x13d   :  { %v871_v11 = vmul.f32 %v11665_v63, %v870_v47  ;;  %v11160_v47 = vld [vmem:[#allocation8 + $0x58] sm:$0xff] }
 0x13e   :  { %v824_v49 = vrot.slane %v823_v44, 2  ;;  %v849_v50 = vadd.f32 %v848_v45, %v847_v43 }
 0x13f   :  { %v875_v21 = vsel %vm874_vm7, %v11665_v63, %v871_v11  ;;  %v11151_v63 = vld [vmem:[#allocation8 + $0x10] sm:$0xff] }
 0x140   :  { %v825_v51 = vadd.f32 %v824_v49, %v823_v44  ;;  %v850_v52 = vrot.slane %v849_v50, 2 }
 0x142   :  { %v826_v54 = vrot.slane %v825_v51, 1  ;;  %v851_v55 = vadd.f32 %v850_v52, %v849_v50  ;;  %v12152_v52 = vld [vmem:[%s12921_s4 + $0x8] sm:$0xff] }
 0x144   :  { %v827_v56 = vadd.f32 %v826_v54, %v825_v51  ;;  %v852_v57 = vrot.slane %v851_v55, 1  ;;  %v12166_v54 = vld [vmem:[%s12921_s4 + $0x18] sm:$0xff] }
 0x146   :  { %v853_v58 = vadd.f32 %v852_v57, %v851_v55  ;;  %v855_v59 = vmul.f32 0.03125, %v827_v56  ;;  %v12173_v55 = vld [vmem:[%s12921_s4 + $0x20] sm:$0xff]  ;;  %v12180_v56 = vld [vmem:[%s12921_s4 + $0x28] sm:$0xff] }
 0x147   :  { %v11156_v57 = vld [vmem:[#allocation8 + $0x38] sm:$0xff] }
 0x148   :  { %v857_v60 = vmul.f32 0.03125, %v853_v58  ;;  %v859_v17 = vmul.f32 %v855_v59, %v855_v59  ;;  %1933 = vmatpush.bf16.msra.mxu3 %v11156_v57  ;;  %v11155_v58 = vld [vmem:[#allocation8 + $0x30] sm:$0xff] }
 0x14a   :  { %v861_v62 = vsub.f32 %v857_v60, %v859_v17  ;;  %v11153_v60 = vld [vmem:[#allocation8 + $0x20] sm:$0xff]  ;;  %v12187_v17 = vld [vmem:[%s12921_s4 + $0x30] sm:$0xff] }
 0x14c   :  { %v863_v1 = vmax.f32 %v861_v62, 0.0  ;;  %1934 = vmatpush.bf16.msra.mxu3 %v11155_v58  ;;  %v11152_v62 = vld [vmem:[#allocation8 + $0x18] sm:$0xff]  ;;  %v11178_v58 = vld [vmem:[#allocation8 + $0xe8] sm:$0xff] }
 0x14e   :  { %v865_v2 = vadd.f32 1e-05, %v863_v1  ;;  %v11150_v1 = vld [vmem:[#allocation8 + $0x8] sm:$0xff] }
 0x150   :  { %11666 = vrsqrt.f32 %v865_v2  ;;  %vm882_vm3 = vweird.f32 %v865_v2 }
 0x156   :  { %v11667_v5 = vpop.eup %11666 }
 0x157   :  { %v877_v13 = vmul.f32 %v11667_v5, %v865_v2  ;;  %vm883_vm1 = vweird.f32 %v11667_v5  ;;  %v12194_v2 = vld [vmem:[%s12921_s4 + $0x38] sm:$0xff] }
 0x158   :  { %vm884_vm4 = vmor %vm882_vm3, %vm883_vm1 }
 0x159   :  { %v878_v0 = vmul.f32 %v11667_v5, %v877_v13  ;;  %v12201_v13 = vld [vmem:[%s12921_s4 + $0x40] sm:$0xff] }
 0x15b   :  { %v879_v10 = vmul.f32 0.5, %v878_v0  ;;  %v11161_v0 = vld [vmem:[#allocation8 + $0x60] sm:$0xff] }
 0x15d   :  { %v880_v32 = vsub.f32 1.5, %v879_v10 }
 0x15f   :  { %v881_v14 = vmul.f32 %v11667_v5, %v880_v32  ;;  %v11159_v32 = vld [vmem:[#allocation8 + $0x50] sm:$0xff] }
 0x161   :  { %v885_v15 = vsel %vm884_vm4, %v11667_v5, %v881_v14  ;;  %v11163_v5 = vld [vmem:[#allocation8 + $0x70] sm:$0xff]  ;;  %v11158_v14 = vld [vmem:[#allocation8 + $0x48] sm:$0xff] }
 0x162   :  { %v888_v20 = vrot.slane %v885_v15, 7  ;;  %1953 = vmatpush.bf16.msra.mxu0 %v11163_v5  ;;  %v11176_v5 = vld [vmem:[#allocation8 + $0xd8] sm:$0xff] }
 0x164   :  { %v890_v22 = vsel %vm889_vm6, %v875_v21, %v888_v20  ;;  %v12208_v20 = vld [vmem:[%s12921_s4 + $0x48] sm:$0xff] }
 0x165   :  { %v892_v9 = vmul.f32 %v890_v22, %v808_v18 }
 0x166   :  { %1954 = vmatpush.bf16.msra.mxu0 %v11162_v7 }
 0x167   :  { %v894_v23 = vperm.slane %v892_v9, 0  ;;  %v895_v24 = vperm.slane %v892_v9, 1  ;;  %v11157_v9 = vld [vmem:[#allocation8 + $0x40] sm:$0xff] }
 0x169   :  { %v898_v26 = vmul.f32 %v894_v23, %v12103_v6  ;;  %v899_v19 = vmul.f32 %v895_v24, %v855_v59  ;;  %v913_v28 = vmul.f32 %v895_v24, %v806_v39  ;;  %v910_v30 = vmul.f32 %v894_v23, %v12093_v37  ;;  %v11154_v59 = vld [vmem:[#allocation8 + $0x28] sm:$0xff] }
 0x16a   :  { %v906_v31 = vmul.f32 %v894_v23, %v12085_v29  ;;  %v911_v33 = vmul.f32 %v895_v24, %v12113_v12  ;;  %v912_v40 = vmul.f32 %v894_v23, %v12098_v46  ;;  %v908_v41 = vmul.f32 %v894_v23, %v12083_v27  ;;  %1935 = vmatpush.bf16.msra.mxu3 %v11154_v59 }
 0x16b   :  { %v902_v34 = vrot.slane %v899_v19, 7  ;;  %v907_v6 = vmul.f32 %v895_v24, %v12111_v8  ;;  %v909_v39 = vmul.f32 %v895_v24, %v12109_v25  ;;  %v12145_v25 = vld [vmem:[%s12921_s4] sm:$0xff]  ;;  %1955 = vmatpush.bf16.msra.mxu0 %v11161_v0  ;;  %v11171_v19 = vld [vmem:[#allocation8 + $0xb0] sm:$0xff] }
 0x16c   :  { %v11172_v24 = vld [vmem:[#allocation8 + $0xb8] sm:$0xff]  ;;  %v11175_v0 = vld [vmem:[#allocation8 + $0xd0] sm:$0xff] }
 0x16d   :  { %v903_v35 = vsel %vm889_vm6, %v898_v26, %v902_v34  ;;  %1971 = vmatpush.bf16.msra.mxu1 %v11172_v24  ;;  %v11187_v24 = vld [vmem:[#allocation8 + $0x130] sm:$0xff] }
 0x16e   :  { %v905_v36 = vsub.f32 %v809_v16, %v903_v35  ;;  %1936 = vmatpush.bf16.msra.mxu3 %v11153_v60  ;;  %v12215_v16 = vld [vmem:[%s12921_s4 + $0x50] sm:$0xff] }
 0x16f   :  { %1956 = vmatpush.bf16.msra.mxu0 %v11160_v47 }
 0x170   :  { %v916_v38 = vperm.slane %v905_v36, 1  ;;  %v915_v61 = vperm.slane %v905_v36, 0  ;;  %v11169_v36 = vld [vmem:[#allocation8 + $0xa0] sm:$0xff] }
 0x171   :  { %1972 = vmatpush.bf16.msra.mxu1 %v11171_v19  ;;  %v11186_v19 = vld [vmem:[#allocation8 + $0x128] sm:$0xff] }
 0x172   :  { %v12134_v37 = vadd.f32 %v916_v38, %v913_v28  ;;  %v923_v29 = vadd.f32 %v915_v61, %v910_v30  ;;  %v925_v42 = vadd.f32 %v915_v61, %v912_v40  ;;  %v919_v12 = vadd.f32 %v915_v61, %v906_v31  ;;  %1937 = vmatpush.bf16.msra.mxu3 %v11152_v62  ;;  %v11170_v30 = vld [vmem:[#allocation8 + $0xa8] sm:$0xff]  ;;  %v11168_v40 = vld [vmem:[#allocation8 + $0x98] sm:$0xff] }
 0x173   :  { %v921_v43 = vadd.f32 %v915_v61, %v908_v41  ;;  %v12136_v44 = vadd.f32 %v916_v38, %v911_v33  ;;  %v12138_v45 = vadd.f32 %v916_v38, %v907_v6  ;;  %v12140_v48 = vadd.f32 %v916_v38, %v909_v39  ;;  %1957 = vmatpush.bf16.msra.mxu0 %v11159_v32  ;;  %v11167_v41 = vld [vmem:[#allocation8 + $0x90] sm:$0xff]  ;;  %v11166_v39 = vld [vmem:[#allocation8 + $0x88] sm:$0xff]  ;;  %v12229_v62 = vld [vmem:[%s12921_s4 + $0x60] sm:$0xff] }
 0x174   :  { %v929_v46 = vmax.f32 %v923_v29, 0.0  ;;  %v930_v49 = vmax.f32 %v925_v42, 0.0  ;;  %v927_v50 = vmax.f32 %v919_v12, 0.0  ;;  %v12222_v12 = vld [vmem:[%s12921_s4 + $0x58] sm:$0xff] }
 0x175   :  { %v928_v27 = vmax.f32 %v921_v43, 0.0  ;;  %1973 = vmatpush.bf16.msra.mxu1 %v11170_v30 }
 0x176   :  { %v932_v51 = vpack.c.bf16 %v930_v49, %v929_v46  ;;  %1938 = vmatpush.bf16.msra.mxu3 %v11151_v63  ;;  %v11165_v49 = vld [vmem:[#allocation8 + $0x80] sm:$0xff] }
 0x177   :  { %v931_v8 = vpack.c.bf16 %v928_v27, %v927_v50  ;;  %1958 = vmatpush.bf16.msra.mxu0 %v11158_v14  ;;  %v11180_v27 = vld [vmem:[#allocation8 + $0xf8] sm:$0xff]  ;;  %v12236_v14 = vld [vmem:[%s12921_s4 + $0x68] sm:$0xff] }
 0x178   :  { %1120 = vmatpush.bf16.msra.mxu2 %v932_v51 }
 0x179   :  { %1974 = vmatpush.bf16.msra.mxu1 %v11169_v36 }
 0x17a   :  { %1939 = vmatpush.bf16.msra.mxu3 %v11150_v1 }
 0x17b   :  { %1959 = vmatpush.bf16.msra.mxu0 %v11157_v9  ;;  %v11188_v9 = vld [vmem:[#allocation8 + $0x138] sm:$0xff] }
 0x17c   :  { %1121 = vmatpush.bf16.msra.mxu2 %v931_v8  ;;  %v11179_v8 = vld [vmem:[#allocation8 + $0xf0] sm:$0xff] }
 0x17d   :  { %1975 = vmatpush.bf16.msra.mxu1 %v11168_v40 }
 0x17e   :  { %1940 = vmatpush.bf16.msra.mxu3 %v11149_v3  ;;  %v11177_v3 = vld [vmem:[#allocation8 + $0xe0] sm:$0xff] }
 0x17f   :  { %8907 = vmatmul.msk.bf16.vlgmr.msra.gmra.mxu2 %vm1059_vm8, %v12145_v25  ;;  %2009 = vmatpush.bf16.msrb.mxu0 %v11188_v9  ;;  %v11189_v9 = vld [vmem:[#allocation8 + $0x140] sm:$0xff] }
 0x181   :  { %1976 = vmatpush.bf16.msra.mxu1 %v11167_v41 }
 0x182   :  { %1990 = vmatpush.bf16.msrb.mxu3 %v11180_v27  ;;  %v11196_v27 = vld [vmem:[#allocation8 + $0x178] sm:$0xff] }
 0x183   :  { %2010 = vmatpush.bf16.msrb.mxu0 %v11187_v24  ;;  %v11204_v24 = vld [vmem:[#allocation8 + $0x1b8] sm:$0xff] }
 0x185   :  { %1977 = vmatpush.bf16.msra.mxu1 %v11166_v39 }
 0x186   :  { %1991 = vmatpush.bf16.msrb.mxu3 %v11179_v8  ;;  %v11195_v8 = vld [vmem:[#allocation8 + $0x170] sm:$0xff] }
 0x187   :  { %2011 = vmatpush.bf16.msrb.mxu0 %v11186_v19  ;;  %v11203_v19 = vld [vmem:[#allocation8 + $0x1b0] sm:$0xff] }
 0x189   :  { %1978 = vmatpush.bf16.msra.mxu1 %v11165_v49  ;;  %v11181_v49 = vld [vmem:[#allocation8 + $0x100] sm:$0xff] }
 0x18a   :  { %1992 = vmatpush.bf16.msrb.mxu3 %v11178_v58  ;;  %v11194_v58 = vld [vmem:[#allocation8 + $0x168] sm:$0xff] }
 0x18d   :  { %2028 = vmatpush.bf16.msrb.mxu1 %v11196_v27  ;;  %v11197_v27 = vld [vmem:[#allocation8 + $0x180] sm:$0xff] }
 0x18e   :  { %1993 = vmatpush.bf16.msrb.mxu3 %v11177_v3 }
 0x18f   :  { %8908 = vmatmul.msk.bf16.gmra.mxu2 %vm1059_vm8, %v12152_v52 }
 0x191   :  { %2029 = vmatpush.bf16.msrb.mxu1 %v11195_v8 }
 0x192   :  { %1994 = vmatpush.bf16.msrb.mxu3 %v11176_v5 }
 0x195   :  { %2030 = vmatpush.bf16.msrb.mxu1 %v11194_v58 }
 0x196   :  { %1995 = vmatpush.bf16.msrb.mxu3 %v11175_v0 }
 0x19f   :  { %8909 = vmatmul.msk.bf16.gmra.mxu2 %vm1059_vm8, %v12159_v53 }
 0x1af   :  { %8910 = vmatmul.msk.bf16.gmra.mxu2 %vm1059_vm8, %v12166_v54 }
 0x1bf   :  { %8911 = vmatmul.msk.bf16.gmra.mxu2 %vm1059_vm8, %v12173_v55 }
 0x1cf   :  { %8912 = vmatmul.msk.bf16.gmra.mxu2 %vm1059_vm8, %v12180_v56 }
 0x1df   :  { %8913 = vmatmul.msk.bf16.gmra.mxu2 %vm1059_vm8, %v12187_v17 }
 0x1ef   :  { %8914 = vmatmul.msk.bf16.gmra.mxu2 %vm1059_vm8, %v12194_v2 }
 0x1ff   :  { %8915 = vmatmul.msk.bf16.gmra.mxu2 %vm1059_vm8, %v12201_v13 }
 0x202   :  { %v1123_v10 = vpop.f32.mrf.mxu2 }
 0x203   :  { %v1213_v11 = vpack.c.bf16 %v1123_v10, %v1123_v10  ;;  %v11174_v10 = vld [vmem:[#allocation8 + $0xc8] sm:$0xff] }
 0x204   :  { %1996 = vmatpush.bf16.msrb.mxu3 %v11174_v10 }
 0x205   :  { %v1253_v21 = vunpack.c.l.b16 %v1213_v11 }
 0x20a   :  { %v1125_v15 = vpop.f32.mrf.mxu2 }
 0x20b   :  { %v1214_v18 = vpack.c.bf16 %v1125_v15, %v1125_v15 }
 0x20d   :  { %v1254_v22 = vunpack.c.l.b16 %v1214_v18 }
 0x20f   :  { %v1257_v23 = vpack.c.b16 %v1254_v22, %v1253_v21  ;;  %8916 = vmatmul.msk.bf16.gmra.mxu2 %vm1059_vm8, %v12208_v20  ;;  %v11173_v21 = vld [vmem:[#allocation8 + $0xc0] sm:$0xff] }
 0x210   :  { %1997 = vmatpush.bf16.msrb.mxu3 %v11173_v21 }
 0x211   :  { %1941 = vmatmul.bf16.vlgmr.msra.gmra.mxu3 %v1257_v23 }
 0x212   :  { %v1128_v26 = vpop.f32.mrf.mxu2 }
 0x213   :  { %v1215_v28 = vpack.c.bf16 %v1128_v26, %v1128_v26 }
 0x214   :  { %2047 = vmatpush.bf16.msra.mxu3 %v11204_v24 }
 0x215   :  { %v1255_v34 = vunpack.c.l.b16 %v1215_v28 }
 0x218   :  { %2048 = vmatpush.bf16.msra.mxu3 %v11203_v19 }
 0x21a   :  { %v1130_v31 = vpop.f32.mrf.mxu2 }
 0x21b   :  { %v1216_v33 = vpack.c.bf16 %v1130_v31, %v1130_v31  ;;  %v12243_v31 = vld [vmem:[%s12921_s4 + $0x70] sm:$0xff] }
 0x21c   :  { %12935 = vst [vmem:[#allocation19_spill] sm:$0xff] %v12243_v31 }
 0x21d   :  { %v1256_v35 = vunpack.c.l.b16 %v1216_v33 }
 0x21f   :  { %8917 = vmatmul.msk.bf16.gmra.mxu2 %vm1059_vm8, %v12215_v16  ;;  %v1258_v38 = vpack.c.b16 %v1256_v35, %v1255_v34  ;;  %v11185_v35 = vld [vmem:[#allocation8 + $0x120] sm:$0xff] }
 0x220   :  { %2012 = vmatpush.bf16.msrb.mxu0 %v11185_v35 }
 0x221   :  { %1946 = vmatmul.bf16.gmra.mxu3 %v1258_v38  ;;  %v11184_v38 = vld [vmem:[#allocation8 + $0x118] sm:$0xff] }
 0x222   :  { %v1133_v61 = vpop.f32.mrf.mxu2 }
 0x223   :  { %v1217_v6 = vpack.c.bf16 %v1133_v61, %v1133_v61  ;;  %v11183_v61 = vld [vmem:[#allocation8 + $0x110] sm:$0xff] }
 0x224   :  { %2013 = vmatpush.bf16.msrb.mxu0 %v11184_v38  ;;  %v11201_v38 = vld [vmem:[#allocation8 + $0x1a0] sm:$0xff] }
 0x225   :  { %v1265_v43 = vunpack.c.l.b16 %v1217_v6  ;;  %v11182_v6 = vld [vmem:[#allocation8 + $0x108] sm:$0xff] }
 0x228   :  { %2014 = vmatpush.bf16.msrb.mxu0 %v11183_v61  ;;  %v11200_v61 = vld [vmem:[#allocation8 + $0x198] sm:$0xff] }
 0x22a   :  { %v1135_v29 = vpop.f32.mrf.mxu2 }
 0x22b   :  { %v1218_v42 = vpack.c.bf16 %v1135_v29, %v1135_v29 }
 0x22c   :  { %2015 = vmatpush.bf16.msrb.mxu0 %v11182_v6  ;;  %v11199_v6 = vld [vmem:[#allocation8 + $0x190] sm:$0xff] }
 0x22d   :  { %v1266_v46 = vunpack.c.l.b16 %v1218_v42  ;;  %v12250_v42 = vld [vmem:[%s12921_s4 + $0x78] sm:$0xff] }
 0x22e   :  { %12936 = vst [vmem:[#allocation20_spill] sm:$0xff] %v12250_v42 }
 0x22f   :  { %v1269_v50 = vpack.c.b16 %v1266_v46, %v1265_v43  ;;  %8918 = vmatmul.msk.bf16.gmra.mxu2 %vm1059_vm8, %v12222_v12 }
 0x230   :  { %2016 = vmatpush.bf16.msrb.mxu0 %v11181_v49 }
 0x231   :  { %1960 = vmatmul.bf16.vlgmr.msra.gmra.mxu0 %v1269_v50 }
 0x232   :  { %v1138_v51 = vpop.f32.mrf.mxu2 }
 0x233   :  { %v1219_v57 = vpack.c.bf16 %v1138_v51, %v1138_v51 }
 0x235   :  { %v1267_v63 = vunpack.c.l.b16 %v1219_v57 }
 0x23a   :  { %v1140_v59 = vpop.f32.mrf.mxu2 }
 0x23b   :  { %v1220_v60 = vpack.c.bf16 %v1140_v59, %v1140_v59 }
 0x23d   :  { %v1268_v1 = vunpack.c.l.b16 %v1220_v60 }
 0x23f   :  { %8919 = vmatmul.msk.bf16.gmra.mxu2 %vm1059_vm8, %v12229_v62  ;;  %v1270_v4 = vpack.c.b16 %v1268_v1, %v1267_v63  ;;  %v12257_v63 = vld [vmem:[%s12921_s4 + $0x80] sm:$0xff] }
 0x240   :  { %12937 = vst [vmem:[#allocation21_spill] sm:$0xff] %v12257_v63 }
 0x241   :  { %1965 = vmatmul.bf16.gmra.mxu0 %v1270_v4  ;;  %v11193_v4 = vld [vmem:[#allocation8 + $0x160] sm:$0xff] }
 0x242   :  { %v1143_v7 = vpop.f32.mrf.mxu2  ;;  %2031 = vmatpush.bf16.msrb.mxu1 %v11193_v4  ;;  %v11210_v4 = vld [vmem:[#allocation8 + $0x1e8] sm:$0xff] }
 0x243   :  { %v1221_v47 = vpack.c.bf16 %v1143_v7, %v1143_v7  ;;  %v11192_v7 = vld [vmem:[#allocation8 + $0x158] sm:$0xff] }
 0x245   :  { %v1277_v15 = vunpack.c.l.b16 %v1221_v47  ;;  %v11191_v47 = vld [vmem:[#allocation8 + $0x150] sm:$0xff] }
 0x246   :  { %2032 = vmatpush.bf16.msrb.mxu1 %v11192_v7 }
 0x24a   :  { %v1145_v32 = vpop.f32.mrf.mxu2  ;;  %2033 = vmatpush.bf16.msrb.mxu1 %v11191_v47 }
 0x24b   :  { %v1222_v11 = vpack.c.bf16 %v1145_v32, %v1145_v32  ;;  %v11190_v32 = vld [vmem:[#allocation8 + $0x148] sm:$0xff] }
 0x24d   :  { %v1278_v18 = vunpack.c.l.b16 %v1222_v11 }
 0x24e   :  { %2034 = vmatpush.bf16.msrb.mxu1 %v11190_v32 }
 0x24f   :  { %v1281_v22 = vpack.c.b16 %v1278_v18, %v1277_v15  ;;  %8920 = vmatmul.msk.bf16.gmra.mxu2 %vm1059_vm8, %v12236_v14  ;;  %v12264_v18 = vld [vmem:[%s12921_s4 + $0x88] sm:$0xff] }
 0x250   :  { %12938 = vst [vmem:[#allocation22_spill] sm:$0xff] %v12264_v18 }
 0x251   :  { %1979 = vmatmul.bf16.vlgmr.msra.gmra.mxu1 %v1281_v22 }
 0x252   :  { %v1148_v23 = vpop.f32.mrf.mxu2  ;;  %2035 = vmatpush.bf16.msrb.mxu1 %v11189_v9  ;;  %v11206_v9 = vld [vmem:[#allocation8 + $0x1c8] sm:$0xff] }
 0x253   :  { %v1223_v26 = vpack.c.bf16 %v1148_v23, %v1148_v23 }
 0x255   :  { %v1279_v33 = vunpack.c.l.b16 %v1223_v26 }
 0x25a   :  { %v1150_v28 = vpop.f32.mrf.mxu2 }
 0x25b   :  { %v1224_v30 = vpack.c.bf16 %v1150_v28, %v1150_v28 }
 0x25d   :  { %v1280_v34 = vunpack.c.l.b16 %v1224_v30  ;;  %v11202_v30 = vld [vmem:[#allocation8 + $0x1a8] sm:$0xff] }
 0x25e   :  { %2049 = vmatpush.bf16.msra.mxu3 %v11202_v30 }
 0x25f   :  { %8921 = vmatmul.msk.bf16.gmra.mxu2 %vm1059_vm8, %v12243_v31  ;;  %v1282_v36 = vpack.c.b16 %v1280_v34, %v1279_v33 }
 0x261   :  { %1984 = vmatmul.bf16.gmra.mxu1 %v1282_v36 }
 0x262   :  { %v1153_v40 = vpop.f32.mrf.mxu2  ;;  %2050 = vmatpush.bf16.msra.mxu3 %v11201_v38  ;;  %v11219_v38 = vld [vmem:[#allocation8 + $0x230] sm:$0xff] }
 0x263   :  { %v1225_v41 = vpack.c.bf16 %v1153_v40, %v1153_v40 }
 0x265   :  { %v1289_v43 = vunpack.c.l.b16 %v1225_v41 }
 0x266   :  { %2051 = vmatpush.bf16.msra.mxu3 %v11200_v61  ;;  %v11218_v61 = vld [vmem:[#allocation8 + $0x228] sm:$0xff] }
 0x26a   :  { %v1155_v39 = vpop.f32.mrf.mxu2  ;;  %2052 = vmatpush.bf16.msra.mxu3 %v11199_v6 }
 0x26b   :  { %v1226_v29 = vpack.c.bf16 %v1155_v39, %v1155_v39 }
 0x26d   :  { %v1290_v46 = vunpack.c.l.b16 %v1226_v29  ;;  %v11198_v29 = vld [vmem:[#allocation8 + $0x188] sm:$0xff] }
 0x26e   :  { %2053 = vmatpush.bf16.msra.mxu3 %v11198_v29 }
 0x26f   :  { %v1293_v50 = vpack.c.b16 %v1290_v46, %v1289_v43  ;;  %8922 = vmatmul.msk.bf16.gmra.mxu2 %vm1059_vm8, %v12250_v42 }
 0x271   :  { %1998 = vmatmul.bf16.vlgmr.msrb.gmra.mxu3 %v1293_v50 }
 0x272   :  { %v1158_v51 = vpop.f32.mrf.mxu2  ;;  %2054 = vmatpush.bf16.msra.mxu3 %v11197_v27  ;;  %v11215_v27 = vld [vmem:[#allocation8 + $0x210] sm:$0xff] }
 0x273   :  { %v1227_v57 = vpack.c.bf16 %v1158_v51, %v1158_v51 }
 0x275   :  { %v1291_v1 = vunpack.c.l.b16 %v1227_v57 }
 0x27a   :  { %v1160_v59 = vpop.f32.mrf.mxu2 }
 0x27b   :  { %v1228_v60 = vpack.c.bf16 %v1160_v59, %v1160_v59  ;;  %v11212_v59 = vld [vmem:[#allocation8 + $0x1f8] sm:$0xff] }
 0x27c   :  { %2066 = vmatpush.bf16.msra.mxu0 %v11212_v59 }
 0x27d   :  { %v1292_v3 = vunpack.c.l.b16 %v1228_v60 }
 0x27f   :  { %8923 = vmatmul.msk.bf16.gmra.mxu2 %vm1059_vm8, %v12257_v63  ;;  %v1294_v5 = vpack.c.b16 %v1292_v3, %v1291_v1  ;;  %v11211_v1 = vld [vmem:[#allocation8 + $0x1f0] sm:$0xff] }
 0x280   :  { %2067 = vmatpush.bf16.msra.mxu0 %v11211_v1  ;;  %v11213_v1 = vld [vmem:[#allocation8 + $0x200] sm:$0xff] }
 0x281   :  { %2003 = vmatmul.bf16.gmra.mxu3 %v1294_v5 }
 0x282   :  { %v1163_v0 = vpop.f32.mrf.mxu2 }
 0x283   :  { %v1229_v10 = vpack.c.bf16 %v1163_v0, %v1163_v0 }
 0x284   :  { %2068 = vmatpush.bf16.msra.mxu0 %v11210_v4 }
 0x285   :  { %v1301_v21 = vunpack.c.l.b16 %v1229_v10  ;;  %v11209_v10 = vld [vmem:[#allocation8 + $0x1e0] sm:$0xff] }
 0x288   :  { %2069 = vmatpush.bf16.msra.mxu0 %v11209_v10 }
 0x28a   :  { %v1165_v11 = vpop.f32.mrf.mxu2 }
 0x28b   :  { %v1230_v15 = vpack.c.bf16 %v1165_v11, %v1165_v11  ;;  %v11208_v11 = vld [vmem:[#allocation8 + $0x1d8] sm:$0xff] }
 0x28c   :  { %2070 = vmatpush.bf16.msra.mxu0 %v11208_v11 }
 0x28d   :  { %v1302_v22 = vunpack.c.l.b16 %v1230_v15 }
 0x28f   :  { %v1305_v23 = vpack.c.b16 %v1302_v22, %v1301_v21  ;;  %8924 = vmatmul.msk.bf16.gmra.mxu2 %vm1059_vm8, %v12264_v18  ;;  %v11207_v21 = vld [vmem:[#allocation8 + $0x1d0] sm:$0xff] }
 0x290   :  { %2071 = vmatpush.bf16.msra.mxu0 %v11207_v21 }
 0x291   :  { %2017 = vmatmul.bf16.vlgmr.msrb.gmra.mxu0 %v1305_v23 }
 0x292   :  { %v1168_v26 = vpop.f32.mrf.mxu2 }
 0x293   :  { %v1231_v28 = vpack.c.bf16 %v1168_v26, %v1168_v26 }
 0x294   :  { %v1942_v51 = vpop.f32.mrf.mxu3  ;;  %2072 = vmatpush.bf16.msra.mxu0 %v11206_v9 }
 0x295   :  { %v1303_v35 = vunpack.c.l.b16 %v1231_v28  ;;  %v11205_v28 = vld [vmem:[#allocation8 + $0x1c0] sm:$0xff] }
 0x298   :  { %2073 = vmatpush.bf16.msra.mxu0 %v11205_v28 }
 0x29a   :  { %v1170_v33 = vpop.f32.mrf.mxu2 }
 0x29b   :  { %v1232_v34 = vpack.c.bf16 %v1170_v33, %v1170_v33 }
 0x29d   :  { %v1304_v36 = vunpack.c.l.b16 %v1232_v34 }
 0x29f   :  { %v1306_v40 = vpack.c.b16 %v1304_v36, %v1303_v35  ;;  %v11220_v35 = vld [vmem:[#allocation8 + $0x238] sm:$0xff] }
 0x2a0   :  { %2085 = vmatpush.bf16.msra.mxu1 %v11220_v35 }
 0x2a1   :  { %2022 = vmatmul.bf16.gmra.mxu0 %v1306_v40 }
 0x2a2   :  { %v1173_v41 = vpop.f32.mrf.mxu2 }
 0x2a3   :  { %v1233_v39 = vpack.c.bf16 %v1173_v41, %v1173_v41 }
 0x2a4   :  { %2086 = vmatpush.bf16.msra.mxu1 %v11219_v38  ;;  %v1944_v38 = vpop.f32.mrf.mxu3 }
 0x2a5   :  { %v1313_v49 = vunpack.c.l.b16 %v1233_v39 }
 0x2a8   :  { %2087 = vmatpush.bf16.msra.mxu1 %v11218_v61 }
 0x2aa   :  { %v1175_v43 = vpop.f32.mrf.mxu2 }
 0x2ab   :  { %v1234_v46 = vpack.c.bf16 %v1175_v43, %v1175_v43  ;;  %v11217_v43 = vld [vmem:[#allocation8 + $0x220] sm:$0xff] }
 0x2ac   :  { %2088 = vmatpush.bf16.msra.mxu1 %v11217_v43  ;;  %v1947_v61 = vpop.f32.mrf.mxu3 }
 0x2ad   :  { %v1314_v50 = vunpack.c.l.b16 %v1234_v46 }
 0x2ae   :  { %v1961_v8 = vpop.f32.mrf.mxu0 }
 0x2af   :  { %v1317_v57 = vpack.c.b16 %v1314_v50, %v1313_v49  ;;  %v1962_v58 = vadd.f32 %v1961_v8, %v1942_v51  ;;  %v11216_v49 = vld [vmem:[#allocation8 + $0x218] sm:$0xff]  ;;  %v11214_v8 = vld [vmem:[#allocation8 + $0x208] sm:$0xff] }
 0x2b0   :  { %2089 = vmatpush.bf16.msra.mxu1 %v11216_v49 }
 0x2b1   :  { %2036 = vmatmul.bf16.vlgmr.msrb.gmra.mxu1 %v1317_v57 }
 0x2b2   :  { %v1178_v60 = vpop.f32.mrf.mxu2 }
 0x2b3   :  { %v1235_v3 = vpack.c.bf16 %v1178_v60, %v1178_v60 }
 0x2b4   :  { %2090 = vmatpush.bf16.msra.mxu1 %v11215_v27 }
 0x2b5   :  { %v1315_v0 = vunpack.c.l.b16 %v1235_v3 }
 0x2b8   :  { %2091 = vmatpush.bf16.msra.mxu1 %v11214_v8 }
 0x2ba   :  { %v1180_v5 = vpop.f32.mrf.mxu2 }
 0x2bb   :  { %v1236_v7 = vpack.c.bf16 %v1180_v5, %v1180_v5 }
 0x2bc   :  { %2092 = vmatpush.bf16.msra.mxu1 %v11213_v1 }
 0x2bd   :  { %v1316_v47 = vunpack.c.l.b16 %v1236_v7 }
 0x2bf   :  { %v1318_v32 = vpack.c.b16 %v1316_v47, %v1315_v0 }
 0x2c1   :  { %2041 = vmatmul.bf16.gmra.mxu1 %v1318_v32 }
 0x2c2   :  { %v1183_v15 = vpop.f32.mrf.mxu2 }
 0x2c3   :  { %v1237_v22 = vpack.c.bf16 %v1183_v15, %v1183_v15 }
 0x2c5   :  { %v1325_v26 = vunpack.c.l.b16 %v1237_v22 }
 0x2ca   :  { %v1185_v23 = vpop.f32.mrf.mxu2 }
 0x2cb   :  { %v1238_v24 = vpack.c.bf16 %v1185_v23, %v1185_v23 }
 0x2cd   :  { %v1326_v19 = vunpack.c.l.b16 %v1238_v24 }
 0x2ce   :  { %v1980_v30 = vpop.f32.mrf.mxu1 }
 0x2cf   :  { %v1329_v33 = vpack.c.b16 %v1326_v19, %v1325_v26  ;;  %v12268_v34 = vadd.f32 %v1980_v30, %v1962_v58 }
 0x2d1   :  { %2055 = vmatmul.bf16.vlgmr.msra.gmra.mxu3 %v1329_v33 }
 0x2d2   :  { %v1188_v36 = vpop.f32.mrf.mxu2 }
 0x2d3   :  { %v1239_v40 = vpack.c.bf16 %v1188_v36, %v1188_v36 }
 0x2d5   :  { %v1327_v39 = vunpack.c.l.b16 %v1239_v40  ;;  %v1963_v40 = vpop.f32.mrf.mxu0 }
 0x2da   :  { %v1190_v41 = vpop.f32.mrf.mxu2 }
 0x2db   :  { %v1240_v6 = vpack.c.bf16 %v1190_v41, %v1190_v41 }
 0x2dd   :  { %v1328_v29 = vunpack.c.l.b16 %v1240_v6  ;;  %v1966_v41 = vpop.f32.mrf.mxu0  ;;  %v1982_v6 = vpop.f32.mrf.mxu1 }
 0x2df   :  { %v1330_v46 = vpack.c.b16 %v1328_v29, %v1327_v39  ;;  %v1949_v39 = vpop.f32.mrf.mxu3 }
 0x2e1   :  { %2060 = vmatmul.bf16.gmra.mxu3 %v1330_v46 }
 0x2e2   :  { %v1193_v50 = vpop.f32.mrf.mxu2 }
 0x2e3   :  { %v1241_v51 = vpack.c.bf16 %v1193_v50, %v1193_v50 }
 0x2e5   :  { %v1337_v59 = vunpack.c.l.b16 %v1241_v51  ;;  %v1968_v29 = vpop.f32.mrf.mxu0  ;;  %v1985_v43 = vpop.f32.mrf.mxu1 }
 0x2ea   :  { %v1195_v57 = vpop.f32.mrf.mxu2 }
 0x2eb   :  { %v1242_v58 = vpack.c.bf16 %v1195_v57, %v1195_v57 }
 0x2ed   :  { %v1338_v60 = vunpack.c.l.b16 %v1242_v58  ;;  %v1987_v50 = vpop.f32.mrf.mxu1 }
 0x2ef   :  { %v1341_v3 = vpack.c.b16 %v1338_v60, %v1337_v59 }
 0x2f1   :  { %2074 = vmatmul.bf16.vlgmr.msra.gmra.mxu0 %v1341_v3 }
 0x2f2   :  { %v1198_v4 = vpop.f32.mrf.mxu2 }
 0x2f3   :  { %v1243_v5 = vpack.c.bf16 %v1198_v4, %v1198_v4 }
 0x2f4   :  { %v1999_v46 = vpop.f32.mrf.mxu3 }
 0x2f5   :  { %v1339_v47 = vunpack.c.l.b16 %v1243_v5 }
 0x2fa   :  { %v1200_v7 = vpop.f32.mrf.mxu2 }
 0x2fb   :  { %v1244_v0 = vpack.c.bf16 %v1200_v7, %v1200_v7 }
 0x2fc   :  { %v2001_v27 = vpop.f32.mrf.mxu3 }
 0x2fd   :  { %v1340_v10 = vunpack.c.l.b16 %v1244_v0 }
 0x2ff   :  { %v1342_v32 = vpack.c.b16 %v1340_v10, %v1339_v47 }
 0x301   :  { %2079 = vmatmul.bf16.gmra.mxu0 %v1342_v32  ;;  %v1964_v32 = vadd.f32 %v1963_v40, %v1944_v38 }
 0x302   :  { %v1203_v11 = vpop.f32.mrf.mxu2 }
 0x303   :  { %v1245_v15 = vpack.c.bf16 %v1203_v11, %v1203_v11  ;;  %v1967_v11 = vadd.f32 %v1966_v41, %v1947_v61 }
 0x304   :  { %v2004_v57 = vpop.f32.mrf.mxu3 }
 0x305   :  { %v1349_v9 = vunpack.c.l.b16 %v1245_v15  ;;  %v1983_v15 = vadd.f32 %v1982_v6, %v1964_v32 }
 0x30a   :  { %v1205_v21 = vpop.f32.mrf.mxu2 }
 0x30b   :  { %v1246_v22 = vpack.c.bf16 %v1205_v21, %v1205_v21  ;;  %v1986_v21 = vadd.f32 %v1985_v43, %v1967_v11 }
 0x30c   :  { %v2006_v60 = vpop.f32.mrf.mxu3 }
 0x30d   :  { %v1350_v23 = vunpack.c.l.b16 %v1246_v22  ;;  %v2002_v22 = vadd.f32 %v2001_v27, %v1983_v15 }
 0x30e   :  { %v2018_v49 = vpop.f32.mrf.mxu0 }
 0x30f   :  { %v1353_v24 = vpack.c.b16 %v1350_v23, %v1349_v9 }
 0x311   :  { %2093 = vmatmul.bf16.vlgmr.msra.gmra.mxu1 %v1353_v24  ;;  %v2000_v24 = vadd.f32 %v1999_v46, %v12268_v34 }
 0x312   :  { %v1208_v26 = vpop.f32.mrf.mxu2 }
 0x313   :  { %v1247_v19 = vpack.c.bf16 %v1208_v26, %v1208_v26  ;;  %v2005_v26 = vadd.f32 %v2004_v57, %v1986_v21 }
 0x315   :  { %v1351_v33 = vunpack.c.l.b16 %v1247_v19 }
 0x316   :  { %v2020_v51 = vpop.f32.mrf.mxu0 }
 0x317   :  { %v2021_v19 = vadd.f32 %v2020_v51, %v2002_v22 }
 0x31a   :  { %v1210_v28 = vpop.f32.mrf.mxu2 }
 0x31b   :  { %v1248_v30 = vpack.c.bf16 %v1210_v28, %v1210_v28 }
 0x31d   :  { %v1352_v35 = vunpack.c.l.b16 %v1248_v30  ;;  %v1969_v30 = vadd.f32 %v1968_v29, %v1949_v39 }
 0x31e   :  { %v2023_v58 = vpop.f32.mrf.mxu0 }
 0x31f   :  { %v1354_v36 = vpack.c.b16 %v1352_v35, %v1351_v33  ;;  %v2019_v33 = vadd.f32 %v2018_v49, %v2000_v24  ;;  %v2024_v35 = vadd.f32 %v2023_v58, %v2005_v26  ;;  %v1988_v18 = vadd.f32 %v1987_v50, %v1969_v30 }
 0x321   :  { %2098 = vmatmul.bf16.gmra.mxu1 %v1354_v36  ;;  %v2007_v38 = vadd.f32 %v2006_v60, %v1988_v18 }
 0x326   :  { %v2025_v1 = vpop.f32.mrf.mxu0 }
 0x327   :  { %v2026_v43 = vadd.f32 %v2025_v1, %v2007_v38 }
 0x32e   :  { %v2037_v8 = vpop.f32.mrf.mxu1 }
 0x32f   :  { %v2038_v63 = vadd.f32 %v2037_v8, %v2019_v33 }
 0x336   :  { %v2039_v59 = vpop.f32.mrf.mxu1 }
 0x337   :  { %v2040_v36 = vadd.f32 %v2039_v59, %v2021_v19 }
 0x33e   :  { %v2042_v3 = vpop.f32.mrf.mxu1 }
 0x33f   :  { %v2043_v42 = vadd.f32 %v2042_v3, %v2024_v35 }
 0x346   :  { %v2044_v7 = vpop.f32.mrf.mxu1 }
 0x347   :  { %v2045_v51 = vadd.f32 %v2044_v7, %v2026_v43  ;;  %v2104_v43 = vld [vmem:[#allocation10] sm:$0x1] }
 0x354   :  { %v2056_v4 = vpop.f32.mrf.mxu3 }
 0x355   :  { %v2057_v40 = vadd.f32 %v2056_v4, %v2038_v63 }
 0x35c   :  { %v2058_v0 = vpop.f32.mrf.mxu3 }
 0x35d   :  { %v2059_v31 = vadd.f32 %v2058_v0, %v2040_v36 }
 0x364   :  { %v2061_v9 = vpop.f32.mrf.mxu3 }
 0x365   :  { %v2062_v61 = vadd.f32 %v2061_v9, %v2043_v42 }
 0x36c   :  { %v2063_v46 = vpop.f32.mrf.mxu3 }
 0x36d   :  { %v2064_v49 = vadd.f32 %v2063_v46, %v2045_v51  ;;  %v2105_v51 = vld [vmem:[#allocation11] sm:$0x1] }
 0x36e   :  { %v2075_v5 = vpop.f32.mrf.mxu0 }
 0x36f   :  { %v2076_v27 = vadd.f32 %v2075_v5, %v2057_v40 }
 0x376   :  { %v2077_v47 = vpop.f32.mrf.mxu0 }
 0x377   :  { %v2078_v41 = vadd.f32 %v2077_v47, %v2059_v31 }
 0x37e   :  { %v2080_v28 = vpop.f32.mrf.mxu0 }
 0x37f   :  { %v2081_v32 = vadd.f32 %v2080_v28, %v2062_v61 }
 0x386   :  { %v2082_v29 = vpop.f32.mrf.mxu0 }
 0x387   :  { %v2083_v50 = vadd.f32 %v2082_v29, %v2064_v49 }
 0x38e   :  { %v2094_v10 = vpop.f32.mrf.mxu1 }
 0x38f   :  { %v2095_v57 = vadd.f32 %v2094_v10, %v2076_v27 }
 0x391   :  { %v2115_v8 = vmul.f32 %v2095_v57, %v2095_v57 }
 0x396   :  { %v2096_v23 = vpop.f32.mrf.mxu1 }
 0x397   :  { %v2097_v34 = vadd.f32 %v2096_v23, %v2078_v41 }
 0x399   :  { %v2116_v58 = vmul.f32 %v2097_v34, %v2097_v34  ;;  %v2106_v59 = vadd.f32 %v2097_v34, %v2095_v57 }
 0x39b   :  { %v2119_v63 = vadd.f32 %v2116_v58, %v2115_v8 }
 0x39e   :  { %v2099_v6 = vpop.f32.mrf.mxu1 }
 0x39f   :  { %v2100_v39 = vadd.f32 %v2099_v6, %v2081_v32 }
 0x3a1   :  { %v2117_v3 = vmul.f32 %v2100_v39, %v2100_v39  ;;  %v2107_v42 = vadd.f32 %v2106_v59, %v2100_v39 }
 0x3a3   :  { %v2120_v60 = vadd.f32 %v2119_v63, %v2117_v3 }
 0x3a6   :  { %v2101_v18 = vpop.f32.mrf.mxu1 }
 0x3a7   :  { %v2102_v31 = vadd.f32 %v2101_v18, %v2083_v50 }
 0x3a9   :  { %v2108_v1 = vadd.f32 %v2107_v42, %v2102_v31  ;;  %v2118_v4 = vmul.f32 %v2102_v31, %v2102_v31 }
 0x3ab   :  { %v2109_v5 = vrot.slane %v2108_v1, 4  ;;  %v2121_v0 = vadd.f32 %v2120_v60, %v2118_v4 }
 0x3ad   :  { %v2110_v47 = vadd.f32 %v2109_v5, %v2108_v1  ;;  %v2122_v7 = vrot.slane %v2121_v0, 4 }
 0x3af   :  { %v2111_v10 = vrot.slane %v2110_v47, 2  ;;  %v2123_v11 = vadd.f32 %v2122_v7, %v2121_v0  ;;  %v11225_v7 = vld [vmem:[#allocation8 + $0x260] sm:$0xff] }
 0x3b1   :  { %v2112_v15 = vadd.f32 %v2111_v10, %v2110_v47  ;;  %v2124_v21 = vrot.slane %v2123_v11, 2  ;;  %v11235_v10 = vld [vmem:[#allocation8 + $0x2b0] sm:$0xff] }
 0x3b3   :  { %v2113_v22 = vrot.slane %v2112_v15, 1  ;;  %v2125_v9 = vadd.f32 %v2124_v21, %v2123_v11  ;;  %v11234_v11 = vld [vmem:[#allocation8 + $0x2a8] sm:$0xff]  ;;  %v11232_v21 = vld [vmem:[#allocation8 + $0x298] sm:$0xff] }
 0x3b5   :  { %v2114_v23 = vadd.f32 %v2113_v22, %v2112_v15  ;;  %v2126_v24 = vrot.slane %v2125_v9, 1  ;;  %v11233_v15 = vld [vmem:[#allocation8 + $0x2a0] sm:$0xff]  ;;  %v11231_v22 = vld [vmem:[#allocation8 + $0x290] sm:$0xff] }
 0x3b7   :  { %v2127_v26 = vadd.f32 %v2126_v24, %v2125_v9  ;;  %v2128_v19 = vmul.f32 0.03125, %v2114_v23 }
 0x3b9   :  { %v2129_v28 = vmul.f32 0.03125, %v2127_v26  ;;  %v2130_v30 = vmul.f32 %v2128_v19, %v2128_v19 }
 0x3bb   :  { %v2131_v33 = vsub.f32 %v2129_v28, %v2130_v30  ;;  %v11229_v28 = vld [vmem:[#allocation8 + $0x280] sm:$0xff] }
 0x3bd   :  { %v2132_v35 = vmax.f32 %v2131_v33, 0.0  ;;  %v11244_v33 = vld [vmem:[#allocation8 + $0x2f8] sm:$0xff] }
 0x3bf   :  { %v2133_v36 = vadd.f32 1e-05, %v2132_v35  ;;  %v11243_v35 = vld [vmem:[#allocation8 + $0x2f0] sm:$0xff] }
 0x3c1   :  { %11668 = vrsqrt.f32 %v2133_v36  ;;  %vm2140_vm10 = vweird.f32 %v2133_v36 }
 0x3c7   :  { %v11669_v38 = vpop.eup %11668 }
 0x3c8   :  { %v2135_v40 = vmul.f32 %v11669_v38, %v2133_v36  ;;  %vm2141_vm9 = vweird.f32 %v11669_v38 }
 0x3c9   :  { %vm2142_vm11 = vmor %vm2140_vm10, %vm2141_vm9 }
 0x3ca   :  { %v2136_v61 = vmul.f32 %v11669_v38, %v2135_v40  ;;  %v11242_v40 = vld [vmem:[#allocation8 + $0x2e8] sm:$0xff] }
 0x3cc   :  { %v2137_v41 = vmul.f32 0.5, %v2136_v61 }
 0x3ce   :  { %v2138_v6 = vsub.f32 1.5, %v2137_v41 }
 0x3d0   :  { %v2139_v27 = vmul.f32 %v11669_v38, %v2138_v6 }
 0x3d2   :  { %v2143_v32 = vsel %vm2142_vm11, %v11669_v38, %v2139_v27 }
 0x3d3   :  { %v2144_v46 = vmul.f32 %v2143_v32, %v2104_v43  ;;  %v11241_v43 = vld [vmem:[#allocation8 + $0x2e0] sm:$0xff]  ;;  %v11240_v32 = vld [vmem:[#allocation8 + $0x2d8] sm:$0xff] }
 0x3d5   :  { %v2145_v29 = vmul.f32 %v2144_v46, %v2128_v19  ;;  %v2147_v49 = vperm.slane %v2144_v46, 0  ;;  %v11239_v46 = vld [vmem:[#allocation8 + $0x2d0] sm:$0xff] }
 0x3d7   :  { %v2146_v58 = vsub.f32 %v2105_v51, %v2145_v29  ;;  %v2151_v50 = vmul.f32 %v2147_v49, %v2102_v31  ;;  %v2150_v59 = vmul.f32 %v2147_v49, %v2100_v39  ;;  %v2148_v3 = vmul.f32 %v2147_v49, %v2095_v57  ;;  %v11227_v31 = vld [vmem:[#allocation8 + $0x270] sm:$0xff] }
 0x3d8   :  { %v2149_v18 = vmul.f32 %v2147_v49, %v2097_v34  ;;  %v11238_v49 = vld [vmem:[#allocation8 + $0x2c8] sm:$0xff] }
 0x3d9   :  { %v2152_v8 = vperm.slane %v2146_v58, 0 }
 0x3db   :  { %v2156_v63 = vadd.f32 %v2152_v8, %v2151_v50  ;;  %v2155_v42 = vadd.f32 %v2152_v8, %v2150_v59  ;;  %v2153_v60 = vadd.f32 %v2152_v8, %v2148_v3  ;;  %v2154_v1 = vadd.f32 %v2152_v8, %v2149_v18  ;;  %v11237_v59 = vld [vmem:[#allocation8 + $0x2c0] sm:$0xff]  ;;  %v11252_v18 = vld [vmem:[#allocation8 + $0x338] sm:$0xff] }
 0x3dd   :  { %v12272_v4 = vadd.f32 %v2155_v42, %v12136_v44  ;;  %v12275_v5 = vadd.f32 %v2156_v63, %v12134_v37  ;;  %v12278_v0 = vadd.f32 %v2153_v60, %v12138_v45  ;;  %v12281_v47 = vadd.f32 %v2154_v1, %v12140_v48  ;;  %v11228_v48 = vld [vmem:[#allocation8 + $0x278] sm:$0xff]  ;;  %v11251_v63 = vld [vmem:[#allocation8 + $0x330] sm:$0xff]  ;;  %v11250_v1 = vld [vmem:[#allocation8 + $0x328] sm:$0xff] }
 0x3de   :  { %2987 = vmatpush.bf16.msrb.mxu0 %v11228_v48 }
 0x3df   :  { %v12933_v39 = vmax.f32 %v12272_v4, 0.0  ;;  %v12932_v34 = vmax.f32 %v12275_v5, 0.0  ;;  %v12931_v44 = vmax.f32 %v12278_v0, 0.0  ;;  %v12930_v37 = vmax.f32 %v12281_v47, 0.0 }
 0x3e1   :  { %v2166_v57 = vpack.c.bf16 %v12932_v34, %v12933_v39  ;;  %v2165_v45 = vpack.c.bf16 %v12930_v37, %v12931_v44 }
 0x3e2   :  { %2988 = vmatpush.bf16.msrb.mxu0 %v11227_v31  ;;  %v11249_v31 = vld [vmem:[#allocation8 + $0x320] sm:$0xff] }
 0x3e3   :  { %2173 = vmatpush.bf16.msrb.mxu3 %v2166_v57 }
 0x3e7   :  { %2174 = vmatpush.bf16.msrb.mxu3 %v2165_v45 }
 0x3ea   :  { %9213 = vmatmul.msk.bf16.vlgmr.msrb.gmra.mxu3 %vm1059_vm8, %v12145_v25  ;;  %v11226_v25 = vld [vmem:[#allocation8 + $0x268] sm:$0xff] }
 0x3eb   :  { %2989 = vmatpush.bf16.msrb.mxu0 %v11226_v25 }
 0x3ef   :  { %2990 = vmatpush.bf16.msrb.mxu0 %v11225_v7  ;;  %v11248_v7 = vld [vmem:[#allocation8 + $0x318] sm:$0xff] }
 0x3fa   :  { %9214 = vmatmul.msk.bf16.gmra.mxu3 %vm1059_vm8, %v12152_v52  ;;  %v11224_v52 = vld [vmem:[#allocation8 + $0x258] sm:$0xff] }
 0x3fb   :  { %2991 = vmatpush.bf16.msrb.mxu0 %v11224_v52  ;;  %v11247_v52 = vld [vmem:[#allocation8 + $0x310] sm:$0xff] }
 0x40a   :  { %9215 = vmatmul.msk.bf16.gmra.mxu3 %vm1059_vm8, %v12159_v53  ;;  %v11223_v53 = vld [vmem:[#allocation8 + $0x250] sm:$0xff] }
 0x40b   :  { %2992 = vmatpush.bf16.msrb.mxu0 %v11223_v53 }
 0x41a   :  { %9216 = vmatmul.msk.bf16.gmra.mxu3 %vm1059_vm8, %v12166_v54  ;;  %v11222_v54 = vld [vmem:[#allocation8 + $0x248] sm:$0xff] }
 0x41b   :  { %2993 = vmatpush.bf16.msrb.mxu0 %v11222_v54 }
 0x42a   :  { %9217 = vmatmul.msk.bf16.gmra.mxu3 %vm1059_vm8, %v12173_v55  ;;  %v11221_v55 = vld [vmem:[#allocation8 + $0x240] sm:$0xff] }
 0x42b   :  { %2994 = vmatpush.bf16.msrb.mxu0 %v11221_v55  ;;  %v11246_v55 = vld [vmem:[#allocation8 + $0x308] sm:$0xff] }
 0x42f   :  { %3025 = vmatpush.bf16.msra.mxu0 %v11244_v33  ;;  %v11256_v33 = vld [vmem:[#allocation8 + $0x358] sm:$0xff] }
 0x433   :  { %3026 = vmatpush.bf16.msra.mxu0 %v11243_v35  ;;  %v11255_v35 = vld [vmem:[#allocation8 + $0x350] sm:$0xff] }
 0x437   :  { %3027 = vmatpush.bf16.msra.mxu0 %v11242_v40  ;;  %v11254_v40 = vld [vmem:[#allocation8 + $0x348] sm:$0xff] }
 0x43a   :  { %9218 = vmatmul.msk.bf16.gmra.mxu3 %vm1059_vm8, %v12180_v56  ;;  %v11236_v56 = vld [vmem:[#allocation8 + $0x2b8] sm:$0xff] }
 0x43b   :  { %3006 = vmatpush.bf16.msrb.mxu1 %v11236_v56  ;;  %3028 = vmatpush.bf16.msra.mxu0 %v11241_v43  ;;  %v11253_v43 = vld [vmem:[#allocation8 + $0x340] sm:$0xff] }
 0x43f   :  { %3007 = vmatpush.bf16.msrb.mxu1 %v11235_v10  ;;  %3029 = vmatpush.bf16.msra.mxu0 %v11240_v32 }
 0x443   :  { %3008 = vmatpush.bf16.msrb.mxu1 %v11234_v11  ;;  %3030 = vmatpush.bf16.msra.mxu0 %v11239_v46  ;;  %v11268_v46 = vld [vmem:[#allocation8 + $0x3b8] sm:$0xff] }
 0x447   :  { %3009 = vmatpush.bf16.msrb.mxu1 %v11233_v15  ;;  %3031 = vmatpush.bf16.msra.mxu0 %v11238_v49  ;;  %v11245_v15 = vld [vmem:[#allocation8 + $0x300] sm:$0xff] }
 0x44a   :  { %9219 = vmatmul.msk.bf16.gmra.mxu3 %vm1059_vm8, %v12187_v17 }
 0x44b   :  { %3010 = vmatpush.bf16.msrb.mxu1 %v11232_v21  ;;  %3032 = vmatpush.bf16.msra.mxu0 %v11237_v59  ;;  %v11260_v21 = vld [vmem:[#allocation8 + $0x378] sm:$0xff] }
 0x44f   :  { %3011 = vmatpush.bf16.msrb.mxu1 %v11231_v22  ;;  %v11259_v22 = vld [vmem:[#allocation8 + $0x370] sm:$0xff] }
 0x45a   :  { %9220 = vmatmul.msk.bf16.gmra.mxu3 %vm1059_vm8, %v12194_v2  ;;  %v11230_v2 = vld [vmem:[#allocation8 + $0x288] sm:$0xff] }
 0x45b   :  { %3012 = vmatpush.bf16.msrb.mxu1 %v11230_v2  ;;  %v11258_v2 = vld [vmem:[#allocation8 + $0x368] sm:$0xff] }
 0x45f   :  { %3013 = vmatpush.bf16.msrb.mxu1 %v11229_v28  ;;  %v11257_v28 = vld [vmem:[#allocation8 + $0x360] sm:$0xff] }
 0x463   :  { %3044 = vmatpush.bf16.msra.mxu1 %v11252_v18 }
 0x467   :  { %3045 = vmatpush.bf16.msra.mxu1 %v11251_v63 }
 0x46a   :  { %9221 = vmatmul.msk.bf16.gmra.mxu3 %vm1059_vm8, %v12201_v13 }
 0x46b   :  { %3046 = vmatpush.bf16.msra.mxu1 %v11250_v1 }
 0x46d   :  { %v2176_v17 = vpop.f32.mrf.mxu3 }
 0x46e   :  { %v2266_v9 = vpack.c.bf16 %v2176_v17, %v2176_v17 }
 0x46f   :  { %3047 = vmatpush.bf16.msra.mxu1 %v11249_v31 }
 0x470   :  { %v2306_v26 = vunpack.c.l.b16 %v2266_v9 }
 0x473   :  { %3048 = vmatpush.bf16.msra.mxu1 %v11248_v7 }
 0x475   :  { %v2178_v23 = vpop.f32.mrf.mxu3 }
 0x476   :  { %v2267_v24 = vpack.c.bf16 %v2178_v23, %v2178_v23 }
 0x477   :  { %3049 = vmatpush.bf16.msra.mxu1 %v11247_v52  ;;  %v12942_v52 = vld [vmem:[#allocation22_spill] sm:$0xff] }
 0x478   :  { %v2307_v19 = vunpack.c.l.b16 %v2267_v24 }
 0x47a   :  { %v2310_v30 = vpack.c.b16 %v2307_v19, %v2306_v26  ;;  %9222 = vmatmul.msk.bf16.gmra.mxu3 %vm1059_vm8, %v12208_v20 }
 0x47b   :  { %3050 = vmatpush.bf16.msra.mxu1 %v11246_v55  ;;  %v11275_v55 = vld [vmem:[#allocation8 + $0x3f0] sm:$0xff] }
 0x47c   :  { %2995 = vmatmul.bf16.vlgmr.msrb.gmra.mxu0 %v2310_v30  ;;  %v12939_v30 = vld [vmem:[#allocation19_spill] sm:$0xff] }
 0x47d   :  { %v2181_v13 = vpop.f32.mrf.mxu3  ;;  %3063 = vmatpush.bf16.msrb.mxu0 %v11260_v21  ;;  %v11273_v21 = vld [vmem:[#allocation8 + $0x3e0] sm:$0xff] }
 0x47e   :  { %v2268_v36 = vpack.c.bf16 %v2181_v13, %v2181_v13 }
 0x47f   :  { %3051 = vmatpush.bf16.msra.mxu1 %v11245_v15 }
 0x480   :  { %v2308_v41 = vunpack.c.l.b16 %v2268_v36 }
 0x481   :  { %3064 = vmatpush.bf16.msrb.mxu0 %v11259_v22 }
 0x485   :  { %v2183_v38 = vpop.f32.mrf.mxu3  ;;  %3065 = vmatpush.bf16.msrb.mxu0 %v11258_v2  ;;  %v11271_v2 = vld [vmem:[#allocation8 + $0x3d0] sm:$0xff] }
 0x486   :  { %v2269_v61 = vpack.c.bf16 %v2183_v38, %v2183_v38 }
 0x488   :  { %v2309_v6 = vunpack.c.l.b16 %v2269_v61 }
 0x489   :  { %3066 = vmatpush.bf16.msrb.mxu0 %v11257_v28  ;;  %v11270_v28 = vld [vmem:[#allocation8 + $0x3c8] sm:$0xff] }
 0x48a   :  { %9223 = vmatmul.msk.bf16.gmra.mxu3 %vm1059_vm8, %v12215_v16  ;;  %v2311_v27 = vpack.c.b16 %v2309_v6, %v2308_v41 }
 0x48c   :  { %3000 = vmatmul.bf16.gmra.mxu0 %v2311_v27 }
 0x48d   :  { %v2186_v20 = vpop.f32.mrf.mxu3  ;;  %3067 = vmatpush.bf16.msrb.mxu0 %v11256_v33 }
 0x48e   :  { %v2270_v51 = vpack.c.bf16 %v2186_v20, %v2186_v20  ;;  %v12940_v20 = vld [vmem:[#allocation20_spill] sm:$0xff] }
 0x490   :  { %v2318_v50 = vunpack.c.l.b16 %v2270_v51  ;;  %v11267_v51 = vld [vmem:[#allocation8 + $0x3b0] sm:$0xff] }
 0x491   :  { %3068 = vmatpush.bf16.msrb.mxu0 %v11255_v35  ;;  %v11269_v35 = vld [vmem:[#allocation8 + $0x3c0] sm:$0xff] }
 0x495   :  { %v2188_v29 = vpop.f32.mrf.mxu3  ;;  %3069 = vmatpush.bf16.msrb.mxu0 %v11254_v40 }
 0x496   :  { %v2271_v58 = vpack.c.bf16 %v2188_v29, %v2188_v29 }
 0x498   :  { %v2319_v8 = vunpack.c.l.b16 %v2271_v58  ;;  %v11266_v58 = vld [vmem:[#allocation8 + $0x3a8] sm:$0xff] }
 0x499   :  { %3070 = vmatpush.bf16.msrb.mxu0 %v11253_v43  ;;  %v11283_v43 = vld [vmem:[#allocation8 + $0x430] sm:$0xff] }
 0x49a   :  { %v2322_v3 = vpack.c.b16 %v2319_v8, %v2318_v50  ;;  %9224 = vmatmul.msk.bf16.gmra.mxu3 %vm1059_vm8, %v12222_v12 }
 0x49c   :  { %3014 = vmatmul.bf16.vlgmr.msrb.gmra.mxu1 %v2322_v3  ;;  %v11265_v3 = vld [vmem:[#allocation8 + $0x3a0] sm:$0xff] }
 0x49d   :  { %v2191_v16 = vpop.f32.mrf.mxu3  ;;  %3082 = vmatpush.bf16.msrb.mxu1 %v11268_v46 }
 0x49e   :  { %v2272_v42 = vpack.c.bf16 %v2191_v16, %v2191_v16  ;;  %v12941_v16 = vld [vmem:[#allocation21_spill] sm:$0xff] }
 0x4a0   :  { %v2320_v45 = vunpack.c.l.b16 %v2272_v42  ;;  %v11264_v42 = vld [vmem:[#allocation8 + $0x398] sm:$0xff] }
 0x4a1   :  { %3083 = vmatpush.bf16.msrb.mxu1 %v11267_v51 }
 0x4a5   :  { %v2193_v60 = vpop.f32.mrf.mxu3  ;;  %3084 = vmatpush.bf16.msrb.mxu1 %v11266_v58 }
 0x4a6   :  { %v2273_v57 = vpack.c.bf16 %v2193_v60, %v2193_v60  ;;  %v11263_v60 = vld [vmem:[#allocation8 + $0x390] sm:$0xff] }
 0x4a8   :  { %v2321_v48 = vunpack.c.l.b16 %v2273_v57 }
 0x4a9   :  { %3085 = vmatpush.bf16.msrb.mxu1 %v11265_v3 }
 0x4aa   :  { %9225 = vmatmul.msk.bf16.gmra.mxu3 %vm1059_vm8, %v12229_v62  ;;  %v2323_v25 = vpack.c.b16 %v2321_v48, %v2320_v45  ;;  %v11262_v45 = vld [vmem:[#allocation8 + $0x388] sm:$0xff] }
 0x4ac   :  { %3019 = vmatmul.bf16.gmra.mxu1 %v2323_v25 }
 0x4ad   :  { %v2196_v12 = vpop.f32.mrf.mxu3  ;;  %3086 = vmatpush.bf16.msrb.mxu1 %v11264_v42 }
 0x4ae   :  { %v2274_v53 = vpack.c.bf16 %v2196_v12, %v2196_v12  ;;  %v11261_v12 = vld [vmem:[#allocation8 + $0x380] sm:$0xff] }
 0x4b0   :  { %v2330_v10 = vunpack.c.l.b16 %v2274_v53 }
 0x4b1   :  { %3087 = vmatpush.bf16.msrb.mxu1 %v11263_v60 }
 0x4b5   :  { %v2198_v54 = vpop.f32.mrf.mxu3  ;;  %3088 = vmatpush.bf16.msrb.mxu1 %v11262_v45 }
 0x4b6   :  { %v2275_v56 = vpack.c.bf16 %v2198_v54, %v2198_v54  ;;  %v11276_v54 = vld [vmem:[#allocation8 + $0x3f8] sm:$0xff] }
 0x4b8   :  { %v2331_v11 = vunpack.c.l.b16 %v2275_v56 }
 0x4b9   :  { %3089 = vmatpush.bf16.msrb.mxu1 %v11261_v12 }
 0x4ba   :  { %v2334_v17 = vpack.c.b16 %v2331_v11, %v2330_v10  ;;  %9226 = vmatmul.msk.bf16.gmra.mxu3 %vm1059_vm8, %v12236_v14  ;;  %v11274_v11 = vld [vmem:[#allocation8 + $0x3e8] sm:$0xff] }
 0x4bc   :  { %3033 = vmatmul.bf16.vlgmr.msra.gmra.mxu0 %v2334_v17 }
 0x4bd   :  { %v2201_v62 = vpop.f32.mrf.mxu3  ;;  %3101 = vmatpush.bf16.msra.mxu0 %v11276_v54 }
 0x4be   :  { %v2276_v9 = vpack.c.bf16 %v2201_v62, %v2201_v62 }
 0x4c0   :  { %v2332_v26 = vunpack.c.l.b16 %v2276_v9 }
 0x4c1   :  { %3102 = vmatpush.bf16.msra.mxu0 %v11275_v55  ;;  %v11291_v55 = vld [vmem:[#allocation8 + $0x470] sm:$0xff] }
 0x4c5   :  { %v2203_v23 = vpop.f32.mrf.mxu3  ;;  %3103 = vmatpush.bf16.msra.mxu0 %v11274_v11  ;;  %v11290_v11 = vld [vmem:[#allocation8 + $0x468] sm:$0xff] }
 0x4c6   :  { %v2277_v24 = vpack.c.bf16 %v2203_v23, %v2203_v23  ;;  %v11272_v23 = vld [vmem:[#allocation8 + $0x3d8] sm:$0xff] }
 0x4c8   :  { %v2333_v19 = vunpack.c.l.b16 %v2277_v24 }
 0x4c9   :  { %3104 = vmatpush.bf16.msra.mxu0 %v11273_v21 }
 0x4ca   :  { %9227 = vmatmul.msk.bf16.gmra.mxu3 %vm1059_vm8, %v12939_v30  ;;  %v2335_v13 = vpack.c.b16 %v2333_v19, %v2332_v26 }
 0x4cc   :  { %3038 = vmatmul.bf16.gmra.mxu0 %v2335_v13 }
 0x4cd   :  { %v2206_v14 = vpop.f32.mrf.mxu3  ;;  %3105 = vmatpush.bf16.msra.mxu0 %v11272_v23 }
 0x4ce   :  { %v2278_v36 = vpack.c.bf16 %v2206_v14, %v2206_v14 }
 0x4d0   :  { %v2342_v41 = vunpack.c.l.b16 %v2278_v36 }
 0x4d1   :  { %3106 = vmatpush.bf16.msra.mxu0 %v11271_v2 }
 0x4d5   :  { %v2208_v38 = vpop.f32.mrf.mxu3  ;;  %3107 = vmatpush.bf16.msra.mxu0 %v11270_v28 }
 0x4d6   :  { %v2279_v61 = vpack.c.bf16 %v2208_v38, %v2208_v38 }
 0x4d8   :  { %v2343_v6 = vunpack.c.l.b16 %v2279_v61 }
 0x4d9   :  { %3108 = vmatpush.bf16.msra.mxu0 %v11269_v35 }
 0x4da   :  { %v2346_v27 = vpack.c.b16 %v2343_v6, %v2342_v41  ;;  %9228 = vmatmul.msk.bf16.gmra.mxu3 %vm1059_vm8, %v12940_v20  ;;  %v11284_v41 = vld [vmem:[#allocation8 + $0x438] sm:$0xff] }
 0x4dc   :  { %3052 = vmatmul.bf16.vlgmr.msra.gmra.mxu1 %v2346_v27 }
 0x4dd   :  { %v2211_v32 = vpop.f32.mrf.mxu3  ;;  %3120 = vmatpush.bf16.msra.mxu1 %v11284_v41 }
 0x4de   :  { %v2280_v29 = vpack.c.bf16 %v2211_v32, %v2211_v32  ;;  %v11282_v32 = vld [vmem:[#allocation8 + $0x428] sm:$0xff] }
 0x4e0   :  { %v2344_v8 = vunpack.c.l.b16 %v2280_v29 }
 0x4e1   :  { %3121 = vmatpush.bf16.msra.mxu1 %v11283_v43 }
 0x4e5   :  { %v2213_v49 = vpop.f32.mrf.mxu3  ;;  %3122 = vmatpush.bf16.msra.mxu1 %v11282_v32 }
 0x4e6   :  { %v2281_v50 = vpack.c.bf16 %v2213_v49, %v2213_v49 }
 0x4e8   :  { %v2345_v59 = vunpack.c.l.b16 %v2281_v50  ;;  %v11281_v50 = vld [vmem:[#allocation8 + $0x420] sm:$0xff] }
 0x4e9   :  { %3123 = vmatpush.bf16.msra.mxu1 %v11281_v50 }
 0x4ea   :  { %9229 = vmatmul.msk.bf16.gmra.mxu3 %vm1059_vm8, %v12941_v16  ;;  %v2347_v18 = vpack.c.b16 %v2345_v59, %v2344_v8  ;;  %v11280_v16 = vld [vmem:[#allocation8 + $0x418] sm:$0xff] }
 0x4ec   :  { %3057 = vmatmul.bf16.gmra.mxu1 %v2347_v18 }
 0x4ed   :  { %v2216_v63 = vpop.f32.mrf.mxu3  ;;  %3124 = vmatpush.bf16.msra.mxu1 %v11280_v16 }
 0x4ee   :  { %v2282_v1 = vpack.c.bf16 %v2216_v63, %v2216_v63  ;;  %v11279_v63 = vld [vmem:[#allocation8 + $0x410] sm:$0xff] }
 0x4f0   :  { %v2354_v31 = vunpack.c.l.b16 %v2282_v1  ;;  %v11278_v1 = vld [vmem:[#allocation8 + $0x408] sm:$0xff] }
 0x4f1   :  { %3125 = vmatpush.bf16.msra.mxu1 %v11279_v63 }
 0x4f5   :  { %v2218_v57 = vpop.f32.mrf.mxu3  ;;  %3126 = vmatpush.bf16.msra.mxu1 %v11278_v1 }
 0x4f6   :  { %v2283_v48 = vpack.c.bf16 %v2218_v57, %v2218_v57 }
 0x4f8   :  { %v2355_v25 = vunpack.c.l.b16 %v2283_v48 }
 0x4f9   :  { %v2996_v24 = vpop.f32.mrf.mxu0 }
 0x4fa   :  { %v2358_v7 = vpack.c.b16 %v2355_v25, %v2354_v31  ;;  %9230 = vmatmul.msk.bf16.gmra.mxu3 %vm1059_vm8, %v12942_v52  ;;  %v11277_v25 = vld [vmem:[#allocation8 + $0x400] sm:$0xff] }
 0x4fb   :  { %3127 = vmatpush.bf16.msra.mxu1 %v11277_v25 }
 0x4fc   :  { %3071 = vmatmul.bf16.vlgmr.msrb.gmra.mxu0 %v2358_v7 }
 0x4fd   :  { %v2221_v53 = vpop.f32.mrf.mxu3 }
 0x4fe   :  { %v2284_v56 = vpack.c.bf16 %v2221_v53, %v2221_v53  ;;  %v11292_v53 = vld [vmem:[#allocation8 + $0x478] sm:$0xff] }
 0x4ff   :  { %3139 = vmatpush.bf16.msrb.mxu0 %v11292_v53 }
 0x500   :  { %v2356_v17 = vunpack.c.l.b16 %v2284_v56 }
 0x501   :  { %v12331_v40 = vpop.f32.mrf.mxu0 }
 0x503   :  { %3140 = vmatpush.bf16.msrb.mxu0 %v11291_v55 }
 0x505   :  { %v2223_v10 = vpop.f32.mrf.mxu3 }
 0x506   :  { %v2285_v15 = vpack.c.bf16 %v2223_v10, %v2223_v10 }
 0x507   :  { %3141 = vmatpush.bf16.msrb.mxu0 %v11290_v11 }
 0x508   :  { %v2357_v62 = vunpack.c.l.b16 %v2285_v15 }
 0x509   :  { %v3001_v51 = vpop.f32.mrf.mxu0 }
 0x50a   :  { %v2359_v22 = vpack.c.b16 %v2357_v62, %v2356_v17 }
 0x50c   :  { %3076 = vmatmul.bf16.gmra.mxu0 %v2359_v22  ;;  %v11289_v22 = vld [vmem:[#allocation8 + $0x460] sm:$0xff] }
 0x50d   :  { %v2226_v9 = vpop.f32.mrf.mxu3  ;;  %3142 = vmatpush.bf16.msrb.mxu0 %v11289_v22 }
 0x50e   :  { %v2286_v26 = vpack.c.bf16 %v2226_v9, %v2226_v9 }
 0x510   :  { %v2366_v13 = vunpack.c.l.b16 %v2286_v26 }
 0x511   :  { %v12335_v18 = vpop.f32.mrf.mxu0 }
 0x515   :  { %v2228_v19 = vpop.f32.mrf.mxu3 }
 0x516   :  { %v2287_v30 = vpack.c.bf16 %v2228_v19, %v2228_v19  ;;  %v11287_v19 = vld [vmem:[#allocation8 + $0x450] sm:$0xff] }
 0x518   :  { %v2367_v14 = vunpack.c.l.b16 %v2287_v30 }
 0x519   :  { %v3015_v33 = vpop.f32.mrf.mxu1 }
 0x51a   :  { %v2370_v36 = vpack.c.b16 %v2367_v14, %v2366_v13  ;;  %v3016_v38 = vadd.f32 %v3015_v33, %v2996_v24  ;;  %v11288_v24 = vld [vmem:[#allocation8 + $0x458] sm:$0xff]  ;;  %v11286_v13 = vld [vmem:[#allocation8 + $0x448] sm:$0xff] }
 0x51b   :  { %3143 = vmatpush.bf16.msrb.mxu0 %v11288_v24 }
 0x51c   :  { %3090 = vmatmul.bf16.vlgmr.msrb.gmra.mxu1 %v2370_v36 }
 0x51d   :  { %v2231_v61 = vpop.f32.mrf.mxu3 }
 0x51e   :  { %v2288_v27 = vpack.c.bf16 %v2231_v61, %v2231_v61 }
 0x51f   :  { %3144 = vmatpush.bf16.msrb.mxu0 %v11287_v19 }
 0x520   :  { %v2368_v29 = vunpack.c.l.b16 %v2288_v27 }
 0x521   :  { %v12333_v6 = vpop.f32.mrf.mxu1 }
 0x522   :  { %v3018_v19 = vadd.f32 %v12333_v6, %v12331_v40 }
 0x523   :  { %3145 = vmatpush.bf16.msrb.mxu0 %v11286_v13 }
 0x525   :  { %v2233_v20 = vpop.f32.mrf.mxu3 }
 0x526   :  { %v2289_v46 = vpack.c.bf16 %v2233_v20, %v2233_v20 }
 0x528   :  { %v2369_v49 = vunpack.c.l.b16 %v2289_v46 }
 0x529   :  { %v3020_v58 = vpop.f32.mrf.mxu1 }
 0x52a   :  { %v3021_v8 = vadd.f32 %v3020_v58, %v3001_v51  ;;  %v2371_v59 = vpack.c.b16 %v2369_v49, %v2368_v29 }
 0x52c   :  { %3095 = vmatmul.bf16.gmra.mxu1 %v2371_v59 }
 0x52d   :  { %v2236_v3 = vpop.f32.mrf.mxu3 }
 0x52e   :  { %v2290_v42 = vpack.c.bf16 %v2236_v3, %v2236_v3 }
 0x530   :  { %v2378_v45 = vunpack.c.l.b16 %v2290_v42 }
 0x531   :  { %v12341_v26 = vpop.f32.mrf.mxu1 }
 0x535   :  { %v2238_v60 = vpop.f32.mrf.mxu3 }
 0x536   :  { %v2291_v57 = vpack.c.bf16 %v2238_v60, %v2238_v60 }
 0x538   :  { %v2379_v48 = vunpack.c.l.b16 %v2291_v57 }
 0x539   :  { %v3034_v31 = vpop.f32.mrf.mxu0 }
 0x53a   :  { %v2382_v12 = vpack.c.b16 %v2379_v48, %v2378_v45  ;;  %v3035_v7 = vadd.f32 %v3034_v31, %v3016_v38  ;;  %v11285_v38 = vld [vmem:[#allocation8 + $0x440] sm:$0xff] }
 0x53b   :  { %3146 = vmatpush.bf16.msrb.mxu0 %v11285_v38 }
 0x53c   :  { %3109 = vmatmul.bf16.vlgmr.msra.gmra.mxu0 %v2382_v12 }
 0x53d   :  { %v2241_v52 = vpop.f32.mrf.mxu3 }
 0x53e   :  { %v2292_v56 = vpack.c.bf16 %v2241_v52, %v2241_v52 }
 0x540   :  { %v2380_v17 = vunpack.c.l.b16 %v2292_v56 }
 0x541   :  { %v12337_v54 = vpop.f32.mrf.mxu0 }
 0x545   :  { %v2243_v10 = vpop.f32.mrf.mxu3 }
 0x546   :  { %v2293_v15 = vpack.c.bf16 %v2243_v10, %v2243_v10 }
 0x548   :  { %v2381_v62 = vunpack.c.l.b16 %v2293_v15 }
 0x549   :  { %v3039_v21 = vpop.f32.mrf.mxu0 }
 0x54a   :  { %v12339_v9 = vadd.f32 %v3039_v21, %v3021_v8  ;;  %v2383_v23 = vpack.c.b16 %v2381_v62, %v2380_v17 }
 0x54c   :  { %3114 = vmatmul.bf16.gmra.mxu0 %v2383_v23 }
 0x54d   :  { %v2246_v2 = vpop.f32.mrf.mxu3 }
 0x54e   :  { %v2294_v28 = vpack.c.bf16 %v2246_v2, %v2246_v2 }
 0x550   :  { %v2390_v33 = vunpack.c.l.b16 %v2294_v28  ;;  %v3037_v28 = vadd.f32 %v12337_v54, %v3018_v19 }
 0x551   :  { %v3041_v58 = vpop.f32.mrf.mxu0 }
 0x555   :  { %v2248_v30 = vpop.f32.mrf.mxu3 }
 0x556   :  { %v2295_v14 = vpack.c.bf16 %v2248_v30, %v2248_v30 }
 0x558   :  { %v2391_v35 = vunpack.c.l.b16 %v2295_v14 }
 0x559   :  { %v3053_v36 = vpop.f32.mrf.mxu1 }
 0x55a   :  { %v2394_v61 = vpack.c.b16 %v2391_v35, %v2390_v33  ;;  %v3054_v41 = vadd.f32 %v3053_v36, %v3035_v7 }
 0x55c   :  { %3128 = vmatmul.bf16.vlgmr.msra.gmra.mxu1 %v2394_v61 }
 0x55d   :  { %v2251_v43 = vpop.f32.mrf.mxu3 }
 0x55e   :  { %v2296_v27 = vpack.c.bf16 %v2251_v43, %v2251_v43 }
 0x560   :  { %v2392_v46 = vunpack.c.l.b16 %v2296_v27 }
 0x561   :  { %v3055_v7 = vpop.f32.mrf.mxu1 }
 0x562   :  { %v3056_v14 = vadd.f32 %v3055_v7, %v3037_v28 }
 0x565   :  { %v2253_v20 = vpop.f32.mrf.mxu3 }
 0x566   :  { %v2297_v32 = vpack.c.bf16 %v2253_v20, %v2253_v20 }
 0x568   :  { %v2393_v51 = vunpack.c.l.b16 %v2297_v32 }
 0x569   :  { %v3058_v52 = vpop.f32.mrf.mxu1 }
 0x56a   :  { %v2395_v29 = vpack.c.b16 %v2393_v51, %v2392_v46  ;;  %v3059_v36 = vadd.f32 %v3058_v52, %v12339_v9  ;;  %v3023_v46 = vadd.f32 %v12341_v26, %v12335_v18 }
 0x56c   :  { %3133 = vmatmul.bf16.gmra.mxu1 %v2395_v29  ;;  %v3042_v51 = vadd.f32 %v3041_v58, %v3023_v46 }
 0x56d   :  { %v2256_v49 = vpop.f32.mrf.mxu3 }
 0x56e   :  { %v2298_v50 = vpack.c.bf16 %v2256_v49, %v2256_v49 }
 0x570   :  { %v2402_v3 = vunpack.c.l.b16 %v2298_v50 }
 0x571   :  { %v3060_v55 = vpop.f32.mrf.mxu1 }
 0x572   :  { %v3061_v50 = vadd.f32 %v3060_v55, %v3042_v51 }
 0x575   :  { %v2258_v8 = vpop.f32.mrf.mxu3 }
 0x576   :  { %v2299_v59 = vpack.c.bf16 %v2258_v8, %v2258_v8 }
 0x578   :  { %v2403_v16 = vunpack.c.l.b16 %v2299_v59 }
 0x579   :  { %v3072_v63 = vpop.f32.mrf.mxu0 }
 0x57a   :  { %v2406_v42 = vpack.c.b16 %v2403_v16, %v2402_v3  ;;  %v3073_v60 = vadd.f32 %v3072_v63, %v3054_v41 }
 0x57c   :  { %3147 = vmatmul.bf16.vlgmr.msrb.gmra.mxu0 %v2406_v42 }
 0x57d   :  { %v2261_v1 = vpop.f32.mrf.mxu3 }
 0x57e   :  { %v2300_v57 = vpack.c.bf16 %v2261_v1, %v2261_v1 }
 0x580   :  { %v2404_v31 = vunpack.c.l.b16 %v2300_v57 }
 0x581   :  { %v3074_v53 = vpop.f32.mrf.mxu0 }
 0x582   :  { %v3075_v33 = vadd.f32 %v3074_v53, %v3056_v14 }
 0x585   :  { %v2263_v45 = vpop.f32.mrf.mxu3 }
 0x586   :  { %v2301_v48 = vpack.c.bf16 %v2263_v45, %v2263_v45 }
 0x588   :  { %v2405_v25 = vunpack.c.l.b16 %v2301_v48 }
 0x589   :  { %v3077_v56 = vpop.f32.mrf.mxu0 }
 0x58a   :  { %v2407_v12 = vpack.c.b16 %v2405_v25, %v2404_v31  ;;  %v3078_v43 = vadd.f32 %v3077_v56, %v3059_v36 }
 0x58c   :  { %3152 = vmatmul.bf16.gmra.mxu0 %v2407_v12 }
 0x591   :  { %v3079_v11 = vpop.f32.mrf.mxu0 }
 0x592   :  { %v3080_v3 = vadd.f32 %v3079_v11, %v3061_v50 }
 0x599   :  { %v3091_v10 = vpop.f32.mrf.mxu1 }
 0x59a   :  { %v3092_v38 = vadd.f32 %v3091_v10, %v3073_v60 }
 0x5a1   :  { %v3093_v15 = vpop.f32.mrf.mxu1 }
 0x5a2   :  { %v3094_v35 = vadd.f32 %v3093_v15, %v3075_v33 }
 0x5a9   :  { %v3096_v62 = vpop.f32.mrf.mxu1 }
 0x5aa   :  { %v3097_v40 = vadd.f32 %v3096_v62, %v3078_v43 }
 0x5b1   :  { %v3098_v22 = vpop.f32.mrf.mxu1 }
 0x5b2   :  { %v3099_v60 = vadd.f32 %v3098_v22, %v3080_v3 }
 0x5b9   :  { %v3110_v17 = vpop.f32.mrf.mxu0 }
 0x5ba   :  { %v3111_v27 = vadd.f32 %v3110_v17, %v3092_v38 }
 0x5c1   :  { %v3112_v21 = vpop.f32.mrf.mxu0 }
 0x5c2   :  { %v3113_v61 = vadd.f32 %v3112_v21, %v3094_v35 }
 0x5c9   :  { %v3115_v23 = vpop.f32.mrf.mxu0 }
 0x5ca   :  { %v3116_v29 = vadd.f32 %v3115_v23, %v3097_v40 }
 0x5d1   :  { %v3117_v24 = vpop.f32.mrf.mxu0 }
 0x5d2   :  { %v3118_v45 = vadd.f32 %v3117_v24, %v3099_v60 }
 0x5d9   :  { %v3129_v2 = vpop.f32.mrf.mxu1 }
 0x5da   :  { %v3130_v6 = vadd.f32 %v3129_v2, %v3111_v27 }
 0x5e1   :  { %v3131_v30 = vpop.f32.mrf.mxu1 }
 0x5e2   :  { %v3132_v20 = vadd.f32 %v3131_v30, %v3113_v61 }
 0x5e9   :  { %v3134_v32 = vpop.f32.mrf.mxu1 }
 0x5ea   :  { %v3135_v8 = vadd.f32 %v3134_v32, %v3116_v29  ;;  %v3159_v32 = vld [vmem:[#allocation11 + $0x1] sm:$0x1] }
 0x5f1   :  { %v3136_v57 = vpop.f32.mrf.mxu1 }
 0x5f2   :  { %v3137_v48 = vadd.f32 %v3136_v57, %v3118_v45 }
 0x5f9   :  { %v3148_v13 = vpop.f32.mrf.mxu0 }
 0x5fa   :  { %v3149_v49 = vadd.f32 %v3148_v13, %v3130_v6 }
 0x5fc   :  { %v3169_v16 = vmul.f32 %v3149_v49, %v3149_v49 }
 0x601   :  { %v3150_v41 = vpop.f32.mrf.mxu0 }
 0x602   :  { %v12349_v54 = vadd.f32 %v3150_v41, %v3132_v20  ;;  %v3158_v41 = vld [vmem:[#allocation10 + $0x1] sm:$0x1] }
 0x604   :  { %v3170_v9 = vmul.f32 %v12349_v54, %v12349_v54  ;;  %v3160_v63 = vadd.f32 %v12349_v54, %v3149_v49 }
 0x606   :  { %v3173_v18 = vadd.f32 %v3170_v9, %v3169_v16 }
 0x609   :  { %v3153_v59 = vpop.f32.mrf.mxu0 }
 0x60a   :  { %v3154_v42 = vadd.f32 %v3153_v59, %v3135_v8 }
 0x60c   :  { %v3161_v26 = vadd.f32 %v3160_v63, %v3154_v42  ;;  %v3171_v1 = vmul.f32 %v3154_v42, %v3154_v42 }
 0x60e   :  { %v3174_v58 = vadd.f32 %v3173_v18, %v3171_v1 }
 0x611   :  { %v3155_v31 = vpop.f32.mrf.mxu0 }
 0x612   :  { %v3156_v25 = vadd.f32 %v3155_v31, %v3137_v48  ;;  %v12386_v48 = vld [vmem:[%s12921_s4 + $0x20] sm:$0xff] }
 0x613   :  { %v11300_v31 = vld [vmem:[#allocation8 + $0x4b8] sm:$0xff] }
 0x614   :  { %v3162_v12 = vadd.f32 %v3161_v26, %v3156_v25  ;;  %v3172_v7 = vmul.f32 %v3156_v25, %v3156_v25  ;;  %4037 = vmatpush.bf16.msra.mxu0 %v11300_v31 }
 0x616   :  { %v3163_v52 = vrot.slane %v3162_v12, 4  ;;  %v3175_v53 = vadd.f32 %v3174_v58, %v3172_v7  ;;  %v12379_v58 = vld [vmem:[%s12921_s4 + $0x18] sm:$0xff]  ;;  %v11298_v7 = vld [vmem:[#allocation8 + $0x4a8] sm:$0xff] }
 0x618   :  { %v3164_v55 = vadd.f32 %v3163_v52, %v3162_v12  ;;  %v3176_v56 = vrot.slane %v3175_v53, 4  ;;  %v11299_v12 = vld [vmem:[#allocation8 + $0x4b0] sm:$0xff]  ;;  %v11297_v52 = vld [vmem:[#allocation8 + $0x4a0] sm:$0xff] }
 0x619   :  { %4038 = vmatpush.bf16.msra.mxu0 %v11299_v12  ;;  %v11324_v12 = vld [vmem:[#allocation8 + $0x578] sm:$0xff] }
 0x61a   :  { %v3165_v10 = vrot.slane %v3164_v55, 2  ;;  %v3177_v11 = vadd.f32 %v3176_v56, %v3175_v53  ;;  %v11296_v53 = vld [vmem:[#allocation8 + $0x498] sm:$0xff]  ;;  %v11295_v56 = vld [vmem:[#allocation8 + $0x490] sm:$0xff]  ;;  %4094 = vmatpush.bf16.msrb.mxu2 %v11324_v12  ;;  %v11325_v12 = vld [vmem:[#allocation8 + $0x580] sm:$0xff] }
 0x61c   :  { %v3166_v15 = vadd.f32 %v3165_v10, %v3164_v55  ;;  %v3178_v17 = vrot.slane %v3177_v11, 2  ;;  %v12400_v55 = vld [vmem:[%s12921_s4 + $0x30] sm:$0xff] }
 0x61d   :  { %4039 = vmatpush.bf16.msra.mxu0 %v11298_v7  ;;  %v11294_v10 = vld [vmem:[#allocation8 + $0x488] sm:$0xff]  ;;  %v12435_v7 = vld [vmem:[%s12921_s4 + $0x58] sm:$0xff] }
 0x61e   :  { %v3167_v62 = vrot.slane %v3166_v15, 1  ;;  %v3179_v21 = vadd.f32 %v3178_v17, %v3177_v11  ;;  %v11293_v11 = vld [vmem:[#allocation8 + $0x480] sm:$0xff]  ;;  %v12407_v17 = vld [vmem:[%s12921_s4 + $0x38] sm:$0xff] }
 0x620   :  { %v3168_v22 = vadd.f32 %v3167_v62, %v3166_v15  ;;  %v3180_v23 = vrot.slane %v3179_v21, 1  ;;  %v11308_v15 = vld [vmem:[#allocation8 + $0x4f8] sm:$0xff]  ;;  %v11307_v62 = vld [vmem:[#allocation8 + $0x4f0] sm:$0xff] }
 0x621   :  { %4040 = vmatpush.bf16.msra.mxu0 %v11297_v52  ;;  %4056 = vmatpush.bf16.msra.mxu3 %v11308_v15  ;;  %v11323_v52 = vld [vmem:[#allocation8 + $0x570] sm:$0xff] }
 0x622   :  { %v3181_v2 = vadd.f32 %v3180_v23, %v3179_v21  ;;  %v3182_v24 = vmul.f32 0.03125, %v3168_v22  ;;  %v11306_v21 = vld [vmem:[#allocation8 + $0x4e8] sm:$0xff]  ;;  %v11305_v22 = vld [vmem:[#allocation8 + $0x4e0] sm:$0xff]  ;;  %4095 = vmatpush.bf16.msrb.mxu2 %v11323_v52 }
 0x624   :  { %v3183_v19 = vmul.f32 0.03125, %v3181_v2  ;;  %v3184_v28 = vmul.f32 %v3182_v24, %v3182_v24  ;;  %v11304_v2 = vld [vmem:[#allocation8 + $0x4d8] sm:$0xff] }
 0x625   :  { %4041 = vmatpush.bf16.msra.mxu0 %v11296_v53  ;;  %4057 = vmatpush.bf16.msra.mxu3 %v11307_v62 }
 0x626   :  { %v3185_v30 = vsub.f32 %v3183_v19, %v3184_v28  ;;  %v11303_v19 = vld [vmem:[#allocation8 + $0x4d0] sm:$0xff] }
 0x628   :  { %v3186_v13 = vmax.f32 %v3185_v30, 0.0 }
 0x629   :  { %4042 = vmatpush.bf16.msra.mxu0 %v11295_v56  ;;  %4058 = vmatpush.bf16.msra.mxu3 %v11306_v21  ;;  %v11321_v21 = vld [vmem:[#allocation8 + $0x560] sm:$0xff] }
 0x62a   :  { %v3187_v14 = vadd.f32 1e-05, %v3186_v13  ;;  %v11302_v13 = vld [vmem:[#allocation8 + $0x4c8] sm:$0xff] }
 0x62c   :  { %11670 = vrsqrt.f32 %v3187_v14  ;;  %vm3194_vm13 = vweird.f32 %v3187_v14 }
 0x62d   :  { %4043 = vmatpush.bf16.msra.mxu0 %v11294_v10  ;;  %4059 = vmatpush.bf16.msra.mxu3 %v11305_v22  ;;  %v11322_v10 = vld [vmem:[#allocation8 + $0x568] sm:$0xff] }
 0x62e   :  { %4096 = vmatpush.bf16.msrb.mxu2 %v11322_v10  ;;  %v12463_v10 = vld [vmem:[%s12921_s4 + $0x78] sm:$0xff] }
 0x631   :  { %4044 = vmatpush.bf16.msra.mxu0 %v11293_v11  ;;  %4060 = vmatpush.bf16.msra.mxu3 %v11304_v2  ;;  %v11320_v2 = vld [vmem:[#allocation8 + $0x558] sm:$0xff] }
 0x632   :  { %v11671_v33 = vpop.eup %11670  ;;  %4097 = vmatpush.bf16.msrb.mxu2 %v11321_v21  ;;  %v11338_v21 = vld [vmem:[#allocation8 + $0x5e8] sm:$0xff] }
 0x633   :  { %v3189_v35 = vmul.f32 %v11671_v33, %v3187_v14  ;;  %vm3195_vm12 = vweird.f32 %v11671_v33 }
 0x634   :  { %vm3196_vm14 = vmor %vm3194_vm13, %vm3195_vm12 }
 0x635   :  { %v3190_v36 = vmul.f32 %v11671_v33, %v3189_v35  ;;  %4061 = vmatpush.bf16.msra.mxu3 %v11303_v19  ;;  %v12442_v19 = vld [vmem:[%s12921_s4 + $0x60] sm:$0xff] }
 0x636   :  { %4098 = vmatpush.bf16.msrb.mxu2 %v11320_v2 }
 0x637   :  { %v3191_v38 = vmul.f32 0.5, %v3190_v36  ;;  %v11301_v36 = vld [vmem:[#allocation8 + $0x4c0] sm:$0xff] }
 0x639   :  { %v3192_v61 = vsub.f32 1.5, %v3191_v38  ;;  %4062 = vmatpush.bf16.msra.mxu3 %v11302_v13 }
 0x63b   :  { %v3193_v43 = vmul.f32 %v11671_v33, %v3192_v61 }
 0x63d   :  { %v3197_v27 = vsel %vm3196_vm14, %v11671_v33, %v3193_v43  ;;  %4063 = vmatpush.bf16.msra.mxu3 %v11301_v36  ;;  %v12421_v43 = vld [vmem:[%s12921_s4 + $0x48] sm:$0xff] }
 0x63e   :  { %v3198_v20 = vmul.f32 %v3197_v27, %v3158_v41  ;;  %v11316_v41 = vld [vmem:[#allocation8 + $0x538] sm:$0xff]  ;;  %v11315_v27 = vld [vmem:[#allocation8 + $0x530] sm:$0xff] }
 0x63f   :  { %4075 = vmatpush.bf16.msrb.mxu0 %v11316_v41 }
 0x640   :  { %v3199_v46 = vmul.f32 %v3198_v20, %v3182_v24  ;;  %v3201_v40 = vperm.slane %v3198_v20, 0  ;;  %v12414_v24 = vld [vmem:[%s12921_s4 + $0x40] sm:$0xff] }
 0x642   :  { %v3200_v6 = vsub.f32 %v3159_v32, %v3199_v46  ;;  %v3204_v51 = vmul.f32 %v3201_v40, %v3154_v42  ;;  %v3202_v29 = vmul.f32 %v3201_v40, %v3149_v49  ;;  %v3205_v50 = vmul.f32 %v3201_v40, %v3156_v25  ;;  %v12358_v49 = vld [vmem:[%s12921_s4] sm:$0xff]  ;;  %v12372_v42 = vld [vmem:[%s12921_s4 + $0x10] sm:$0xff]  ;;  %v12393_v25 = vld [vmem:[%s12921_s4 + $0x28] sm:$0xff] }
 0x643   :  { %v3203_v9 = vmul.f32 %v3201_v40, %v12349_v54  ;;  %v12365_v54 = vld [vmem:[%s12921_s4 + $0x8] sm:$0xff]  ;;  %4076 = vmatpush.bf16.msrb.mxu0 %v11315_v27  ;;  %v11332_v27 = vld [vmem:[#allocation8 + $0x5b8] sm:$0xff] }
 0x644   :  { %v3206_v8 = vperm.slane %v3200_v6, 0  ;;  %v11314_v46 = vld [vmem:[#allocation8 + $0x528] sm:$0xff] }
 0x646   :  { %v3210_v59 = vadd.f32 %v3206_v8, %v3205_v50  ;;  %v3209_v3 = vadd.f32 %v3206_v8, %v3204_v51  ;;  %v3207_v16 = vadd.f32 %v3206_v8, %v3202_v29  ;;  %v3208_v63 = vadd.f32 %v3206_v8, %v3203_v9  ;;  %v11313_v29 = vld [vmem:[#allocation8 + $0x520] sm:$0xff]  ;;  %v11312_v9 = vld [vmem:[#allocation8 + $0x518] sm:$0xff] }
 0x647   :  { %4077 = vmatpush.bf16.msrb.mxu0 %v11314_v46 }
 0x648   :  { %v3214_v60 = vmax.f32 %v3210_v59, 0.0  ;;  %v3213_v18 = vmax.f32 %v3209_v3, 0.0  ;;  %v3211_v26 = vmax.f32 %v3207_v16, 0.0  ;;  %v3212_v1 = vmax.f32 %v3208_v63, 0.0  ;;  %v12428_v59 = vld [vmem:[%s12921_s4 + $0x50] sm:$0xff] }
 0x649   :  { %v11311_v3 = vld [vmem:[#allocation8 + $0x510] sm:$0xff] }
 0x64a   :  { %v3216_v57 = vpack.c.bf16 %v3214_v60, %v3213_v18  ;;  %v3215_v45 = vpack.c.bf16 %v3212_v1, %v3211_v26  ;;  %v11310_v60 = vld [vmem:[#allocation8 + $0x508] sm:$0xff] }
 0x64b   :  { %4078 = vmatpush.bf16.msrb.mxu0 %v11313_v29 }
 0x64c   :  { %3223 = vmatpush.bf16.msrb.mxu1 %v3216_v57  ;;  %v11309_v57 = vld [vmem:[#allocation8 + $0x500] sm:$0xff] }
 0x64f   :  { %4079 = vmatpush.bf16.msrb.mxu0 %v11312_v9 }
 0x650   :  { %3224 = vmatpush.bf16.msrb.mxu1 %v3215_v45 }
 0x653   :  { %9519 = vmatmul.msk.bf16.vlgmr.msrb.gmra.mxu1 %vm1059_vm8, %v12358_v49  ;;  %4080 = vmatpush.bf16.msrb.mxu0 %v11311_v3 }
 0x657   :  { %4081 = vmatpush.bf16.msrb.mxu0 %v11310_v60  ;;  %v11327_v60 = vld [vmem:[#allocation8 + $0x590] sm:$0xff] }
 0x65b   :  { %4082 = vmatpush.bf16.msrb.mxu0 %v11309_v57 }
 0x663   :  { %9520 = vmatmul.msk.bf16.gmra.mxu1 %vm1059_vm8, %v12365_v54 }
 0x673   :  { %9521 = vmatmul.msk.bf16.gmra.mxu1 %vm1059_vm8, %v12372_v42 }
 0x683   :  { %9522 = vmatmul.msk.bf16.gmra.mxu1 %vm1059_vm8, %v12379_v58 }
 0x693   :  { %9523 = vmatmul.msk.bf16.gmra.mxu1 %vm1059_vm8, %v12386_v48 }
 0x6a3   :  { %9524 = vmatmul.msk.bf16.gmra.mxu1 %vm1059_vm8, %v12393_v25 }
 0x6b3   :  { %9525 = vmatmul.msk.bf16.gmra.mxu1 %vm1059_vm8, %v12400_v55 }
 0x6c3   :  { %9526 = vmatmul.msk.bf16.gmra.mxu1 %vm1059_vm8, %v12407_v17 }
 0x6d0   :  { %v3226_v23 = vpop.f32.mrf.mxu1 }
 0x6d1   :  { %v3316_v28 = vpack.c.bf16 %v3226_v23, %v3226_v23 }
 0x6d3   :  { %9527 = vmatmul.msk.bf16.gmra.mxu1 %vm1059_vm8, %v12414_v24  ;;  %v3356_v33 = vunpack.c.l.b16 %v3316_v28  ;;  %v11319_v28 = vld [vmem:[#allocation8 + $0x550] sm:$0xff] }
 0x6d4   :  { %4099 = vmatpush.bf16.msrb.mxu2 %v11319_v28  ;;  %v11337_v28 = vld [vmem:[#allocation8 + $0x5e0] sm:$0xff] }
 0x6d8   :  { %v3228_v30 = vpop.f32.mrf.mxu1 }
 0x6d9   :  { %v3317_v14 = vpack.c.bf16 %v3228_v30, %v3228_v30 }
 0x6db   :  { %v3357_v35 = vunpack.c.l.b16 %v3317_v14  ;;  %v11318_v14 = vld [vmem:[#allocation8 + $0x548] sm:$0xff] }
 0x6dc   :  { %4100 = vmatpush.bf16.msrb.mxu2 %v11318_v14  ;;  %v11336_v14 = vld [vmem:[#allocation8 + $0x5d8] sm:$0xff] }
 0x6dd   :  { %v3360_v38 = vpack.c.b16 %v3357_v35, %v3356_v33 }
 0x6df   :  { %4045 = vmatmul.bf16.vlgmr.msra.gmra.mxu0 %v3360_v38  ;;  %v11317_v38 = vld [vmem:[#allocation8 + $0x540] sm:$0xff] }
 0x6e0   :  { %v3231_v61 = vpop.f32.mrf.mxu1  ;;  %4101 = vmatpush.bf16.msrb.mxu2 %v11317_v38  ;;  %4113 = vmatpush.bf16.msra.mxu0 %v11332_v27 }
 0x6e1   :  { %v3318_v20 = vpack.c.bf16 %v3231_v61, %v3231_v61 }
 0x6e3   :  { %9528 = vmatmul.msk.bf16.gmra.mxu1 %vm1059_vm8, %v12421_v43  ;;  %v3358_v6 = vunpack.c.l.b16 %v3318_v20  ;;  %v12449_v20 = vld [vmem:[%s12921_s4 + $0x68] sm:$0xff] }
 0x6e8   :  { %v3233_v32 = vpop.f32.mrf.mxu1 }
 0x6e9   :  { %v3319_v40 = vpack.c.bf16 %v3233_v32, %v3233_v32  ;;  %v11331_v32 = vld [vmem:[#allocation8 + $0x5b0] sm:$0xff] }
 0x6ea   :  { %4114 = vmatpush.bf16.msra.mxu0 %v11331_v32 }
 0x6eb   :  { %v3359_v51 = vunpack.c.l.b16 %v3319_v40 }
 0x6ed   :  { %v3361_v50 = vpack.c.b16 %v3359_v51, %v3358_v6  ;;  %v11330_v6 = vld [vmem:[#allocation8 + $0x5a8] sm:$0xff] }
 0x6ee   :  { %4115 = vmatpush.bf16.msra.mxu0 %v11330_v6 }
 0x6ef   :  { %4050 = vmatmul.bf16.gmra.mxu0 %v3361_v50 }
 0x6f0   :  { %v3236_v8 = vpop.f32.mrf.mxu1 }
 0x6f1   :  { %v3320_v16 = vpack.c.bf16 %v3236_v8, %v3236_v8  ;;  %v11329_v8 = vld [vmem:[#allocation8 + $0x5a0] sm:$0xff] }
 0x6f2   :  { %4116 = vmatpush.bf16.msra.mxu0 %v11329_v8 }
 0x6f3   :  { %9529 = vmatmul.msk.bf16.gmra.mxu1 %vm1059_vm8, %v12428_v59  ;;  %v3368_v26 = vunpack.c.l.b16 %v3320_v16  ;;  %v11328_v16 = vld [vmem:[#allocation8 + $0x598] sm:$0xff] }
 0x6f6   :  { %4117 = vmatpush.bf16.msra.mxu0 %v11328_v16 }
 0x6f8   :  { %v3238_v63 = vpop.f32.mrf.mxu1 }
 0x6f9   :  { %v3321_v18 = vpack.c.bf16 %v3238_v63, %v3238_v63  ;;  %v12456_v63 = vld [vmem:[%s12921_s4 + $0x70] sm:$0xff] }
 0x6fa   :  { %4118 = vmatpush.bf16.msra.mxu0 %v11327_v60 }
 0x6fb   :  { %v3369_v1 = vunpack.c.l.b16 %v3321_v18 }
 0x6fd   :  { %v3372_v45 = vpack.c.b16 %v3369_v1, %v3368_v26  ;;  %v11326_v1 = vld [vmem:[#allocation8 + $0x588] sm:$0xff] }
 0x6fe   :  { %4119 = vmatpush.bf16.msra.mxu0 %v11326_v1 }
 0x6ff   :  { %4064 = vmatmul.bf16.vlgmr.msra.gmra.mxu3 %v3372_v45 }
 0x700   :  { %v3241_v31 = vpop.f32.mrf.mxu1 }
 0x701   :  { %v3322_v53 = vpack.c.bf16 %v3241_v31, %v3241_v31 }
 0x702   :  { %4120 = vmatpush.bf16.msra.mxu0 %v11325_v12 }
 0x703   :  { %9530 = vmatmul.msk.bf16.gmra.mxu1 %vm1059_vm8, %v12435_v7  ;;  %v3370_v15 = vunpack.c.l.b16 %v3322_v53 }
 0x708   :  { %v3243_v56 = vpop.f32.mrf.mxu1 }
 0x709   :  { %v3323_v11 = vpack.c.bf16 %v3243_v56, %v3243_v56  ;;  %v11340_v56 = vld [vmem:[#allocation8 + $0x5f8] sm:$0xff] }
 0x70a   :  { %4132 = vmatpush.bf16.msra.mxu2 %v11340_v56  ;;  %v11342_v56 = vld [vmem:[#allocation8 + $0x608] sm:$0xff] }
 0x70b   :  { %v3371_v62 = vunpack.c.l.b16 %v3323_v11  ;;  %v11339_v11 = vld [vmem:[#allocation8 + $0x5f0] sm:$0xff] }
 0x70d   :  { %v3373_v22 = vpack.c.b16 %v3371_v62, %v3370_v15 }
 0x70e   :  { %4133 = vmatpush.bf16.msra.mxu2 %v11339_v11 }
 0x70f   :  { %4069 = vmatmul.bf16.gmra.mxu3 %v3373_v22 }
 0x710   :  { %v3246_v23 = vpop.f32.mrf.mxu1 }
 0x711   :  { %v3324_v30 = vpack.c.bf16 %v3246_v23, %v3246_v23 }
 0x712   :  { %4134 = vmatpush.bf16.msra.mxu2 %v11338_v21  ;;  %v11341_v21 = vld [vmem:[#allocation8 + $0x600] sm:$0xff] }
 0x713   :  { %9531 = vmatmul.msk.bf16.gmra.mxu1 %vm1059_vm8, %v12442_v19  ;;  %v3380_v35 = vunpack.c.l.b16 %v3324_v30 }
 0x716   :  { %4135 = vmatpush.bf16.msra.mxu2 %v11337_v28  ;;  %v11356_v28 = vld [vmem:[#allocation8 + $0x678] sm:$0xff] }
 0x718   :  { %v3248_v13 = vpop.f32.mrf.mxu1 }
 0x719   :  { %v3325_v33 = vpack.c.bf16 %v3248_v13, %v3248_v13 }
 0x71a   :  { %4136 = vmatpush.bf16.msra.mxu2 %v11336_v14 }
 0x71b   :  { %v3381_v36 = vunpack.c.l.b16 %v3325_v33  ;;  %v12470_v33 = vld [vmem:[%s12921_s4 + $0x80] sm:$0xff] }
 0x71d   :  { %v3384_v61 = vpack.c.b16 %v3381_v36, %v3380_v35  ;;  %v11335_v35 = vld [vmem:[#allocation8 + $0x5d0] sm:$0xff] }
 0x71e   :  { %4137 = vmatpush.bf16.msra.mxu2 %v11335_v35  ;;  %v11354_v35 = vld [vmem:[#allocation8 + $0x668] sm:$0xff] }
 0x71f   :  { %4083 = vmatmul.bf16.vlgmr.msrb.gmra.mxu0 %v3384_v61  ;;  %v11334_v61 = vld [vmem:[#allocation8 + $0x5c8] sm:$0xff] }
 0x720   :  { %v3251_v41 = vpop.f32.mrf.mxu1 }
 0x721   :  { %v3326_v46 = vpack.c.bf16 %v3251_v41, %v3251_v41 }
 0x722   :  { %4138 = vmatpush.bf16.msra.mxu2 %v11334_v61 }
 0x723   :  { %9532 = vmatmul.msk.bf16.gmra.mxu1 %vm1059_vm8, %v12449_v20  ;;  %v3382_v29 = vunpack.c.l.b16 %v3326_v46  ;;  %v11333_v46 = vld [vmem:[#allocation8 + $0x5c0] sm:$0xff] }
 0x726   :  { %4139 = vmatpush.bf16.msra.mxu2 %v11333_v46 }
 0x728   :  { %v3253_v40 = vpop.f32.mrf.mxu1 }
 0x729   :  { %v3327_v51 = vpack.c.bf16 %v3253_v40, %v3253_v40 }
 0x72b   :  { %v3383_v50 = vunpack.c.l.b16 %v3327_v51  ;;  %v11348_v51 = vld [vmem:[#allocation8 + $0x638] sm:$0xff] }
 0x72c   :  { %4151 = vmatpush.bf16.msrb.mxu0 %v11348_v51  ;;  %v11351_v51 = vld [vmem:[#allocation8 + $0x650] sm:$0xff] }
 0x72d   :  { %v3385_v9 = vpack.c.b16 %v3383_v50, %v3382_v29  ;;  %v12477_v29 = vld [vmem:[%s12921_s4 + $0x88] sm:$0xff]  ;;  %v11347_v50 = vld [vmem:[#allocation8 + $0x630] sm:$0xff] }
 0x72f   :  { %4088 = vmatmul.bf16.gmra.mxu0 %v3385_v9 }
 0x730   :  { %v3256_v3 = vpop.f32.mrf.mxu1  ;;  %4152 = vmatpush.bf16.msrb.mxu0 %v11347_v50 }
 0x731   :  { %v3328_v18 = vpack.c.bf16 %v3256_v3, %v3256_v3  ;;  %v11346_v3 = vld [vmem:[#allocation8 + $0x628] sm:$0xff] }
 0x733   :  { %9533 = vmatmul.msk.bf16.gmra.mxu1 %vm1059_vm8, %v12456_v63  ;;  %v3392_v45 = vunpack.c.l.b16 %v3328_v18 }
 0x734   :  { %4153 = vmatpush.bf16.msrb.mxu0 %v11346_v3  ;;  %v11350_v3 = vld [vmem:[#allocation8 + $0x648] sm:$0xff] }
 0x738   :  { %v3258_v26 = vpop.f32.mrf.mxu1 }
 0x739   :  { %v3329_v57 = vpack.c.bf16 %v3258_v26, %v3258_v26  ;;  %v11345_v26 = vld [vmem:[#allocation8 + $0x620] sm:$0xff] }
 0x73a   :  { %4154 = vmatpush.bf16.msrb.mxu0 %v11345_v26 }
 0x73b   :  { %v3393_v31 = vunpack.c.l.b16 %v3329_v57 }
 0x73d   :  { %v3396_v52 = vpack.c.b16 %v3393_v31, %v3392_v45  ;;  %v11344_v45 = vld [vmem:[#allocation8 + $0x618] sm:$0xff]  ;;  %v11343_v31 = vld [vmem:[#allocation8 + $0x610] sm:$0xff] }
 0x73e   :  { %4155 = vmatpush.bf16.msrb.mxu0 %v11344_v45 }
 0x73f   :  { %4102 = vmatmul.bf16.vlgmr.msrb.gmra.mxu2 %v3396_v52 }
 0x740   :  { %v3261_v53 = vpop.f32.mrf.mxu1  ;;  %4170 = vmatpush.bf16.msrb.mxu2 %v11356_v28 }
 0x741   :  { %v3330_v15 = vpack.c.bf16 %v3261_v53, %v3261_v53 }
 0x742   :  { %4156 = vmatpush.bf16.msrb.mxu0 %v11343_v31 }
 0x743   :  { %9534 = vmatmul.msk.bf16.gmra.mxu1 %vm1059_vm8, %v12463_v10  ;;  %v3394_v23 = vunpack.c.l.b16 %v3330_v15 }
 0x746   :  { %4157 = vmatpush.bf16.msrb.mxu0 %v11342_v56  ;;  %v11363_v56 = vld [vmem:[#allocation8 + $0x6b0] sm:$0xff] }
 0x748   :  { %v3263_v62 = vpop.f32.mrf.mxu1 }
 0x749   :  { %v3331_v22 = vpack.c.bf16 %v3263_v62, %v3263_v62 }
 0x74a   :  { %4158 = vmatpush.bf16.msrb.mxu0 %v11341_v21 }
 0x74b   :  { %v3395_v2 = vunpack.c.l.b16 %v3331_v22 }
 0x74d   :  { %v3397_v30 = vpack.c.b16 %v3395_v2, %v3394_v23 }
 0x74f   :  { %4107 = vmatmul.bf16.gmra.mxu2 %v3397_v30  ;;  %v11355_v30 = vld [vmem:[#allocation8 + $0x670] sm:$0xff] }
 0x750   :  { %v3266_v13 = vpop.f32.mrf.mxu1  ;;  %4171 = vmatpush.bf16.msrb.mxu2 %v11355_v30 }
 0x751   :  { %v3332_v36 = vpack.c.bf16 %v3266_v13, %v3266_v13 }
 0x753   :  { %9535 = vmatmul.msk.bf16.gmra.mxu1 %vm1059_vm8, %v12470_v33  ;;  %v3404_v27 = vunpack.c.l.b16 %v3332_v36 }
 0x754   :  { %4172 = vmatpush.bf16.msrb.mxu2 %v11354_v35 }
 0x758   :  { %v3268_v38 = vpop.f32.mrf.mxu1 }
 0x759   :  { %v3333_v41 = vpack.c.bf16 %v3268_v38, %v3268_v38 }
 0x75b   :  { %v3405_v32 = vunpack.c.l.b16 %v3333_v41 }
 0x75c   :  { %v4046_v12 = vpop.f32.mrf.mxu0 }
 0x75d   :  { %v3408_v40 = vpack.c.b16 %v3405_v32, %v3404_v27  ;;  %v11353_v27 = vld [vmem:[#allocation8 + $0x660] sm:$0xff] }
 0x75e   :  { %4173 = vmatpush.bf16.msrb.mxu2 %v11353_v27 }
 0x75f   :  { %4121 = vmatmul.bf16.vlgmr.msra.gmra.mxu0 %v3408_v40  ;;  %v11352_v40 = vld [vmem:[#allocation8 + $0x658] sm:$0xff] }
 0x760   :  { %v3271_v6 = vpop.f32.mrf.mxu1 }
 0x761   :  { %v3334_v8 = vpack.c.bf16 %v3271_v6, %v3271_v6 }
 0x762   :  { %4174 = vmatpush.bf16.msrb.mxu2 %v11352_v40 }
 0x763   :  { %9536 = vmatmul.msk.bf16.gmra.mxu1 %vm1059_vm8, %v12477_v29  ;;  %v3406_v60 = vunpack.c.l.b16 %v3334_v8 }
 0x764   :  { %v12481_v23 = vpop.f32.mrf.mxu0 }
 0x766   :  { %4175 = vmatpush.bf16.msrb.mxu2 %v11351_v51 }
 0x768   :  { %v3273_v9 = vpop.f32.mrf.mxu1 }
 0x769   :  { %v3335_v16 = vpack.c.bf16 %v3273_v9, %v3273_v9 }
 0x76a   :  { %4176 = vmatpush.bf16.msrb.mxu2 %v11350_v3 }
 0x76b   :  { %v3407_v18 = vunpack.c.l.b16 %v3335_v16 }
 0x76c   :  { %v12483_v38 = vpop.f32.mrf.mxu0 }
 0x76d   :  { %v3409_v1 = vpack.c.b16 %v3407_v18, %v3406_v60 }
 0x76f   :  { %4126 = vmatmul.bf16.gmra.mxu0 %v3409_v1 }
 0x770   :  { %v3276_v57 = vpop.f32.mrf.mxu1 }
 0x771   :  { %v3336_v52 = vpack.c.bf16 %v3276_v57, %v3276_v57  ;;  %v11349_v57 = vld [vmem:[#allocation8 + $0x640] sm:$0xff] }
 0x772   :  { %4177 = vmatpush.bf16.msrb.mxu2 %v11349_v57 }
 0x773   :  { %v3416_v15 = vunpack.c.l.b16 %v3336_v52 }
 0x774   :  { %v12485_v6 = vpop.f32.mrf.mxu0 }
 0x778   :  { %v3278_v53 = vpop.f32.mrf.mxu1 }
 0x779   :  { %v3337_v11 = vpack.c.bf16 %v3278_v53, %v3278_v53  ;;  %v11364_v53 = vld [vmem:[#allocation8 + $0x6b8] sm:$0xff] }
 0x77a   :  { %4189 = vmatpush.bf16.msrb.mxu3 %v11364_v53 }
 0x77b   :  { %v3417_v62 = vunpack.c.l.b16 %v3337_v11 }
 0x77d   :  { %v3420_v22 = vpack.c.b16 %v3417_v62, %v3416_v15  ;;  %v11362_v62 = vld [vmem:[#allocation8 + $0x6a8] sm:$0xff] }
 0x77e   :  { %4190 = vmatpush.bf16.msrb.mxu3 %v11363_v56 }
 0x77f   :  { %4140 = vmatmul.bf16.vlgmr.msra.gmra.mxu2 %v3420_v22 }
 0x780   :  { %v3281_v2 = vpop.f32.mrf.mxu1 }
 0x781   :  { %v3338_v13 = vpack.c.bf16 %v3281_v2, %v3281_v2  ;;  %v11361_v2 = vld [vmem:[#allocation8 + $0x6a0] sm:$0xff] }
 0x782   :  { %v4065_v8 = vpop.f32.mrf.mxu3  ;;  %4191 = vmatpush.bf16.msrb.mxu3 %v11362_v62 }
 0x783   :  { %v3418_v61 = vunpack.c.l.b16 %v3338_v13  ;;  %v4066_v60 = vadd.f32 %v4065_v8, %v4046_v12  ;;  %v11360_v13 = vld [vmem:[#allocation8 + $0x698] sm:$0xff] }
 0x786   :  { %4192 = vmatpush.bf16.msrb.mxu3 %v11361_v2 }
 0x788   :  { %v3283_v14 = vpop.f32.mrf.mxu1 }
 0x789   :  { %v3339_v36 = vpack.c.bf16 %v3283_v14, %v3283_v14  ;;  %v11359_v14 = vld [vmem:[#allocation8 + $0x690] sm:$0xff] }
 0x78a   :  { %4193 = vmatpush.bf16.msrb.mxu3 %v11360_v13 }
 0x78b   :  { %v3419_v41 = vunpack.c.l.b16 %v3339_v36 }
 0x78d   :  { %v3421_v32 = vpack.c.b16 %v3419_v41, %v3418_v61  ;;  %v11358_v61 = vld [vmem:[#allocation8 + $0x688] sm:$0xff] }
 0x78e   :  { %4194 = vmatpush.bf16.msrb.mxu3 %v11359_v14 }
 0x78f   :  { %4145 = vmatmul.bf16.gmra.mxu2 %v3421_v32 }
 0x790   :  { %v3286_v46 = vpop.f32.mrf.mxu1 }
 0x791   :  { %v3340_v50 = vpack.c.bf16 %v3286_v46, %v3286_v46  ;;  %v11357_v46 = vld [vmem:[#allocation8 + $0x680] sm:$0xff] }
 0x792   :  { %4195 = vmatpush.bf16.msrb.mxu3 %v11358_v61 }
 0x793   :  { %v3428_v18 = vunpack.c.l.b16 %v3340_v50 }
 0x796   :  { %4196 = vmatpush.bf16.msrb.mxu3 %v11357_v46 }
 0x798   :  { %v3288_v9 = vpop.f32.mrf.mxu1 }
 0x799   :  { %v3341_v16 = vpack.c.bf16 %v3288_v9, %v3288_v9 }
 0x79b   :  { %v3429_v26 = vunpack.c.l.b16 %v3341_v16 }
 0x79c   :  { %v4084_v1 = vpop.f32.mrf.mxu0 }
 0x79d   :  { %v3432_v45 = vpack.c.b16 %v3429_v26, %v3428_v18  ;;  %v4085_v31 = vadd.f32 %v4084_v1, %v4066_v60 }
 0x79f   :  { %4159 = vmatmul.bf16.vlgmr.msrb.gmra.mxu0 %v3432_v45 }
 0x7a0   :  { %v3291_v52 = vpop.f32.mrf.mxu1 }
 0x7a1   :  { %v3342_v11 = vpack.c.bf16 %v3291_v52, %v3291_v52 }
 0x7a3   :  { %v3430_v22 = vunpack.c.l.b16 %v3342_v11 }
 0x7a8   :  { %v3293_v15 = vpop.f32.mrf.mxu1 }
 0x7a9   :  { %v3343_v21 = vpack.c.bf16 %v3293_v15, %v3293_v15 }
 0x7ab   :  { %v3431_v12 = vunpack.c.l.b16 %v3343_v21 }
 0x7ad   :  { %v3433_v28 = vpack.c.b16 %v3431_v12, %v3430_v22 }
 0x7af   :  { %4164 = vmatmul.bf16.gmra.mxu0 %v3433_v28  ;;  %v4086_v28 = vpop.f32.mrf.mxu0 }
 0x7b0   :  { %v3296_v30 = vpop.f32.mrf.mxu1 }
 0x7b1   :  { %v3344_v35 = vpack.c.bf16 %v3296_v30, %v3296_v30 }
 0x7b3   :  { %v3440_v27 = vunpack.c.l.b16 %v3344_v35 }
 0x7b7   :  { %v4089_v13 = vpop.f32.mrf.mxu0 }
 0x7b8   :  { %v3298_v36 = vpop.f32.mrf.mxu1 }
 0x7b9   :  { %v3345_v41 = vpack.c.bf16 %v3298_v36, %v3298_v36 }
 0x7bb   :  { %v3441_v32 = vunpack.c.l.b16 %v3345_v41 }
 0x7bd   :  { %v3444_v40 = vpack.c.b16 %v3441_v32, %v3440_v27 }
 0x7bf   :  { %4178 = vmatmul.bf16.vlgmr.msrb.gmra.mxu2 %v3444_v40  ;;  %v4091_v35 = vpop.f32.mrf.mxu0  ;;  %v4067_v40 = vpop.f32.mrf.mxu3 }
 0x7c0   :  { %v3301_v51 = vpop.f32.mrf.mxu1 }
 0x7c1   :  { %v3346_v9 = vpack.c.bf16 %v3301_v51, %v3301_v51 }
 0x7c2   :  { %v4103_v50 = vpop.f32.mrf.mxu2 }
 0x7c3   :  { %v4104_v8 = vadd.f32 %v4103_v50, %v4085_v31  ;;  %v3442_v60 = vunpack.c.l.b16 %v3346_v9 }
 0x7c7   :  { %v4070_v9 = vpop.f32.mrf.mxu3 }
 0x7c8   :  { %v3303_v3 = vpop.f32.mrf.mxu1 }
 0x7c9   :  { %v3347_v16 = vpack.c.bf16 %v3303_v3, %v3303_v3 }
 0x7ca   :  { %v4105_v30 = vpop.f32.mrf.mxu2 }
 0x7cb   :  { %v3443_v18 = vunpack.c.l.b16 %v3347_v16 }
 0x7cd   :  { %v3445_v26 = vpack.c.b16 %v3443_v18, %v3442_v60 }
 0x7cf   :  { %4183 = vmatmul.bf16.gmra.mxu2 %v3445_v26  ;;  %v4072_v18 = vpop.f32.mrf.mxu3  ;;  %v4068_v26 = vadd.f32 %v4067_v40, %v12481_v23 }
 0x7d0   :  { %v3306_v1 = vpop.f32.mrf.mxu1 }
 0x7d1   :  { %v3348_v57 = vpack.c.bf16 %v3306_v1, %v3306_v1 }
 0x7d2   :  { %v4108_v14 = vpop.f32.mrf.mxu2 }
 0x7d3   :  { %v3452_v53 = vunpack.c.l.b16 %v3348_v57  ;;  %v4087_v57 = vadd.f32 %v4086_v28, %v4068_v26  ;;  %v4073_v28 = vadd.f32 %v4072_v18, %v12485_v6 }
 0x7d8   :  { %v3308_v45 = vpop.f32.mrf.mxu1 }
 0x7d9   :  { %v3349_v52 = vpack.c.bf16 %v3308_v45, %v3308_v45 }
 0x7da   :  { %v4110_v36 = vpop.f32.mrf.mxu2 }
 0x7db   :  { %v3453_v56 = vunpack.c.l.b16 %v3349_v52 }
 0x7dc   :  { %v4122_v61 = vpop.f32.mrf.mxu0 }
 0x7dd   :  { %v3456_v11 = vpack.c.b16 %v3453_v56, %v3452_v53  ;;  %v4106_v53 = vadd.f32 %v4105_v30, %v4087_v57  ;;  %v4071_v56 = vadd.f32 %v4070_v9, %v12483_v38  ;;  %v4092_v38 = vadd.f32 %v4091_v35, %v4073_v28 }
 0x7df   :  { %4197 = vmatmul.bf16.vlgmr.msrb.gmra.mxu3 %v3456_v11 }
 0x7e0   :  { %v3311_v15 = vpop.f32.mrf.mxu1 }
 0x7e1   :  { %v3350_v62 = vpack.c.bf16 %v3311_v15, %v3311_v15  ;;  %v4090_v15 = vadd.f32 %v4089_v13, %v4071_v56 }
 0x7e3   :  { %v3454_v31 = vunpack.c.l.b16 %v3350_v62  ;;  %v4123_v62 = vadd.f32 %v4122_v61, %v4104_v8  ;;  %v4111_v8 = vadd.f32 %v4110_v36, %v4092_v38 }
 0x7e4   :  { %v4124_v27 = vpop.f32.mrf.mxu0 }
 0x7e5   :  { %v4125_v11 = vadd.f32 %v4124_v27, %v4106_v53 }
 0x7e8   :  { %v3313_v21 = vpop.f32.mrf.mxu1 }
 0x7e9   :  { %v3351_v22 = vpack.c.bf16 %v3313_v21, %v3313_v21 }
 0x7eb   :  { %v3455_v12 = vunpack.c.l.b16 %v3351_v22  ;;  %v4109_v22 = vadd.f32 %v4108_v14, %v4090_v15 }
 0x7ec   :  { %v4127_v46 = vpop.f32.mrf.mxu0 }
 0x7ed   :  { %v3457_v2 = vpack.c.b16 %v3455_v12, %v3454_v31  ;;  %v4128_v44 = vadd.f32 %v4127_v46, %v4109_v22 }
 0x7ef   :  { %4202 = vmatmul.bf16.gmra.mxu3 %v3457_v2 }
 0x7f4   :  { %v4129_v50 = vpop.f32.mrf.mxu0 }
 0x802   :  { %v4141_v41 = vpop.f32.mrf.mxu2 }
 0x803   :  { %v4142_v31 = vadd.f32 %v4141_v41, %v4123_v62 }
 0x80a   :  { %v4143_v32 = vpop.f32.mrf.mxu2 }
 0x80b   :  { %v4144_v21 = vadd.f32 %v4143_v32, %v4125_v11  ;;  %v4130_v32 = vadd.f32 %v4129_v50, %v4111_v8 }
 0x812   :  { %v4146_v51 = vpop.f32.mrf.mxu2 }
 0x813   :  { %v4147_v40 = vadd.f32 %v4146_v51, %v4128_v44 }
 0x81a   :  { %v4148_v3 = vpop.f32.mrf.mxu2 }
 0x81b   :  { %v4149_v6 = vadd.f32 %v4148_v3, %v4130_v32 }
 0x81c   :  { %v4160_v16 = vpop.f32.mrf.mxu0 }
 0x81d   :  { %v4161_v34 = vadd.f32 %v4160_v16, %v4142_v31 }
 0x824   :  { %v4162_v1 = vpop.f32.mrf.mxu0 }
 0x825   :  { %v4163_v12 = vadd.f32 %v4162_v1, %v4144_v21 }
 0x82c   :  { %v4165_v2 = vpop.f32.mrf.mxu0 }
 0x82d   :  { %v4166_v27 = vadd.f32 %v4165_v2, %v4147_v40 }
 0x834   :  { %v4167_v1 = vpop.f32.mrf.mxu0 }
 0x835   :  { %v4168_v35 = vadd.f32 %v4167_v1, %v4149_v6 }
 0x842   :  { %v4179_v60 = vpop.f32.mrf.mxu2 }
 0x843   :  { %v4180_v26 = vadd.f32 %v4179_v60, %v4161_v34 }
 0x84a   :  { %v4181_v45 = vpop.f32.mrf.mxu2 }
 0x84b   :  { %v4182_v39 = vadd.f32 %v4181_v45, %v4163_v12 }
 0x852   :  { %v4184_v23 = vpop.f32.mrf.mxu2 }
 0x853   :  { %v4185_v61 = vadd.f32 %v4184_v23, %v4166_v27 }
 0x862   :  { %v4198_v52 = vpop.f32.mrf.mxu3 }
 0x863   :  { %v4199_v13 = vadd.f32 %v4198_v52, %v4180_v26 }
 0x865   :  { %v4219_v46 = vmul.f32 %v4199_v13, %v4199_v13 }
 0x86a   :  { %v4200_v37 = vpop.f32.mrf.mxu3 }
 0x86b   :  { %v12490_v30 = vadd.f32 %v4200_v37, %v4182_v39  ;;  %v4186_v37 = vpop.f32.mrf.mxu2 }
 0x86c   :  { %v4187_v60 = vadd.f32 %v4186_v37, %v4168_v35 }
 0x86d   :  { %v4220_v14 = vmul.f32 %v12490_v30, %v12490_v30  ;;  %v4210_v9 = vadd.f32 %v12490_v30, %v4199_v13 }
 0x86f   :  { %v4223_v44 = vadd.f32 %v4220_v14, %v4219_v46  ;;  %v4208_v46 = vld [vmem:[#allocation10 + $0x2] sm:$0x1] }
 0x872   :  { %v4203_v41 = vpop.f32.mrf.mxu3 }
 0x873   :  { %v4204_v16 = vadd.f32 %v4203_v41, %v4185_v61 }
 0x875   :  { %v4211_v34 = vadd.f32 %v4210_v9, %v4204_v16  ;;  %v4221_v39 = vmul.f32 %v4204_v16, %v4204_v16 }
 0x877   :  { %v4224_v51 = vadd.f32 %v4223_v44, %v4221_v39  ;;  %v4209_v44 = vld [vmem:[#allocation11 + $0x2] sm:$0x1] }
 0x87a   :  { %v4205_v36 = vpop.f32.mrf.mxu3 }
 0x87b   :  { %v4206_v18 = vadd.f32 %v4205_v36, %v4187_v60 }
 0x87d   :  { %v4212_v57 = vadd.f32 %v4211_v34, %v4206_v18  ;;  %v4222_v45 = vmul.f32 %v4206_v18, %v4206_v18 }
 0x87f   :  { %v4213_v52 = vrot.slane %v4212_v57, 4  ;;  %v4225_v53 = vadd.f32 %v4224_v51, %v4222_v45 }
 0x881   :  { %v4214_v50 = vadd.f32 %v4213_v52, %v4212_v57  ;;  %v4226_v56 = vrot.slane %v4225_v53, 4 }
 0x883   :  { %v4215_v11 = vrot.slane %v4214_v50, 2  ;;  %v4227_v15 = vadd.f32 %v4226_v56, %v4225_v53  ;;  %v12943_v56 = vmax.f32 %v12272_v4, 0.0 }
 0x885   :  { %v4216_v62 = vadd.f32 %v4215_v11, %v4214_v50  ;;  %v4228_v21 = vrot.slane %v4227_v15, 2 }
 0x887   :  { %v4217_v3 = vrot.slane %v4216_v62, 1  ;;  %v4229_v22 = vadd.f32 %v4228_v21, %v4227_v15  ;;  %v12944_v15 = vmax.f32 %v12275_v5, 0.0  ;;  %v12945_v21 = vmax.f32 %v12278_v0, 0.0 }
 0x889   :  { %v4218_v31 = vadd.f32 %v4217_v3, %v4216_v62  ;;  %v4230_v12 = vrot.slane %v4229_v22, 1 }
 0x88b   :  { %v4231_v2 = vadd.f32 %v4230_v12, %v4229_v22  ;;  %v4232_v23 = vmul.f32 0.03125, %v4218_v31  ;;  %v11371_v31 = vld [vmem:[#allocation8 + $0x6f0] sm:$0xff]  ;;  %v11369_v12 = vld [vmem:[#allocation8 + $0x6e0] sm:$0xff] }
 0x88d   :  { %v4233_v28 = vmul.f32 0.03125, %v4231_v2  ;;  %v4234_v40 = vmul.f32 %v4232_v23, %v4232_v23  ;;  %v11380_v2 = vld [vmem:[#allocation8 + $0x738] sm:$0xff] }
 0x88e   :  { %5110 = vmatpush.bf16.msra.mxu3 %v11380_v2  ;;  %v11392_v2 = vld [vmem:[#allocation8 + $0x798] sm:$0xff] }
 0x88f   :  { %v4235_v26 = vsub.f32 %v4233_v28, %v4234_v40  ;;  %v11377_v28 = vld [vmem:[#allocation8 + $0x720] sm:$0xff] }
 0x891   :  { %v4236_v38 = vmax.f32 %v4235_v26, 0.0  ;;  %v11376_v26 = vld [vmem:[#allocation8 + $0x718] sm:$0xff] }
 0x893   :  { %v4237_v27 = vadd.f32 1e-05, %v4236_v38 }
 0x895   :  { %11672 = vrsqrt.f32 %v4237_v27  ;;  %vm4244_vm0 = vweird.f32 %v4237_v27 }
 0x89b   :  { %v11673_v8 = vpop.eup %11672 }
 0x89c   :  { %v4239_v61 = vmul.f32 %v11673_v8, %v4237_v27  ;;  %vm4245_vm15 = vweird.f32 %v11673_v8 }
 0x89d   :  { %vm4246_vm1 = vmor %vm4244_vm0, %vm4245_vm15 }
 0x89e   :  { %v4240_v14 = vmul.f32 %v11673_v8, %v4239_v61 }
 0x8a0   :  { %v4241_v41 = vmul.f32 0.5, %v4240_v14 }
 0x8a2   :  { %v4242_v32 = vsub.f32 1.5, %v4241_v41  ;;  %v11373_v41 = vld [vmem:[#allocation8 + $0x700] sm:$0xff] }
 0x8a4   :  { %v4243_v9 = vmul.f32 %v11673_v8, %v4242_v32 }
 0x8a6   :  { %v4247_v1 = vsel %vm4246_vm1, %v11673_v8, %v4243_v9  ;;  %v11374_v8 = vld [vmem:[#allocation8 + $0x708] sm:$0xff]  ;;  %v11388_v9 = vld [vmem:[#allocation8 + $0x778] sm:$0xff] }
 0x8a7   :  { %v4248_v6 = vmul.f32 %v4247_v1, %v4208_v46 }
 0x8a9   :  { %v4249_v34 = vmul.f32 %v4248_v6, %v4232_v23  ;;  %v4251_v39 = vperm.slane %v4248_v6, 0  ;;  %v11378_v23 = vld [vmem:[#allocation8 + $0x728] sm:$0xff] }
 0x8ab   :  { %v4250_v37 = vsub.f32 %v4209_v44, %v4249_v34  ;;  %v4254_v35 = vmul.f32 %v4251_v39, %v4204_v16  ;;  %v4252_v51 = vmul.f32 %v4251_v39, %v4199_v13  ;;  %v4255_v60 = vmul.f32 %v4251_v39, %v4206_v18  ;;  %v11386_v44 = vld [vmem:[#allocation8 + $0x768] sm:$0xff] }
 0x8ac   :  { %v4253_v57 = vmul.f32 %v4251_v39, %v12490_v30  ;;  %v12946_v13 = vmax.f32 %v12281_v47, 0.0  ;;  %v11372_v47 = vld [vmem:[#allocation8 + $0x6f8] sm:$0xff] }
 0x8ad   :  { %v4256_v36 = vperm.slane %v4250_v37, 0  ;;  %5091 = vmatpush.bf16.msra.mxu2 %v11372_v47 }
 0x8af   :  { %v4260_v45 = vadd.f32 %v4256_v36, %v4255_v60  ;;  %v4259_v52 = vadd.f32 %v4256_v36, %v4254_v35  ;;  %v4257_v53 = vadd.f32 %v4256_v36, %v4252_v51  ;;  %v4258_v50 = vadd.f32 %v4256_v36, %v4253_v57  ;;  %v11385_v35 = vld [vmem:[#allocation8 + $0x760] sm:$0xff]  ;;  %v11384_v36 = vld [vmem:[#allocation8 + $0x758] sm:$0xff] }
 0x8b1   :  { %v12498_v11 = vadd.f32 %v4259_v52, %v12943_v56  ;;  %v12502_v62 = vadd.f32 %v4260_v45, %v12944_v15  ;;  %v12506_v16 = vadd.f32 %v4257_v53, %v12945_v21  ;;  %v12510_v18 = vadd.f32 %v4258_v50, %v12946_v13  ;;  %5092 = vmatpush.bf16.msra.mxu2 %v11371_v31  ;;  %v11382_v52 = vld [vmem:[#allocation8 + $0x748] sm:$0xff]  ;;  %v11381_v15 = vld [vmem:[#allocation8 + $0x740] sm:$0xff] }
 0x8b2   :  { %v11394_v31 = vld [vmem:[#allocation8 + $0x7a8] sm:$0xff] }
 0x8b3   :  { %v4267_v30 = vmax.f32 %v12498_v11, 0.0  ;;  %v4268_v3 = vmax.f32 %v12502_v62, 0.0  ;;  %v4265_v5 = vmax.f32 %v12506_v16, 0.0  ;;  %v12934_v22 = vmax.f32 %v12510_v18, 0.0 }
 0x8b5   :  { %v4270_v4 = vpack.c.bf16 %v4268_v3, %v4267_v30  ;;  %v4269_v0 = vpack.c.bf16 %v12934_v22, %v4265_v5 }
 0x8b7   :  { %4277 = vmatpush.bf16.msra.mxu0 %v4270_v4  ;;  %v11396_v4 = vld [vmem:[#allocation8 + $0x7b8] sm:$0xff] }
 0x8bb   :  { %4278 = vmatpush.bf16.msra.mxu0 %v4269_v0 }
 0x8be   :  { %9825 = vmatmul.msk.bf16.vlgmr.msra.gmra.mxu0 %vm1059_vm8, %v12358_v49  ;;  %v11370_v49 = vld [vmem:[#allocation8 + $0x6e8] sm:$0xff] }
 0x8bf   :  { %5093 = vmatpush.bf16.msra.mxu2 %v11370_v49 }
 0x8c3   :  { %5094 = vmatpush.bf16.msra.mxu2 %v11369_v12 }
 0x8ce   :  { %9826 = vmatmul.msk.bf16.gmra.mxu0 %vm1059_vm8, %v12365_v54  ;;  %v11368_v54 = vld [vmem:[#allocation8 + $0x6d8] sm:$0xff] }
 0x8cf   :  { %5095 = vmatpush.bf16.msra.mxu2 %v11368_v54 }
 0x8de   :  { %9827 = vmatmul.msk.bf16.gmra.mxu0 %vm1059_vm8, %v12372_v42  ;;  %v11367_v42 = vld [vmem:[#allocation8 + $0x6d0] sm:$0xff] }
 0x8df   :  { %5096 = vmatpush.bf16.msra.mxu2 %v11367_v42  ;;  %v11393_v42 = vld [vmem:[#allocation8 + $0x7a0] sm:$0xff] }
 0x8ee   :  { %9828 = vmatmul.msk.bf16.gmra.mxu0 %vm1059_vm8, %v12379_v58  ;;  %v11366_v58 = vld [vmem:[#allocation8 + $0x6c8] sm:$0xff] }
 0x8ef   :  { %5097 = vmatpush.bf16.msra.mxu2 %v11366_v58 }
 0x8fe   :  { %9829 = vmatmul.msk.bf16.gmra.mxu0 %vm1059_vm8, %v12386_v48  ;;  %v11365_v48 = vld [vmem:[#allocation8 + $0x6c0] sm:$0xff] }
 0x8ff   :  { %5098 = vmatpush.bf16.msra.mxu2 %v11365_v48 }
 0x903   :  { %5129 = vmatpush.bf16.msrb.mxu2 %v11388_v9 }
 0x90e   :  { %9830 = vmatmul.msk.bf16.gmra.mxu0 %vm1059_vm8, %v12393_v25  ;;  %v11379_v25 = vld [vmem:[#allocation8 + $0x730] sm:$0xff] }
 0x90f   :  { %5111 = vmatpush.bf16.msra.mxu3 %v11379_v25 }
 0x913   :  { %5112 = vmatpush.bf16.msra.mxu3 %v11378_v23 }
 0x917   :  { %5113 = vmatpush.bf16.msra.mxu3 %v11377_v28  ;;  %v11390_v28 = vld [vmem:[#allocation8 + $0x788] sm:$0xff] }
 0x91b   :  { %5114 = vmatpush.bf16.msra.mxu3 %v11376_v26 }
 0x91e   :  { %9831 = vmatmul.msk.bf16.gmra.mxu0 %vm1059_vm8, %v12400_v55  ;;  %v11375_v55 = vld [vmem:[#allocation8 + $0x710] sm:$0xff] }
 0x91f   :  { %5115 = vmatpush.bf16.msra.mxu3 %v11375_v55 }
 0x923   :  { %5116 = vmatpush.bf16.msra.mxu3 %v11374_v8 }
 0x927   :  { %5117 = vmatpush.bf16.msra.mxu3 %v11373_v41  ;;  %v11402_v41 = vld [vmem:[#allocation8 + $0x7e8] sm:$0xff] }
 0x92b   :  { %5148 = vmatpush.bf16.msrb.mxu3 %v11396_v4 }
 0x92e   :  { %9832 = vmatmul.msk.bf16.gmra.mxu0 %vm1059_vm8, %v12407_v17 }
 0x93b   :  { %v4280_v40 = vpop.f32.mrf.mxu0 }
 0x93c   :  { %v4370_v38 = vpack.c.bf16 %v4280_v40, %v4280_v40 }
 0x93e   :  { %9833 = vmatmul.msk.bf16.gmra.mxu0 %vm1059_vm8, %v12414_v24  ;;  %v4410_v17 = vunpack.c.l.b16 %v4370_v38  ;;  %v11387_v24 = vld [vmem:[#allocation8 + $0x770] sm:$0xff]  ;;  %v11389_v38 = vld [vmem:[#allocation8 + $0x780] sm:$0xff] }
 0x93f   :  { %5130 = vmatpush.bf16.msrb.mxu2 %v11387_v24  ;;  %v11401_v24 = vld [vmem:[#allocation8 + $0x7e0] sm:$0xff] }
 0x943   :  { %v4282_v27 = vpop.f32.mrf.mxu0  ;;  %5131 = vmatpush.bf16.msrb.mxu2 %v11386_v44  ;;  %v11400_v44 = vld [vmem:[#allocation8 + $0x7d8] sm:$0xff] }
 0x944   :  { %v4371_v61 = vpack.c.bf16 %v4282_v27, %v4282_v27 }
 0x946   :  { %v4411_v14 = vunpack.c.l.b16 %v4371_v61  ;;  %v11404_v61 = vld [vmem:[#allocation8 + $0x7f8] sm:$0xff] }
 0x947   :  { %5132 = vmatpush.bf16.msrb.mxu2 %v11385_v35 }
 0x948   :  { %v4414_v32 = vpack.c.b16 %v4411_v14, %v4410_v17 }
 0x94a   :  { %5099 = vmatmul.bf16.vlgmr.msra.gmra.mxu2 %v4414_v32 }
 0x94b   :  { %v4285_v46 = vpop.f32.mrf.mxu0  ;;  %5133 = vmatpush.bf16.msrb.mxu2 %v11384_v36  ;;  %v11397_v36 = vld [vmem:[#allocation8 + $0x7c0] sm:$0xff] }
 0x94c   :  { %v4372_v1 = vpack.c.bf16 %v4285_v46, %v4285_v46 }
 0x94e   :  { %9834 = vmatmul.msk.bf16.gmra.mxu0 %vm1059_vm8, %v12421_v43  ;;  %v4412_v39 = vunpack.c.l.b16 %v4372_v1  ;;  %v11383_v43 = vld [vmem:[#allocation8 + $0x750] sm:$0xff] }
 0x94f   :  { %5134 = vmatpush.bf16.msrb.mxu2 %v11383_v43 }
 0x953   :  { %v4287_v6 = vpop.f32.mrf.mxu0  ;;  %5135 = vmatpush.bf16.msrb.mxu2 %v11382_v52 }
 0x954   :  { %v4373_v34 = vpack.c.bf16 %v4287_v6, %v4287_v6 }
 0x956   :  { %v4413_v37 = vunpack.c.l.b16 %v4373_v34 }
 0x957   :  { %5136 = vmatpush.bf16.msrb.mxu2 %v11381_v15 }
 0x958   :  { %v4415_v51 = vpack.c.b16 %v4413_v37, %v4412_v39  ;;  %v11398_v37 = vld [vmem:[#allocation8 + $0x7c8] sm:$0xff] }
 0x95a   :  { %5104 = vmatmul.bf16.gmra.mxu2 %v4415_v51 }
 0x95b   :  { %v4290_v60 = vpop.f32.mrf.mxu0  ;;  %5167 = vmatpush.bf16.msra.mxu2 %v11404_v61  ;;  %v11416_v61 = vld [vmem:[#allocation8 + $0x858] sm:$0xff] }
 0x95c   :  { %v4374_v57 = vpack.c.bf16 %v4290_v60, %v4290_v60 }
 0x95e   :  { %9835 = vmatmul.msk.bf16.gmra.mxu0 %vm1059_vm8, %v12428_v59  ;;  %v4422_v50 = vunpack.c.l.b16 %v4374_v57  ;;  %v11395_v59 = vld [vmem:[#allocation8 + $0x7b0] sm:$0xff] }
 0x95f   :  { %5149 = vmatpush.bf16.msrb.mxu3 %v11395_v59 }
 0x963   :  { %v4292_v45 = vpop.f32.mrf.mxu0  ;;  %5150 = vmatpush.bf16.msrb.mxu3 %v11394_v31 }
 0x964   :  { %v4375_v53 = vpack.c.bf16 %v4292_v45, %v4292_v45  ;;  %v11412_v45 = vld [vmem:[#allocation8 + $0x838] sm:$0xff] }
 0x966   :  { %v4423_v56 = vunpack.c.l.b16 %v4375_v53 }
 0x967   :  { %5151 = vmatpush.bf16.msrb.mxu3 %v11393_v42 }
 0x968   :  { %v4426_v21 = vpack.c.b16 %v4423_v56, %v4422_v50  ;;  %v11410_v50 = vld [vmem:[#allocation8 + $0x828] sm:$0xff] }
 0x96a   :  { %5118 = vmatmul.bf16.vlgmr.msra.gmra.mxu3 %v4426_v21 }
 0x96b   :  { %v4295_v13 = vpop.f32.mrf.mxu0  ;;  %5152 = vmatpush.bf16.msrb.mxu3 %v11392_v2 }
 0x96c   :  { %v4376_v0 = vpack.c.bf16 %v4295_v13, %v4295_v13  ;;  %v11409_v13 = vld [vmem:[#allocation8 + $0x820] sm:$0xff] }
 0x96e   :  { %9836 = vmatmul.msk.bf16.gmra.mxu0 %vm1059_vm8, %v12435_v7  ;;  %v4424_v12 = vunpack.c.l.b16 %v4376_v0  ;;  %v11391_v7 = vld [vmem:[#allocation8 + $0x790] sm:$0xff]  ;;  %v11408_v0 = vld [vmem:[#allocation8 + $0x818] sm:$0xff] }
 0x96f   :  { %5153 = vmatpush.bf16.msrb.mxu3 %v11391_v7  ;;  %v11420_v7 = vld [vmem:[#allocation8 + $0x878] sm:$0xff] }
 0x973   :  { %v4297_v47 = vpop.f32.mrf.mxu0  ;;  %5154 = vmatpush.bf16.msrb.mxu3 %v11390_v28  ;;  %v11418_v28 = vld [vmem:[#allocation8 + $0x868] sm:$0xff] }
 0x974   :  { %v4377_v49 = vpack.c.bf16 %v4297_v47, %v4297_v47 }
 0x976   :  { %v4425_v54 = vunpack.c.l.b16 %v4377_v49  ;;  %v11406_v49 = vld [vmem:[#allocation8 + $0x808] sm:$0xff] }
 0x977   :  { %5155 = vmatpush.bf16.msrb.mxu3 %v11389_v38  ;;  %v11417_v38 = vld [vmem:[#allocation8 + $0x860] sm:$0xff] }
 0x978   :  { %v4427_v58 = vpack.c.b16 %v4425_v54, %v4424_v12 }
 0x97a   :  { %5123 = vmatmul.bf16.gmra.mxu3 %v4427_v58  ;;  %v11405_v58 = vld [vmem:[#allocation8 + $0x800] sm:$0xff] }
 0x97b   :  { %v4300_v48 = vpop.f32.mrf.mxu0  ;;  %5186 = vmatpush.bf16.msra.mxu3 %v11412_v45 }
 0x97c   :  { %v4378_v25 = vpack.c.bf16 %v4300_v48, %v4300_v48 }
 0x97e   :  { %9837 = vmatmul.msk.bf16.gmra.mxu0 %vm1059_vm8, %v12442_v19  ;;  %v4434_v26 = vunpack.c.l.b16 %v4378_v25  ;;  %v11403_v19 = vld [vmem:[#allocation8 + $0x7f0] sm:$0xff] }
 0x97f   :  { %5168 = vmatpush.bf16.msra.mxu2 %v11403_v19  ;;  %v11415_v19 = vld [vmem:[#allocation8 + $0x850] sm:$0xff] }
 0x983   :  { %v4302_v23 = vpop.f32.mrf.mxu0  ;;  %5169 = vmatpush.bf16.msra.mxu2 %v11402_v41 }
 0x984   :  { %v4379_v40 = vpack.c.bf16 %v4302_v23, %v4302_v23 }
 0x986   :  { %v4435_v55 = vunpack.c.l.b16 %v4379_v40 }
 0x987   :  { %5170 = vmatpush.bf16.msra.mxu2 %v11401_v24  ;;  %v11413_v24 = vld [vmem:[#allocation8 + $0x840] sm:$0xff] }
 0x988   :  { %v4438_v27 = vpack.c.b16 %v4435_v55, %v4434_v26 }
 0x98a   :  { %5137 = vmatmul.bf16.vlgmr.msrb.gmra.mxu2 %v4438_v27 }
 0x98b   :  { %v4305_v8 = vpop.f32.mrf.mxu0  ;;  %5171 = vmatpush.bf16.msra.mxu2 %v11400_v44  ;;  %v11428_v44 = vld [vmem:[#allocation8 + $0x8b8] sm:$0xff] }
 0x98c   :  { %v4380_v17 = vpack.c.bf16 %v4305_v8, %v4305_v8 }
 0x98e   :  { %9838 = vmatmul.msk.bf16.gmra.mxu0 %vm1059_vm8, %v12449_v20  ;;  %v4436_v46 = vunpack.c.l.b16 %v4380_v17  ;;  %v11399_v20 = vld [vmem:[#allocation8 + $0x7d0] sm:$0xff] }
 0x98f   :  { %5172 = vmatpush.bf16.msra.mxu2 %v11399_v20 }
 0x993   :  { %v4307_v14 = vpop.f32.mrf.mxu0  ;;  %5173 = vmatpush.bf16.msra.mxu2 %v11398_v37 }
 0x994   :  { %v4381_v32 = vpack.c.bf16 %v4307_v14, %v4307_v14  ;;  %v11414_v14 = vld [vmem:[#allocation8 + $0x848] sm:$0xff] }
 0x996   :  { %v4437_v9 = vunpack.c.l.b16 %v4381_v32 }
 0x997   :  { %5174 = vmatpush.bf16.msra.mxu2 %v11397_v36 }
 0x998   :  { %v4439_v1 = vpack.c.b16 %v4437_v9, %v4436_v46 }
 0x99a   :  { %5142 = vmatmul.bf16.gmra.mxu2 %v4439_v1 }
 0x99b   :  { %v4310_v6 = vpop.f32.mrf.mxu0  ;;  %5205 = vmatpush.bf16.msrb.mxu2 %v11420_v7  ;;  %v11435_v7 = vld [vmem:[#allocation8 + $0x8f0] sm:$0xff] }
 0x99c   :  { %v4382_v34 = vpack.c.bf16 %v4310_v6, %v4310_v6 }
 0x99e   :  { %9839 = vmatmul.msk.bf16.gmra.mxu0 %vm1059_vm8, %v12456_v63  ;;  %v4446_v51 = vunpack.c.l.b16 %v4382_v34  ;;  %v11411_v63 = vld [vmem:[#allocation8 + $0x830] sm:$0xff] }
 0x99f   :  { %5187 = vmatpush.bf16.msra.mxu3 %v11411_v63  ;;  %v11425_v63 = vld [vmem:[#allocation8 + $0x8a0] sm:$0xff] }
 0x9a3   :  { %v4312_v39 = vpop.f32.mrf.mxu0  ;;  %5188 = vmatpush.bf16.msra.mxu3 %v11410_v50 }
 0x9a4   :  { %v4383_v35 = vpack.c.bf16 %v4312_v39, %v4312_v39  ;;  %v11427_v39 = vld [vmem:[#allocation8 + $0x8b0] sm:$0xff] }
 0x9a6   :  { %v4447_v60 = vunpack.c.l.b16 %v4383_v35 }
 0x9a7   :  { %5189 = vmatpush.bf16.msra.mxu3 %v11409_v13  ;;  %v11423_v13 = vld [vmem:[#allocation8 + $0x890] sm:$0xff] }
 0x9a8   :  { %v4450_v43 = vpack.c.b16 %v4447_v60, %v4446_v51  ;;  %v11426_v60 = vld [vmem:[#allocation8 + $0x8a8] sm:$0xff] }
 0x9aa   :  { %5156 = vmatmul.bf16.vlgmr.msrb.gmra.mxu3 %v4450_v43 }
 0x9ab   :  { %v4315_v57 = vpop.f32.mrf.mxu0  ;;  %5190 = vmatpush.bf16.msra.mxu3 %v11408_v0  ;;  %v11422_v0 = vld [vmem:[#allocation8 + $0x888] sm:$0xff] }
 0x9ac   :  { %v4384_v52 = vpack.c.bf16 %v4315_v57, %v4315_v57 }
 0x9ae   :  { %9840 = vmatmul.msk.bf16.gmra.mxu0 %vm1059_vm8, %v12463_v10  ;;  %v4448_v15 = vunpack.c.l.b16 %v4384_v52  ;;  %v11407_v10 = vld [vmem:[#allocation8 + $0x810] sm:$0xff] }
 0x9af   :  { %5191 = vmatpush.bf16.msra.mxu3 %v11407_v10 }
 0x9b3   :  { %v4317_v53 = vpop.f32.mrf.mxu0  ;;  %5192 = vmatpush.bf16.msra.mxu3 %v11406_v49 }
 0x9b4   :  { %v4385_v56 = vpack.c.bf16 %v4317_v53, %v4317_v53 }
 0x9b6   :  { %v4449_v21 = vunpack.c.l.b16 %v4385_v56  ;;  %v11424_v56 = vld [vmem:[#allocation8 + $0x898] sm:$0xff] }
 0x9b7   :  { %5193 = vmatpush.bf16.msra.mxu3 %v11405_v58  ;;  %v11436_v58 = vld [vmem:[#allocation8 + $0x8f8] sm:$0xff] }
 0x9b8   :  { %v4451_v4 = vpack.c.b16 %v4449_v21, %v4448_v15  ;;  %5243 = vmatpush.bf16.msra.mxu1 %v11436_v58 }
 0x9ba   :  { %5161 = vmatmul.bf16.gmra.mxu3 %v4451_v4 }
 0x9bb   :  { %v4320_v59 = vpop.f32.mrf.mxu0  ;;  %5224 = vmatpush.bf16.msrb.mxu3 %v11428_v44 }
 0x9bc   :  { %v4386_v47 = vpack.c.bf16 %v4320_v59, %v4320_v59  ;;  %5244 = vmatpush.bf16.msra.mxu1 %v11435_v7 }
 0x9be   :  { %9841 = vmatmul.msk.bf16.gmra.mxu0 %vm1059_vm8, %v12470_v33  ;;  %v4458_v54 = vunpack.c.l.b16 %v4386_v47  ;;  %v11419_v33 = vld [vmem:[#allocation8 + $0x870] sm:$0xff] }
 0x9bf   :  { %5206 = vmatpush.bf16.msrb.mxu2 %v11419_v33  ;;  %5225 = vmatpush.bf16.msrb.mxu3 %v11427_v39 }
 0x9c3   :  { %v4322_v31 = vpop.f32.mrf.mxu0  ;;  %5207 = vmatpush.bf16.msrb.mxu2 %v11418_v28  ;;  %5226 = vmatpush.bf16.msrb.mxu3 %v11426_v60 }
 0x9c4   :  { %v4387_v12 = vpack.c.bf16 %v4322_v31, %v4322_v31 }
 0x9c6   :  { %v4459_v42 = vunpack.c.l.b16 %v4387_v12  ;;  %v11421_v12 = vld [vmem:[#allocation8 + $0x880] sm:$0xff] }
 0x9c7   :  { %5208 = vmatpush.bf16.msrb.mxu2 %v11417_v38  ;;  %5227 = vmatpush.bf16.msrb.mxu3 %v11425_v63 }
 0x9c8   :  { %v4462_v48 = vpack.c.b16 %v4459_v42, %v4458_v54 }
 0x9ca   :  { %5175 = vmatmul.bf16.vlgmr.msra.gmra.mxu2 %v4462_v48 }
 0x9cb   :  { %v4325_v2 = vpop.f32.mrf.mxu0  ;;  %5209 = vmatpush.bf16.msrb.mxu2 %v11416_v61  ;;  %5228 = vmatpush.bf16.msrb.mxu3 %v11424_v56  ;;  %v11431_v61 = vld [vmem:[#allocation8 + $0x8d0] sm:$0xff] }
 0x9cc   :  { %v4388_v25 = vpack.c.bf16 %v4325_v2, %v4325_v2 }
 0x9cd   :  { %v5100_v9 = vpop.f32.mrf.mxu2 }
 0x9ce   :  { %9842 = vmatmul.msk.bf16.gmra.mxu0 %vm1059_vm8, %v12477_v29  ;;  %v4460_v26 = vunpack.c.l.b16 %v4388_v25 }
 0x9cf   :  { %5210 = vmatpush.bf16.msrb.mxu2 %v11415_v19  ;;  %5229 = vmatpush.bf16.msrb.mxu3 %v11423_v13 }
 0x9d3   :  { %v4327_v23 = vpop.f32.mrf.mxu0  ;;  %5211 = vmatpush.bf16.msrb.mxu2 %v11414_v14  ;;  %5230 = vmatpush.bf16.msrb.mxu3 %v11422_v0 }
 0x9d4   :  { %v4389_v40 = vpack.c.bf16 %v4327_v23, %v4327_v23  ;;  %v11434_v23 = vld [vmem:[#allocation8 + $0x8e8] sm:$0xff] }
 0x9d5   :  { %v12560_v37 = vpop.f32.mrf.mxu2  ;;  %5245 = vmatpush.bf16.msra.mxu1 %v11434_v23 }
 0x9d6   :  { %v4461_v55 = vunpack.c.l.b16 %v4389_v40 }
 0x9d7   :  { %5212 = vmatpush.bf16.msrb.mxu2 %v11413_v24  ;;  %5231 = vmatpush.bf16.msrb.mxu3 %v11421_v12 }
 0x9d8   :  { %v4463_v27 = vpack.c.b16 %v4461_v55, %v4460_v26  ;;  %v11433_v55 = vld [vmem:[#allocation8 + $0x8e0] sm:$0xff] }
 0x9d9   :  { %5246 = vmatpush.bf16.msra.mxu1 %v11433_v55 }
 0x9da   :  { %5180 = vmatmul.bf16.gmra.mxu2 %v4463_v27 }
 0x9db   :  { %v4330_v8 = vpop.f32.mrf.mxu0 }
 0x9dc   :  { %v4390_v17 = vpack.c.bf16 %v4330_v8, %v4330_v8  ;;  %v11432_v8 = vld [vmem:[#allocation8 + $0x8d8] sm:$0xff] }
 0x9dd   :  { %v5105_v53 = vpop.f32.mrf.mxu2  ;;  %5247 = vmatpush.bf16.msra.mxu1 %v11432_v8 }
 0x9de   :  { %v4470_v32 = vunpack.c.l.b16 %v4390_v17 }
 0x9e1   :  { %5248 = vmatpush.bf16.msra.mxu1 %v11431_v61 }
 0x9e3   :  { %v4332_v29 = vpop.f32.mrf.mxu0 }
 0x9e4   :  { %v4391_v41 = vpack.c.bf16 %v4332_v29, %v4332_v29  ;;  %v11430_v29 = vld [vmem:[#allocation8 + $0x8c8] sm:$0xff] }
 0x9e5   :  { %v12566_v47 = vpop.f32.mrf.mxu2  ;;  %5249 = vmatpush.bf16.msra.mxu1 %v11430_v29 }
 0x9e6   :  { %v4471_v46 = vunpack.c.l.b16 %v4391_v41 }
 0x9e8   :  { %v4474_v1 = vpack.c.b16 %v4471_v46, %v4470_v32 }
 0x9ea   :  { %5194 = vmatmul.bf16.vlgmr.msra.gmra.mxu3 %v4474_v1 }
 0x9eb   :  { %v4335_v6 = vpop.f32.mrf.mxu0 }
 0x9ec   :  { %v4392_v35 = vpack.c.bf16 %v4335_v6, %v4335_v6 }
 0x9ed   :  { %v5119_v20 = vpop.f32.mrf.mxu3 }
 0x9ee   :  { %v5120_v34 = vadd.f32 %v5119_v20, %v5100_v9  ;;  %v4472_v57 = vunpack.c.l.b16 %v4392_v35  ;;  %v11429_v9 = vld [vmem:[#allocation8 + $0x8c0] sm:$0xff] }
 0x9ef   :  { %5250 = vmatpush.bf16.msra.mxu1 %v11429_v9 }
 0x9f3   :  { %v4337_v51 = vpop.f32.mrf.mxu0 }
 0x9f4   :  { %v4393_v36 = vpack.c.bf16 %v4337_v51, %v4337_v51 }
 0x9f5   :  { %v12562_v43 = vpop.f32.mrf.mxu3 }
 0x9f6   :  { %v4473_v45 = vunpack.c.l.b16 %v4393_v36 }
 0x9f8   :  { %v4475_v52 = vpack.c.b16 %v4473_v45, %v4472_v57 }
 0x9fa   :  { %5199 = vmatmul.bf16.gmra.mxu3 %v4475_v52 }
 0x9fb   :  { %v4340_v50 = vpop.f32.mrf.mxu0 }
 0x9fc   :  { %v4394_v4 = vpack.c.bf16 %v4340_v50, %v4340_v50 }
 0x9fd   :  { %v5124_v15 = vpop.f32.mrf.mxu3 }
 0x9fe   :  { %v12564_v21 = vadd.f32 %v5124_v15, %v5105_v53  ;;  %v4482_v31 = vunpack.c.l.b16 %v4394_v4 }
 0xa03   :  { %v4342_v59 = vpop.f32.mrf.mxu0 }
 0xa04   :  { %v4395_v10 = vpack.c.bf16 %v4342_v59, %v4342_v59 }
 0xa05   :  { %v12568_v41 = vpop.f32.mrf.mxu3 }
 0xa06   :  { %v4483_v49 = vunpack.c.l.b16 %v4395_v10 }
 0xa08   :  { %v4486_v54 = vpack.c.b16 %v4483_v49, %v4482_v31 }
 0xa0a   :  { %5213 = vmatmul.bf16.vlgmr.msrb.gmra.mxu2 %v4486_v54 }
 0xa0b   :  { %v4345_v42 = vpop.f32.mrf.mxu0 }
 0xa0c   :  { %v4396_v33 = vpack.c.bf16 %v4345_v42, %v4345_v42 }
 0xa0d   :  { %v5138_v48 = vpop.f32.mrf.mxu2 }
 0xa0e   :  { %v5139_v2 = vadd.f32 %v5138_v48, %v5120_v34  ;;  %v4484_v40 = vunpack.c.l.b16 %v4396_v33 }
 0xa13   :  { %v4347_v25 = vpop.f32.mrf.mxu0 }
 0xa14   :  { %v4397_v28 = vpack.c.bf16 %v4347_v25, %v4347_v25 }
 0xa15   :  { %v5140_v31 = vpop.f32.mrf.mxu2 }
 0xa16   :  { %v4485_v26 = vunpack.c.l.b16 %v4397_v28 }
 0xa18   :  { %v4487_v38 = vpack.c.b16 %v4485_v26, %v4484_v40 }
 0xa1a   :  { %5218 = vmatmul.bf16.gmra.mxu2 %v4487_v38  ;;  %v5122_v38 = vadd.f32 %v12562_v43, %v12560_v37  ;;  %v5127_v37 = vadd.f32 %v12568_v41, %v12566_v47 }
 0xa1b   :  { %v4350_v27 = vpop.f32.mrf.mxu0 }
 0xa1c   :  { %v4398_v19 = vpack.c.bf16 %v4350_v27, %v4350_v27  ;;  %v5141_v8 = vadd.f32 %v5140_v31, %v5122_v38 }
 0xa1d   :  { %v5143_v12 = vpop.f32.mrf.mxu2 }
 0xa1e   :  { %v4494_v32 = vunpack.c.l.b16 %v4398_v19 }
 0xa23   :  { %v4352_v17 = vpop.f32.mrf.mxu0 }
 0xa24   :  { %v4399_v14 = vpack.c.bf16 %v4352_v17, %v4352_v17 }
 0xa25   :  { %v5145_v42 = vpop.f32.mrf.mxu2 }
 0xa26   :  { %v4495_v46 = vunpack.c.l.b16 %v4399_v14  ;;  %v5144_v14 = vadd.f32 %v5143_v12, %v12564_v21 }
 0xa28   :  { %v4498_v24 = vpack.c.b16 %v4495_v46, %v4494_v32 }
 0xa2a   :  { %5232 = vmatmul.bf16.vlgmr.msrb.gmra.mxu3 %v4498_v24 }
 0xa2b   :  { %v4355_v1 = vpop.f32.mrf.mxu0 }
 0xa2c   :  { %v4400_v20 = vpack.c.bf16 %v4355_v1, %v4355_v1 }
 0xa2d   :  { %v5157_v6 = vpop.f32.mrf.mxu3 }
 0xa2e   :  { %v5158_v44 = vadd.f32 %v5157_v6, %v5139_v2  ;;  %v4496_v35 = vunpack.c.l.b16 %v4400_v20 }
 0xa33   :  { %v4357_v34 = vpop.f32.mrf.mxu0 }
 0xa34   :  { %v4401_v39 = vpack.c.bf16 %v4357_v34, %v4357_v34 }
 0xa35   :  { %v5159_v49 = vpop.f32.mrf.mxu3 }
 0xa36   :  { %v4497_v51 = vunpack.c.l.b16 %v4401_v39  ;;  %v5160_v17 = vadd.f32 %v5159_v49, %v5141_v8 }
 0xa38   :  { %v4499_v60 = vpack.c.b16 %v4497_v51, %v4496_v35 }
 0xa3a   :  { %5237 = vmatmul.bf16.gmra.mxu3 %v4499_v60 }
 0xa3b   :  { %v4360_v36 = vpop.f32.mrf.mxu0 }
 0xa3c   :  { %v4402_v57 = vpack.c.bf16 %v4360_v36, %v4360_v36 }
 0xa3d   :  { %v5162_v54 = vpop.f32.mrf.mxu3 }
 0xa3e   :  { %v4506_v52 = vunpack.c.l.b16 %v4402_v57  ;;  %v5163_v9 = vadd.f32 %v5162_v54, %v5144_v14  ;;  %v5146_v57 = vadd.f32 %v5145_v42, %v5127_v37  ;;  %v5263_v37 = vld [vmem:[#allocation11 + $0x3] sm:$0x1] }
 0xa43   :  { %v4362_v45 = vpop.f32.mrf.mxu0 }
 0xa44   :  { %v4403_v63 = vpack.c.bf16 %v4362_v45, %v4362_v45 }
 0xa45   :  { %v5164_v58 = vpop.f32.mrf.mxu3 }
 0xa46   :  { %v4507_v53 = vunpack.c.l.b16 %v4403_v63  ;;  %v5165_v45 = vadd.f32 %v5164_v58, %v5146_v57 }
 0xa48   :  { %v4510_v50 = vpack.c.b16 %v4507_v53, %v4506_v52 }
 0xa4a   :  { %5251 = vmatmul.bf16.vlgmr.msra.gmra.mxu1 %v4510_v50 }
 0xa4b   :  { %v4365_v56 = vpop.f32.mrf.mxu0 }
 0xa4c   :  { %v4404_v15 = vpack.c.bf16 %v4365_v56, %v4365_v56 }
 0xa4d   :  { %v5176_v48 = vpop.f32.mrf.mxu2 }
 0xa4e   :  { %v4508_v59 = vunpack.c.l.b16 %v4404_v15  ;;  %v5177_v32 = vadd.f32 %v5176_v48, %v5158_v44 }
 0xa53   :  { %v4367_v13 = vpop.f32.mrf.mxu0 }
 0xa54   :  { %v4405_v4 = vpack.c.bf16 %v4367_v13, %v4367_v13 }
 0xa55   :  { %v5178_v7 = vpop.f32.mrf.mxu2 }
 0xa56   :  { %v4509_v0 = vunpack.c.l.b16 %v4405_v4  ;;  %v5179_v29 = vadd.f32 %v5178_v7, %v5160_v17 }
 0xa58   :  { %v4511_v10 = vpack.c.b16 %v4509_v0, %v4508_v59 }
 0xa5a   :  { %5256 = vmatmul.bf16.gmra.mxu1 %v4511_v10 }
 0xa5d   :  { %v5181_v25 = vpop.f32.mrf.mxu2 }
 0xa5e   :  { %v5182_v34 = vadd.f32 %v5181_v25, %v5163_v9 }
 0xa65   :  { %v5183_v28 = vpop.f32.mrf.mxu2 }
 0xa66   :  { %v5184_v50 = vadd.f32 %v5183_v28, %v5165_v45 }
 0xa6d   :  { %v5195_v2 = vpop.f32.mrf.mxu3 }
 0xa6e   :  { %v5196_v24 = vadd.f32 %v5195_v2, %v5177_v32 }
 0xa75   :  { %v5197_v33 = vpop.f32.mrf.mxu3 }
 0xa76   :  { %v5198_v46 = vadd.f32 %v5197_v33, %v5179_v29 }
 0xa7d   :  { %v5200_v23 = vpop.f32.mrf.mxu3 }
 0xa7e   :  { %v5201_v43 = vadd.f32 %v5200_v23, %v5182_v34  ;;  %v5262_v34 = vld [vmem:[#allocation10 + $0x3] sm:$0x1] }
 0xa85   :  { %v5202_v40 = vpop.f32.mrf.mxu3 }
 0xa86   :  { %v5203_v47 = vadd.f32 %v5202_v40, %v5184_v50 }
 0xa8d   :  { %v5214_v26 = vpop.f32.mrf.mxu2 }
 0xa8e   :  { %v5215_v39 = vadd.f32 %v5214_v26, %v5196_v24 }
 0xa95   :  { %v5216_v27 = vpop.f32.mrf.mxu2 }
 0xa96   :  { %v5217_v1 = vadd.f32 %v5216_v27, %v5198_v46 }
 0xa9d   :  { %v5219_v6 = vpop.f32.mrf.mxu2 }
 0xa9e   :  { %v5220_v21 = vadd.f32 %v5219_v6, %v5201_v43 }
 0xaa5   :  { %v5221_v4 = vpop.f32.mrf.mxu2 }
 0xaa6   :  { %v5222_v31 = vadd.f32 %v5221_v4, %v5203_v47 }
 0xaad   :  { %v5233_v55 = vpop.f32.mrf.mxu3 }
 0xaae   :  { %v5234_v60 = vadd.f32 %v5233_v55, %v5215_v39 }
 0xab5   :  { %v5235_v61 = vpop.f32.mrf.mxu3 }
 0xab6   :  { %v5236_v35 = vadd.f32 %v5235_v61, %v5217_v1 }
 0xabd   :  { %v5238_v51 = vpop.f32.mrf.mxu3 }
 0xabe   :  { %v5239_v63 = vadd.f32 %v5238_v51, %v5220_v21 }
 0xac5   :  { %v5240_v10 = vpop.f32.mrf.mxu3 }
 0xac6   :  { %v5241_v12 = vadd.f32 %v5240_v10, %v5222_v31 }
 0xac7   :  { %v5252_v19 = vpop.f32.mrf.mxu1 }
 0xac8   :  { %v5253_v44 = vadd.f32 %v5252_v19, %v5234_v60 }
 0xaca   :  { %v5273_v56 = vmul.f32 %v5253_v44, %v5253_v44 }
 0xacf   :  { %v5254_v20 = vpop.f32.mrf.mxu1 }
 0xad0   :  { %v12575_v36 = vadd.f32 %v5254_v20, %v5236_v35 }
 0xad2   :  { %v5274_v52 = vmul.f32 %v12575_v36, %v12575_v36  ;;  %v5264_v15 = vadd.f32 %v12575_v36, %v5253_v44 }
 0xad4   :  { %v5277_v41 = vadd.f32 %v5274_v52, %v5273_v56 }
 0xad7   :  { %v5257_v53 = vpop.f32.mrf.mxu1 }
 0xad8   :  { %v5258_v13 = vadd.f32 %v5257_v53, %v5239_v63 }
 0xada   :  { %v5265_v59 = vadd.f32 %v5264_v15, %v5258_v13  ;;  %v5275_v0 = vmul.f32 %v5258_v13, %v5258_v13 }
 0xadc   :  { %v5278_v49 = vadd.f32 %v5277_v41, %v5275_v0 }
 0xadf   :  { %v5259_v54 = vpop.f32.mrf.mxu1 }
 0xae0   :  { %v5260_v42 = vadd.f32 %v5259_v54, %v5241_v12  ;;  %v12612_v12 = vld [vmem:[%s12921_s4 + $0x20] sm:$0xff]  ;;  %v12619_v54 = vld [vmem:[%s12921_s4 + $0x28] sm:$0xff] }
 0xae2   :  { %v5266_v58 = vadd.f32 %v5265_v59, %v5260_v42  ;;  %v5276_v48 = vmul.f32 %v5260_v42, %v5260_v42 }
 0xae4   :  { %v5267_v2 = vrot.slane %v5266_v58, 4  ;;  %v5279_v7 = vadd.f32 %v5278_v49, %v5276_v48  ;;  %v12605_v49 = vld [vmem:[%s12921_s4 + $0x18] sm:$0xff]  ;;  %v11442_v48 = vld [vmem:[#allocation8 + $0x928] sm:$0xff] }
 0xae6   :  { %v5268_v33 = vadd.f32 %v5267_v2, %v5266_v58  ;;  %v5280_v25 = vrot.slane %v5279_v7, 4  ;;  %v11443_v58 = vld [vmem:[#allocation8 + $0x930] sm:$0xff]  ;;  %v11441_v2 = vld [vmem:[#allocation8 + $0x920] sm:$0xff] }
 0xae8   :  { %v5269_v23 = vrot.slane %v5268_v33, 2  ;;  %v5281_v28 = vadd.f32 %v5280_v25, %v5279_v7  ;;  %v12626_v7 = vld [vmem:[%s12921_s4 + $0x30] sm:$0xff] }
 0xae9   :  { %v11439_v25 = vld [vmem:[#allocation8 + $0x910] sm:$0xff] }
 0xaea   :  { %v5270_v26 = vadd.f32 %v5269_v23, %v5268_v33  ;;  %v5282_v55 = vrot.slane %v5281_v28, 2  ;;  %v11440_v33 = vld [vmem:[#allocation8 + $0x918] sm:$0xff]  ;;  %v11438_v23 = vld [vmem:[#allocation8 + $0x908] sm:$0xff] }
 0xaec   :  { %v5271_v40 = vrot.slane %v5270_v26, 1  ;;  %v5283_v38 = vadd.f32 %v5282_v55, %v5281_v28  ;;  %v11437_v28 = vld [vmem:[#allocation8 + $0x900] sm:$0xff]  ;;  %v11452_v55 = vld [vmem:[#allocation8 + $0x978] sm:$0xff] }
 0xaed   :  { %6160 = vmatpush.bf16.msrb.mxu1 %v11452_v55 }
 0xaee   :  { %v5272_v27 = vadd.f32 %v5271_v40, %v5270_v26  ;;  %v5284_v8 = vrot.slane %v5283_v38, 1  ;;  %v12633_v26 = vld [vmem:[%s12921_s4 + $0x38] sm:$0xff] }
 0xaef   :  { %v11451_v40 = vld [vmem:[#allocation8 + $0x970] sm:$0xff] }
 0xaf0   :  { %v5285_v61 = vadd.f32 %v5284_v8, %v5283_v38  ;;  %v5286_v19 = vmul.f32 0.03125, %v5272_v27  ;;  %v11450_v38 = vld [vmem:[#allocation8 + $0x968] sm:$0xff]  ;;  %v11449_v27 = vld [vmem:[#allocation8 + $0x960] sm:$0xff] }
 0xaf1   :  { %6161 = vmatpush.bf16.msrb.mxu1 %v11451_v40  ;;  %v12640_v8 = vld [vmem:[%s12921_s4 + $0x40] sm:$0xff] }
 0xaf2   :  { %v5287_v17 = vmul.f32 0.03125, %v5285_v61  ;;  %v5288_v29 = vmul.f32 %v5286_v19, %v5286_v19 }
 0xaf4   :  { %v5289_v14 = vsub.f32 %v5287_v17, %v5288_v29  ;;  %v11447_v17 = vld [vmem:[#allocation8 + $0x950] sm:$0xff] }
 0xaf5   :  { %6162 = vmatpush.bf16.msrb.mxu1 %v11450_v38  ;;  %v11465_v38 = vld [vmem:[#allocation8 + $0x9e0] sm:$0xff] }
 0xaf6   :  { %v5290_v32 = vmax.f32 %v5289_v14, 0.0 }
 0xaf8   :  { %v5291_v46 = vadd.f32 1e-05, %v5290_v32  ;;  %v11446_v32 = vld [vmem:[#allocation8 + $0x948] sm:$0xff] }
 0xaf9   :  { %6163 = vmatpush.bf16.msrb.mxu1 %v11449_v27  ;;  %v12668_v27 = vld [vmem:[%s12921_s4 + $0x60] sm:$0xff] }
 0xafa   :  { %11674 = vrsqrt.f32 %v5291_v46  ;;  %vm5298_vm3 = vweird.f32 %v5291_v46 }
 0xb00   :  { %v11675_v9 = vpop.eup %11674 }
 0xb01   :  { %v5293_v24 = vmul.f32 %v11675_v9, %v5291_v46  ;;  %vm5299_vm2 = vweird.f32 %v11675_v9 }
 0xb02   :  { %vm5300_vm4 = vmor %vm5298_vm3, %vm5299_vm2 }
 0xb03   :  { %v5294_v1 = vmul.f32 %v11675_v9, %v5293_v24 }
 0xb05   :  { %v5295_v6 = vmul.f32 0.5, %v5294_v1  ;;  %v11445_v1 = vld [vmem:[#allocation8 + $0x940] sm:$0xff] }
 0xb07   :  { %v5296_v20 = vsub.f32 1.5, %v5295_v6 }
 0xb09   :  { %v5297_v39 = vmul.f32 %v11675_v9, %v5296_v20  ;;  %v12647_v20 = vld [vmem:[%s12921_s4 + $0x48] sm:$0xff] }
 0xb0b   :  { %v5301_v35 = vsel %vm5300_vm4, %v11675_v9, %v5297_v39  ;;  %v11460_v39 = vld [vmem:[#allocation8 + $0x9b8] sm:$0xff] }
 0xb0c   :  { %v5302_v51 = vmul.f32 %v5301_v35, %v5262_v34  ;;  %v11459_v35 = vld [vmem:[#allocation8 + $0x9b0] sm:$0xff] }
 0xb0e   :  { %v5303_v43 = vmul.f32 %v5302_v51, %v5286_v19  ;;  %v5305_v60 = vperm.slane %v5302_v51, 0  ;;  %v11448_v19 = vld [vmem:[#allocation8 + $0x958] sm:$0xff] }
 0xb0f   :  { %6164 = vmatpush.bf16.msrb.mxu1 %v11448_v19 }
 0xb10   :  { %v5304_v57 = vsub.f32 %v5263_v37, %v5303_v43  ;;  %v5308_v21 = vmul.f32 %v5305_v60, %v5258_v13  ;;  %v5306_v45 = vmul.f32 %v5305_v60, %v5253_v44  ;;  %v5309_v63 = vmul.f32 %v5305_v60, %v5260_v42  ;;  %v12584_v44 = vld [vmem:[%s12921_s4] sm:$0xff]  ;;  %v12598_v13 = vld [vmem:[%s12921_s4 + $0x10] sm:$0xff] }
 0xb11   :  { %v5307_v53 = vmul.f32 %v5305_v60, %v12575_v36  ;;  %v12591_v36 = vld [vmem:[%s12921_s4 + $0x8] sm:$0xff]  ;;  %v11444_v42 = vld [vmem:[#allocation8 + $0x938] sm:$0xff] }
 0xb12   :  { %v5310_v52 = vperm.slane %v5304_v57, 0  ;;  %6141 = vmatpush.bf16.msra.mxu3 %v11444_v42  ;;  %v11458_v43 = vld [vmem:[#allocation8 + $0x9a8] sm:$0xff]  ;;  %v12661_v42 = vld [vmem:[%s12921_s4 + $0x58] sm:$0xff] }
 0xb13   :  { %6165 = vmatpush.bf16.msrb.mxu1 %v11447_v17  ;;  %v11464_v17 = vld [vmem:[#allocation8 + $0x9d8] sm:$0xff] }
 0xb14   :  { %v5314_v50 = vadd.f32 %v5310_v52, %v5309_v63  ;;  %v5313_v56 = vadd.f32 %v5310_v52, %v5308_v21  ;;  %v5311_v15 = vadd.f32 %v5310_v52, %v5306_v45  ;;  %v5312_v4 = vadd.f32 %v5310_v52, %v5307_v53  ;;  %v11457_v45 = vld [vmem:[#allocation8 + $0x9a0] sm:$0xff]  ;;  %v12654_v63 = vld [vmem:[%s12921_s4 + $0x50] sm:$0xff] }
 0xb16   :  { %v5318_v47 = vmax.f32 %v5314_v50, 0.0  ;;  %v5317_v41 = vmax.f32 %v5313_v56, 0.0  ;;  %v5315_v59 = vmax.f32 %v5311_v15, 0.0  ;;  %v5316_v0 = vmax.f32 %v5312_v4, 0.0  ;;  %6142 = vmatpush.bf16.msra.mxu3 %v11443_v58  ;;  %v11456_v50 = vld [vmem:[#allocation8 + $0x998] sm:$0xff]  ;;  %v11455_v56 = vld [vmem:[#allocation8 + $0x990] sm:$0xff] }
 0xb17   :  { %6166 = vmatpush.bf16.msrb.mxu1 %v11446_v32 }
 0xb18   :  { %v5320_v10 = vpack.c.bf16 %v5318_v47, %v5317_v41  ;;  %v5319_v31 = vpack.c.bf16 %v5316_v0, %v5315_v59  ;;  %v11454_v47 = vld [vmem:[#allocation8 + $0x988] sm:$0xff] }
 0xb1a   :  { %5327 = vmatpush.bf16.msra.mxu2 %v5320_v10  ;;  %6143 = vmatpush.bf16.msra.mxu3 %v11442_v48  ;;  %v11453_v10 = vld [vmem:[#allocation8 + $0x980] sm:$0xff]  ;;  %v11468_v48 = vld [vmem:[#allocation8 + $0x9f8] sm:$0xff] }
 0xb1b   :  { %6167 = vmatpush.bf16.msrb.mxu1 %v11445_v1 }
 0xb1e   :  { %5328 = vmatpush.bf16.msra.mxu2 %v5319_v31  ;;  %6144 = vmatpush.bf16.msra.mxu3 %v11441_v2  ;;  %v11467_v2 = vld [vmem:[#allocation8 + $0x9f0] sm:$0xff] }
 0xb1f   :  { %6198 = vmatpush.bf16.msra.mxu1 %v11468_v48  ;;  %v11469_v48 = vld [vmem:[#allocation8 + $0xa00] sm:$0xff] }
 0xb21   :  { %10131 = vmatmul.msk.bf16.vlgmr.msra.gmra.mxu2 %vm1059_vm8, %v12584_v44 }
 0xb22   :  { %6145 = vmatpush.bf16.msra.mxu3 %v11440_v33 }
 0xb23   :  { %6199 = vmatpush.bf16.msra.mxu1 %v11467_v2 }
 0xb26   :  { %6146 = vmatpush.bf16.msra.mxu3 %v11439_v25 }
 0xb2a   :  { %6147 = vmatpush.bf16.msra.mxu3 %v11438_v23  ;;  %v11466_v23 = vld [vmem:[#allocation8 + $0x9e8] sm:$0xff] }
 0xb2b   :  { %6200 = vmatpush.bf16.msra.mxu1 %v11466_v23  ;;  %v11484_v23 = vld [vmem:[#allocation8 + $0xa78] sm:$0xff] }
 0xb2e   :  { %6148 = vmatpush.bf16.msra.mxu3 %v11437_v28 }
 0xb2f   :  { %6201 = vmatpush.bf16.msra.mxu1 %v11465_v38  ;;  %v11482_v38 = vld [vmem:[#allocation8 + $0xa68] sm:$0xff] }
 0xb31   :  { %10132 = vmatmul.msk.bf16.gmra.mxu2 %vm1059_vm8, %v12591_v36 }
 0xb32   :  { %6179 = vmatpush.bf16.msrb.mxu3 %v11460_v39  ;;  %v12675_v39 = vld [vmem:[%s12921_s4 + $0x68] sm:$0xff] }
 0xb33   :  { %6202 = vmatpush.bf16.msra.mxu1 %v11464_v17 }
 0xb36   :  { %6180 = vmatpush.bf16.msrb.mxu3 %v11459_v35 }
 0xb3a   :  { %6181 = vmatpush.bf16.msrb.mxu3 %v11458_v43 }
 0xb3e   :  { %6182 = vmatpush.bf16.msrb.mxu3 %v11457_v45 }
 0xb41   :  { %10133 = vmatmul.msk.bf16.gmra.mxu2 %vm1059_vm8, %v12598_v13 }
 0xb42   :  { %6183 = vmatpush.bf16.msrb.mxu3 %v11456_v50  ;;  %v12682_v50 = vld [vmem:[%s12921_s4 + $0x70] sm:$0xff] }
 0xb46   :  { %6184 = vmatpush.bf16.msrb.mxu3 %v11455_v56 }
 0xb4a   :  { %6185 = vmatpush.bf16.msrb.mxu3 %v11454_v47  ;;  %v11471_v47 = vld [vmem:[#allocation8 + $0xa10] sm:$0xff] }
 0xb4e   :  { %6186 = vmatpush.bf16.msrb.mxu3 %v11453_v10 }
 0xb51   :  { %10134 = vmatmul.msk.bf16.gmra.mxu2 %vm1059_vm8, %v12605_v49 }
 0xb61   :  { %10135 = vmatmul.msk.bf16.gmra.mxu2 %vm1059_vm8, %v12612_v12 }
 0xb71   :  { %10136 = vmatmul.msk.bf16.gmra.mxu2 %vm1059_vm8, %v12619_v54 }
 0xb81   :  { %10137 = vmatmul.msk.bf16.gmra.mxu2 %vm1059_vm8, %v12626_v7 }
 0xb91   :  { %10138 = vmatmul.msk.bf16.gmra.mxu2 %vm1059_vm8, %v12633_v26 }
 0xba1   :  { %10139 = vmatmul.msk.bf16.gmra.mxu2 %vm1059_vm8, %v12640_v8 }
 0xba4   :  { %v5330_v61 = vpop.f32.mrf.mxu2 }
 0xba5   :  { %v5420_v29 = vpack.c.bf16 %v5330_v61, %v5330_v61 }
 0xba7   :  { %v5460_v9 = vunpack.c.l.b16 %v5420_v29  ;;  %v11463_v29 = vld [vmem:[#allocation8 + $0x9d0] sm:$0xff] }
 0xba8   :  { %6203 = vmatpush.bf16.msra.mxu1 %v11463_v29  ;;  %v11481_v29 = vld [vmem:[#allocation8 + $0xa60] sm:$0xff] }
 0xbac   :  { %v5332_v14 = vpop.f32.mrf.mxu2 }
 0xbad   :  { %v5421_v46 = vpack.c.bf16 %v5332_v14, %v5332_v14 }
 0xbaf   :  { %v5461_v24 = vunpack.c.l.b16 %v5421_v46  ;;  %v11462_v46 = vld [vmem:[#allocation8 + $0x9c8] sm:$0xff] }
 0xbb0   :  { %6204 = vmatpush.bf16.msra.mxu1 %v11462_v46 }
 0xbb1   :  { %v5464_v6 = vpack.c.b16 %v5461_v24, %v5460_v9  ;;  %10140 = vmatmul.msk.bf16.gmra.mxu2 %vm1059_vm8, %v12647_v20 }
 0xbb3   :  { %6149 = vmatmul.bf16.vlgmr.msra.gmra.mxu3 %v5464_v6  ;;  %v11461_v6 = vld [vmem:[#allocation8 + $0x9c0] sm:$0xff] }
 0xbb4   :  { %v5335_v34 = vpop.f32.mrf.mxu2  ;;  %6205 = vmatpush.bf16.msra.mxu1 %v11461_v6 }
 0xbb5   :  { %v5422_v51 = vpack.c.bf16 %v5335_v34, %v5335_v34 }
 0xbb7   :  { %v5462_v57 = vunpack.c.l.b16 %v5422_v51  ;;  %v11476_v51 = vld [vmem:[#allocation8 + $0xa38] sm:$0xff] }
 0xbb8   :  { %6217 = vmatpush.bf16.msra.mxu3 %v11476_v51 }
 0xbbc   :  { %v5337_v37 = vpop.f32.mrf.mxu2 }
 0xbbd   :  { %v5423_v60 = vpack.c.bf16 %v5337_v37, %v5337_v37  ;;  %v11475_v37 = vld [vmem:[#allocation8 + $0xa30] sm:$0xff] }
 0xbbe   :  { %6218 = vmatpush.bf16.msra.mxu3 %v11475_v37 }
 0xbbf   :  { %v5463_v21 = vunpack.c.l.b16 %v5423_v60 }
 0xbc1   :  { %10141 = vmatmul.msk.bf16.gmra.mxu2 %vm1059_vm8, %v12654_v63  ;;  %v5465_v52 = vpack.c.b16 %v5463_v21, %v5462_v57  ;;  %v11474_v57 = vld [vmem:[#allocation8 + $0xa28] sm:$0xff] }
 0xbc2   :  { %6219 = vmatpush.bf16.msra.mxu3 %v11474_v57  ;;  %v12703_v57 = vld [vmem:[%s12921_s4 + $0x88] sm:$0xff] }
 0xbc3   :  { %6154 = vmatmul.bf16.gmra.mxu3 %v5465_v52 }
 0xbc4   :  { %v5340_v53 = vpop.f32.mrf.mxu2 }
 0xbc5   :  { %v5424_v15 = vpack.c.bf16 %v5340_v53, %v5340_v53  ;;  %v11473_v53 = vld [vmem:[#allocation8 + $0xa20] sm:$0xff] }
 0xbc6   :  { %6220 = vmatpush.bf16.msra.mxu3 %v11473_v53 }
 0xbc7   :  { %v5472_v59 = vunpack.c.l.b16 %v5424_v15 }
 0xbcc   :  { %v5342_v4 = vpop.f32.mrf.mxu2 }
 0xbcd   :  { %v5425_v41 = vpack.c.bf16 %v5342_v4, %v5342_v4  ;;  %v11472_v4 = vld [vmem:[#allocation8 + $0xa18] sm:$0xff] }
 0xbce   :  { %6221 = vmatpush.bf16.msra.mxu3 %v11472_v4 }
 0xbcf   :  { %v5473_v0 = vunpack.c.l.b16 %v5425_v41 }
 0xbd1   :  { %v5476_v31 = vpack.c.b16 %v5473_v0, %v5472_v59  ;;  %10142 = vmatmul.msk.bf16.gmra.mxu2 %vm1059_vm8, %v12661_v42  ;;  %v11470_v0 = vld [vmem:[#allocation8 + $0xa08] sm:$0xff] }
 0xbd2   :  { %6222 = vmatpush.bf16.msra.mxu3 %v11471_v47 }
 0xbd3   :  { %6168 = vmatmul.bf16.vlgmr.msrb.gmra.mxu1 %v5476_v31 }
 0xbd4   :  { %v5345_v58 = vpop.f32.mrf.mxu2  ;;  %6236 = vmatpush.bf16.msrb.mxu1 %v11484_v23  ;;  %v11486_v23 = vld [vmem:[#allocation8 + $0xa88] sm:$0xff] }
 0xbd5   :  { %v5426_v33 = vpack.c.bf16 %v5345_v58, %v5345_v58 }
 0xbd6   :  { %6223 = vmatpush.bf16.msra.mxu3 %v11470_v0 }
 0xbd7   :  { %v5474_v55 = vunpack.c.l.b16 %v5426_v33  ;;  %v12689_v33 = vld [vmem:[%s12921_s4 + $0x78] sm:$0xff] }
 0xbda   :  { %6224 = vmatpush.bf16.msra.mxu3 %v11469_v48 }
 0xbdc   :  { %v5347_v25 = vpop.f32.mrf.mxu2 }
 0xbdd   :  { %v5427_v28 = vpack.c.bf16 %v5347_v25, %v5347_v25 }
 0xbdf   :  { %v5475_v40 = vunpack.c.l.b16 %v5427_v28  ;;  %v11483_v28 = vld [vmem:[#allocation8 + $0xa70] sm:$0xff] }
 0xbe0   :  { %6237 = vmatpush.bf16.msrb.mxu1 %v11483_v28 }
 0xbe1   :  { %10143 = vmatmul.msk.bf16.gmra.mxu2 %vm1059_vm8, %v12668_v27  ;;  %v5477_v61 = vpack.c.b16 %v5475_v40, %v5474_v55 }
 0xbe3   :  { %6173 = vmatmul.bf16.gmra.mxu1 %v5477_v61 }
 0xbe4   :  { %v5350_v19 = vpop.f32.mrf.mxu2  ;;  %6238 = vmatpush.bf16.msrb.mxu1 %v11482_v38 }
 0xbe5   :  { %v5428_v14 = vpack.c.bf16 %v5350_v19, %v5350_v19 }
 0xbe7   :  { %v5484_v24 = vunpack.c.l.b16 %v5428_v14  ;;  %v12696_v14 = vld [vmem:[%s12921_s4 + $0x80] sm:$0xff] }
 0xbe8   :  { %6239 = vmatpush.bf16.msrb.mxu1 %v11481_v29 }
 0xbec   :  { %v5352_v32 = vpop.f32.mrf.mxu2 }
 0xbed   :  { %v5429_v9 = vpack.c.bf16 %v5352_v32, %v5352_v32 }
 0xbef   :  { %v5485_v1 = vunpack.c.l.b16 %v5429_v9  ;;  %v11480_v9 = vld [vmem:[#allocation8 + $0xa58] sm:$0xff] }
 0xbf0   :  { %6240 = vmatpush.bf16.msrb.mxu1 %v11480_v9  ;;  %v11499_v9 = vld [vmem:[#allocation8 + $0xaf0] sm:$0xff] }
 0xbf1   :  { %v5488_v34 = vpack.c.b16 %v5485_v1, %v5484_v24  ;;  %10144 = vmatmul.msk.bf16.gmra.mxu2 %vm1059_vm8, %v12675_v39  ;;  %v11479_v24 = vld [vmem:[#allocation8 + $0xa50] sm:$0xff] }
 0xbf3   :  { %6187 = vmatmul.bf16.vlgmr.msrb.gmra.mxu3 %v5488_v34  ;;  %v11478_v34 = vld [vmem:[#allocation8 + $0xa48] sm:$0xff] }
 0xbf4   :  { %v5355_v35 = vpop.f32.mrf.mxu2  ;;  %6241 = vmatpush.bf16.msrb.mxu1 %v11479_v24 }
 0xbf5   :  { %v5430_v43 = vpack.c.bf16 %v5355_v35, %v5355_v35 }
 0xbf7   :  { %v5486_v45 = vunpack.c.l.b16 %v5430_v43  ;;  %v11477_v43 = vld [vmem:[#allocation8 + $0xa40] sm:$0xff] }
 0xbf8   :  { %6242 = vmatpush.bf16.msrb.mxu1 %v11478_v34  ;;  %v11498_v34 = vld [vmem:[#allocation8 + $0xae8] sm:$0xff] }
 0xbfc   :  { %v5357_v60 = vpop.f32.mrf.mxu2  ;;  %6243 = vmatpush.bf16.msrb.mxu1 %v11477_v43  ;;  %v11497_v43 = vld [vmem:[#allocation8 + $0xae0] sm:$0xff] }
 0xbfd   :  { %v5431_v21 = vpack.c.bf16 %v5357_v60, %v5357_v60 }
 0xbff   :  { %v5487_v52 = vunpack.c.l.b16 %v5431_v21 }
 0xc01   :  { %10145 = vmatmul.msk.bf16.gmra.mxu2 %vm1059_vm8, %v12682_v50  ;;  %v5489_v56 = vpack.c.b16 %v5487_v52, %v5486_v45  ;;  %v11492_v45 = vld [vmem:[#allocation8 + $0xab8] sm:$0xff]  ;;  %v11491_v52 = vld [vmem:[#allocation8 + $0xab0] sm:$0xff] }
 0xc02   :  { %6255 = vmatpush.bf16.msrb.mxu3 %v11492_v45 }
 0xc03   :  { %6192 = vmatmul.bf16.gmra.mxu3 %v5489_v56 }
 0xc04   :  { %v5360_v15 = vpop.f32.mrf.mxu2 }
 0xc05   :  { %v5432_v41 = vpack.c.bf16 %v5360_v15, %v5360_v15  ;;  %v11490_v15 = vld [vmem:[#allocation8 + $0xaa8] sm:$0xff] }
 0xc06   :  { %6256 = vmatpush.bf16.msrb.mxu3 %v11491_v52 }
 0xc07   :  { %v5496_v31 = vunpack.c.l.b16 %v5432_v41 }
 0xc0a   :  { %6257 = vmatpush.bf16.msrb.mxu3 %v11490_v15  ;;  %v11495_v15 = vld [vmem:[#allocation8 + $0xad0] sm:$0xff] }
 0xc0c   :  { %v5362_v59 = vpop.f32.mrf.mxu2 }
 0xc0d   :  { %v5433_v10 = vpack.c.bf16 %v5362_v59, %v5362_v59  ;;  %v11489_v59 = vld [vmem:[#allocation8 + $0xaa0] sm:$0xff] }
 0xc0e   :  { %6258 = vmatpush.bf16.msrb.mxu3 %v11489_v59 }
 0xc0f   :  { %v5497_v58 = vunpack.c.l.b16 %v5433_v10 }
 0xc11   :  { %v5500_v2 = vpack.c.b16 %v5497_v58, %v5496_v31  ;;  %10146 = vmatmul.msk.bf16.gmra.mxu2 %vm1059_vm8, %v12689_v33  ;;  %v11488_v31 = vld [vmem:[#allocation8 + $0xa98] sm:$0xff]  ;;  %v11487_v58 = vld [vmem:[#allocation8 + $0xa90] sm:$0xff] }
 0xc12   :  { %6259 = vmatpush.bf16.msrb.mxu3 %v11488_v31 }
 0xc13   :  { %6206 = vmatmul.bf16.vlgmr.msra.gmra.mxu1 %v5500_v2 }
 0xc14   :  { %v5365_v25 = vpop.f32.mrf.mxu2 }
 0xc15   :  { %v5434_v55 = vpack.c.bf16 %v5365_v25, %v5365_v25 }
 0xc16   :  { %6260 = vmatpush.bf16.msrb.mxu3 %v11487_v58  ;;  %v11493_v58 = vld [vmem:[#allocation8 + $0xac0] sm:$0xff] }
 0xc17   :  { %v5498_v19 = vunpack.c.l.b16 %v5434_v55 }
 0xc1a   :  { %6261 = vmatpush.bf16.msrb.mxu3 %v11486_v23 }
 0xc1c   :  { %v5367_v40 = vpop.f32.mrf.mxu2 }
 0xc1d   :  { %v5435_v61 = vpack.c.bf16 %v5367_v40, %v5367_v40 }
 0xc1f   :  { %v5499_v17 = vunpack.c.l.b16 %v5435_v61  ;;  %v11485_v61 = vld [vmem:[#allocation8 + $0xa80] sm:$0xff] }
 0xc20   :  { %6262 = vmatpush.bf16.msrb.mxu3 %v11485_v61  ;;  %v11506_v61 = vld [vmem:[#allocation8 + $0xb28] sm:$0xff] }
 0xc21   :  { %10147 = vmatmul.msk.bf16.gmra.mxu2 %vm1059_vm8, %v12696_v14  ;;  %v5501_v32 = vpack.c.b16 %v5499_v17, %v5498_v19 }
 0xc23   :  { %6211 = vmatmul.bf16.gmra.mxu1 %v5501_v32  ;;  %v11500_v32 = vld [vmem:[#allocation8 + $0xaf8] sm:$0xff] }
 0xc24   :  { %v5370_v46 = vpop.f32.mrf.mxu2  ;;  %6274 = vmatpush.bf16.msra.mxu1 %v11500_v32 }
 0xc25   :  { %v5436_v1 = vpack.c.bf16 %v5370_v46, %v5370_v46 }
 0xc27   :  { %v5508_v51 = vunpack.c.l.b16 %v5436_v1 }
 0xc28   :  { %6275 = vmatpush.bf16.msra.mxu1 %v11499_v9 }
 0xc2c   :  { %v5372_v6 = vpop.f32.mrf.mxu2  ;;  %6276 = vmatpush.bf16.msra.mxu1 %v11498_v34 }
 0xc2d   :  { %v5437_v35 = vpack.c.bf16 %v5372_v6, %v5372_v6 }
 0xc2f   :  { %v5509_v37 = vunpack.c.l.b16 %v5437_v35 }
 0xc30   :  { %6277 = vmatpush.bf16.msra.mxu1 %v11497_v43  ;;  %v11503_v43 = vld [vmem:[#allocation8 + $0xb10] sm:$0xff] }
 0xc31   :  { %v5512_v60 = vpack.c.b16 %v5509_v37, %v5508_v51  ;;  %10148 = vmatmul.msk.bf16.gmra.mxu2 %vm1059_vm8, %v12703_v57 }
 0xc33   :  { %6225 = vmatmul.bf16.vlgmr.msra.gmra.mxu3 %v5512_v60 }
 0xc34   :  { %v5375_v21 = vpop.f32.mrf.mxu2 }
 0xc35   :  { %v5438_v53 = vpack.c.bf16 %v5375_v21, %v5375_v21 }
 0xc36   :  { %v6150_v2 = vpop.f32.mrf.mxu3 }
 0xc37   :  { %v5510_v47 = vunpack.c.l.b16 %v5438_v53 }
 0xc3c   :  { %v5377_v56 = vpop.f32.mrf.mxu2 }
 0xc3d   :  { %v5439_v4 = vpack.c.bf16 %v5377_v56, %v5377_v56  ;;  %v11496_v56 = vld [vmem:[#allocation8 + $0xad8] sm:$0xff] }
 0xc3e   :  { %v12707_v46 = vpop.f32.mrf.mxu3  ;;  %6278 = vmatpush.bf16.msra.mxu1 %v11496_v56 }
 0xc3f   :  { %v5511_v41 = vunpack.c.l.b16 %v5439_v4 }
 0xc41   :  { %v5513_v0 = vpack.c.b16 %v5511_v41, %v5510_v47  ;;  %v11494_v41 = vld [vmem:[#allocation8 + $0xac8] sm:$0xff] }
 0xc42   :  { %6279 = vmatpush.bf16.msra.mxu1 %v11495_v15 }
 0xc43   :  { %6230 = vmatmul.bf16.gmra.mxu3 %v5513_v0 }
 0xc44   :  { %v5380_v10 = vpop.f32.mrf.mxu2 }
 0xc45   :  { %v5440_v48 = vpack.c.bf16 %v5380_v10, %v5380_v10 }
 0xc46   :  { %v6155_v60 = vpop.f32.mrf.mxu3  ;;  %6280 = vmatpush.bf16.msra.mxu1 %v11494_v41 }
 0xc47   :  { %v5520_v55 = vunpack.c.l.b16 %v5440_v48 }
 0xc4a   :  { %6281 = vmatpush.bf16.msra.mxu1 %v11493_v58 }
 0xc4c   :  { %v5382_v25 = vpop.f32.mrf.mxu2 }
 0xc4d   :  { %v5441_v28 = vpack.c.bf16 %v5382_v25, %v5382_v25  ;;  %v11508_v25 = vld [vmem:[#allocation8 + $0xb38] sm:$0xff] }
 0xc4e   :  { %v12711_v0 = vpop.f32.mrf.mxu3  ;;  %6293 = vmatpush.bf16.msra.mxu3 %v11508_v25 }
 0xc4f   :  { %v5521_v40 = vunpack.c.l.b16 %v5441_v28 }
 0xc50   :  { %v6169_v38 = vpop.f32.mrf.mxu1 }
 0xc51   :  { %v5524_v19 = vpack.c.b16 %v5521_v40, %v5520_v55  ;;  %v6170_v17 = vadd.f32 %v6169_v38, %v6150_v2  ;;  %v11507_v55 = vld [vmem:[#allocation8 + $0xb30] sm:$0xff] }
 0xc52   :  { %6294 = vmatpush.bf16.msra.mxu3 %v11507_v55 }
 0xc53   :  { %6244 = vmatmul.bf16.vlgmr.msrb.gmra.mxu1 %v5524_v19 }
 0xc54   :  { %v5385_v29 = vpop.f32.mrf.mxu2 }
 0xc55   :  { %v5442_v1 = vpack.c.bf16 %v5385_v29, %v5385_v29 }
 0xc56   :  { %6295 = vmatpush.bf16.msra.mxu3 %v11506_v61 }
 0xc57   :  { %v5522_v51 = vunpack.c.l.b16 %v5442_v1  ;;  %v11505_v1 = vld [vmem:[#allocation8 + $0xb20] sm:$0xff] }
 0xc58   :  { %v12709_v24 = vpop.f32.mrf.mxu1 }
 0xc5a   :  { %6296 = vmatpush.bf16.msra.mxu3 %v11505_v1 }
 0xc5c   :  { %v5387_v6 = vpop.f32.mrf.mxu2 }
 0xc5d   :  { %v5443_v35 = vpack.c.bf16 %v5387_v6, %v5387_v6 }
 0xc5f   :  { %v5523_v37 = vunpack.c.l.b16 %v5443_v35  ;;  %v11504_v35 = vld [vmem:[#allocation8 + $0xb18] sm:$0xff] }
 0xc60   :  { %v6174_v21 = vpop.f32.mrf.mxu1  ;;  %6297 = vmatpush.bf16.msra.mxu3 %v11504_v35 }
 0xc61   :  { %v6175_v45 = vadd.f32 %v6174_v21, %v6155_v60  ;;  %v5525_v52 = vpack.c.b16 %v5523_v37, %v5522_v51 }
 0xc63   :  { %6249 = vmatmul.bf16.gmra.mxu1 %v5525_v52  ;;  %v11502_v52 = vld [vmem:[#allocation8 + $0xb08] sm:$0xff] }
 0xc64   :  { %v5390_v53 = vpop.f32.mrf.mxu2  ;;  %6298 = vmatpush.bf16.msra.mxu3 %v11503_v43 }
 0xc65   :  { %v5444_v4 = vpack.c.bf16 %v5390_v53, %v5390_v53 }
 0xc67   :  { %v5532_v10 = vunpack.c.l.b16 %v5444_v4 }
 0xc68   :  { %v12717_v37 = vpop.f32.mrf.mxu1  ;;  %6299 = vmatpush.bf16.msra.mxu3 %v11502_v52 }
 0xc69   :  { %v6177_v22 = vadd.f32 %v12717_v37, %v12711_v0 }
 0xc6c   :  { %v5392_v47 = vpop.f32.mrf.mxu2 }
 0xc6d   :  { %v5445_v59 = vpack.c.bf16 %v5392_v47, %v5392_v47  ;;  %v11501_v47 = vld [vmem:[#allocation8 + $0xb00] sm:$0xff] }
 0xc6e   :  { %6300 = vmatpush.bf16.msra.mxu3 %v11501_v47 }
 0xc6f   :  { %v5533_v31 = vunpack.c.l.b16 %v5445_v59 }
 0xc71   :  { %v5536_v48 = vpack.c.b16 %v5533_v31, %v5532_v10 }
 0xc73   :  { %6263 = vmatmul.bf16.vlgmr.msrb.gmra.mxu3 %v5536_v48 }
 0xc74   :  { %v5395_v2 = vpop.f32.mrf.mxu2 }
 0xc75   :  { %v5446_v40 = vpack.c.bf16 %v5395_v2, %v5395_v2 }
 0xc76   :  { %v6188_v23 = vpop.f32.mrf.mxu3 }
 0xc77   :  { %v6189_v28 = vadd.f32 %v6188_v23, %v6170_v17  ;;  %v5534_v32 = vunpack.c.l.b16 %v5446_v40 }
 0xc7c   :  { %v5397_v38 = vpop.f32.mrf.mxu2 }
 0xc7d   :  { %v5447_v19 = vpack.c.bf16 %v5397_v38, %v5397_v38 }
 0xc7e   :  { %v12713_v29 = vpop.f32.mrf.mxu3 }
 0xc7f   :  { %v5535_v9 = vunpack.c.l.b16 %v5447_v19 }
 0xc81   :  { %v5537_v6 = vpack.c.b16 %v5535_v9, %v5534_v32 }
 0xc83   :  { %6268 = vmatmul.bf16.gmra.mxu3 %v5537_v6 }
 0xc84   :  { %v5400_v34 = vpop.f32.mrf.mxu2 }
 0xc85   :  { %v5448_v60 = vpack.c.bf16 %v5400_v34, %v5400_v34 }
 0xc86   :  { %v6193_v51 = vpop.f32.mrf.mxu3 }
 0xc87   :  { %v12715_v17 = vadd.f32 %v6193_v51, %v6175_v45  ;;  %v5544_v56 = vunpack.c.l.b16 %v5448_v60 }
 0xc8c   :  { %v5402_v21 = vpop.f32.mrf.mxu2 }
 0xc8d   :  { %v5449_v53 = vpack.c.bf16 %v5402_v21, %v5402_v21 }
 0xc8e   :  { %v6195_v61 = vpop.f32.mrf.mxu3 }
 0xc8f   :  { %v5545_v15 = vunpack.c.l.b16 %v5449_v53 }
 0xc90   :  { %v6207_v4 = vpop.f32.mrf.mxu1 }
 0xc91   :  { %v5548_v41 = vpack.c.b16 %v5545_v15, %v5544_v56  ;;  %v6208_v59 = vadd.f32 %v6207_v4, %v6189_v28 }
 0xc93   :  { %6282 = vmatmul.bf16.vlgmr.msra.gmra.mxu1 %v5548_v41 }
 0xc94   :  { %v5405_v10 = vpop.f32.mrf.mxu2 }
 0xc95   :  { %v5450_v45 = vpack.c.bf16 %v5405_v10, %v5405_v10 }
 0xc97   :  { %v5546_v48 = vunpack.c.l.b16 %v5450_v45 }
 0xc98   :  { %v6209_v52 = vpop.f32.mrf.mxu1 }
 0xc9c   :  { %v5407_v31 = vpop.f32.mrf.mxu2 }
 0xc9d   :  { %v5451_v58 = vpack.c.bf16 %v5407_v31, %v5407_v31 }
 0xc9f   :  { %v5547_v2 = vunpack.c.l.b16 %v5451_v58 }
 0xca0   :  { %v6212_v53 = vpop.f32.mrf.mxu1 }
 0xca1   :  { %v5549_v25 = vpack.c.b16 %v5547_v2, %v5546_v48 }
 0xca3   :  { %6287 = vmatmul.bf16.gmra.mxu1 %v5549_v25 }
 0xca4   :  { %v5410_v23 = vpop.f32.mrf.mxu2 }
 0xca5   :  { %v5452_v55 = vpack.c.bf16 %v5410_v23, %v5410_v23  ;;  %v6172_v23 = vadd.f32 %v12709_v24, %v12707_v46 }
 0xca7   :  { %v5556_v19 = vunpack.c.l.b16 %v5452_v55  ;;  %v6191_v55 = vadd.f32 %v12713_v29, %v6172_v23  ;;  %v6196_v23 = vadd.f32 %v6195_v61, %v6177_v22 }
 0xca8   :  { %v6214_v15 = vpop.f32.mrf.mxu1 }
 0xcac   :  { %v5412_v40 = vpop.f32.mrf.mxu2 }
 0xcad   :  { %v5453_v38 = vpack.c.bf16 %v5412_v40, %v5412_v40 }
 0xcaf   :  { %v5557_v32 = vunpack.c.l.b16 %v5453_v38 }
 0xcb1   :  { %v5560_v9 = vpack.c.b16 %v5557_v32, %v5556_v19  ;;  %v6210_v19 = vadd.f32 %v6209_v52, %v6191_v55 }
 0xcb3   :  { %6301 = vmatmul.bf16.vlgmr.msra.gmra.mxu3 %v5560_v9 }
 0xcb4   :  { %v5415_v28 = vpop.f32.mrf.mxu2 }
 0xcb5   :  { %v5454_v34 = vpack.c.bf16 %v5415_v28, %v5415_v28  ;;  %v6213_v28 = vadd.f32 %v6212_v53, %v12715_v17 }
 0xcb6   :  { %v6226_v1 = vpop.f32.mrf.mxu3 }
 0xcb7   :  { %v6227_v6 = vadd.f32 %v6226_v1, %v6208_v59  ;;  %v5558_v43 = vunpack.c.l.b16 %v5454_v34 }
 0xcbc   :  { %v5417_v35 = vpop.f32.mrf.mxu2 }
 0xcbd   :  { %v5455_v51 = vpack.c.bf16 %v5417_v35, %v5417_v35 }
 0xcbe   :  { %v6228_v56 = vpop.f32.mrf.mxu3 }
 0xcbf   :  { %v5559_v60 = vunpack.c.l.b16 %v5455_v51  ;;  %v6229_v32 = vadd.f32 %v6228_v56, %v6210_v19 }
 0xcc1   :  { %v5561_v21 = vpack.c.b16 %v5559_v60, %v5558_v43 }
 0xcc3   :  { %6306 = vmatmul.bf16.gmra.mxu3 %v5561_v21 }
 0xcc6   :  { %v6231_v4 = vpop.f32.mrf.mxu3 }
 0xcc7   :  { %v6232_v51 = vadd.f32 %v6231_v4, %v6213_v28 }
 0xcce   :  { %v6233_v41 = vpop.f32.mrf.mxu3 }
 0xcd0   :  { %v6245_v47 = vpop.f32.mrf.mxu1 }
 0xcd1   :  { %v6246_v1 = vadd.f32 %v6245_v47, %v6227_v6 }
 0xcd8   :  { %v6247_v10 = vpop.f32.mrf.mxu1 }
 0xcd9   :  { %v6248_v9 = vadd.f32 %v6247_v10, %v6229_v32  ;;  %v6215_v10 = vadd.f32 %v6214_v15, %v6196_v23 }
 0xcdb   :  { %v6234_v53 = vadd.f32 %v6233_v41, %v6215_v10 }
 0xce0   :  { %v6250_v31 = vpop.f32.mrf.mxu1 }
 0xce1   :  { %v6251_v46 = vadd.f32 %v6250_v31, %v6232_v51 }
 0xce8   :  { %v6252_v48 = vpop.f32.mrf.mxu1 }
 0xcf6   :  { %v6264_v45 = vpop.f32.mrf.mxu3 }
 0xcf7   :  { %v6265_v43 = vadd.f32 %v6264_v45, %v6246_v1 }
 0xcfe   :  { %v6266_v58 = vpop.f32.mrf.mxu3 }
 0xcff   :  { %v6267_v34 = vadd.f32 %v6266_v58, %v6248_v9  ;;  %v6253_v58 = vadd.f32 %v6252_v48, %v6234_v53 }
 0xd06   :  { %v6269_v59 = vpop.f32.mrf.mxu3 }
 0xd07   :  { %v6270_v52 = vadd.f32 %v6269_v59, %v6251_v46 }
 0xd0e   :  { %v6271_v25 = vpop.f32.mrf.mxu3 }
 0xd10   :  { %v6283_v2 = vpop.f32.mrf.mxu1 }
 0xd11   :  { %v6284_v24 = vadd.f32 %v6283_v2, %v6265_v43 }
 0xd18   :  { %v6285_v40 = vpop.f32.mrf.mxu1 }
 0xd19   :  { %v6286_v60 = vadd.f32 %v6285_v40, %v6267_v34  ;;  %v6272_v40 = vadd.f32 %v6271_v25, %v6253_v58  ;;  %v6312_v58 = vld [vmem:[#allocation10 + $0x4] sm:$0x1] }
 0xd20   :  { %v6288_v21 = vpop.f32.mrf.mxu1 }
 0xd21   :  { %v6289_v55 = vadd.f32 %v6288_v21, %v6270_v52 }
 0xd28   :  { %v6290_v2 = vpop.f32.mrf.mxu1 }
 0xd29   :  { %v6291_v61 = vadd.f32 %v6290_v2, %v6272_v40  ;;  %v6313_v2 = vld [vmem:[#allocation11 + $0x4] sm:$0x1] }
 0xd36   :  { %v6302_v38 = vpop.f32.mrf.mxu3 }
 0xd37   :  { %v6303_v56 = vadd.f32 %v6302_v38, %v6284_v24 }
 0xd39   :  { %v6323_v4 = vmul.f32 %v6303_v56, %v6303_v56 }
 0xd3e   :  { %v6304_v35 = vpop.f32.mrf.mxu3 }
 0xd3f   :  { %v12725_v29 = vadd.f32 %v6304_v35, %v6286_v60 }
 0xd41   :  { %v6324_v17 = vmul.f32 %v12725_v29, %v12725_v29  ;;  %v6314_v47 = vadd.f32 %v12725_v29, %v6303_v56 }
 0xd43   :  { %v6327_v0 = vadd.f32 %v6324_v17, %v6323_v4 }
 0xd46   :  { %v6307_v6 = vpop.f32.mrf.mxu3 }
 0xd47   :  { %v6308_v45 = vadd.f32 %v6307_v6, %v6289_v55 }
 0xd49   :  { %v6315_v37 = vadd.f32 %v6314_v47, %v6308_v45  ;;  %v6325_v31 = vmul.f32 %v6308_v45, %v6308_v45 }
 0xd4b   :  { %v6328_v22 = vadd.f32 %v6327_v0, %v6325_v31 }
 0xd4e   :  { %v6309_v59 = vpop.f32.mrf.mxu3 }
 0xd4f   :  { %v6310_v15 = vadd.f32 %v6309_v59, %v6291_v61 }
 0xd51   :  { %v6316_v38 = vadd.f32 %v6315_v37, %v6310_v15  ;;  %v6326_v19 = vmul.f32 %v6310_v15, %v6310_v15 }
 0xd53   :  { %v6317_v32 = vrot.slane %v6316_v38, 4  ;;  %v6329_v9 = vadd.f32 %v6328_v22, %v6326_v19 }
 0xd55   :  { %v6318_v28 = vadd.f32 %v6317_v32, %v6316_v38  ;;  %v6330_v41 = vrot.slane %v6329_v9, 4 }
 0xd57   :  { %v6319_v1 = vrot.slane %v6318_v28, 2  ;;  %v6331_v34 = vadd.f32 %v6330_v41, %v6329_v9 }
 0xd59   :  { %v6320_v35 = vadd.f32 %v6319_v1, %v6318_v28  ;;  %v6332_v51 = vrot.slane %v6331_v34, 2 }
 0xd5b   :  { %v6321_v48 = vrot.slane %v6320_v35, 1  ;;  %v6333_v43 = vadd.f32 %v6332_v51, %v6331_v34 }
 0xd5d   :  { %v6322_v60 = vadd.f32 %v6321_v48, %v6320_v35  ;;  %v6334_v21 = vrot.slane %v6333_v43, 1 }
 0xd5f   :  { %v6335_v46 = vadd.f32 %v6334_v21, %v6333_v43  ;;  %v6336_v25 = vmul.f32 0.03125, %v6322_v60  ;;  %v11524_v43 = vld [vmem:[#allocation8 + $0xbb8] sm:$0xff]  ;;  %v11522_v60 = vld [vmem:[#allocation8 + $0xba8] sm:$0xff]  ;;  %v11521_v21 = vld [vmem:[#allocation8 + $0xba0] sm:$0xff] }
 0xd60   :  { %7214 = vmatpush.bf16.msrb.mxu3 %v11524_v43  ;;  %v11536_v43 = vld [vmem:[#allocation8 + $0xc18] sm:$0xff] }
 0xd61   :  { %v6337_v24 = vmul.f32 0.03125, %v6335_v46  ;;  %v6338_v23 = vmul.f32 %v6336_v25, %v6336_v25 }
 0xd63   :  { %v6339_v52 = vsub.f32 %v6337_v24, %v6338_v23 }
 0xd65   :  { %v6340_v10 = vmax.f32 %v6339_v52, 0.0  ;;  %v11518_v52 = vld [vmem:[#allocation8 + $0xb88] sm:$0xff] }
 0xd67   :  { %v6341_v55 = vadd.f32 1e-05, %v6340_v10 }
 0xd69   :  { %11676 = vrsqrt.f32 %v6341_v55  ;;  %vm6348_vm6 = vweird.f32 %v6341_v55 }
 0xd6f   :  { %v11677_v17 = vpop.eup %11676 }
 0xd70   :  { %v6343_v6 = vmul.f32 %v11677_v17, %v6341_v55  ;;  %vm6349_vm5 = vweird.f32 %v11677_v17 }
 0xd71   :  { %vm6350_vm7 = vmor %vm6348_vm6, %vm6349_vm5 }
 0xd72   :  { %v6344_v53 = vmul.f32 %v11677_v17, %v6343_v6 }
 0xd74   :  { %v6345_v4 = vmul.f32 0.5, %v6344_v53 }
 0xd76   :  { %v6346_v47 = vsub.f32 1.5, %v6345_v4  ;;  %v11532_v4 = vld [vmem:[#allocation8 + $0xbf8] sm:$0xff] }
 0xd78   :  { %v6347_v0 = vmul.f32 %v11677_v17, %v6346_v47 }
 0xd7a   :  { %v6351_v37 = vsel %vm6350_vm7, %v11677_v17, %v6347_v0  ;;  %v11517_v17 = vld [vmem:[#allocation8 + $0xb80] sm:$0xff]  ;;  %v11530_v0 = vld [vmem:[#allocation8 + $0xbe8] sm:$0xff] }
 0xd7b   :  { %v6352_v31 = vmul.f32 %v6351_v37, %v6312_v58 }
 0xd7d   :  { %v6353_v40 = vmul.f32 %v6352_v31, %v6336_v25  ;;  %v6355_v22 = vperm.slane %v6352_v31, 0  ;;  %v11520_v25 = vld [vmem:[#allocation8 + $0xb98] sm:$0xff] }
 0xd7f   :  { %v6354_v61 = vsub.f32 %v6313_v2, %v6353_v40  ;;  %v6358_v59 = vmul.f32 %v6355_v22, %v6308_v45  ;;  %v6356_v38 = vmul.f32 %v6355_v22, %v6303_v56  ;;  %v6359_v19 = vmul.f32 %v6355_v22, %v6310_v15  ;;  %v11529_v40 = vld [vmem:[#allocation8 + $0xbe0] sm:$0xff] }
 0xd80   :  { %v6357_v9 = vmul.f32 %v6355_v22, %v12725_v29  ;;  %v12947_v56 = vmax.f32 %v12510_v18, 0.0  ;;  %v11516_v18 = vld [vmem:[#allocation8 + $0xb78] sm:$0xff] }
 0xd81   :  { %v6360_v32 = vperm.slane %v6354_v61, 0  ;;  %7195 = vmatpush.bf16.msrb.mxu1 %v11516_v18 }
 0xd83   :  { %v6364_v28 = vadd.f32 %v6360_v32, %v6359_v19  ;;  %v6363_v41 = vadd.f32 %v6360_v32, %v6358_v59  ;;  %v6361_v1 = vadd.f32 %v6360_v32, %v6356_v38  ;;  %v6362_v34 = vadd.f32 %v6360_v32, %v6357_v9  ;;  %v11528_v59 = vld [vmem:[#allocation8 + $0xbd8] sm:$0xff]  ;;  %v11526_v32 = vld [vmem:[#allocation8 + $0xbc8] sm:$0xff] }
 0xd85   :  { %v12733_v35 = vadd.f32 %v6363_v41, %v4267_v30  ;;  %v12737_v51 = vadd.f32 %v6364_v28, %v4268_v3  ;;  %v12741_v45 = vadd.f32 %v6361_v1, %v4265_v5  ;;  %v12745_v15 = vadd.f32 %v6362_v34, %v12947_v56  ;;  %v11515_v3 = vld [vmem:[#allocation8 + $0xb70] sm:$0xff]  ;;  %v11514_v5 = vld [vmem:[#allocation8 + $0xb68] sm:$0xff]  ;;  %v11525_v1 = vld [vmem:[#allocation8 + $0xbc0] sm:$0xff] }
 0xd86   :  { %7196 = vmatpush.bf16.msrb.mxu1 %v11515_v3  ;;  %v11538_v3 = vld [vmem:[#allocation8 + $0xc28] sm:$0xff] }
 0xd87   :  { %v6371_v29 = vmax.f32 %v12733_v35, 0.0  ;;  %v6372_v48 = vmax.f32 %v12737_v51, 0.0  ;;  %v6369_v62 = vmax.f32 %v12741_v45, 0.0  ;;  %v6370_v30 = vmax.f32 %v12745_v15, 0.0 }
 0xd89   :  { %v6374_v11 = vpack.c.bf16 %v6372_v48, %v6371_v29  ;;  %v6373_v16 = vpack.c.bf16 %v6370_v30, %v6369_v62 }
 0xd8a   :  { %7197 = vmatpush.bf16.msrb.mxu1 %v11514_v5 }
 0xd8b   :  { %6381 = vmatpush.bf16.msrb.mxu0 %v6374_v11  ;;  %v11540_v11 = vld [vmem:[#allocation8 + $0xc38] sm:$0xff] }
 0xd8f   :  { %6382 = vmatpush.bf16.msrb.mxu0 %v6373_v16 }
 0xd92   :  { %10437 = vmatmul.msk.bf16.vlgmr.msrb.gmra.mxu0 %vm1059_vm8, %v12584_v44  ;;  %v11513_v44 = vld [vmem:[#allocation8 + $0xb60] sm:$0xff] }
 0xd93   :  { %7198 = vmatpush.bf16.msrb.mxu1 %v11513_v44 }
 0xda2   :  { %10438 = vmatmul.msk.bf16.gmra.mxu0 %vm1059_vm8, %v12591_v36  ;;  %v11512_v36 = vld [vmem:[#allocation8 + $0xb58] sm:$0xff] }
 0xda3   :  { %7199 = vmatpush.bf16.msrb.mxu1 %v11512_v36 }
 0xdb2   :  { %10439 = vmatmul.msk.bf16.gmra.mxu0 %vm1059_vm8, %v12598_v13  ;;  %v11511_v13 = vld [vmem:[#allocation8 + $0xb50] sm:$0xff] }
 0xdb3   :  { %7200 = vmatpush.bf16.msrb.mxu1 %v11511_v13  ;;  %v11537_v13 = vld [vmem:[#allocation8 + $0xc20] sm:$0xff] }
 0xdc2   :  { %10440 = vmatmul.msk.bf16.gmra.mxu0 %vm1059_vm8, %v12605_v49  ;;  %v11510_v49 = vld [vmem:[#allocation8 + $0xb48] sm:$0xff] }
 0xdc3   :  { %7201 = vmatpush.bf16.msrb.mxu1 %v11510_v49 }
 0xdd2   :  { %10441 = vmatmul.msk.bf16.gmra.mxu0 %vm1059_vm8, %v12612_v12  ;;  %v11509_v12 = vld [vmem:[#allocation8 + $0xb40] sm:$0xff] }
 0xdd3   :  { %7202 = vmatpush.bf16.msrb.mxu1 %v11509_v12 }
 0xdd7   :  { %7233 = vmatpush.bf16.msra.mxu1 %v11532_v4 }
 0xde2   :  { %10442 = vmatmul.msk.bf16.gmra.mxu0 %vm1059_vm8, %v12619_v54  ;;  %v11523_v54 = vld [vmem:[#allocation8 + $0xbb0] sm:$0xff] }
 0xde3   :  { %7215 = vmatpush.bf16.msrb.mxu3 %v11523_v54 }
 0xde7   :  { %7216 = vmatpush.bf16.msrb.mxu3 %v11522_v60 }
 0xdeb   :  { %7217 = vmatpush.bf16.msrb.mxu3 %v11521_v21  ;;  %v11534_v21 = vld [vmem:[#allocation8 + $0xc08] sm:$0xff] }
 0xdef   :  { %7218 = vmatpush.bf16.msrb.mxu3 %v11520_v25 }
 0xdf2   :  { %10443 = vmatmul.msk.bf16.gmra.mxu0 %vm1059_vm8, %v12626_v7  ;;  %v11519_v7 = vld [vmem:[#allocation8 + $0xb90] sm:$0xff] }
 0xdf3   :  { %7219 = vmatpush.bf16.msrb.mxu3 %v11519_v7 }
 0xdf7   :  { %7220 = vmatpush.bf16.msrb.mxu3 %v11518_v52 }
 0xdfb   :  { %7221 = vmatpush.bf16.msrb.mxu3 %v11517_v17  ;;  %v11546_v17 = vld [vmem:[#allocation8 + $0xc68] sm:$0xff] }
 0xdff   :  { %7252 = vmatpush.bf16.msra.mxu3 %v11540_v11 }
 0xe02   :  { %10444 = vmatmul.msk.bf16.gmra.mxu0 %vm1059_vm8, %v12633_v26 }
 0xe0f   :  { %v6384_v46 = vpop.f32.mrf.mxu0 }
 0xe10   :  { %v6474_v24 = vpack.c.bf16 %v6384_v46, %v6384_v46 }
 0xe12   :  { %10445 = vmatmul.msk.bf16.gmra.mxu0 %vm1059_vm8, %v12640_v8  ;;  %v6514_v26 = vunpack.c.l.b16 %v6474_v24  ;;  %v11531_v8 = vld [vmem:[#allocation8 + $0xbf0] sm:$0xff]  ;;  %v11533_v24 = vld [vmem:[#allocation8 + $0xc00] sm:$0xff] }
 0xe13   :  { %7234 = vmatpush.bf16.msra.mxu1 %v11531_v8  ;;  %v11545_v8 = vld [vmem:[#allocation8 + $0xc60] sm:$0xff] }
 0xe17   :  { %v6386_v23 = vpop.f32.mrf.mxu0  ;;  %7235 = vmatpush.bf16.msra.mxu1 %v11530_v0  ;;  %v11544_v0 = vld [vmem:[#allocation8 + $0xc58] sm:$0xff] }
 0xe18   :  { %v6475_v10 = vpack.c.bf16 %v6386_v23, %v6386_v23 }
 0xe1a   :  { %v6515_v55 = vunpack.c.l.b16 %v6475_v10  ;;  %v11548_v10 = vld [vmem:[#allocation8 + $0xc78] sm:$0xff] }
 0xe1b   :  { %7236 = vmatpush.bf16.msra.mxu1 %v11529_v40 }
 0xe1c   :  { %v6518_v6 = vpack.c.b16 %v6515_v55, %v6514_v26 }
 0xe1e   :  { %7203 = vmatmul.bf16.vlgmr.msrb.gmra.mxu1 %v6518_v6 }
 0xe1f   :  { %v6389_v53 = vpop.f32.mrf.mxu0  ;;  %7237 = vmatpush.bf16.msra.mxu1 %v11528_v59  ;;  %v11541_v59 = vld [vmem:[#allocation8 + $0xc40] sm:$0xff] }
 0xe20   :  { %v6476_v47 = vpack.c.bf16 %v6389_v53, %v6389_v53 }
 0xe22   :  { %10446 = vmatmul.msk.bf16.gmra.mxu0 %vm1059_vm8, %v12647_v20  ;;  %v6516_v31 = vunpack.c.l.b16 %v6476_v47  ;;  %v11527_v20 = vld [vmem:[#allocation8 + $0xbd0] sm:$0xff] }
 0xe23   :  { %7238 = vmatpush.bf16.msra.mxu1 %v11527_v20 }
 0xe27   :  { %v6391_v58 = vpop.f32.mrf.mxu0  ;;  %7239 = vmatpush.bf16.msra.mxu1 %v11526_v32 }
 0xe28   :  { %v6477_v37 = vpack.c.bf16 %v6391_v58, %v6391_v58 }
 0xe2a   :  { %v6517_v2 = vunpack.c.l.b16 %v6477_v37 }
 0xe2b   :  { %7240 = vmatpush.bf16.msra.mxu1 %v11525_v1 }
 0xe2c   :  { %v6519_v22 = vpack.c.b16 %v6517_v2, %v6516_v31  ;;  %v11542_v2 = vld [vmem:[#allocation8 + $0xc48] sm:$0xff] }
 0xe2e   :  { %7208 = vmatmul.bf16.gmra.mxu1 %v6519_v22 }
 0xe2f   :  { %v6394_v61 = vpop.f32.mrf.mxu0  ;;  %7271 = vmatpush.bf16.msrb.mxu1 %v11548_v10  ;;  %v11560_v10 = vld [vmem:[#allocation8 + $0xcd8] sm:$0xff] }
 0xe30   :  { %v6478_v38 = vpack.c.bf16 %v6394_v61, %v6394_v61 }
 0xe32   :  { %10447 = vmatmul.msk.bf16.gmra.mxu0 %vm1059_vm8, %v12654_v63  ;;  %v6526_v28 = vunpack.c.l.b16 %v6478_v38  ;;  %v11539_v63 = vld [vmem:[#allocation8 + $0xc30] sm:$0xff] }
 0xe33   :  { %7253 = vmatpush.bf16.msra.mxu3 %v11539_v63 }
 0xe37   :  { %v6396_v19 = vpop.f32.mrf.mxu0  ;;  %7254 = vmatpush.bf16.msra.mxu3 %v11538_v3 }
 0xe38   :  { %v6479_v9 = vpack.c.bf16 %v6396_v19, %v6396_v19  ;;  %v11556_v19 = vld [vmem:[#allocation8 + $0xcb8] sm:$0xff] }
 0xe3a   :  { %v6527_v41 = vunpack.c.l.b16 %v6479_v9 }
 0xe3b   :  { %7255 = vmatpush.bf16.msra.mxu3 %v11537_v13 }
 0xe3c   :  { %v6530_v34 = vpack.c.b16 %v6527_v41, %v6526_v28  ;;  %v11554_v28 = vld [vmem:[#allocation8 + $0xca8] sm:$0xff] }
 0xe3e   :  { %7222 = vmatmul.bf16.vlgmr.msrb.gmra.mxu3 %v6530_v34 }
 0xe3f   :  { %v6399_v56 = vpop.f32.mrf.mxu0  ;;  %7256 = vmatpush.bf16.msra.mxu3 %v11536_v43 }
 0xe40   :  { %v6480_v16 = vpack.c.bf16 %v6399_v56, %v6399_v56  ;;  %v11553_v56 = vld [vmem:[#allocation8 + $0xca0] sm:$0xff] }
 0xe42   :  { %10448 = vmatmul.msk.bf16.gmra.mxu0 %vm1059_vm8, %v12661_v42  ;;  %v6528_v44 = vunpack.c.l.b16 %v6480_v16  ;;  %v11535_v42 = vld [vmem:[#allocation8 + $0xc10] sm:$0xff]  ;;  %v11552_v16 = vld [vmem:[#allocation8 + $0xc98] sm:$0xff] }
 0xe43   :  { %7257 = vmatpush.bf16.msra.mxu3 %v11535_v42  ;;  %v11564_v42 = vld [vmem:[#allocation8 + $0xcf8] sm:$0xff] }
 0xe47   :  { %v6401_v18 = vpop.f32.mrf.mxu0  ;;  %7258 = vmatpush.bf16.msra.mxu3 %v11534_v21  ;;  %v11562_v21 = vld [vmem:[#allocation8 + $0xce8] sm:$0xff] }
 0xe48   :  { %v6481_v5 = vpack.c.bf16 %v6401_v18, %v6401_v18 }
 0xe4a   :  { %v6529_v36 = vunpack.c.l.b16 %v6481_v5  ;;  %v11550_v5 = vld [vmem:[#allocation8 + $0xc88] sm:$0xff] }
 0xe4b   :  { %7259 = vmatpush.bf16.msra.mxu3 %v11533_v24  ;;  %v11561_v24 = vld [vmem:[#allocation8 + $0xce0] sm:$0xff] }
 0xe4c   :  { %v6531_v49 = vpack.c.b16 %v6529_v36, %v6528_v44 }
 0xe4e   :  { %7227 = vmatmul.bf16.gmra.mxu3 %v6531_v49  ;;  %v11549_v49 = vld [vmem:[#allocation8 + $0xc80] sm:$0xff] }
 0xe4f   :  { %v6404_v12 = vpop.f32.mrf.mxu0  ;;  %7290 = vmatpush.bf16.msrb.mxu3 %v11556_v19 }
 0xe50   :  { %v6482_v54 = vpack.c.bf16 %v6404_v12, %v6404_v12 }
 0xe52   :  { %10449 = vmatmul.msk.bf16.gmra.mxu0 %vm1059_vm8, %v12668_v27  ;;  %v6538_v25 = vunpack.c.l.b16 %v6482_v54  ;;  %v11547_v27 = vld [vmem:[#allocation8 + $0xc70] sm:$0xff] }
 0xe53   :  { %7272 = vmatpush.bf16.msrb.mxu1 %v11547_v27  ;;  %v11559_v27 = vld [vmem:[#allocation8 + $0xcd0] sm:$0xff] }
 0xe57   :  { %v6406_v60 = vpop.f32.mrf.mxu0  ;;  %7273 = vmatpush.bf16.msrb.mxu1 %v11546_v17  ;;  %v11558_v17 = vld [vmem:[#allocation8 + $0xcc8] sm:$0xff] }
 0xe58   :  { %v6483_v46 = vpack.c.bf16 %v6406_v60, %v6406_v60 }
 0xe5a   :  { %v6539_v7 = vunpack.c.l.b16 %v6483_v46 }
 0xe5b   :  { %7274 = vmatpush.bf16.msrb.mxu1 %v11545_v8  ;;  %v11557_v8 = vld [vmem:[#allocation8 + $0xcc0] sm:$0xff] }
 0xe5c   :  { %v6542_v23 = vpack.c.b16 %v6539_v7, %v6538_v25 }
 0xe5e   :  { %7241 = vmatmul.bf16.vlgmr.msra.gmra.mxu1 %v6542_v23 }
 0xe5f   :  { %v6409_v52 = vpop.f32.mrf.mxu0  ;;  %7275 = vmatpush.bf16.msrb.mxu1 %v11544_v0 }
 0xe60   :  { %v6484_v26 = vpack.c.bf16 %v6409_v52, %v6409_v52 }
 0xe62   :  { %10450 = vmatmul.msk.bf16.gmra.mxu0 %vm1059_vm8, %v12675_v39  ;;  %v6540_v53 = vunpack.c.l.b16 %v6484_v26  ;;  %v11543_v39 = vld [vmem:[#allocation8 + $0xc50] sm:$0xff] }
 0xe63   :  { %7276 = vmatpush.bf16.msrb.mxu1 %v11543_v39  ;;  %v11572_v39 = vld [vmem:[#allocation8 + $0xd38] sm:$0xff] }
 0xe67   :  { %v6411_v55 = vpop.f32.mrf.mxu0  ;;  %7277 = vmatpush.bf16.msrb.mxu1 %v11542_v2  ;;  %v11571_v2 = vld [vmem:[#allocation8 + $0xd30] sm:$0xff] }
 0xe68   :  { %v6485_v6 = vpack.c.bf16 %v6411_v55, %v6411_v55 }
 0xe6a   :  { %v6541_v4 = vunpack.c.l.b16 %v6485_v6 }
 0xe6b   :  { %7278 = vmatpush.bf16.msrb.mxu1 %v11541_v59 }
 0xe6c   :  { %v6543_v47 = vpack.c.b16 %v6541_v4, %v6540_v53 }
 0xe6e   :  { %7246 = vmatmul.bf16.gmra.mxu1 %v6543_v47 }
 0xe6f   :  { %v6414_v58 = vpop.f32.mrf.mxu0  ;;  %7309 = vmatpush.bf16.msra.mxu1 %v11564_v42  ;;  %v11579_v42 = vld [vmem:[#allocation8 + $0xd70] sm:$0xff] }
 0xe70   :  { %v6486_v37 = vpack.c.bf16 %v6414_v58, %v6414_v58 }
 0xe72   :  { %10451 = vmatmul.msk.bf16.gmra.mxu0 %vm1059_vm8, %v12682_v50  ;;  %v6550_v22 = vunpack.c.l.b16 %v6486_v37  ;;  %v11555_v50 = vld [vmem:[#allocation8 + $0xcb0] sm:$0xff] }
 0xe73   :  { %7291 = vmatpush.bf16.msrb.mxu3 %v11555_v50 }
 0xe77   :  { %v6416_v31 = vpop.f32.mrf.mxu0  ;;  %7292 = vmatpush.bf16.msrb.mxu3 %v11554_v28 }
 0xe78   :  { %v6487_v40 = vpack.c.bf16 %v6416_v31, %v6416_v31 }
 0xe7a   :  { %v6551_v61 = vunpack.c.l.b16 %v6487_v40 }
 0xe7b   :  { %7293 = vmatpush.bf16.msrb.mxu3 %v11553_v56 }
 0xe7c   :  { %v6554_v20 = vpack.c.b16 %v6551_v61, %v6550_v22  ;;  %v11570_v61 = vld [vmem:[#allocation8 + $0xd28] sm:$0xff] }
 0xe7e   :  { %7260 = vmatmul.bf16.vlgmr.msra.gmra.mxu3 %v6554_v20 }
 0xe7f   :  { %v6419_v38 = vpop.f32.mrf.mxu0  ;;  %7294 = vmatpush.bf16.msrb.mxu3 %v11552_v16 }
 0xe80   :  { %v6488_v32 = vpack.c.bf16 %v6419_v38, %v6419_v38 }
 0xe82   :  { %10452 = vmatmul.msk.bf16.gmra.mxu0 %vm1059_vm8, %v12689_v33  ;;  %v6552_v1 = vunpack.c.l.b16 %v6488_v32  ;;  %v11551_v33 = vld [vmem:[#allocation8 + $0xc90] sm:$0xff]  ;;  %v11569_v32 = vld [vmem:[#allocation8 + $0xd20] sm:$0xff] }
 0xe83   :  { %7295 = vmatpush.bf16.msrb.mxu3 %v11551_v33  ;;  %v11566_v33 = vld [vmem:[#allocation8 + $0xd08] sm:$0xff] }
 0xe87   :  { %v6421_v9 = vpop.f32.mrf.mxu0  ;;  %7296 = vmatpush.bf16.msrb.mxu3 %v11550_v5 }
 0xe88   :  { %v6489_v41 = vpack.c.bf16 %v6421_v9, %v6421_v9 }
 0xe8a   :  { %v6553_v34 = vunpack.c.l.b16 %v6489_v41  ;;  %v11568_v41 = vld [vmem:[#allocation8 + $0xd18] sm:$0xff] }
 0xe8b   :  { %7297 = vmatpush.bf16.msrb.mxu3 %v11549_v49 }
 0xe8c   :  { %v6555_v11 = vpack.c.b16 %v6553_v34, %v6552_v1 }
 0xe8e   :  { %7265 = vmatmul.bf16.gmra.mxu3 %v6555_v11  ;;  %v11567_v11 = vld [vmem:[#allocation8 + $0xd10] sm:$0xff] }
 0xe8f   :  { %v6424_v63 = vpop.f32.mrf.mxu0  ;;  %7328 = vmatpush.bf16.msra.mxu3 %v11572_v39 }
 0xe90   :  { %v6490_v18 = vpack.c.bf16 %v6424_v63, %v6424_v63 }
 0xe92   :  { %10453 = vmatmul.msk.bf16.gmra.mxu0 %vm1059_vm8, %v12696_v14  ;;  %v6562_v36 = vunpack.c.l.b16 %v6490_v18  ;;  %v11563_v14 = vld [vmem:[#allocation8 + $0xcf0] sm:$0xff] }
 0xe93   :  { %7310 = vmatpush.bf16.msra.mxu1 %v11563_v14  ;;  %7329 = vmatpush.bf16.msra.mxu3 %v11571_v2 }
 0xe97   :  { %v6426_v3 = vpop.f32.mrf.mxu0  ;;  %7311 = vmatpush.bf16.msra.mxu1 %v11562_v21  ;;  %7330 = vmatpush.bf16.msra.mxu3 %v11570_v61  ;;  %v11578_v21 = vld [vmem:[#allocation8 + $0xd68] sm:$0xff] }
 0xe98   :  { %v6491_v44 = vpack.c.bf16 %v6426_v3, %v6426_v3 }
 0xe9a   :  { %v6563_v13 = vunpack.c.l.b16 %v6491_v44 }
 0xe9b   :  { %7312 = vmatpush.bf16.msra.mxu1 %v11561_v24  ;;  %v7204_v26 = vpop.f32.mrf.mxu1  ;;  %7331 = vmatpush.bf16.msra.mxu3 %v11569_v32 }
 0xe9c   :  { %v6566_v12 = vpack.c.b16 %v6563_v13, %v6562_v36  ;;  %v11565_v36 = vld [vmem:[#allocation8 + $0xd00] sm:$0xff] }
 0xe9e   :  { %7279 = vmatmul.bf16.vlgmr.msrb.gmra.mxu1 %v6566_v12 }
 0xe9f   :  { %v6429_v43 = vpop.f32.mrf.mxu0  ;;  %7313 = vmatpush.bf16.msra.mxu1 %v11560_v10  ;;  %7332 = vmatpush.bf16.msra.mxu3 %v11568_v41 }
 0xea0   :  { %v6492_v54 = vpack.c.bf16 %v6429_v43, %v6429_v43  ;;  %v11580_v43 = vld [vmem:[#allocation8 + $0xd78] sm:$0xff] }
 0xea2   :  { %10454 = vmatmul.msk.bf16.gmra.mxu0 %vm1059_vm8, %v12703_v57  ;;  %v6564_v25 = vunpack.c.l.b16 %v6492_v54 }
 0xea3   :  { %7314 = vmatpush.bf16.msra.mxu1 %v11559_v27  ;;  %v12795_v58 = vpop.f32.mrf.mxu1  ;;  %7333 = vmatpush.bf16.msra.mxu3 %v11567_v11 }
 0xea7   :  { %v6431_v60 = vpop.f32.mrf.mxu0  ;;  %7315 = vmatpush.bf16.msra.mxu1 %v11558_v17  ;;  %7334 = vmatpush.bf16.msra.mxu3 %v11566_v33 }
 0xea8   :  { %v6493_v46 = vpack.c.bf16 %v6431_v60, %v6431_v60 }
 0xeaa   :  { %v6565_v7 = vunpack.c.l.b16 %v6493_v46 }
 0xeab   :  { %7316 = vmatpush.bf16.msra.mxu1 %v11557_v8  ;;  %v7209_v20 = vpop.f32.mrf.mxu1  ;;  %7335 = vmatpush.bf16.msra.mxu3 %v11565_v36 }
 0xeac   :  { %v6567_v23 = vpack.c.b16 %v6565_v7, %v6564_v25 }
 0xeae   :  { %7284 = vmatmul.bf16.gmra.mxu1 %v6567_v23  ;;  %v11577_v23 = vld [vmem:[#allocation8 + $0xd60] sm:$0xff] }
 0xeaf   :  { %v6434_v52 = vpop.f32.mrf.mxu0  ;;  %7347 = vmatpush.bf16.msrb.mxu1 %v11580_v43 }
 0xeb0   :  { %v6494_v57 = vpack.c.bf16 %v6434_v52, %v6434_v52 }
 0xeb2   :  { %v6574_v53 = vunpack.c.l.b16 %v6494_v57  ;;  %v11575_v57 = vld [vmem:[#allocation8 + $0xd50] sm:$0xff] }
 0xeb3   :  { %v12799_v56 = vpop.f32.mrf.mxu1  ;;  %7348 = vmatpush.bf16.msrb.mxu1 %v11579_v42 }
 0xeb7   :  { %v6436_v55 = vpop.f32.mrf.mxu0  ;;  %7349 = vmatpush.bf16.msrb.mxu1 %v11578_v21 }
 0xeb8   :  { %v6495_v6 = vpack.c.bf16 %v6436_v55, %v6436_v55 }
 0xeba   :  { %v6575_v4 = vunpack.c.l.b16 %v6495_v6  ;;  %v11574_v6 = vld [vmem:[#allocation8 + $0xd48] sm:$0xff] }
 0xebb   :  { %7350 = vmatpush.bf16.msrb.mxu1 %v11577_v23 }
 0xebc   :  { %v6578_v47 = vpack.c.b16 %v6575_v4, %v6574_v53 }
 0xebe   :  { %7298 = vmatmul.bf16.vlgmr.msrb.gmra.mxu3 %v6578_v47 }
 0xebf   :  { %v6439_v0 = vpop.f32.mrf.mxu0 }
 0xec0   :  { %v6496_v40 = vpack.c.bf16 %v6439_v0, %v6439_v0  ;;  %v11573_v0 = vld [vmem:[#allocation8 + $0xd40] sm:$0xff] }
 0xec1   :  { %v7223_v37 = vpop.f32.mrf.mxu3 }
 0xec2   :  { %v7224_v31 = vadd.f32 %v7223_v37, %v7204_v26  ;;  %v6576_v19 = vunpack.c.l.b16 %v6496_v40  ;;  %v11576_v26 = vld [vmem:[#allocation8 + $0xd58] sm:$0xff] }
 0xec3   :  { %7351 = vmatpush.bf16.msrb.mxu1 %v11576_v26 }
 0xec7   :  { %v6441_v22 = vpop.f32.mrf.mxu0  ;;  %7352 = vmatpush.bf16.msrb.mxu1 %v11575_v57 }
 0xec8   :  { %v6497_v59 = vpack.c.bf16 %v6441_v22, %v6441_v22 }
 0xec9   :  { %v12797_v38 = vpop.f32.mrf.mxu3 }
 0xeca   :  { %v6577_v50 = vunpack.c.l.b16 %v6497_v59  ;;  %v7226_v57 = vadd.f32 %v12797_v38, %v12795_v58 }
 0xecb   :  { %7353 = vmatpush.bf16.msrb.mxu1 %v11574_v6 }
 0xecc   :  { %v6579_v9 = vpack.c.b16 %v6577_v50, %v6576_v19 }
 0xece   :  { %7303 = vmatmul.bf16.gmra.mxu3 %v6579_v9 }
 0xecf   :  { %v6444_v28 = vpop.f32.mrf.mxu0  ;;  %7354 = vmatpush.bf16.msrb.mxu1 %v11573_v0 }
 0xed0   :  { %v6498_v63 = vpack.c.bf16 %v6444_v28, %v6444_v28 }
 0xed1   :  { %v7228_v1 = vpop.f32.mrf.mxu3 }
 0xed2   :  { %v7229_v34 = vadd.f32 %v7228_v1, %v7209_v20  ;;  %v6586_v3 = vunpack.c.l.b16 %v6498_v63 }
 0xed7   :  { %v6446_v16 = vpop.f32.mrf.mxu0 }
 0xed8   :  { %v6499_v18 = vpack.c.bf16 %v6446_v16, %v6446_v16 }
 0xed9   :  { %v12805_v4 = vpop.f32.mrf.mxu3 }
 0xeda   :  { %v6587_v5 = vunpack.c.l.b16 %v6499_v18 }
 0xedb   :  { %v7242_v44 = vpop.f32.mrf.mxu1 }
 0xedc   :  { %v6590_v13 = vpack.c.b16 %v6587_v5, %v6586_v3  ;;  %v7243_v49 = vadd.f32 %v7242_v44, %v7224_v31 }
 0xede   :  { %7317 = vmatmul.bf16.vlgmr.msra.gmra.mxu1 %v6590_v13 }
 0xedf   :  { %v6449_v12 = vpop.f32.mrf.mxu0 }
 0xee0   :  { %v6500_v54 = vpack.c.bf16 %v6449_v12, %v6449_v12 }
 0xee2   :  { %v6588_v25 = vunpack.c.l.b16 %v6500_v54 }
 0xee3   :  { %v12801_v14 = vpop.f32.mrf.mxu1 }
 0xee7   :  { %v6451_v60 = vpop.f32.mrf.mxu0 }
 0xee8   :  { %v6501_v46 = vpack.c.bf16 %v6451_v60, %v6451_v60 }
 0xeea   :  { %v6589_v7 = vunpack.c.l.b16 %v6501_v46 }
 0xeeb   :  { %v7247_v24 = vpop.f32.mrf.mxu1 }
 0xeec   :  { %v6591_v52 = vpack.c.b16 %v6589_v7, %v6588_v25  ;;  %v12803_v10 = vadd.f32 %v7247_v24, %v7229_v34 }
 0xeee   :  { %7322 = vmatmul.bf16.gmra.mxu1 %v6591_v52 }
 0xeef   :  { %v6454_v27 = vpop.f32.mrf.mxu0 }
 0xef0   :  { %v6502_v55 = vpack.c.bf16 %v6454_v27, %v6454_v27 }
 0xef2   :  { %v6598_v8 = vunpack.c.l.b16 %v6502_v55  ;;  %v7245_v55 = vadd.f32 %v12801_v14, %v7226_v57 }
 0xef3   :  { %v7249_v32 = vpop.f32.mrf.mxu1 }
 0xef7   :  { %v6456_v17 = vpop.f32.mrf.mxu0 }
 0xef8   :  { %v6503_v53 = vpack.c.bf16 %v6456_v17, %v6456_v17 }
 0xefa   :  { %v6599_v47 = vunpack.c.l.b16 %v6503_v53 }
 0xefc   :  { %v6602_v39 = vpack.c.b16 %v6599_v47, %v6598_v8 }
 0xefe   :  { %7336 = vmatmul.bf16.vlgmr.msra.gmra.mxu3 %v6602_v39 }
 0xeff   :  { %v6459_v37 = vpop.f32.mrf.mxu0 }
 0xf00   :  { %v6504_v40 = vpack.c.bf16 %v6459_v37, %v6459_v37 }
 0xf01   :  { %v7261_v31 = vpop.f32.mrf.mxu3 }
 0xf02   :  { %v7262_v2 = vadd.f32 %v7261_v31, %v7243_v49  ;;  %v6600_v59 = vunpack.c.l.b16 %v6504_v40 }
 0xf07   :  { %v6461_v22 = vpop.f32.mrf.mxu0 }
 0xf08   :  { %v6505_v61 = vpack.c.bf16 %v6461_v22, %v6461_v22 }
 0xf09   :  { %v7263_v49 = vpop.f32.mrf.mxu3 }
 0xf0a   :  { %v6601_v20 = vunpack.c.l.b16 %v6505_v61  ;;  %v7264_v53 = vadd.f32 %v7263_v49, %v7245_v55 }
 0xf0c   :  { %v6603_v19 = vpack.c.b16 %v6601_v20, %v6600_v59  ;;  %v7231_v59 = vadd.f32 %v12805_v4, %v12799_v56 }
 0xf0e   :  { %7341 = vmatmul.bf16.gmra.mxu3 %v6603_v19  ;;  %v7250_v20 = vadd.f32 %v7249_v32, %v7231_v59 }
 0xf0f   :  { %v6464_v50 = vpop.f32.mrf.mxu0 }
 0xf10   :  { %v6506_v9 = vpack.c.bf16 %v6464_v50, %v6464_v50 }
 0xf11   :  { %v7266_v12 = vpop.f32.mrf.mxu3 }
 0xf12   :  { %v6610_v1 = vunpack.c.l.b16 %v6506_v9  ;;  %v7267_v0 = vadd.f32 %v7266_v12, %v12803_v10 }
 0xf17   :  { %v6466_v28 = vpop.f32.mrf.mxu0 }
 0xf18   :  { %v6507_v41 = vpack.c.bf16 %v6466_v28, %v6466_v28 }
 0xf19   :  { %v7268_v42 = vpop.f32.mrf.mxu3 }
 0xf1a   :  { %v6611_v34 = vunpack.c.l.b16 %v6507_v41  ;;  %v7269_v9 = vadd.f32 %v7268_v42, %v7250_v20 }
 0xf1b   :  { %v7280_v11 = vpop.f32.mrf.mxu1 }
 0xf1c   :  { %v6614_v63 = vpack.c.b16 %v6611_v34, %v6610_v1  ;;  %v7281_v16 = vadd.f32 %v7280_v11, %v7262_v2 }
 0xf1e   :  { %7355 = vmatmul.bf16.vlgmr.msrb.gmra.mxu1 %v6614_v63 }
 0xf1f   :  { %v6469_v33 = vpop.f32.mrf.mxu0 }
 0xf20   :  { %v6508_v18 = vpack.c.bf16 %v6469_v33, %v6469_v33 }
 0xf22   :  { %v6612_v44 = vunpack.c.l.b16 %v6508_v18 }
 0xf23   :  { %v7282_v43 = vpop.f32.mrf.mxu1 }
 0xf24   :  { %v7283_v8 = vadd.f32 %v7282_v43, %v7264_v53 }
 0xf27   :  { %v6471_v3 = vpop.f32.mrf.mxu0 }
 0xf28   :  { %v6509_v5 = vpack.c.bf16 %v6471_v3, %v6471_v3 }
 0xf2a   :  { %v6613_v36 = vunpack.c.l.b16 %v6509_v5 }
 0xf2b   :  { %v7285_v54 = vpop.f32.mrf.mxu1 }
 0xf2c   :  { %v6615_v13 = vpack.c.b16 %v6613_v36, %v6612_v44  ;;  %v7286_v2 = vadd.f32 %v7285_v54, %v7267_v0 }
 0xf2e   :  { %7360 = vmatmul.bf16.gmra.mxu1 %v6615_v13 }
 0xf33   :  { %v7287_v21 = vpop.f32.mrf.mxu1 }
 0xf34   :  { %v7288_v1 = vadd.f32 %v7287_v21, %v7269_v9 }
 0xf41   :  { %v7299_v60 = vpop.f32.mrf.mxu3 }
 0xf42   :  { %v7300_v39 = vadd.f32 %v7299_v60, %v7281_v16 }
 0xf49   :  { %v7301_v46 = vpop.f32.mrf.mxu3 }
 0xf4a   :  { %v7302_v47 = vadd.f32 %v7301_v46, %v7283_v8 }
 0xf51   :  { %v7304_v7 = vpop.f32.mrf.mxu3 }
 0xf52   :  { %v7305_v58 = vadd.f32 %v7304_v7, %v7286_v2 }
 0xf59   :  { %v7306_v23 = vpop.f32.mrf.mxu3 }
 0xf5a   :  { %v7307_v16 = vadd.f32 %v7306_v23, %v7288_v1 }
 0xf5b   :  { %v7318_v25 = vpop.f32.mrf.mxu1 }
 0xf5c   :  { %v7319_v40 = vadd.f32 %v7318_v25, %v7300_v39 }
 0xf63   :  { %v7320_v24 = vpop.f32.mrf.mxu1 }
 0xf64   :  { %v7321_v37 = vadd.f32 %v7320_v24, %v7302_v47 }
 0xf6b   :  { %v7323_v52 = vpop.f32.mrf.mxu1 }
 0xf6c   :  { %v7324_v19 = vadd.f32 %v7323_v52, %v7305_v58 }
 0xf73   :  { %v7325_v26 = vpop.f32.mrf.mxu1 }
 0xf74   :  { %v7326_v3 = vadd.f32 %v7325_v26, %v7307_v16 }
 0xf81   :  { %v7337_v27 = vpop.f32.mrf.mxu3 }
 0xf82   :  { %v7338_v38 = vadd.f32 %v7337_v27, %v7319_v40 }
 0xf89   :  { %v7339_v17 = vpop.f32.mrf.mxu3 }
 0xf8a   :  { %v7340_v22 = vadd.f32 %v7339_v17, %v7321_v37 }
 0xf91   :  { %v7342_v61 = vpop.f32.mrf.mxu3 }
 0xf92   :  { %v7343_v28 = vadd.f32 %v7342_v61, %v7324_v19  ;;  %v7367_v61 = vld [vmem:[#allocation11 + $0x5] sm:$0x1] }
 0xf99   :  { %v7344_v18 = vpop.f32.mrf.mxu3 }
 0xf9a   :  { %v7345_v5 = vadd.f32 %v7344_v18, %v7326_v3 }
 0xf9b   :  { %v7356_v6 = vpop.f32.mrf.mxu1 }
 0xf9c   :  { %v7357_v50 = vadd.f32 %v7356_v6, %v7338_v38 }
 0xf9e   :  { %v7377_v34 = vmul.f32 %v7357_v50, %v7357_v50 }
 0xfa3   :  { %v7358_v31 = vpop.f32.mrf.mxu1 }
 0xfa4   :  { %v12813_v14 = vadd.f32 %v7358_v31, %v7340_v22  ;;  %v7366_v31 = vld [vmem:[#allocation10 + $0x5] sm:$0x1] }
 0xfa6   :  { %v7378_v10 = vmul.f32 %v12813_v14, %v12813_v14  ;;  %v7368_v11 = vadd.f32 %v12813_v14, %v7357_v50 }
 0xfa8   :  { %v7381_v56 = vadd.f32 %v7378_v10, %v7377_v34 }
 0xfab   :  { %v7361_v41 = vpop.f32.mrf.mxu1 }
 0xfac   :  { %v7362_v63 = vadd.f32 %v7361_v41, %v7343_v28 }
 0xfae   :  { %v7369_v4 = vadd.f32 %v7368_v11, %v7362_v63  ;;  %v7379_v33 = vmul.f32 %v7362_v63, %v7362_v63 }
 0xfb0   :  { %v7382_v32 = vadd.f32 %v7381_v56, %v7379_v33 }
 0xfb3   :  { %v7363_v44 = vpop.f32.mrf.mxu1 }
 0xfb4   :  { %v7364_v36 = vadd.f32 %v7363_v44, %v7345_v5  ;;  %v11722_v5 = vld [vmem:[%s12921_s4 + $0x20] sm:$0xff]  ;;  %v11723_v44 = vld [vmem:[%s12921_s4 + $0x28] sm:$0xff] }
 0xfb6   :  { %v7370_v13 = vadd.f32 %v7369_v4, %v7364_v36  ;;  %v7380_v49 = vmul.f32 %v7364_v36, %v7364_v36 }
 0xfb8   :  { %v7371_v12 = vrot.slane %v7370_v13, 4  ;;  %v7383_v43 = vadd.f32 %v7382_v32, %v7380_v49  ;;  %v11721_v32 = vld [vmem:[%s12921_s4 + $0x18] sm:$0xff]  ;;  %v11586_v49 = vld [vmem:[#allocation8 + $0xda8] sm:$0xff] }
 0xfba   :  { %v7372_v42 = vadd.f32 %v7371_v12, %v7370_v13  ;;  %v7384_v54 = vrot.slane %v7383_v43, 4  ;;  %v11587_v13 = vld [vmem:[#allocation8 + $0xdb0] sm:$0xff]  ;;  %v11585_v12 = vld [vmem:[#allocation8 + $0xda0] sm:$0xff] }
 0xfbc   :  { %v7373_v60 = vrot.slane %v7372_v42, 2  ;;  %v7385_v21 = vadd.f32 %v7384_v54, %v7383_v43  ;;  %v11724_v43 = vld [vmem:[%s12921_s4 + $0x30] sm:$0xff] }
 0xfbd   :  { %v11583_v54 = vld [vmem:[#allocation8 + $0xd90] sm:$0xff] }
 0xfbe   :  { %v7374_v46 = vadd.f32 %v7373_v60, %v7372_v42  ;;  %v7386_v25 = vrot.slane %v7385_v21, 2  ;;  %v11584_v42 = vld [vmem:[#allocation8 + $0xd98] sm:$0xff]  ;;  %v11582_v60 = vld [vmem:[#allocation8 + $0xd88] sm:$0xff] }
 0xfc0   :  { %v7375_v7 = vrot.slane %v7374_v46, 1  ;;  %v7387_v24 = vadd.f32 %v7386_v25, %v7385_v21  ;;  %v11581_v21 = vld [vmem:[#allocation8 + $0xd80] sm:$0xff]  ;;  %v11596_v25 = vld [vmem:[#allocation8 + $0xdf8] sm:$0xff] }
 0xfc1   :  { %8264 = vmatpush.bf16.msra.mxu1 %v11596_v25 }
 0xfc2   :  { %v7376_v23 = vadd.f32 %v7375_v7, %v7374_v46  ;;  %v7388_v52 = vrot.slane %v7387_v24, 1  ;;  %v11725_v46 = vld [vmem:[%s12921_s4 + $0x38] sm:$0xff] }
 0xfc3   :  { %v11595_v7 = vld [vmem:[#allocation8 + $0xdf0] sm:$0xff] }
 0xfc4   :  { %v7389_v27 = vadd.f32 %v7388_v52, %v7387_v24  ;;  %v7390_v26 = vmul.f32 0.03125, %v7376_v23  ;;  %v11594_v24 = vld [vmem:[#allocation8 + $0xde8] sm:$0xff]  ;;  %v11593_v23 = vld [vmem:[#allocation8 + $0xde0] sm:$0xff] }
 0xfc5   :  { %8265 = vmatpush.bf16.msra.mxu1 %v11595_v7  ;;  %v11726_v52 = vld [vmem:[%s12921_s4 + $0x40] sm:$0xff] }
 0xfc6   :  { %v7391_v57 = vmul.f32 0.03125, %v7389_v27  ;;  %v7392_v55 = vmul.f32 %v7390_v26, %v7390_v26 }
 0xfc8   :  { %v7393_v17 = vsub.f32 %v7391_v57, %v7392_v55  ;;  %v11591_v57 = vld [vmem:[#allocation8 + $0xdd0] sm:$0xff] }
 0xfc9   :  { %8266 = vmatpush.bf16.msra.mxu1 %v11594_v24  ;;  %v11606_v24 = vld [vmem:[#allocation8 + $0xe48] sm:$0xff] }
 0xfca   :  { %v7394_v6 = vmax.f32 %v7393_v17, 0.0 }
 0xfcc   :  { %v7395_v53 = vadd.f32 1e-05, %v7394_v6  ;;  %v11590_v6 = vld [vmem:[#allocation8 + $0xdc8] sm:$0xff] }
 0xfcd   :  { %8267 = vmatpush.bf16.msra.mxu1 %v11593_v23 }
 0xfce   :  { %11678 = vrsqrt.f32 %v7395_v53  ;;  %vm7402_vm10 = vweird.f32 %v7395_v53 }
 0xfd4   :  { %v11679_v8 = vpop.eup %11678 }
 0xfd5   :  { %v7397_v47 = vmul.f32 %v11679_v8, %v7395_v53  ;;  %vm7403_vm9 = vweird.f32 %v11679_v8 }
 0xfd6   :  { %vm7404_vm11 = vmor %vm7402_vm10, %vm7403_vm9 }
 0xfd7   :  { %v7398_v0 = vmul.f32 %v11679_v8, %v7397_v47 }
 0xfd9   :  { %v7399_v39 = vmul.f32 0.5, %v7398_v0  ;;  %v11589_v0 = vld [vmem:[#allocation8 + $0xdc0] sm:$0xff] }
 0xfdb   :  { %v7400_v37 = vsub.f32 1.5, %v7399_v39 }
 0xfdd   :  { %v7401_v2 = vmul.f32 %v11679_v8, %v7400_v37  ;;  %v11727_v37 = vld [vmem:[%s12921_s4 + $0x48] sm:$0xff] }
 0xfdf   :  { %v7405_v40 = vsel %vm7404_vm11, %v11679_v8, %v7401_v2  ;;  %v11604_v2 = vld [vmem:[#allocation8 + $0xe38] sm:$0xff] }
 0xfe0   :  { %v7406_v22 = vmul.f32 %v7405_v40, %v7366_v31  ;;  %v11603_v40 = vld [vmem:[#allocation8 + $0xe30] sm:$0xff] }
 0xfe2   :  { %v7407_v59 = vmul.f32 %v7406_v22, %v7390_v26  ;;  %v7409_v58 = vperm.slane %v7406_v22, 0  ;;  %v11592_v26 = vld [vmem:[#allocation8 + $0xdd8] sm:$0xff] }
 0xfe3   :  { %8268 = vmatpush.bf16.msra.mxu1 %v11592_v26  ;;  %v11605_v26 = vld [vmem:[#allocation8 + $0xe40] sm:$0xff] }
 0xfe4   :  { %v7408_v38 = vsub.f32 %v7367_v61, %v7407_v59  ;;  %v7412_v20 = vmul.f32 %v7409_v58, %v7362_v63  ;;  %v7410_v19 = vmul.f32 %v7409_v58, %v7357_v50  ;;  %v7413_v9 = vmul.f32 %v7409_v58, %v7364_v36  ;;  %v11718_v50 = vld [vmem:[%s12921_s4] sm:$0xff]  ;;  %v11720_v63 = vld [vmem:[%s12921_s4 + $0x10] sm:$0xff] }
 0xfe5   :  { %v7411_v10 = vmul.f32 %v7409_v58, %v12813_v14  ;;  %v11719_v14 = vld [vmem:[%s12921_s4 + $0x8] sm:$0xff]  ;;  %v11588_v36 = vld [vmem:[#allocation8 + $0xdb8] sm:$0xff] }
 0xfe6   :  { %v7414_v28 = vperm.slane %v7408_v38, 0  ;;  %8245 = vmatpush.bf16.msrb.mxu3 %v11588_v36  ;;  %v11602_v59 = vld [vmem:[#allocation8 + $0xe28] sm:$0xff] }
 0xfe7   :  { %8269 = vmatpush.bf16.msra.mxu1 %v11591_v57  ;;  %v11610_v36 = vld [vmem:[#allocation8 + $0xe68] sm:$0xff] }
 0xfe8   :  { %v7418_v41 = vadd.f32 %v7414_v28, %v7413_v9  ;;  %v7417_v1 = vadd.f32 %v7414_v28, %v7412_v20  ;;  %v7415_v34 = vadd.f32 %v7414_v28, %v7410_v19  ;;  %v7416_v11 = vadd.f32 %v7414_v28, %v7411_v10  ;;  %v11601_v19 = vld [vmem:[#allocation8 + $0xe20] sm:$0xff]  ;;  %v11728_v9 = vld [vmem:[%s12921_s4 + $0x50] sm:$0xff] }
 0xfea   :  { %v7422_v16 = vmax.f32 %v7418_v41, 0.0  ;;  %v7421_v56 = vmax.f32 %v7417_v1, 0.0  ;;  %v7419_v4 = vmax.f32 %v7415_v34, 0.0  ;;  %v7420_v33 = vmax.f32 %v7416_v11, 0.0  ;;  %8246 = vmatpush.bf16.msrb.mxu3 %v11587_v13  ;;  %v11600_v41 = vld [vmem:[#allocation8 + $0xe18] sm:$0xff]  ;;  %v11599_v1 = vld [vmem:[#allocation8 + $0xe10] sm:$0xff] }
 0xfeb   :  { %8270 = vmatpush.bf16.msra.mxu1 %v11590_v6  ;;  %v11620_v6 = vld [vmem:[#allocation8 + $0xeb8] sm:$0xff] }
 0xfec   :  { %v7424_v18 = vpack.c.bf16 %v7422_v16, %v7421_v56  ;;  %v7423_v3 = vpack.c.bf16 %v7420_v33, %v7419_v4  ;;  %v11598_v16 = vld [vmem:[#allocation8 + $0xe08] sm:$0xff] }
 0xfee   :  { %7431 = vmatpush.bf16.msrb.mxu2 %v7424_v18  ;;  %8247 = vmatpush.bf16.msrb.mxu3 %v11586_v49  ;;  %v11597_v18 = vld [vmem:[#allocation8 + $0xe00] sm:$0xff] }
 0xfef   :  { %8271 = vmatpush.bf16.msra.mxu1 %v11589_v0  ;;  %v11618_v0 = vld [vmem:[#allocation8 + $0xea8] sm:$0xff] }
 0xff2   :  { %7432 = vmatpush.bf16.msrb.mxu2 %v7423_v3  ;;  %8248 = vmatpush.bf16.msrb.mxu3 %v11585_v12 }
 0xff5   :  { %10743 = vmatmul.msk.bf16.vlgmr.msrb.gmra.mxu2 %vm1059_vm8, %v11718_v50  ;;  %v11729_v50 = vld [vmem:[%s12921_s4 + $0x58] sm:$0xff] }
 0xff6   :  { %8249 = vmatpush.bf16.msrb.mxu3 %v11584_v42  ;;  %v11730_v42 = vld [vmem:[%s12921_s4 + $0x60] sm:$0xff] }
 0xffa   :  { %8250 = vmatpush.bf16.msrb.mxu3 %v11583_v54 }
 0xffe   :  { %8251 = vmatpush.bf16.msrb.mxu3 %v11582_v60 }
0x1002   :  { %8252 = vmatpush.bf16.msrb.mxu3 %v11581_v21  ;;  %v11608_v21 = vld [vmem:[#allocation8 + $0xe58] sm:$0xff] }
0x1005   :  { %10744 = vmatmul.msk.bf16.gmra.mxu2 %vm1059_vm8, %v11719_v14 }
0x1006   :  { %8283 = vmatpush.bf16.msra.mxu3 %v11604_v2  ;;  %v11617_v2 = vld [vmem:[#allocation8 + $0xea0] sm:$0xff] }
0x100a   :  { %8284 = vmatpush.bf16.msra.mxu3 %v11603_v40  ;;  %v11732_v40 = vld [vmem:[%s12921_s4 + $0x70] sm:$0xff] }
0x100e   :  { %8285 = vmatpush.bf16.msra.mxu3 %v11602_v59  ;;  %v11616_v59 = vld [vmem:[#allocation8 + $0xe98] sm:$0xff] }
0x1012   :  { %8286 = vmatpush.bf16.msra.mxu3 %v11601_v19  ;;  %v11614_v19 = vld [vmem:[#allocation8 + $0xe88] sm:$0xff] }
0x1015   :  { %10745 = vmatmul.msk.bf16.gmra.mxu2 %vm1059_vm8, %v11720_v63  ;;  %v11612_v63 = vld [vmem:[#allocation8 + $0xe78] sm:$0xff] }
0x1016   :  { %8287 = vmatpush.bf16.msra.mxu3 %v11600_v41  ;;  %8302 = vmatpush.bf16.msrb.mxu1 %v11612_v63  ;;  %v11613_v41 = vld [vmem:[#allocation8 + $0xe80] sm:$0xff] }
0x1017   :  { %v11625_v63 = vld [vmem:[#allocation8 + $0xee0] sm:$0xff] }
0x101a   :  { %8288 = vmatpush.bf16.msra.mxu3 %v11599_v1 }
0x101e   :  { %8289 = vmatpush.bf16.msra.mxu3 %v11598_v16  ;;  %v11628_v16 = vld [vmem:[#allocation8 + $0xef8] sm:$0xff] }
0x1022   :  { %8290 = vmatpush.bf16.msra.mxu3 %v11597_v18  ;;  %v11626_v18 = vld [vmem:[#allocation8 + $0xee8] sm:$0xff] }
0x1025   :  { %10746 = vmatmul.msk.bf16.gmra.mxu2 %vm1059_vm8, %v11721_v32  ;;  %v11611_v32 = vld [vmem:[#allocation8 + $0xe70] sm:$0xff] }
0x1026   :  { %8303 = vmatpush.bf16.msrb.mxu1 %v11611_v32 }
0x102a   :  { %8304 = vmatpush.bf16.msrb.mxu1 %v11610_v36  ;;  %v11624_v36 = vld [vmem:[#allocation8 + $0xed8] sm:$0xff] }
0x1035   :  { %10747 = vmatmul.msk.bf16.gmra.mxu2 %vm1059_vm8, %v11722_v5 }
0x1045   :  { %10748 = vmatmul.msk.bf16.gmra.mxu2 %vm1059_vm8, %v11723_v44 }
0x1055   :  { %10749 = vmatmul.msk.bf16.gmra.mxu2 %vm1059_vm8, %v11724_v43  ;;  %v11609_v43 = vld [vmem:[#allocation8 + $0xe60] sm:$0xff] }
0x1056   :  { %8305 = vmatpush.bf16.msrb.mxu1 %v11609_v43  ;;  %v11622_v43 = vld [vmem:[#allocation8 + $0xec8] sm:$0xff] }
0x105a   :  { %8306 = vmatpush.bf16.msrb.mxu1 %v11608_v21  ;;  %v11621_v21 = vld [vmem:[#allocation8 + $0xec0] sm:$0xff] }
0x1065   :  { %10750 = vmatmul.msk.bf16.gmra.mxu2 %vm1059_vm8, %v11725_v46  ;;  %v11607_v46 = vld [vmem:[#allocation8 + $0xe50] sm:$0xff] }
0x1066   :  { %8307 = vmatpush.bf16.msrb.mxu1 %v11607_v46 }
0x106a   :  { %8308 = vmatpush.bf16.msrb.mxu1 %v11606_v24  ;;  %v11636_v24 = vld [vmem:[#allocation8 + $0xf38] sm:$0xff] }
0x106e   :  { %8309 = vmatpush.bf16.msrb.mxu1 %v11605_v26  ;;  %v11634_v26 = vld [vmem:[#allocation8 + $0xf28] sm:$0xff] }
0x1075   :  { %10751 = vmatmul.msk.bf16.gmra.mxu2 %vm1059_vm8, %v11726_v52 }
0x1078   :  { %v7434_v27 = vpop.f32.mrf.mxu2 }
0x1079   :  { %v7524_v55 = vpack.c.bf16 %v7434_v27, %v7434_v27 }
0x107b   :  { %v7564_v8 = vunpack.c.l.b16 %v7524_v55  ;;  %v11731_v55 = vld [vmem:[%s12921_s4 + $0x68] sm:$0xff] }
0x1080   :  { %v7436_v17 = vpop.f32.mrf.mxu2 }
0x1081   :  { %v7525_v53 = vpack.c.bf16 %v7436_v17, %v7436_v17 }
0x1083   :  { %v7565_v47 = vunpack.c.l.b16 %v7525_v53  ;;  %v11619_v53 = vld [vmem:[#allocation8 + $0xeb0] sm:$0xff] }
0x1085   :  { %v7568_v39 = vpack.c.b16 %v7565_v47, %v7564_v8  ;;  %10752 = vmatmul.msk.bf16.gmra.mxu2 %vm1059_vm8, %v11727_v37 }
0x1087   :  { %8253 = vmatmul.bf16.vlgmr.msrb.gmra.mxu3 %v7568_v39 }
0x1088   :  { %v7439_v31 = vpop.f32.mrf.mxu2  ;;  %8321 = vmatpush.bf16.msrb.mxu3 %v11620_v6  ;;  %v11633_v6 = vld [vmem:[#allocation8 + $0xf20] sm:$0xff] }
0x1089   :  { %v7526_v22 = vpack.c.bf16 %v7439_v31, %v7439_v31 }
0x108b   :  { %v7566_v38 = vunpack.c.l.b16 %v7526_v22 }
0x108c   :  { %8322 = vmatpush.bf16.msrb.mxu3 %v11619_v53 }
0x1090   :  { %v7441_v61 = vpop.f32.mrf.mxu2  ;;  %8323 = vmatpush.bf16.msrb.mxu3 %v11618_v0  ;;  %v11631_v0 = vld [vmem:[#allocation8 + $0xf10] sm:$0xff] }
0x1091   :  { %v7527_v58 = vpack.c.bf16 %v7441_v61, %v7441_v61 }
0x1093   :  { %v7567_v20 = vunpack.c.l.b16 %v7527_v58  ;;  %v11615_v58 = vld [vmem:[#allocation8 + $0xe90] sm:$0xff] }
0x1094   :  { %8324 = vmatpush.bf16.msrb.mxu3 %v11617_v2  ;;  %v11630_v2 = vld [vmem:[#allocation8 + $0xf08] sm:$0xff] }
0x1095   :  { %10753 = vmatmul.msk.bf16.gmra.mxu2 %vm1059_vm8, %v11728_v9  ;;  %v7569_v28 = vpack.c.b16 %v7567_v20, %v7566_v38 }
0x1097   :  { %8258 = vmatmul.bf16.gmra.mxu3 %v7569_v28 }
0x1098   :  { %v7444_v10 = vpop.f32.mrf.mxu2  ;;  %8325 = vmatpush.bf16.msrb.mxu3 %v11616_v59  ;;  %v11629_v59 = vld [vmem:[#allocation8 + $0xf00] sm:$0xff] }
0x1099   :  { %v7528_v34 = vpack.c.bf16 %v7444_v10, %v7444_v10 }
0x109b   :  { %v7576_v4 = vunpack.c.l.b16 %v7528_v34  ;;  %v11733_v34 = vld [vmem:[%s12921_s4 + $0x78] sm:$0xff] }
0x109c   :  { %8326 = vmatpush.bf16.msrb.mxu3 %v11615_v58 }
0x10a0   :  { %v7446_v11 = vpop.f32.mrf.mxu2  ;;  %8327 = vmatpush.bf16.msrb.mxu3 %v11614_v19 }
0x10a1   :  { %v7529_v56 = vpack.c.bf16 %v7446_v11, %v7446_v11 }
0x10a3   :  { %v7577_v33 = vunpack.c.l.b16 %v7529_v56  ;;  %v11627_v56 = vld [vmem:[#allocation8 + $0xef0] sm:$0xff] }
0x10a4   :  { %8328 = vmatpush.bf16.msrb.mxu3 %v11613_v41 }
0x10a5   :  { %v7580_v3 = vpack.c.b16 %v7577_v33, %v7576_v4  ;;  %10754 = vmatmul.msk.bf16.gmra.mxu2 %vm1059_vm8, %v11729_v50 }
0x10a7   :  { %8272 = vmatmul.bf16.vlgmr.msra.gmra.mxu1 %v7580_v3 }
0x10a8   :  { %v7449_v14 = vpop.f32.mrf.mxu2  ;;  %8340 = vmatpush.bf16.msra.mxu1 %v11628_v16  ;;  %v11642_v16 = vld [vmem:[#allocation8 + $0xf68] sm:$0xff] }
0x10a9   :  { %v7530_v5 = vpack.c.bf16 %v7449_v14, %v7449_v14 }
0x10ab   :  { %v7578_v49 = vunpack.c.l.b16 %v7530_v5  ;;  %v11734_v5 = vld [vmem:[%s12921_s4 + $0x80] sm:$0xff] }
0x10ac   :  { %8341 = vmatpush.bf16.msra.mxu1 %v11627_v56 }
0x10b0   :  { %v7451_v44 = vpop.f32.mrf.mxu2  ;;  %8342 = vmatpush.bf16.msra.mxu1 %v11626_v18 }
0x10b1   :  { %v7531_v13 = vpack.c.bf16 %v7451_v44, %v7451_v44 }
0x10b3   :  { %v7579_v12 = vunpack.c.l.b16 %v7531_v13  ;;  %v11623_v13 = vld [vmem:[#allocation8 + $0xed0] sm:$0xff] }
0x10b4   :  { %8343 = vmatpush.bf16.msra.mxu1 %v11625_v63 }
0x10b5   :  { %10755 = vmatmul.msk.bf16.gmra.mxu2 %vm1059_vm8, %v11730_v42  ;;  %v7581_v54 = vpack.c.b16 %v7579_v12, %v7578_v49 }
0x10b7   :  { %8277 = vmatmul.bf16.gmra.mxu1 %v7581_v54 }
0x10b8   :  { %v7454_v60 = vpop.f32.mrf.mxu2  ;;  %8344 = vmatpush.bf16.msra.mxu1 %v11624_v36 }
0x10b9   :  { %v7532_v25 = vpack.c.bf16 %v7454_v60, %v7454_v60 }
0x10bb   :  { %v7588_v52 = vunpack.c.l.b16 %v7532_v25  ;;  %v11735_v25 = vld [vmem:[%s12921_s4 + $0x88] sm:$0xff]  ;;  %s11924_s4 = smov [#allocation13]  }
0x10bc   :  { %8345 = vmatpush.bf16.msra.mxu1 %v11623_v13  ;;  %s8485_s9 = sshll.u32 %s11924_s4, 4  ;;  %s8486_s9 = int_to_ptr.vmem [resolvable:$true] %s8485_s9 }
0x10c0   :  { %v7456_v7 = vpop.f32.mrf.mxu2  ;;  %8346 = vmatpush.bf16.msra.mxu1 %v11622_v43 }
0x10c1   :  { %v7533_v23 = vpack.c.bf16 %v7456_v7, %v7456_v7 }
0x10c3   :  { %v7589_v27 = vunpack.c.l.b16 %v7533_v23  ;;  %v11635_v23 = vld [vmem:[#allocation8 + $0xf30] sm:$0xff] }
0x10c4   :  { %8347 = vmatpush.bf16.msra.mxu1 %v11621_v21 }
0x10c5   :  { %v7592_v57 = vpack.c.b16 %v7589_v27, %v7588_v52  ;;  %10756 = vmatmul.msk.bf16.gmra.mxu2 %vm1059_vm8, %v11731_v55 }
0x10c7   :  { %8291 = vmatmul.bf16.vlgmr.msra.gmra.mxu3 %v7592_v57 }
0x10c8   :  { %v7459_v17 = vpop.f32.mrf.mxu2  ;;  %8359 = vmatpush.bf16.msra.mxu3 %v11636_v24  ;;  %v11652_v24 = vld [vmem:[#allocation8 + $0xfb8] sm:$0xff] }
0x10c9   :  { %v7534_v8 = vpack.c.bf16 %v7459_v17, %v7459_v17 }
0x10cb   :  { %v7590_v37 = vunpack.c.l.b16 %v7534_v8 }
0x10cc   :  { %8360 = vmatpush.bf16.msra.mxu3 %v11635_v23 }
0x10d0   :  { %v7461_v47 = vpop.f32.mrf.mxu2  ;;  %8361 = vmatpush.bf16.msra.mxu3 %v11634_v26 }
0x10d1   :  { %v7535_v39 = vpack.c.bf16 %v7461_v47, %v7461_v47  ;;  %v11632_v47 = vld [vmem:[#allocation8 + $0xf18] sm:$0xff] }
0x10d3   :  { %v7591_v31 = vunpack.c.l.b16 %v7535_v39 }
0x10d4   :  { %8362 = vmatpush.bf16.msra.mxu3 %v11633_v6 }
0x10d5   :  { %10757 = vmatmul.msk.bf16.gmra.mxu2 %vm1059_vm8, %v11732_v40  ;;  %v7593_v22 = vpack.c.b16 %v7591_v31, %v7590_v37 }
0x10d7   :  { %8296 = vmatmul.bf16.gmra.mxu3 %v7593_v22 }
0x10d8   :  { %v7464_v61 = vpop.f32.mrf.mxu2  ;;  %8363 = vmatpush.bf16.msra.mxu3 %v11632_v47 }
0x10d9   :  { %v7536_v38 = vpack.c.bf16 %v7464_v61, %v7464_v61 }
0x10db   :  { %v7600_v28 = vunpack.c.l.b16 %v7536_v38 }
0x10dc   :  { %8364 = vmatpush.bf16.msra.mxu3 %v11631_v0  ;;  %v11649_v0 = vld [vmem:[#allocation8 + $0xfa0] sm:$0xff] }
0x10e0   :  { %v7466_v20 = vpop.f32.mrf.mxu2  ;;  %8365 = vmatpush.bf16.msra.mxu3 %v11630_v2 }
0x10e1   :  { %v7537_v9 = vpack.c.bf16 %v7466_v20, %v7466_v20 }
0x10e3   :  { %v7601_v10 = vunpack.c.l.b16 %v7537_v9  ;;  %v11644_v9 = vld [vmem:[#allocation8 + $0xf78] sm:$0xff] }
0x10e4   :  { %8366 = vmatpush.bf16.msra.mxu3 %v11629_v59 }
0x10e5   :  { %v7604_v1 = vpack.c.b16 %v7601_v10, %v7600_v28  ;;  %10758 = vmatmul.msk.bf16.gmra.mxu2 %vm1059_vm8, %v11733_v34  ;;  %v11643_v10 = vld [vmem:[#allocation8 + $0xf70] sm:$0xff] }
0x10e7   :  { %8310 = vmatmul.bf16.vlgmr.msrb.gmra.mxu1 %v7604_v1 }
0x10e8   :  { %v7469_v11 = vpop.f32.mrf.mxu2  ;;  %8378 = vmatpush.bf16.msrb.mxu1 %v11644_v9 }
0x10e9   :  { %v7538_v4 = vpack.c.bf16 %v7469_v11, %v7469_v11 }
0x10eb   :  { %v7602_v50 = vunpack.c.l.b16 %v7538_v4 }
0x10ec   :  { %8379 = vmatpush.bf16.msrb.mxu1 %v11643_v10  ;;  %v11645_v10 = vld [vmem:[#allocation8 + $0xf80] sm:$0xff] }
0x10f0   :  { %v7471_v33 = vpop.f32.mrf.mxu2  ;;  %8380 = vmatpush.bf16.msrb.mxu1 %v11642_v16 }
0x10f1   :  { %v7539_v3 = vpack.c.bf16 %v7471_v33, %v7471_v33 }
0x10f3   :  { %v7603_v14 = vunpack.c.l.b16 %v7539_v3  ;;  %v11641_v3 = vld [vmem:[#allocation8 + $0xf60] sm:$0xff] }
0x10f4   :  { %8381 = vmatpush.bf16.msrb.mxu1 %v11641_v3 }
0x10f5   :  { %v7605_v32 = vpack.c.b16 %v7603_v14, %v7602_v50  ;;  %10759 = vmatmul.msk.bf16.gmra.mxu2 %vm1059_vm8, %v11734_v5  ;;  %v11640_v5 = vld [vmem:[#allocation8 + $0xf58] sm:$0xff] }
0x10f7   :  { %8315 = vmatmul.bf16.gmra.mxu1 %v7605_v32 }
0x10f8   :  { %v7474_v44 = vpop.f32.mrf.mxu2  ;;  %8382 = vmatpush.bf16.msrb.mxu1 %v11640_v5 }
0x10f9   :  { %v7540_v49 = vpack.c.bf16 %v7474_v44, %v7474_v44  ;;  %v11639_v44 = vld [vmem:[#allocation8 + $0xf50] sm:$0xff] }
0x10fb   :  { %v7612_v54 = vunpack.c.l.b16 %v7540_v49 }
0x10fc   :  { %8383 = vmatpush.bf16.msrb.mxu1 %v11639_v44 }
0x1100   :  { %v7476_v12 = vpop.f32.mrf.mxu2 }
0x1101   :  { %v7541_v42 = vpack.c.bf16 %v7476_v12, %v7476_v12 }
0x1103   :  { %v7613_v60 = vunpack.c.l.b16 %v7541_v42  ;;  %v11638_v42 = vld [vmem:[#allocation8 + $0xf48] sm:$0xff] }
0x1104   :  { %8384 = vmatpush.bf16.msrb.mxu1 %v11638_v42 }
0x1105   :  { %v7616_v46 = vpack.c.b16 %v7613_v60, %v7612_v54  ;;  %10760 = vmatmul.msk.bf16.gmra.mxu2 %vm1059_vm8, %v11735_v25 }
0x1107   :  { %8329 = vmatmul.bf16.vlgmr.msrb.gmra.mxu3 %v7616_v46  ;;  %v11637_v46 = vld [vmem:[#allocation8 + $0xf40] sm:$0xff] }
0x1108   :  { %v7479_v7 = vpop.f32.mrf.mxu2  ;;  %8385 = vmatpush.bf16.msrb.mxu1 %v11637_v46  ;;  %8397 = vmatpush.bf16.msrb.mxu3 %v11652_v24 }
0x1109   :  { %v7542_v52 = vpack.c.bf16 %v7479_v7, %v7479_v7 }
0x110a   :  { %v8254_v39 = vpop.f32.mrf.mxu3 }
0x110b   :  { %v7614_v55 = vunpack.c.l.b16 %v7542_v52  ;;  %v11651_v52 = vld [vmem:[#allocation8 + $0xfb0] sm:$0xff] }
0x110c   :  { %8398 = vmatpush.bf16.msrb.mxu3 %v11651_v52 }
0x1110   :  { %v7481_v27 = vpop.f32.mrf.mxu2 }
0x1111   :  { %v7543_v57 = vpack.c.bf16 %v7481_v27, %v7481_v27 }
0x1112   :  { %v8256_v28 = vpop.f32.mrf.mxu3 }
0x1113   :  { %v7615_v17 = vunpack.c.l.b16 %v7543_v57 }
0x1115   :  { %v7617_v53 = vpack.c.b16 %v7615_v17, %v7614_v55  ;;  %v11650_v55 = vld [vmem:[#allocation8 + $0xfa8] sm:$0xff] }
0x1116   :  { %8399 = vmatpush.bf16.msrb.mxu3 %v11650_v55 }
0x1117   :  { %8334 = vmatmul.bf16.gmra.mxu3 %v7617_v53 }
0x1118   :  { %v7484_v8 = vpop.f32.mrf.mxu2 }
0x1119   :  { %v7544_v37 = vpack.c.bf16 %v7484_v8, %v7484_v8 }
0x111a   :  { %v8259_v4 = vpop.f32.mrf.mxu3  ;;  %8400 = vmatpush.bf16.msrb.mxu3 %v11649_v0 }
0x111b   :  { %v7624_v22 = vunpack.c.l.b16 %v7544_v37 }
0x1120   :  { %v7486_v31 = vpop.f32.mrf.mxu2 }
0x1121   :  { %v7545_v40 = vpack.c.bf16 %v7486_v31, %v7486_v31  ;;  %v11648_v31 = vld [vmem:[#allocation8 + $0xf98] sm:$0xff] }
0x1122   :  { %v8261_v36 = vpop.f32.mrf.mxu3  ;;  %8401 = vmatpush.bf16.msrb.mxu3 %v11648_v31 }
0x1123   :  { %v7625_v61 = vunpack.c.l.b16 %v7545_v40  ;;  %v11647_v40 = vld [vmem:[#allocation8 + $0xf90] sm:$0xff] }
0x1124   :  { %v8273_v58 = vpop.f32.mrf.mxu1 }
0x1125   :  { %v7628_v38 = vpack.c.b16 %v7625_v61, %v7624_v22  ;;  %v8274_v20 = vadd.f32 %v8273_v58, %v8254_v39  ;;  %v11646_v58 = vld [vmem:[#allocation8 + $0xf88] sm:$0xff] }
0x1126   :  { %8402 = vmatpush.bf16.msrb.mxu3 %v11647_v40 }
0x1127   :  { %8348 = vmatmul.bf16.vlgmr.msra.gmra.mxu1 %v7628_v38 }
0x1128   :  { %v7489_v19 = vpop.f32.mrf.mxu2 }
0x1129   :  { %v7546_v34 = vpack.c.bf16 %v7489_v19, %v7489_v19 }
0x112a   :  { %8403 = vmatpush.bf16.msrb.mxu3 %v11646_v58 }
0x112b   :  { %v7626_v33 = vunpack.c.l.b16 %v7546_v34 }
0x112c   :  { %v8275_v41 = vpop.f32.mrf.mxu1 }
0x112d   :  { %v8276_v1 = vadd.f32 %v8275_v41, %v8256_v28 }
0x112e   :  { %8404 = vmatpush.bf16.msrb.mxu3 %v11645_v10 }
0x1130   :  { %v7491_v11 = vpop.f32.mrf.mxu2 }
0x1131   :  { %v7547_v56 = vpack.c.bf16 %v7491_v11, %v7491_v11 }
0x1133   :  { %v7627_v18 = vunpack.c.l.b16 %v7547_v56 }
0x1134   :  { %v8278_v50 = vpop.f32.mrf.mxu1 }
0x1135   :  { %v7629_v14 = vpack.c.b16 %v7627_v18, %v7626_v33  ;;  %v8279_v63 = vadd.f32 %v8278_v50, %v8259_v4 }
0x1137   :  { %8353 = vmatmul.bf16.gmra.mxu1 %v7629_v14 }
0x1138   :  { %v7494_v32 = vpop.f32.mrf.mxu2 }
0x1139   :  { %v7548_v12 = vpack.c.bf16 %v7494_v32, %v7494_v32 }
0x113b   :  { %v7636_v60 = vunpack.c.l.b16 %v7548_v12 }
0x113c   :  { %v8280_v13 = vpop.f32.mrf.mxu1 }
0x113d   :  { %v8281_v49 = vadd.f32 %v8280_v13, %v8261_v36 }
0x1140   :  { %v7496_v43 = vpop.f32.mrf.mxu2 }
0x1141   :  { %v7549_v54 = vpack.c.bf16 %v7496_v43, %v7496_v43 }
0x1143   :  { %v7637_v21 = vunpack.c.l.b16 %v7549_v54 }
0x1145   :  { %v7640_v25 = vpack.c.b16 %v7637_v21, %v7636_v60 }
0x1147   :  { %8367 = vmatmul.bf16.vlgmr.msra.gmra.mxu3 %v7640_v25 }
0x1148   :  { %v7499_v7 = vpop.f32.mrf.mxu2 }
0x1149   :  { %v7550_v26 = vpack.c.bf16 %v7499_v7, %v7499_v7 }
0x114a   :  { %v8292_v23 = vpop.f32.mrf.mxu3 }
0x114b   :  { %v8293_v27 = vadd.f32 %v8292_v23, %v8274_v20  ;;  %v7638_v53 = vunpack.c.l.b16 %v7550_v26 }
0x1150   :  { %v7501_v57 = vpop.f32.mrf.mxu2 }
0x1151   :  { %v7551_v17 = vpack.c.bf16 %v7501_v57, %v7501_v57 }
0x1152   :  { %v8294_v6 = vpop.f32.mrf.mxu3 }
0x1153   :  { %v7639_v8 = vunpack.c.l.b16 %v7551_v17  ;;  %v8295_v47 = vadd.f32 %v8294_v6, %v8276_v1 }
0x1155   :  { %v7641_v39 = vpack.c.b16 %v7639_v8, %v7638_v53 }
0x1157   :  { %8372 = vmatmul.bf16.gmra.mxu3 %v7641_v39 }
0x1158   :  { %v7504_v37 = vpop.f32.mrf.mxu2 }
0x1159   :  { %v7552_v61 = vpack.c.bf16 %v7504_v37, %v7504_v37 }
0x115a   :  { %v8297_v2 = vpop.f32.mrf.mxu3 }
0x115b   :  { %v12891_v22 = vadd.f32 %v8297_v2, %v8279_v63  ;;  %v7648_v19 = vunpack.c.l.b16 %v7552_v61 }
0x1160   :  { %v7506_v59 = vpop.f32.mrf.mxu2 }
0x1161   :  { %v7553_v38 = vpack.c.bf16 %v7506_v59, %v7506_v59 }
0x1162   :  { %v8299_v20 = vpop.f32.mrf.mxu3 }
0x1163   :  { %v7649_v9 = vunpack.c.l.b16 %v7553_v38  ;;  %v12893_v28 = vadd.f32 %v8299_v20, %v8281_v49 }
0x1164   :  { %v8311_v41 = vpop.f32.mrf.mxu1 }
0x1165   :  { %v7652_v1 = vpack.c.b16 %v7649_v9, %v7648_v19  ;;  %v8312_v34 = vadd.f32 %v8311_v41, %v8293_v27 }
0x1167   :  { %8386 = vmatmul.bf16.vlgmr.msrb.gmra.mxu1 %v7652_v1 }
0x1168   :  { %v7509_v11 = vpop.f32.mrf.mxu2 }
0x1169   :  { %v7554_v4 = vpack.c.bf16 %v7509_v11, %v7509_v11 }
0x116b   :  { %v7650_v3 = vunpack.c.l.b16 %v7554_v4 }
0x116c   :  { %v8313_v16 = vpop.f32.mrf.mxu1 }
0x116d   :  { %v8314_v56 = vadd.f32 %v8313_v16, %v8295_v47 }
0x1170   :  { %v7511_v33 = vpop.f32.mrf.mxu2 }
0x1171   :  { %v7555_v18 = vpack.c.bf16 %v7511_v33, %v7511_v33 }
0x1173   :  { %v7651_v50 = vunpack.c.l.b16 %v7555_v18 }
0x1174   :  { %v8316_v52 = vpop.f32.mrf.mxu1 }
0x1175   :  { %v7653_v14 = vpack.c.b16 %v7651_v50, %v7650_v3  ;;  %v8317_v20 = vadd.f32 %v8316_v52, %v12891_v22 }
0x1177   :  { %8391 = vmatmul.bf16.gmra.mxu1 %v7653_v14 }
0x1178   :  { %v7514_v63 = vpop.f32.mrf.mxu2 }
0x1179   :  { %v7556_v32 = vpack.c.bf16 %v7514_v63, %v7514_v63 }
0x117b   :  { %v7660_v36 = vunpack.c.l.b16 %v7556_v32 }
0x117c   :  { %v8318_v26 = vpop.f32.mrf.mxu1 }
0x117d   :  { %v8319_v3 = vadd.f32 %v8318_v26, %v12893_v28 }
0x1180   :  { %v7516_v5 = vpop.f32.mrf.mxu2 }
0x1181   :  { %v7557_v44 = vpack.c.bf16 %v7516_v5, %v7516_v5 }
0x1183   :  { %v7661_v13 = vunpack.c.l.b16 %v7557_v44 }
0x1185   :  { %v7664_v49 = vpack.c.b16 %v7661_v13, %v7660_v36 }
0x1187   :  { %8405 = vmatmul.bf16.vlgmr.msrb.gmra.mxu3 %v7664_v49 }
0x1188   :  { %v7519_v12 = vpop.f32.mrf.mxu2 }
0x1189   :  { %v7558_v54 = vpack.c.bf16 %v7519_v12, %v7519_v12 }
0x118a   :  { %v8330_v43 = vpop.f32.mrf.mxu3 }
0x118b   :  { %v8331_v42 = vadd.f32 %v8330_v43, %v8312_v34  ;;  %v7662_v25 = vunpack.c.l.b16 %v7558_v54 }
0x1190   :  { %v7521_v60 = vpop.f32.mrf.mxu2 }
0x1191   :  { %v7559_v21 = vpack.c.bf16 %v7521_v60, %v7521_v60 }
0x1192   :  { %v8332_v46 = vpop.f32.mrf.mxu3 }
0x1193   :  { %v7663_v7 = vunpack.c.l.b16 %v7559_v21  ;;  %v8333_v24 = vadd.f32 %v8332_v46, %v8314_v56 }
0x1195   :  { %v7665_v23 = vpack.c.b16 %v7663_v7, %v7662_v25 }
0x1197   :  { %8410 = vmatmul.bf16.gmra.mxu3 %v7665_v23 }
0x119a   :  { %v8335_v27 = vpop.f32.mrf.mxu3 }
0x119b   :  { %v8336_v41 = vadd.f32 %v8335_v27, %v8317_v20 }
0x11a2   :  { %v8337_v55 = vpop.f32.mrf.mxu3 }
0x11a3   :  { %v8338_v14 = vadd.f32 %v8337_v55, %v8319_v3 }
0x11a4   :  { %v8349_v57 = vpop.f32.mrf.mxu1 }
0x11a5   :  { %v8350_v40 = vadd.f32 %v8349_v57, %v8331_v42 }
0x11ac   :  { %v8351_v6 = vpop.f32.mrf.mxu1 }
0x11ad   :  { %v8352_v59 = vadd.f32 %v8351_v6, %v8333_v24 }
0x11b4   :  { %v8354_v8 = vpop.f32.mrf.mxu1 }
0x11b5   :  { %v8355_v11 = vadd.f32 %v8354_v8, %v8336_v41 }
0x11bc   :  { %v8356_v0 = vpop.f32.mrf.mxu1 }
0x11bd   :  { %v8357_v32 = vadd.f32 %v8356_v0, %v8338_v14 }
0x11ca   :  { %v8368_v17 = vpop.f32.mrf.mxu3 }
0x11cb   :  { %v8369_v61 = vadd.f32 %v8368_v17, %v8350_v40 }
0x11d2   :  { %v8370_v53 = vpop.f32.mrf.mxu3 }
0x11d3   :  { %v8371_v58 = vadd.f32 %v8370_v53, %v8352_v59  ;;  %v8416_v59 = vld [vmem:[#allocation10 + $0x6] sm:$0x1] }
0x11da   :  { %v8373_v47 = vpop.f32.mrf.mxu3 }
0x11db   :  { %v8374_v33 = vadd.f32 %v8373_v47, %v8355_v11 }
0x11e2   :  { %v8375_v37 = vpop.f32.mrf.mxu3 }
0x11e3   :  { %v8376_v13 = vadd.f32 %v8375_v37, %v8357_v32 }
0x11e4   :  { %v8387_v39 = vpop.f32.mrf.mxu1 }
0x11e5   :  { %v8388_v38 = vadd.f32 %v8387_v39, %v8369_v61 }
0x11ec   :  { %v8389_v2 = vpop.f32.mrf.mxu1 }
0x11ed   :  { %v8390_v9 = vadd.f32 %v8389_v2, %v8371_v58 }
0x11f4   :  { %v8392_v34 = vpop.f32.mrf.mxu1 }
0x11f5   :  { %v8393_v50 = vadd.f32 %v8392_v34, %v8374_v33 }
0x11fc   :  { %v8394_v36 = vpop.f32.mrf.mxu1 }
0x11fd   :  { %v8395_v12 = vadd.f32 %v8394_v36, %v8376_v13 }
0x120a   :  { %v8406_v31 = vpop.f32.mrf.mxu3 }
0x120b   :  { %v12896_v19 = vadd.f32 %v8406_v31, %v8388_v38 }
0x120d   :  { %v8427_v16 = vmul.f32 %v12896_v19, %v12896_v19 }
0x1212   :  { %v8408_v10 = vpop.f32.mrf.mxu3 }
0x1213   :  { %v8409_v1 = vadd.f32 %v8408_v10, %v8390_v9  ;;  %v8417_v9 = vld [vmem:[#allocation11 + $0x6] sm:$0x1] }
0x1215   :  { %v8418_v56 = vadd.f32 %v8409_v1, %v12896_v19  ;;  %v8428_v4 = vmul.f32 %v8409_v1, %v8409_v1 }
0x1217   :  { %v8431_v18 = vadd.f32 %v8428_v4, %v8427_v16 }
0x121a   :  { %v8411_v22 = vpop.f32.mrf.mxu3 }
0x121b   :  { %v8412_v63 = vadd.f32 %v8411_v22, %v8393_v50 }
0x121d   :  { %v8419_v5 = vadd.f32 %v8418_v56, %v8412_v63  ;;  %v8429_v44 = vmul.f32 %v8412_v63, %v8412_v63 }
0x121f   :  { %v8432_v49 = vadd.f32 %v8431_v18, %v8429_v44 }
0x1222   :  { %v8413_v43 = vpop.f32.mrf.mxu3 }
0x1223   :  { %v8414_v42 = vadd.f32 %v8413_v43, %v8395_v12 }
0x1225   :  { %v8420_v54 = vadd.f32 %v8419_v5, %v8414_v42  ;;  %v8430_v60 = vmul.f32 %v8414_v42, %v8414_v42 }
0x1227   :  { %v8421_v21 = vrot.slane %v8420_v54, 4  ;;  %v8433_v46 = vadd.f32 %v8432_v49, %v8430_v60 }
0x1229   :  { %v8422_v25 = vadd.f32 %v8421_v21, %v8420_v54  ;;  %v8434_v7 = vrot.slane %v8433_v46, 4 }
0x122b   :  { %v8423_v28 = vrot.slane %v8422_v25, 2  ;;  %v8435_v24 = vadd.f32 %v8434_v7, %v8433_v46 }
0x122d   :  { %v8424_v23 = vadd.f32 %v8423_v28, %v8422_v25  ;;  %v8436_v52 = vrot.slane %v8435_v24, 2 }
0x122f   :  { %v8425_v27 = vrot.slane %v8424_v23, 1  ;;  %v8437_v26 = vadd.f32 %v8436_v52, %v8435_v24 }
0x1231   :  { %v8426_v57 = vadd.f32 %v8425_v27, %v8424_v23  ;;  %v8438_v55 = vrot.slane %v8437_v26, 1 }
0x1233   :  { %v8439_v17 = vadd.f32 %v8438_v55, %v8437_v26  ;;  %v8440_v6 = vmul.f32 0.03125, %v8426_v57 }
0x1235   :  { %v8441_v53 = vmul.f32 0.03125, %v8439_v17  ;;  %v8442_v8 = vmul.f32 %v8440_v6, %v8440_v6 }
0x1237   :  { %v8443_v47 = vsub.f32 %v8441_v53, %v8442_v8 }
0x1239   :  { %v8444_v0 = vmax.f32 %v8443_v47, 0.0 }
0x123b   :  { %v8445_v39 = vadd.f32 1e-05, %v8444_v0 }
0x123d   :  { %11680 = vrsqrt.f32 %v8445_v39  ;;  %vm8452_vm12 = vweird.f32 %v8445_v39 }
0x1243   :  { %v11681_v37 = vpop.eup %11680 }
0x1244   :  { %v8447_v31 = vmul.f32 %v11681_v37, %v8445_v39  ;;  %vm8453_vm8 = vweird.f32 %v11681_v37 }
0x1245   :  { %vm8454_vm13 = vmor %vm8452_vm12, %vm8453_vm8 }
0x1246   :  { %v8448_v2 = vmul.f32 %v11681_v37, %v8447_v31 }
0x1248   :  { %v8449_v40 = vmul.f32 0.5, %v8448_v2 }
0x124a   :  { %v8450_v61 = vsub.f32 1.5, %v8449_v40 }
0x124c   :  { %v8451_v58 = vmul.f32 %v11681_v37, %v8450_v61 }
0x124e   :  { %v8455_v38 = vsel %vm8454_vm13, %v11681_v37, %v8451_v58 }
0x124f   :  { %v8456_v20 = vmul.f32 %v8455_v38, %v8416_v59 }
0x1251   :  { %v8457_v10 = vmul.f32 %v8456_v20, %v8440_v6  ;;  %v8459_v41 = vperm.slane %v8456_v20, 0 }
0x1253   :  { %v8458_v34 = vsub.f32 %v8417_v9, %v8457_v10  ;;  %v8463_v11 = vmul.f32 %v8459_v41, %v8414_v42  ;;  %v8460_v16 = vmul.f32 %v8459_v41, %v12896_v19  ;;  %v8461_v56 = vmul.f32 %v8459_v41, %v8409_v1 }
0x1254   :  { %v8462_v4 = vmul.f32 %v8459_v41, %v8412_v63 }
0x1255   :  { %v8464_v33 = vperm.slane %v8458_v34, 0 }
0x1257   :  { %v8468_v18 = vadd.f32 %v8464_v33, %v8463_v11  ;;  %v8465_v3 = vadd.f32 %v8464_v33, %v8460_v16  ;;  %v8466_v50 = vadd.f32 %v8464_v33, %v8461_v56  ;;  %v8467_v22 = vadd.f32 %v8464_v33, %v8462_v4 }
0x1259   :  { %v8472_v14 = vadd.f32 %v8468_v18, %v6372_v48  ;;  %v8469_v32 = vadd.f32 %v8465_v3, %v6369_v62  ;;  %v8470_v5 = vadd.f32 %v8466_v50, %v6370_v30  ;;  %v8471_v44 = vadd.f32 %v8467_v22, %v6371_v29 }
0x125b   :  { %v8476_v19 = vmax.f32 %v8472_v14, 0.0  ;;  %v8473_v1 = vmax.f32 %v8469_v32, 0.0  ;;  %v8474_v63 = vmax.f32 %v8470_v5, 0.0  ;;  %v8475_v51 = vmax.f32 %v8471_v44, 0.0 }
0x125d   :  { %8480 = vst [vmem:[#allocation13 + $0x18] sm:$0xff] %v8476_v19 }
0x125e   :  { %8477 = vst [vmem:[#allocation13] sm:$0xff] %v8473_v1 }
0x125f   :  { %8478 = vst [vmem:[#allocation13 + $0x8] sm:$0xff] %v8474_v63 }
0x1260   :  { %8479 = vst [vmem:[#allocation13 + $0x10] sm:$0xff] %v8475_v51 }
0x1261   :  { %8493 = dma.vmem_to_hbm [thread:$0]  %s8486_s9, 512, %s8488_s12, [#allocation4], %s11919_s23, %s11919_s23, %s11920_s24  }
0x1262   :  { %11912 = dma.done.wait [#allocation4], 512  }
0x1263   :  { %11913 = vsyncadd [#allocation4], 4294966784 }
0x1264   :  { %8498 = vsyncpa [#allocation3], 1 }
0x1265   :  { %8499 = vsyncpa [#allocation6], 1 }
0x1266   :  { %8500 = vsyncpa [#allocation9], 1 }
0x1267   :  { %8501 = vsyncpa [#allocation12], 1 }
0x1268   :  { %8502 = vsyncpa [#allocation4], 1 }

</bundles_post_ra>
